<compile_context>
chip_gen: v5e
topology: v5e:2x2
jax: 0.10.0
libtpu: 0.0.40
codegen_flags: <defaults>
</compile_context>

<pallas_src>
import functools

import jax
import jax.numpy as jnp
from jax import lax
from jax.experimental import pallas as pl
from jax.experimental.pallas import tpu as pltpu

EPS = 1e-5
CPAD = 128        # lane-dense output slab width (multiple of 128)
VMEM_LIMIT = 32 * 1024 * 1024


def _ceil8(v):
    return (v + 7) // 8 * 8


# --------------------------------------------------------------------------- #
# Pallas kernels
# --------------------------------------------------------------------------- #

def _conv1_res_stats_kernel(x_ref, w1_ref, wc_ref, msk_ref,
                            c1_ref, res_ref,
                            s1_ref, q1_ref, sr_ref, qr_ref,
                            *, wp, rout, front, rin2):
    """Pass A: conv1 (9 shifted matmuls) + residual 1x1 conv + BN stat accumulation.

    conv1 is stored directly into a zero-padded flat layout (rows [front, front+rout)),
    so pass C can re-window it with no extra HBM copy.
    """
    n = pl.program_id(0)

    @pl.when(n == 0)
    def _init():                                  # accumulator init (P3 pattern)
        s1_ref[...] = jnp.zeros_like(s1_ref)
        q1_ref[...] = jnp.zeros_like(q1_ref)
        sr_ref[...] = jnp.zeros_like(sr_ref)
        qr_ref[...] = jnp.zeros_like(qr_ref)

    acc = None
    for k in range(9):                            # 9 shifted (rout, Cin)x(Cin, CPAD) matmuls
        ky, kx = divmod(k, 3)
        start = ky * wp + kx
        win = x_ref[0, pl.ds(start, rout), :].astype(jnp.bfloat16)
        d = jnp.dot(win, w1_ref[k], preferred_element_type=jnp.float32)
        acc = d if acc is None else acc + d

    # zero halo rows (top/bottom SAME-padding for conv2) + aligned payload store
    tail = rin2 - front - rout
    c1_ref[0, pl.ds(0, front), :] = jnp.zeros((front, CPAD), jnp.float32)
    c1_ref[0, pl.ds(front, rout), :] = acc
    c1_ref[0, pl.ds(front + rout, tail), :] = jnp.zeros((tail, CPAD), jnp.float32)

    ctr = x_ref[0, pl.ds(wp + 1, rout), :].astype(jnp.bfloat16)   # center tap = original x
    r = jnp.dot(ctr, wc_ref[...], preferred_element_type=jnp.float32)
    res_ref[0] = r                                # pre-BN residual (1x1 conv, no bias)

    m = msk_ref[pl.ds(front, rout), :]            # 0/1 mask for the valid spatial rows
    am = acc * m
    rm = r * m
    s1_ref[...] += jnp.sum(am, axis=0, keepdims=True)
    q1_ref[...] += jnp.sum(am * acc, axis=0, keepdims=True)
    sr_ref[...] += jnp.sum(rm, axis=0, keepdims=True)
    qr_ref[...] += jnp.sum(rm * r, axis=0, keepdims=True)


def _bn_relu_conv2_stats_kernel(c1_ref, w2_ref, msk_ref, s1_ref, b1_ref,
                                c2_ref, s2_ref, q2_ref, *, wp, rout, front):
    """Pass C (fused): y1 = relu(BN1(conv1)) applied per window, conv2 via 9 shifted
    matmuls, + BN2 stat accumulation.  BN1 apply is a per-channel FMA (cheap VPU
    work under the MXU), so re-applying it per window beats an HBM round trip."""
    n = pl.program_id(0)

    @pl.when(n == 0)
    def _init():
        s2_ref[...] = jnp.zeros_like(s2_ref)
        q2_ref[...] = jnp.zeros_like(q2_ref)

    s1 = s1_ref[...]
    b1 = b1_ref[...]
    off = front - (wp + 1)                        # static alignment offset (>= 0)

    acc = None
    for k in range(9):
        ky, kx = divmod(k, 3)
        start = ky * wp + kx + off
        c = c1_ref[0, pl.ds(start, rout), :]
        m = msk_ref[pl.ds(start, rout), :]        # zeros pad rows + wrap columns
        y = (jnp.maximum(c * s1 + b1, 0.0) * m).astype(jnp.bfloat16)
        d = jnp.dot(y, w2_ref[k], preferred_element_type=jnp.float32)
        acc = d if acc is None else acc + d
    c2_ref[0] = acc

    mo = msk_ref[pl.ds(front, rout), :]
    am = acc * mo
    s2_ref[...] += jnp.sum(am, axis=0, keepdims=True)
    q2_ref[...] += jnp.sum(am * acc, axis=0, keepdims=True)


def _final_apply_kernel(c2_ref, res_ref, s2_ref, b2_ref, sc_ref, bc_ref, o_ref):
    """Pass D: out = relu(BN2(conv2)) + BNc(residual)."""
    y = jnp.maximum(c2_ref[0] * s2_ref[...] + b2_ref[...], 0.0)
    r = res_ref[0] * sc_ref[...] + bc_ref[...]
    o_ref[0] = y + r


# --------------------------------------------------------------------------- #
# helpers
# --------------------------------------------------------------------------- #

def _pad_cols(a, width):
    return jnp.pad(a, [(0, 0)] * (a.ndim - 1) + [(0, width - a.shape[-1])])


def _scale_shift(ssum, ssq, gamma, beta, count):
    """Fold batch mean/var into a per-channel FMA: y = x*scale + shift."""
    mean = ssum / count
    var = jnp.maximum(ssq / count - mean * mean, 0.0)
    scale = gamma * lax.rsqrt(var + EPS)
    return scale, beta - mean * scale


def _row_tile(rout, cap=2048):
    """Largest multiple-of-8 divisor of rout (<= cap) for the elementwise pass."""
    cands = [t for t in range(8, min(rout, cap) + 1, 8) if rout % t == 0]
    return max(cands) if cands else rout


# --------------------------------------------------------------------------- #
# forward
# --------------------------------------------------------------------------- #

@jax.jit
def double_conv_forward(params, x_nchw):
    x = jnp.transpose(x_nchw, (0, 2, 3, 1)).astype(jnp.float32)     # NHWC
    n, h, w, cin = x.shape
    cout = params["g1"].shape[0]
    assert cin != cout, "residual channel_conv branch assumed (in_ch != out_ch)"

    wp = w + 2                                   # padded width
    hp = h + 2
    rout = h * wp                                # flat rows per image (incl. 2 wrap cols/row)
    rin = _ceil8(hp * wp + 2)                    # flat padded input rows (+ window slack)
    front = _ceil8(wp + 1)                       # aligned start of conv1 payload in c1pad
    rin2 = _ceil8(front + rout + wp + 1)         # padded conv1 buffer rows

    # ---- wrapper-side prep (cheap XLA; NO 9x im2col materialization) ----
    xpad = jnp.pad(x, ((0, 0), (1, 1), (1, 1), (0, 0)))
    xflat = xpad.reshape(n, hp * wp, cin)
    xflat = jnp.pad(xflat, ((0, 0), (0, rin - hp * wp), (0, 0)))

    # validity mask in padded-buffer coordinates: 1 for real pixels of y1/conv1,
    # 0 for halo rows and the 2 wrap-around columns of each flattened image row.
    idx = jnp.arange(rin2)
    maskbuf = ((idx >= front) & (idx < front + rout)
               & (((idx - front) % wp) < w)).astype(jnp.float32).reshape(rin2, 1)
    count = jnp.float32(n * h * w)

    # bf16 weights, padded to a lane-dense CPAD-wide channel slab
    w1 = _pad_cols(params["w1"].reshape(9, cin, cout), CPAD).astype(jnp.bfloat16)
    wc = _pad_cols(params["wc"], CPAD).astype(jnp.bfloat16)
    w2 = jnp.pad(params["w2"].reshape(9, cout, cout),
                 ((0, 0), (0, CPAD - cout), (0, CPAD - cout))).astype(jnp.bfloat16)
    g1, be1 = _pad_cols(params["g1"][None], CPAD), _pad_cols(params["be1"][None], CPAD)
    g2, be2 = _pad_cols(params["g2"][None], CPAD), _pad_cols(params["be2"][None], CPAD)
    gc, bec = _pad_cols(params["gc"][None], CPAD), _pad_cols(params["bec"][None], CPAD)

    stat_shape = jax.ShapeDtypeStruct((1, CPAD), jnp.float32)
    stat_spec = pl.BlockSpec((1, CPAD), lambda i: (0, 0))           # grid-resident accumulator
    vec_spec = pl.BlockSpec((1, CPAD), lambda i: (0, 0))

    # -------- pass A: conv1 (into padded layout) + residual 1x1 + stats -----
    c1p, res, s1s, s1q, srs, srq = pl.pallas_call(
        functools.partial(_conv1_res_stats_kernel,
                          wp=wp, rout=rout, front=front, rin2=rin2),
        grid=(n,),
        in_specs=[
            pl.BlockSpec((1, rin, cin), lambda i: (i, 0, 0)),
            pl.BlockSpec((9, cin, CPAD), lambda i: (0, 0, 0)),
            pl.BlockSpec((cin, CPAD), lambda i: (0, 0)),
            pl.BlockSpec((rin2, 1), lambda i: (0, 0)),
        ],
        out_specs=(
            pl.BlockSpec((1, rin2, CPAD), lambda i: (i, 0, 0)),
            pl.BlockSpec((1, rout, CPAD), lambda i: (i, 0, 0)),
            stat_spec, stat_spec, stat_spec, stat_spec,
        ),
        out_shape=(
            jax.ShapeDtypeStruct((n, rin2, CPAD), jnp.float32),
            jax.ShapeDtypeStruct((n, rout, CPAD), jnp.float32),
            stat_shape, stat_shape, stat_shape, stat_shape,
        ),
        compiler_params=pltpu.CompilerParams(
            dimension_semantics=("arbitrary",), vmem_limit_bytes=VMEM_LIMIT),
    )(xflat, w1, wc, maskbuf)

    sc1, sh1 = _scale_shift(s1s, s1q, g1, be1, count)
    scc, shc = _scale_shift(srs, srq, gc, bec, count)

    # -------- pass C (fused B+C): relu(BN1(conv1)) -> conv2 + stats --------
    c2, s2s, s2q = pl.pallas_call(
        functools.partial(_bn_relu_conv2_stats_kernel, wp=wp, rout=rout, front=front),
        grid=(n,),
        in_specs=[
            pl.BlockSpec((1, rin2, CPAD), lambda i: (i, 0, 0)),
            pl.BlockSpec((9, CPAD, CPAD), lambda i: (0, 0, 0)),
            pl.BlockSpec((rin2, 1), lambda i: (0, 0)),
            vec_spec, vec_spec,
        ],
        out_specs=(
            pl.BlockSpec((1, rout, CPAD), lambda i: (i, 0, 0)),
            stat_spec, stat_spec,
        ),
        out_shape=(
            jax.ShapeDtypeStruct((n, rout, CPAD), jnp.float32),
            stat_shape, stat_shape,
        ),
        compiler_params=pltpu.CompilerParams(
            dimension_semantics=("arbitrary",), vmem_limit_bytes=VMEM_LIMIT),
    )(c1p, w2, maskbuf, sc1, sh1)

    sc2, sh2 = _scale_shift(s2s, s2q, g2, be2, count)

    # -------- pass D: out = relu(BN2(conv2)) + BNc(residual); fully "parallel" -----
    tr = _row_tile(rout)
    gridb = (n, rout // tr)
    out = pl.pallas_call(
        _final_apply_kernel,
        grid=gridb,
        in_specs=[
            pl.BlockSpec((1, tr, CPAD), lambda i, t: (i, t, 0)),
            pl.BlockSpec((1, tr, CPAD), lambda i, t: (i, t, 0)),
            pl.BlockSpec((1, CPAD), lambda i, t: (0, 0)),
            pl.BlockSpec((1, CPAD), lambda i, t: (0, 0)),
            pl.BlockSpec((1, CPAD), lambda i, t: (0, 0)),
            pl.BlockSpec((1, CPAD), lambda i, t: (0, 0)),
        ],
        out_specs=pl.BlockSpec((1, tr, CPAD), lambda i, t: (i, t, 0)),
        out_shape=jax.ShapeDtypeStruct((n, rout, CPAD), jnp.float32),
        compiler_params=pltpu.CompilerParams(
            dimension_semantics=("parallel", "parallel"), vmem_limit_bytes=VMEM_LIMIT),
    )(c2, res, sc2, sh2, scc, shc)

    # drop the wrap-around columns and padded channels, back to NCHW
    out = out.reshape(n, h, wp, CPAD)[:, :, :w, :cout]
    return jnp.transpose(out, (0, 3, 1, 2))


# --------------------------------------------------------------------------- #
# parameters
# --------------------------------------------------------------------------- #

def init_params(key, in_ch, out_ch):
    ks = jax.random.split(key, 11)
    return {
        "w1": 0.1 * jax.random.normal(ks[0], (3, 3, in_ch, out_ch), jnp.float32),   # HWIO
        "b1": 0.1 * jax.random.normal(ks[1], (out_ch,), jnp.float32),
        "g1": 1.0 + 0.1 * jax.random.normal(ks[2], (out_ch,), jnp.float32),
        "be1": 0.1 * jax.random.normal(ks[3], (out_ch,), jnp.float32),
        "w2": 0.1 * jax.random.normal(ks[4], (3, 3, out_ch, out_ch), jnp.float32),
        "b2": 0.1 * jax.random.normal(ks[5], (out_ch,), jnp.float32),
        "g2": 1.0 + 0.1 * jax.random.normal(ks[6], (out_ch,), jnp.float32),
        "be2": 0.1 * jax.random.normal(ks[7], (out_ch,), jnp.float32),
        "wc": 0.1 * jax.random.normal(ks[8], (in_ch, out_ch), jnp.float32),          # 1x1, no bias
        "gc": 1.0 + 0.1 * jax.random.normal(ks[9], (out_ch,), jnp.float32),
        "bec": 0.1 * jax.random.normal(ks[10], (out_ch,), jnp.float32),
    }


# --------------------------------------------------------------------------- #
# pure-JAX reference (f32 convs on bf16-rounded operands, matching kernel quantization)
# --------------------------------------------------------------------------- #

def _bn_train(x, g, b):
    mean = jnp.mean(x, axis=(0, 1, 2), keepdims=True)
    var = jnp.mean((x - mean) ** 2, axis=(0, 1, 2), keepdims=True)
    return (x - mean) * lax.rsqrt(var + EPS) * g.reshape(1, 1, 1, -1) + b.reshape(1, 1, 1, -1)


def double_conv_ref(params, x_nchw):
    bf = lambda a: a.astype(jnp.bfloat16).astype(jnp.float32)
    dn = ("NHWC", "HWIO", "NHWC")
    hiprec = lax.Precision.HIGHEST
    x = jnp.transpose(x_nchw, (0, 2, 3, 1)).astype(jnp.float32)
    xq = bf(x)
    h1 = lax.conv_general_dilated(xq, bf(params["w1"]), (1, 1), "SAME",
                                  dimension_numbers=dn, precision=hiprec)
    h1 = h1 + params["b1"].reshape(1, 1, 1, -1)       # bias is cancelled by training-mode BN
    y1 = jnp.maximum(_bn_train(h1, params["g1"], params["be1"]), 0.0)
    h2 = lax.conv_general_dilated(bf(y1), bf(params["w2"]), (1, 1), "SAME",
                                  dimension_numbers=dn, precision=hiprec)
    h2 = h2 + params["b2"].reshape(1, 1, 1, -1)
    a2 = jnp.maximum(_bn_train(h2, params["g2"], params["be2"]), 0.0)
    wc = bf(params["wc"]).reshape(1, 1, *params["wc"].shape)
    r = lax.conv_general_dilated(xq, wc, (1, 1), "SAME",
                                 dimension_numbers=dn, precision=hiprec)
    r = _bn_train(r, params["gc"], params["bec"])
    return jnp.transpose(a2 + r, (0, 3, 1, 2))


# --------------------------------------------------------------------------- #
# main
# --------------------------------------------------------------------------- #

if __name__ == "__main__":
    key = jax.random.PRNGKey(0)
    kx, kp = jax.random.split(key)

    # inconv(in_ch=4, out_ch=8) on x: (N=2, C=4, H=16, W=16), NCHW like PyTorch
    N, IN_CH, OUT_CH, H, W = 2, 4, 8, 16, 16
    x = jax.random.normal(kx, (N, IN_CH, H, W), jnp.float32)
    params = init_params(kp, IN_CH, OUT_CH)

    out = jax.block_until_ready(double_conv_forward(params, x))
    assert out.shape == (N, OUT_CH, H, W), out.shape

    ref = jax.block_until_ready(double_conv_ref(params, x))
    max_err = float(jnp.max(jnp.abs(out - ref)))
    assert jnp.allclose(out, ref, atol=5e-3, rtol=5e-3), max_err

    print("KERNEL_OK")
</pallas_src>

<mosaic_0001>
module attributes {stable_mosaic.version = 11 : i64} {
  func.func @_conv1_res_stats_kernel(%arg0: i32, %arg1: memref<1x328x4xf32, #tpu.memory_space<vmem>>, %arg2: memref<9x4x128xbf16, #tpu.memory_space<vmem>>, %arg3: memref<4x128xbf16, #tpu.memory_space<vmem>>, %arg4: memref<336x1xf32, #tpu.memory_space<vmem>>, %arg5: memref<1x336x128xf32, #tpu.memory_space<vmem>>, %arg6: memref<1x288x128xf32, #tpu.memory_space<vmem>>, %arg7: memref<1x128xf32, #tpu.memory_space<vmem>>, %arg8: memref<1x128xf32, #tpu.memory_space<vmem>>, %arg9: memref<1x128xf32, #tpu.memory_space<vmem>>, %arg10: memref<1x128xf32, #tpu.memory_space<vmem>>) attributes {dimension_semantics = [#tpu.dimension_semantics<arbitrary>], iteration_bounds = array<i64: 2>, scalar_prefetch = 0 : i64, scratch_operands = 0 : i64, tpu.core_type = #tpu.core_type<tc>, window_params = [{transform_indices = @transform_0, window_bounds = array<i64: 1, 328, 4>}, {pipeline_mode = #tpu.pipeline_mode<synchronous>, transform_indices = @transform_1, window_bounds = array<i64: 9, 4, 128>}, {pipeline_mode = #tpu.pipeline_mode<synchronous>, transform_indices = @transform_2, window_bounds = array<i64: 4, 128>}, {pipeline_mode = #tpu.pipeline_mode<synchronous>, transform_indices = @transform_3, window_bounds = array<i64: 336, 1>}, {transform_indices = @transform_4, window_bounds = array<i64: 1, 336, 128>}, {transform_indices = @transform_5, window_bounds = array<i64: 1, 288, 128>}, {pipeline_mode = #tpu.pipeline_mode<synchronous>, transform_indices = @transform_6, window_bounds = array<i64: 1, 128>}, {pipeline_mode = #tpu.pipeline_mode<synchronous>, transform_indices = @transform_7, window_bounds = array<i64: 1, 128>}, {pipeline_mode = #tpu.pipeline_mode<synchronous>, transform_indices = @transform_8, window_bounds = array<i64: 1, 128>}, {pipeline_mode = #tpu.pipeline_mode<synchronous>, transform_indices = @transform_9, window_bounds = array<i64: 1, 128>}]} {
    %c0_i32 = arith.constant 0 : i32
    %0 = arith.cmpi eq, %arg0, %c0_i32 : i32
    %1 = arith.extui %0 : i1 to i32
    %c0_i32_0 = arith.constant 0 : i32
    %2 = arith.cmpi ne, %1, %c0_i32_0 : i32
    scf.if %2 {
      %cst_88 = arith.constant 0.000000e+00 : f32
      %111 = vector.broadcast %cst_88 : f32 to vector<1x128xf32>
      %c0_89 = arith.constant 0 : index
      %c0_90 = arith.constant 0 : index
      %112 = vector.load %arg7[%c0_89, %c0_90] : memref<1x128xf32, #tpu.memory_space<vmem>>, vector<1x128xf32>
      tpu.vector_store %arg7[%c0_89, %c0_90], %111 {strides = array<i32>} : memref<1x128xf32, #tpu.memory_space<vmem>>, vector<1x128xf32>,
      %cst_91 = arith.constant 0.000000e+00 : f32
      %113 = vector.broadcast %cst_91 : f32 to vector<1x128xf32>
      %c0_92 = arith.constant 0 : index
      %c0_93 = arith.constant 0 : index
      %114 = vector.load %arg8[%c0_92, %c0_93] : memref<1x128xf32, #tpu.memory_space<vmem>>, vector<1x128xf32>
      tpu.vector_store %arg8[%c0_92, %c0_93], %113 {strides = array<i32>} : memref<1x128xf32, #tpu.memory_space<vmem>>, vector<1x128xf32>,
      %cst_94 = arith.constant 0.000000e+00 : f32
      %115 = vector.broadcast %cst_94 : f32 to vector<1x128xf32>
      %c0_95 = arith.constant 0 : index
      %c0_96 = arith.constant 0 : index
      %116 = vector.load %arg9[%c0_95, %c0_96] : memref<1x128xf32, #tpu.memory_space<vmem>>, vector<1x128xf32>
      tpu.vector_store %arg9[%c0_95, %c0_96], %115 {strides = array<i32>} : memref<1x128xf32, #tpu.memory_space<vmem>>, vector<1x128xf32>,
      %cst_97 = arith.constant 0.000000e+00 : f32
      %117 = vector.broadcast %cst_97 : f32 to vector<1x128xf32>
      %c0_98 = arith.constant 0 : index
      %c0_99 = arith.constant 0 : index
      %118 = vector.load %arg10[%c0_98, %c0_99] : memref<1x128xf32, #tpu.memory_space<vmem>>, vector<1x128xf32>
      tpu.vector_store %arg10[%c0_98, %c0_99], %117 {strides = array<i32>} : memref<1x128xf32, #tpu.memory_space<vmem>>, vector<1x128xf32>,
    } else {
    }
    %c0 = arith.constant 0 : index
    %c0_1 = arith.constant 0 : index
    %c0_2 = arith.constant 0 : index
    %3 = vector.load %arg1[%c0, %c0_1, %c0_2] : memref<1x328x4xf32, #tpu.memory_space<vmem>>, vector<1x288x4xf32>
    %4 = vector.shape_cast %3 : vector<1x288x4xf32> to vector<288x4xf32>
    %5 = arith.truncf %4 : vector<288x4xf32> to vector<288x4xbf16>
    %c0_3 = arith.constant 0 : index
    %c0_4 = arith.constant 0 : index
    %c0_5 = arith.constant 0 : index
    %6 = vector.load %arg2[%c0_3, %c0_4, %c0_5] : memref<9x4x128xbf16, #tpu.memory_space<vmem>>, vector<1x4x128xbf16>
    %7 = vector.shape_cast %6 : vector<1x4x128xbf16> to vector<4x128xbf16>
    %cst = arith.constant dense<0.000000e+00> : vector<288x128xf32>
    %8 = tpu.matmul %5, %7, %cst {dimension_numbers = #tpu.dot_dimension_numbers<[1], [0], [0], [1], [0, 0, 1, 1], [], []>} : vector<288x4xbf16>, vector<4x128xbf16>, vector<288x128xf32> -> vector<288x128xf32>
    %c0_6 = arith.constant 0 : index
    %c1 = arith.constant 1 : index
    %c0_7 = arith.constant 0 : index
    %9 = vector.load %arg1[%c0_6, %c1, %c0_7] : memref<1x328x4xf32, #tpu.memory_space<vmem>>, vector<1x288x4xf32>
    %10 = vector.shape_cast %9 : vector<1x288x4xf32> to vector<288x4xf32>
    %11 = arith.truncf %10 : vector<288x4xf32> to vector<288x4xbf16>
    %c1_8 = arith.constant 1 : index
    %c0_9 = arith.constant 0 : index
    %c0_10 = arith.constant 0 : index
    %12 = vector.load %arg2[%c1_8, %c0_9, %c0_10] : memref<9x4x128xbf16, #tpu.memory_space<vmem>>, vector<1x4x128xbf16>
    %13 = vector.shape_cast %12 : vector<1x4x128xbf16> to vector<4x128xbf16>
    %cst_11 = arith.constant dense<0.000000e+00> : vector<288x128xf32>
    %14 = tpu.matmul %11, %13, %cst_11 {dimension_numbers = #tpu.dot_dimension_numbers<[1], [0], [0], [1], [0, 0, 1, 1], [], []>} : vector<288x4xbf16>, vector<4x128xbf16>, vector<288x128xf32> -> vector<288x128xf32>
    %15 = arith.addf %8, %14 : vector<288x128xf32>
    %c0_12 = arith.constant 0 : index
    %c2 = arith.constant 2 : index
    %c0_13 = arith.constant 0 : index
    %16 = vector.load %arg1[%c0_12, %c2, %c0_13] : memref<1x328x4xf32, #tpu.memory_space<vmem>>, vector<1x288x4xf32>
    %17 = vector.shape_cast %16 : vector<1x288x4xf32> to vector<288x4xf32>
    %18 = arith.truncf %17 : vector<288x4xf32> to vector<288x4xbf16>
    %c2_14 = arith.constant 2 : index
    %c0_15 = arith.constant 0 : index
    %c0_16 = arith.constant 0 : index
    %19 = vector.load %arg2[%c2_14, %c0_15, %c0_16] : memref<9x4x128xbf16, #tpu.memory_space<vmem>>, vector<1x4x128xbf16>
    %20 = vector.shape_cast %19 : vector<1x4x128xbf16> to vector<4x128xbf16>
    %cst_17 = arith.constant dense<0.000000e+00> : vector<288x128xf32>
    %21 = tpu.matmul %18, %20, %cst_17 {dimension_numbers = #tpu.dot_dimension_numbers<[1], [0], [0], [1], [0, 0, 1, 1], [], []>} : vector<288x4xbf16>, vector<4x128xbf16>, vector<288x128xf32> -> vector<288x128xf32>
    %22 = arith.addf %15, %21 : vector<288x128xf32>
    %c0_18 = arith.constant 0 : index
    %c18 = arith.constant 18 : index
    %c0_19 = arith.constant 0 : index
    %23 = vector.load %arg1[%c0_18, %c18, %c0_19] : memref<1x328x4xf32, #tpu.memory_space<vmem>>, vector<1x288x4xf32>
    %24 = vector.shape_cast %23 : vector<1x288x4xf32> to vector<288x4xf32>
    %25 = arith.truncf %24 : vector<288x4xf32> to vector<288x4xbf16>
    %c3 = arith.constant 3 : index
    %c0_20 = arith.constant 0 : index
    %c0_21 = arith.constant 0 : index
    %26 = vector.load %arg2[%c3, %c0_20, %c0_21] : memref<9x4x128xbf16, #tpu.memory_space<vmem>>, vector<1x4x128xbf16>
    %27 = vector.shape_cast %26 : vector<1x4x128xbf16> to vector<4x128xbf16>
    %cst_22 = arith.constant dense<0.000000e+00> : vector<288x128xf32>
    %28 = tpu.matmul %25, %27, %cst_22 {dimension_numbers = #tpu.dot_dimension_numbers<[1], [0], [0], [1], [0, 0, 1, 1], [], []>} : vector<288x4xbf16>, vector<4x128xbf16>, vector<288x128xf32> -> vector<288x128xf32>
    %29 = arith.addf %22, %28 : vector<288x128xf32>
    %c0_23 = arith.constant 0 : index
    %c19 = arith.constant 19 : index
    %c0_24 = arith.constant 0 : index
    %30 = vector.load %arg1[%c0_23, %c19, %c0_24] : memref<1x328x4xf32, #tpu.memory_space<vmem>>, vector<1x288x4xf32>
    %31 = vector.shape_cast %30 : vector<1x288x4xf32> to vector<288x4xf32>
    %32 = arith.truncf %31 : vector<288x4xf32> to vector<288x4xbf16>
    %c4 = arith.constant 4 : index
    %c0_25 = arith.constant 0 : index
    %c0_26 = arith.constant 0 : index
    %33 = vector.load %arg2[%c4, %c0_25, %c0_26] : memref<9x4x128xbf16, #tpu.memory_space<vmem>>, vector<1x4x128xbf16>
    %34 = vector.shape_cast %33 : vector<1x4x128xbf16> to vector<4x128xbf16>
    %cst_27 = arith.constant dense<0.000000e+00> : vector<288x128xf32>
    %35 = tpu.matmul %32, %34, %cst_27 {dimension_numbers = #tpu.dot_dimension_numbers<[1], [0], [0], [1], [0, 0, 1, 1], [], []>} : vector<288x4xbf16>, vector<4x128xbf16>, vector<288x128xf32> -> vector<288x128xf32>
    %36 = arith.addf %29, %35 : vector<288x128xf32>
    %c0_28 = arith.constant 0 : index
    %c20 = arith.constant 20 : index
    %c0_29 = arith.constant 0 : index
    %37 = vector.load %arg1[%c0_28, %c20, %c0_29] : memref<1x328x4xf32, #tpu.memory_space<vmem>>, vector<1x288x4xf32>
    %38 = vector.shape_cast %37 : vector<1x288x4xf32> to vector<288x4xf32>
    %39 = arith.truncf %38 : vector<288x4xf32> to vector<288x4xbf16>
    %c5 = arith.constant 5 : index
    %c0_30 = arith.constant 0 : index
    %c0_31 = arith.constant 0 : index
    %40 = vector.load %arg2[%c5, %c0_30, %c0_31] : memref<9x4x128xbf16, #tpu.memory_space<vmem>>, vector<1x4x128xbf16>
    %41 = vector.shape_cast %40 : vector<1x4x128xbf16> to vector<4x128xbf16>
    %cst_32 = arith.constant dense<0.000000e+00> : vector<288x128xf32>
    %42 = tpu.matmul %39, %41, %cst_32 {dimension_numbers = #tpu.dot_dimension_numbers<[1], [0], [0], [1], [0, 0, 1, 1], [], []>} : vector<288x4xbf16>, vector<4x128xbf16>, vector<288x128xf32> -> vector<288x128xf32>
    %43 = arith.addf %36, %42 : vector<288x128xf32>
    %c0_33 = arith.constant 0 : index
    %c36 = arith.constant 36 : index
    %c0_34 = arith.constant 0 : index
    %44 = vector.load %arg1[%c0_33, %c36, %c0_34] : memref<1x328x4xf32, #tpu.memory_space<vmem>>, vector<1x288x4xf32>
    %45 = vector.shape_cast %44 : vector<1x288x4xf32> to vector<288x4xf32>
    %46 = arith.truncf %45 : vector<288x4xf32> to vector<288x4xbf16>
    %c6 = arith.constant 6 : index
    %c0_35 = arith.constant 0 : index
    %c0_36 = arith.constant 0 : index
    %47 = vector.load %arg2[%c6, %c0_35, %c0_36] : memref<9x4x128xbf16, #tpu.memory_space<vmem>>, vector<1x4x128xbf16>
    %48 = vector.shape_cast %47 : vector<1x4x128xbf16> to vector<4x128xbf16>
    %cst_37 = arith.constant dense<0.000000e+00> : vector<288x128xf32>
    %49 = tpu.matmul %46, %48, %cst_37 {dimension_numbers = #tpu.dot_dimension_numbers<[1], [0], [0], [1], [0, 0, 1, 1], [], []>} : vector<288x4xbf16>, vector<4x128xbf16>, vector<288x128xf32> -> vector<288x128xf32>
    %50 = arith.addf %43, %49 : vector<288x128xf32>
    %c0_38 = arith.constant 0 : index
    %c37 = arith.constant 37 : index
    %c0_39 = arith.constant 0 : index
    %51 = vector.load %arg1[%c0_38, %c37, %c0_39] : memref<1x328x4xf32, #tpu.memory_space<vmem>>, vector<1x288x4xf32>
    %52 = vector.shape_cast %51 : vector<1x288x4xf32> to vector<288x4xf32>
    %53 = arith.truncf %52 : vector<288x4xf32> to vector<288x4xbf16>
    %c7 = arith.constant 7 : index
    %c0_40 = arith.constant 0 : index
    %c0_41 = arith.constant 0 : index
    %54 = vector.load %arg2[%c7, %c0_40, %c0_41] : memref<9x4x128xbf16, #tpu.memory_space<vmem>>, vector<1x4x128xbf16>
    %55 = vector.shape_cast %54 : vector<1x4x128xbf16> to vector<4x128xbf16>
    %cst_42 = arith.constant dense<0.000000e+00> : vector<288x128xf32>
    %56 = tpu.matmul %53, %55, %cst_42 {dimension_numbers = #tpu.dot_dimension_numbers<[1], [0], [0], [1], [0, 0, 1, 1], [], []>} : vector<288x4xbf16>, vector<4x128xbf16>, vector<288x128xf32> -> vector<288x128xf32>
    %57 = arith.addf %50, %56 : vector<288x128xf32>
    %c0_43 = arith.constant 0 : index
    %c38 = arith.constant 38 : index
    %c0_44 = arith.constant 0 : index
    %58 = vector.load %arg1[%c0_43, %c38, %c0_44] : memref<1x328x4xf32, #tpu.memory_space<vmem>>, vector<1x288x4xf32>
    %59 = vector.shape_cast %58 : vector<1x288x4xf32> to vector<288x4xf32>
    %60 = arith.truncf %59 : vector<288x4xf32> to vector<288x4xbf16>
    %c8 = arith.constant 8 : index
    %c0_45 = arith.constant 0 : index
    %c0_46 = arith.constant 0 : index
    %61 = vector.load %arg2[%c8, %c0_45, %c0_46] : memref<9x4x128xbf16, #tpu.memory_space<vmem>>, vector<1x4x128xbf16>
    %62 = vector.shape_cast %61 : vector<1x4x128xbf16> to vector<4x128xbf16>
    %cst_47 = arith.constant dense<0.000000e+00> : vector<288x128xf32>
    %63 = tpu.matmul %60, %62, %cst_47 {dimension_numbers = #tpu.dot_dimension_numbers<[1], [0], [0], [1], [0, 0, 1, 1], [], []>} : vector<288x4xbf16>, vector<4x128xbf16>, vector<288x128xf32> -> vector<288x128xf32>
    %64 = arith.addf %57, %63 : vector<288x128xf32>
    %cst_48 = arith.constant 0.000000e+00 : f32
    %65 = vector.broadcast %cst_48 : f32 to vector<24x128xf32>
    %c0_49 = arith.constant 0 : index
    %c0_50 = arith.constant 0 : index
    %c0_51 = arith.constant 0 : index
    %66 = vector.load %arg5[%c0_49, %c0_50, %c0_51] : memref<1x336x128xf32, #tpu.memory_space<vmem>>, vector<1x24x128xf32>
    %67 = vector.shape_cast %66 : vector<1x24x128xf32> to vector<24x128xf32>
    %68 = vector.shape_cast %65 : vector<24x128xf32> to vector<1x24x128xf32>
    tpu.vector_store %arg5[%c0_49, %c0_50, %c0_51], %68 {strides = array<i32>} : memref<1x336x128xf32, #tpu.memory_space<vmem>>, vector<1x24x128xf32>,
    %c0_52 = arith.constant 0 : index
    %c24 = arith.constant 24 : index
    %c0_53 = arith.constant 0 : index
    %69 = vector.load %arg5[%c0_52, %c24, %c0_53] : memref<1x336x128xf32, #tpu.memory_space<vmem>>, vector<1x288x128xf32>
    %70 = vector.shape_cast %69 : vector<1x288x128xf32> to vector<288x128xf32>
    %71 = vector.shape_cast %64 : vector<288x128xf32> to vector<1x288x128xf32>
    tpu.vector_store %arg5[%c0_52, %c24, %c0_53], %71 {strides = array<i32>} : memref<1x336x128xf32, #tpu.memory_space<vmem>>, vector<1x288x128xf32>,
    %cst_54 = arith.constant 0.000000e+00 : f32
    %72 = vector.broadcast %cst_54 : f32 to vector<24x128xf32>
    %c0_55 = arith.constant 0 : index
    %c312 = arith.constant 312 : index
    %c0_56 = arith.constant 0 : index
    %73 = vector.load %arg5[%c0_55, %c312, %c0_56] : memref<1x336x128xf32, #tpu.memory_space<vmem>>, vector<1x24x128xf32>
    %74 = vector.shape_cast %73 : vector<1x24x128xf32> to vector<24x128xf32>
    %75 = vector.shape_cast %72 : vector<24x128xf32> to vector<1x24x128xf32>
    tpu.vector_store %arg5[%c0_55, %c312, %c0_56], %75 {strides = array<i32>} : memref<1x336x128xf32, #tpu.memory_space<vmem>>, vector<1x24x128xf32>,
    %c0_57 = arith.constant 0 : index
    %c19_58 = arith.constant 19 : index
    %c0_59 = arith.constant 0 : index
    %76 = vector.load %arg1[%c0_57, %c19_58, %c0_59] : memref<1x328x4xf32, #tpu.memory_space<vmem>>, vector<1x288x4xf32>
    %77 = vector.shape_cast %76 : vector<1x288x4xf32> to vector<288x4xf32>
    %78 = arith.truncf %77 : vector<288x4xf32> to vector<288x4xbf16>
    %c0_60 = arith.constant 0 : index
    %c0_61 = arith.constant 0 : index
    %79 = vector.load %arg3[%c0_60, %c0_61] : memref<4x128xbf16, #tpu.memory_space<vmem>>, vector<4x128xbf16>
    %cst_62 = arith.constant dense<0.000000e+00> : vector<288x128xf32>
    %80 = tpu.matmul %78, %79, %cst_62 {dimension_numbers = #tpu.dot_dimension_numbers<[1], [0], [0], [1], [0, 0, 1, 1], [], []>} : vector<288x4xbf16>, vector<4x128xbf16>, vector<288x128xf32> -> vector<288x128xf32>
    %c0_63 = arith.constant 0 : index
    %c0_64 = arith.constant 0 : index
    %c0_65 = arith.constant 0 : index
    %81 = vector.load %arg6[%c0_63, %c0_64, %c0_65] : memref<1x288x128xf32, #tpu.memory_space<vmem>>, vector<1x288x128xf32>
    %82 = vector.shape_cast %81 : vector<1x288x128xf32> to vector<288x128xf32>
    %83 = vector.shape_cast %80 : vector<288x128xf32> to vector<1x288x128xf32>
    tpu.vector_store %arg6[%c0_63, %c0_64, %c0_65], %83 {strides = array<i32>} : memref<1x288x128xf32, #tpu.memory_space<vmem>>, vector<1x288x128xf32>,
    %c24_66 = arith.constant 24 : index
    %c0_67 = arith.constant 0 : index
    %84 = vector.load %arg4[%c24_66, %c0_67] : memref<336x1xf32, #tpu.memory_space<vmem>>, vector<288x1xf32>
    %85 = vector.broadcast %84 : vector<288x1xf32> to vector<288x128xf32>
    %86 = arith.mulf %64, %85 : vector<288x128xf32>
    %87 = vector.broadcast %84 : vector<288x1xf32> to vector<288x128xf32>
    %88 = arith.mulf %80, %87 : vector<288x128xf32>
    %c0_68 = arith.constant 0 : index
    %c0_69 = arith.constant 0 : index
    %89 = vector.load %arg7[%c0_68, %c0_69] : memref<1x128xf32, #tpu.memory_space<vmem>>, vector<1x128xf32>
    %cst_70 = arith.constant dense<0.000000e+00> : vector<128xf32>
    %90 = vector.multi_reduction <add>, %86, %cst_70 [0] : vector<288x128xf32> to vector<128xf32>
    %91 = vector.shape_cast %90 : vector<128xf32> to vector<1x128xf32>
    %92 = arith.addf %89, %91 : vector<1x128xf32>
    %c0_71 = arith.constant 0 : index
    %c0_72 = arith.constant 0 : index
    %93 = vector.load %arg7[%c0_71, %c0_72] : memref<1x128xf32, #tpu.memory_space<vmem>>, vector<1x128xf32>
    tpu.vector_store %arg7[%c0_71, %c0_72], %92 {strides = array<i32>} : memref<1x128xf32, #tpu.memory_space<vmem>>, vector<1x128xf32>,
    %c0_73 = arith.constant 0 : index
    %c0_74 = arith.constant 0 : index
    %94 = vector.load %arg8[%c0_73, %c0_74] : memref<1x128xf32, #tpu.memory_space<vmem>>, vector<1x128xf32>
    %95 = arith.mulf %86, %64 : vector<288x128xf32>
    %cst_75 = arith.constant dense<0.000000e+00> : vector<128xf32>
    %96 = vector.multi_reduction <add>, %95, %cst_75 [0] : vector<288x128xf32> to vector<128xf32>
    %97 = vector.shape_cast %96 : vector<128xf32> to vector<1x128xf32>
    %98 = arith.addf %94, %97 : vector<1x128xf32>
    %c0_76 = arith.constant 0 : index
    %c0_77 = arith.constant 0 : index
    %99 = vector.load %arg8[%c0_76, %c0_77] : memref<1x128xf32, #tpu.memory_space<vmem>>, vector<1x128xf32>
    tpu.vector_store %arg8[%c0_76, %c0_77], %98 {strides = array<i32>} : memref<1x128xf32, #tpu.memory_space<vmem>>, vector<1x128xf32>,
    %c0_78 = arith.constant 0 : index
    %c0_79 = arith.constant 0 : index
    %100 = vector.load %arg9[%c0_78, %c0_79] : memref<1x128xf32, #tpu.memory_space<vmem>>, vector<1x128xf32>
    %cst_80 = arith.constant dense<0.000000e+00> : vector<128xf32>
    %101 = vector.multi_reduction <add>, %88, %cst_80 [0] : vector<288x128xf32> to vector<128xf32>
    %102 = vector.shape_cast %101 : vector<128xf32> to vector<1x128xf32>
    %103 = arith.addf %100, %102 : vector<1x128xf32>
    %c0_81 = arith.constant 0 : index
    %c0_82 = arith.constant 0 : index
    %104 = vector.load %arg9[%c0_81, %c0_82] : memref<1x128xf32, #tpu.memory_space<vmem>>, vector<1x128xf32>
    tpu.vector_store %arg9[%c0_81, %c0_82], %103 {strides = array<i32>} : memref<1x128xf32, #tpu.memory_space<vmem>>, vector<1x128xf32>,
    %c0_83 = arith.constant 0 : index
    %c0_84 = arith.constant 0 : index
    %105 = vector.load %arg10[%c0_83, %c0_84] : memref<1x128xf32, #tpu.memory_space<vmem>>, vector<1x128xf32>
    %106 = arith.mulf %88, %80 : vector<288x128xf32>
    %cst_85 = arith.constant dense<0.000000e+00> : vector<128xf32>
    %107 = vector.multi_reduction <add>, %106, %cst_85 [0] : vector<288x128xf32> to vector<128xf32>
    %108 = vector.shape_cast %107 : vector<128xf32> to vector<1x128xf32>
    %109 = arith.addf %105, %108 : vector<1x128xf32>
    %c0_86 = arith.constant 0 : index
    %c0_87 = arith.constant 0 : index
    %110 = vector.load %arg10[%c0_86, %c0_87] : memref<1x128xf32, #tpu.memory_space<vmem>>, vector<1x128xf32>
    tpu.vector_store %arg10[%c0_86, %c0_87], %109 {strides = array<i32>} : memref<1x128xf32, #tpu.memory_space<vmem>>, vector<1x128xf32>,
    return
  }
  func.func @transform_0(%arg0: i32) -> (i32, i32, i32) {
    %c0_i32 = arith.constant 0 : i32
    %c0_i32_0 = arith.constant 0 : i32
    %c0_i32_1 = arith.constant 0 : i32
    return %arg0, %c0_i32, %c0_i32_0 : i32, i32, i32
  }
  func.func @transform_1(%arg0: i32) -> (i32, i32, i32) {
    %c0_i32 = arith.constant 0 : i32
    %c0_i32_0 = arith.constant 0 : i32
    %c0_i32_1 = arith.constant 0 : i32
    %c0_i32_2 = arith.constant 0 : i32
    return %c0_i32, %c0_i32_0, %c0_i32_1 : i32, i32, i32
  }
  func.func @transform_2(%arg0: i32) -> (i32, i32) {
    %c0_i32 = arith.constant 0 : i32
    %c0_i32_0 = arith.constant 0 : i32
    %c0_i32_1 = arith.constant 0 : i32
    return %c0_i32, %c0_i32_0 : i32, i32
  }
  func.func @transform_3(%arg0: i32) -> (i32, i32) {
    %c0_i32 = arith.constant 0 : i32
    %c0_i32_0 = arith.constant 0 : i32
    %c0_i32_1 = arith.constant 0 : i32
    return %c0_i32, %c0_i32_0 : i32, i32
  }
  func.func @transform_4(%arg0: i32) -> (i32, i32, i32) {
    %c0_i32 = arith.constant 0 : i32
    %c0_i32_0 = arith.constant 0 : i32
    %c0_i32_1 = arith.constant 0 : i32
    return %arg0, %c0_i32, %c0_i32_0 : i32, i32, i32
  }
  func.func @transform_5(%arg0: i32) -> (i32, i32, i32) {
    %c0_i32 = arith.constant 0 : i32
    %c0_i32_0 = arith.constant 0 : i32
    %c0_i32_1 = arith.constant 0 : i32
    return %arg0, %c0_i32, %c0_i32_0 : i32, i32, i32
  }
  func.func @transform_6(%arg0: i32) -> (i32, i32) {
    %c0_i32 = arith.constant 0 : i32
    %c0_i32_0 = arith.constant 0 : i32
    %c0_i32_1 = arith.constant 0 : i32
    return %c0_i32, %c0_i32_0 : i32, i32
  }
  func.func @transform_7(%arg0: i32) -> (i32, i32) {
    %c0_i32 = arith.constant 0 : i32
    %c0_i32_0 = arith.constant 0 : i32
    %c0_i32_1 = arith.constant 0 : i32
    return %c0_i32, %c0_i32_0 : i32, i32
  }
  func.func @transform_8(%arg0: i32) -> (i32, i32) {
    %c0_i32 = arith.constant 0 : i32
    %c0_i32_0 = arith.constant 0 : i32
    %c0_i32_1 = arith.constant 0 : i32
    return %c0_i32, %c0_i32_0 : i32, i32
  }
  func.func @transform_9(%arg0: i32) -> (i32, i32) {
    %c0_i32 = arith.constant 0 : i32
    %c0_i32_0 = arith.constant 0 : i32
    %c0_i32_1 = arith.constant 0 : i32
    return %c0_i32, %c0_i32_0 : i32, i32
  }
}

module attributes {stable_mosaic.version = 11 : i64} {
  func.func @_bn_relu_conv2_stats_kernel(%arg0: i32, %arg1: memref<1x336x128xf32, #tpu.memory_space<vmem>>, %arg2: memref<9x128x128xbf16, #tpu.memory_space<vmem>>, %arg3: memref<336x1xf32, #tpu.memory_space<vmem>>, %arg4: memref<1x128xf32, #tpu.memory_space<vmem>>, %arg5: memref<1x128xf32, #tpu.memory_space<vmem>>, %arg6: memref<1x288x128xf32, #tpu.memory_space<vmem>>, %arg7: memref<1x128xf32, #tpu.memory_space<vmem>>, %arg8: memref<1x128xf32, #tpu.memory_space<vmem>>) attributes {dimension_semantics = [#tpu.dimension_semantics<arbitrary>], iteration_bounds = array<i64: 2>, scalar_prefetch = 0 : i64, scratch_operands = 0 : i64, tpu.core_type = #tpu.core_type<tc>, window_params = [{transform_indices = @transform_0, window_bounds = array<i64: 1, 336, 128>}, {pipeline_mode = #tpu.pipeline_mode<synchronous>, transform_indices = @transform_1, window_bounds = array<i64: 9, 128, 128>}, {pipeline_mode = #tpu.pipeline_mode<synchronous>, transform_indices = @transform_2, window_bounds = array<i64: 336, 1>}, {pipeline_mode = #tpu.pipeline_mode<synchronous>, transform_indices = @transform_3, window_bounds = array<i64: 1, 128>}, {pipeline_mode = #tpu.pipeline_mode<synchronous>, transform_indices = @transform_4, window_bounds = array<i64: 1, 128>}, {transform_indices = @transform_5, window_bounds = array<i64: 1, 288, 128>}, {pipeline_mode = #tpu.pipeline_mode<synchronous>, transform_indices = @transform_6, window_bounds = array<i64: 1, 128>}, {pipeline_mode = #tpu.pipeline_mode<synchronous>, transform_indices = @transform_7, window_bounds = array<i64: 1, 128>}]} {
    %c0_i32 = arith.constant 0 : i32
    %0 = arith.cmpi eq, %arg0, %c0_i32 : i32
    %1 = arith.extui %0 : i1 to i32
    %c0_i32_0 = arith.constant 0 : i32
    %2 = arith.cmpi ne, %1, %c0_i32_0 : i32
    scf.if %2 {
      %cst_94 = arith.constant 0.000000e+00 : f32
      %165 = vector.broadcast %cst_94 : f32 to vector<1x128xf32>
      %c0_95 = arith.constant 0 : index
      %c0_96 = arith.constant 0 : index
      %166 = vector.load %arg7[%c0_95, %c0_96] : memref<1x128xf32, #tpu.memory_space<vmem>>, vector<1x128xf32>
      tpu.vector_store %arg7[%c0_95, %c0_96], %165 {strides = array<i32>} : memref<1x128xf32, #tpu.memory_space<vmem>>, vector<1x128xf32>,
      %cst_97 = arith.constant 0.000000e+00 : f32
      %167 = vector.broadcast %cst_97 : f32 to vector<1x128xf32>
      %c0_98 = arith.constant 0 : index
      %c0_99 = arith.constant 0 : index
      %168 = vector.load %arg8[%c0_98, %c0_99] : memref<1x128xf32, #tpu.memory_space<vmem>>, vector<1x128xf32>
      tpu.vector_store %arg8[%c0_98, %c0_99], %167 {strides = array<i32>} : memref<1x128xf32, #tpu.memory_space<vmem>>, vector<1x128xf32>,
    } else {
    }
    %c0 = arith.constant 0 : index
    %c0_1 = arith.constant 0 : index
    %3 = vector.load %arg4[%c0, %c0_1] : memref<1x128xf32, #tpu.memory_space<vmem>>, vector<1x128xf32>
    %c0_2 = arith.constant 0 : index
    %c0_3 = arith.constant 0 : index
    %4 = vector.load %arg5[%c0_2, %c0_3] : memref<1x128xf32, #tpu.memory_space<vmem>>, vector<1x128xf32>
    %c0_4 = arith.constant 0 : index
    %c5 = arith.constant 5 : index
    %c0_5 = arith.constant 0 : index
    %5 = vector.load %arg1[%c0_4, %c5, %c0_5] : memref<1x336x128xf32, #tpu.memory_space<vmem>>, vector<1x288x128xf32>
    %6 = vector.shape_cast %5 : vector<1x288x128xf32> to vector<288x128xf32>
    %c5_6 = arith.constant 5 : index
    %c0_7 = arith.constant 0 : index
    %7 = vector.load %arg3[%c5_6, %c0_7] : memref<336x1xf32, #tpu.memory_space<vmem>>, vector<288x1xf32>
    %8 = vector.broadcast %3 : vector<1x128xf32> to vector<288x128xf32>
    %9 = arith.mulf %6, %8 : vector<288x128xf32>
    %10 = vector.broadcast %4 : vector<1x128xf32> to vector<288x128xf32>
    %11 = arith.addf %9, %10 : vector<288x128xf32>
    %cst = arith.constant 0.000000e+00 : f32
    %12 = vector.broadcast %cst : f32 to vector<288x128xf32>
    %13 = arith.maximumf %11, %12 : vector<288x128xf32>
    %14 = vector.broadcast %7 : vector<288x1xf32> to vector<288x128xf32>
    %15 = arith.mulf %13, %14 : vector<288x128xf32>
    %16 = arith.truncf %15 : vector<288x128xf32> to vector<288x128xbf16>
    %c0_8 = arith.constant 0 : index
    %c0_9 = arith.constant 0 : index
    %c0_10 = arith.constant 0 : index
    %17 = vector.load %arg2[%c0_8, %c0_9, %c0_10] : memref<9x128x128xbf16, #tpu.memory_space<vmem>>, vector<1x128x128xbf16>
    %18 = vector.shape_cast %17 : vector<1x128x128xbf16> to vector<128x128xbf16>
    %cst_11 = arith.constant dense<0.000000e+00> : vector<288x128xf32>
    %19 = tpu.matmul %16, %18, %cst_11 {dimension_numbers = #tpu.dot_dimension_numbers<[1], [0], [0], [1], [0, 0, 1, 1], [], []>} : vector<288x128xbf16>, vector<128x128xbf16>, vector<288x128xf32> -> vector<288x128xf32>
    %c0_12 = arith.constant 0 : index
    %c6 = arith.constant 6 : index
    %c0_13 = arith.constant 0 : index
    %20 = vector.load %arg1[%c0_12, %c6, %c0_13] : memref<1x336x128xf32, #tpu.memory_space<vmem>>, vector<1x288x128xf32>
    %21 = vector.shape_cast %20 : vector<1x288x128xf32> to vector<288x128xf32>
    %c6_14 = arith.constant 6 : index
    %c0_15 = arith.constant 0 : index
    %22 = vector.load %arg3[%c6_14, %c0_15] : memref<336x1xf32, #tpu.memory_space<vmem>>, vector<288x1xf32>
    %23 = vector.broadcast %3 : vector<1x128xf32> to vector<288x128xf32>
    %24 = arith.mulf %21, %23 : vector<288x128xf32>
    %25 = vector.broadcast %4 : vector<1x128xf32> to vector<288x128xf32>
    %26 = arith.addf %24, %25 : vector<288x128xf32>
    %cst_16 = arith.constant 0.000000e+00 : f32
    %27 = vector.broadcast %cst_16 : f32 to vector<288x128xf32>
    %28 = arith.maximumf %26, %27 : vector<288x128xf32>
    %29 = vector.broadcast %22 : vector<288x1xf32> to vector<288x128xf32>
    %30 = arith.mulf %28, %29 : vector<288x128xf32>
    %31 = arith.truncf %30 : vector<288x128xf32> to vector<288x128xbf16>
    %c1 = arith.constant 1 : index
    %c0_17 = arith.constant 0 : index
    %c0_18 = arith.constant 0 : index
    %32 = vector.load %arg2[%c1, %c0_17, %c0_18] : memref<9x128x128xbf16, #tpu.memory_space<vmem>>, vector<1x128x128xbf16>
    %33 = vector.shape_cast %32 : vector<1x128x128xbf16> to vector<128x128xbf16>
    %cst_19 = arith.constant dense<0.000000e+00> : vector<288x128xf32>
    %34 = tpu.matmul %31, %33, %cst_19 {dimension_numbers = #tpu.dot_dimension_numbers<[1], [0], [0], [1], [0, 0, 1, 1], [], []>} : vector<288x128xbf16>, vector<128x128xbf16>, vector<288x128xf32> -> vector<288x128xf32>
    %35 = arith.addf %19, %34 : vector<288x128xf32>
    %c0_20 = arith.constant 0 : index
    %c7 = arith.constant 7 : index
    %c0_21 = arith.constant 0 : index
    %36 = vector.load %arg1[%c0_20, %c7, %c0_21] : memref<1x336x128xf32, #tpu.memory_space<vmem>>, vector<1x288x128xf32>
    %37 = vector.shape_cast %36 : vector<1x288x128xf32> to vector<288x128xf32>
    %c7_22 = arith.constant 7 : index
    %c0_23 = arith.constant 0 : index
    %38 = vector.load %arg3[%c7_22, %c0_23] : memref<336x1xf32, #tpu.memory_space<vmem>>, vector<288x1xf32>
    %39 = vector.broadcast %3 : vector<1x128xf32> to vector<288x128xf32>
    %40 = arith.mulf %37, %39 : vector<288x128xf32>
    %41 = vector.broadcast %4 : vector<1x128xf32> to vector<288x128xf32>
    %42 = arith.addf %40, %41 : vector<288x128xf32>
    %cst_24 = arith.constant 0.000000e+00 : f32
    %43 = vector.broadcast %cst_24 : f32 to vector<288x128xf32>
    %44 = arith.maximumf %42, %43 : vector<288x128xf32>
    %45 = vector.broadcast %38 : vector<288x1xf32> to vector<288x128xf32>
    %46 = arith.mulf %44, %45 : vector<288x128xf32>
    %47 = arith.truncf %46 : vector<288x128xf32> to vector<288x128xbf16>
    %c2 = arith.constant 2 : index
    %c0_25 = arith.constant 0 : index
    %c0_26 = arith.constant 0 : index
    %48 = vector.load %arg2[%c2, %c0_25, %c0_26] : memref<9x128x128xbf16, #tpu.memory_space<vmem>>, vector<1x128x128xbf16>
    %49 = vector.shape_cast %48 : vector<1x128x128xbf16> to vector<128x128xbf16>
    %cst_27 = arith.constant dense<0.000000e+00> : vector<288x128xf32>
    %50 = tpu.matmul %47, %49, %cst_27 {dimension_numbers = #tpu.dot_dimension_numbers<[1], [0], [0], [1], [0, 0, 1, 1], [], []>} : vector<288x128xbf16>, vector<128x128xbf16>, vector<288x128xf32> -> vector<288x128xf32>
    %51 = arith.addf %35, %50 : vector<288x128xf32>
    %c0_28 = arith.constant 0 : index
    %c23 = arith.constant 23 : index
    %c0_29 = arith.constant 0 : index
    %52 = vector.load %arg1[%c0_28, %c23, %c0_29] : memref<1x336x128xf32, #tpu.memory_space<vmem>>, vector<1x288x128xf32>
    %53 = vector.shape_cast %52 : vector<1x288x128xf32> to vector<288x128xf32>
    %c23_30 = arith.constant 23 : index
    %c0_31 = arith.constant 0 : index
    %54 = vector.load %arg3[%c23_30, %c0_31] : memref<336x1xf32, #tpu.memory_space<vmem>>, vector<288x1xf32>
    %55 = vector.broadcast %3 : vector<1x128xf32> to vector<288x128xf32>
    %56 = arith.mulf %53, %55 : vector<288x128xf32>
    %57 = vector.broadcast %4 : vector<1x128xf32> to vector<288x128xf32>
    %58 = arith.addf %56, %57 : vector<288x128xf32>
    %cst_32 = arith.constant 0.000000e+00 : f32
    %59 = vector.broadcast %cst_32 : f32 to vector<288x128xf32>
    %60 = arith.maximumf %58, %59 : vector<288x128xf32>
    %61 = vector.broadcast %54 : vector<288x1xf32> to vector<288x128xf32>
    %62 = arith.mulf %60, %61 : vector<288x128xf32>
    %63 = arith.truncf %62 : vector<288x128xf32> to vector<288x128xbf16>
    %c3 = arith.constant 3 : index
    %c0_33 = arith.constant 0 : index
    %c0_34 = arith.constant 0 : index
    %64 = vector.load %arg2[%c3, %c0_33, %c0_34] : memref<9x128x128xbf16, #tpu.memory_space<vmem>>, vector<1x128x128xbf16>
    %65 = vector.shape_cast %64 : vector<1x128x128xbf16> to vector<128x128xbf16>
    %cst_35 = arith.constant dense<0.000000e+00> : vector<288x128xf32>
    %66 = tpu.matmul %63, %65, %cst_35 {dimension_numbers = #tpu.dot_dimension_numbers<[1], [0], [0], [1], [0, 0, 1, 1], [], []>} : vector<288x128xbf16>, vector<128x128xbf16>, vector<288x128xf32> -> vector<288x128xf32>
    %67 = arith.addf %51, %66 : vector<288x128xf32>
    %c0_36 = arith.constant 0 : index
    %c24 = arith.constant 24 : index
    %c0_37 = arith.constant 0 : index
    %68 = vector.load %arg1[%c0_36, %c24, %c0_37] : memref<1x336x128xf32, #tpu.memory_space<vmem>>, vector<1x288x128xf32>
    %69 = vector.shape_cast %68 : vector<1x288x128xf32> to vector<288x128xf32>
    %c24_38 = arith.constant 24 : index
    %c0_39 = arith.constant 0 : index
    %70 = vector.load %arg3[%c24_38, %c0_39] : memref<336x1xf32, #tpu.memory_space<vmem>>, vector<288x1xf32>
    %71 = vector.broadcast %3 : vector<1x128xf32> to vector<288x128xf32>
    %72 = arith.mulf %69, %71 : vector<288x128xf32>
    %73 = vector.broadcast %4 : vector<1x128xf32> to vector<288x128xf32>
    %74 = arith.addf %72, %73 : vector<288x128xf32>
    %cst_40 = arith.constant 0.000000e+00 : f32
    %75 = vector.broadcast %cst_40 : f32 to vector<288x128xf32>
    %76 = arith.maximumf %74, %75 : vector<288x128xf32>
    %77 = vector.broadcast %70 : vector<288x1xf32> to vector<288x128xf32>
    %78 = arith.mulf %76, %77 : vector<288x128xf32>
    %79 = arith.truncf %78 : vector<288x128xf32> to vector<288x128xbf16>
    %c4 = arith.constant 4 : index
    %c0_41 = arith.constant 0 : index
    %c0_42 = arith.constant 0 : index
    %80 = vector.load %arg2[%c4, %c0_41, %c0_42] : memref<9x128x128xbf16, #tpu.memory_space<vmem>>, vector<1x128x128xbf16>
    %81 = vector.shape_cast %80 : vector<1x128x128xbf16> to vector<128x128xbf16>
    %cst_43 = arith.constant dense<0.000000e+00> : vector<288x128xf32>
    %82 = tpu.matmul %79, %81, %cst_43 {dimension_numbers = #tpu.dot_dimension_numbers<[1], [0], [0], [1], [0, 0, 1, 1], [], []>} : vector<288x128xbf16>, vector<128x128xbf16>, vector<288x128xf32> -> vector<288x128xf32>
    %83 = arith.addf %67, %82 : vector<288x128xf32>
    %c0_44 = arith.constant 0 : index
    %c25 = arith.constant 25 : index
    %c0_45 = arith.constant 0 : index
    %84 = vector.load %arg1[%c0_44, %c25, %c0_45] : memref<1x336x128xf32, #tpu.memory_space<vmem>>, vector<1x288x128xf32>
    %85 = vector.shape_cast %84 : vector<1x288x128xf32> to vector<288x128xf32>
    %c25_46 = arith.constant 25 : index
    %c0_47 = arith.constant 0 : index
    %86 = vector.load %arg3[%c25_46, %c0_47] : memref<336x1xf32, #tpu.memory_space<vmem>>, vector<288x1xf32>
    %87 = vector.broadcast %3 : vector<1x128xf32> to vector<288x128xf32>
    %88 = arith.mulf %85, %87 : vector<288x128xf32>
    %89 = vector.broadcast %4 : vector<1x128xf32> to vector<288x128xf32>
    %90 = arith.addf %88, %89 : vector<288x128xf32>
    %cst_48 = arith.constant 0.000000e+00 : f32
    %91 = vector.broadcast %cst_48 : f32 to vector<288x128xf32>
    %92 = arith.maximumf %90, %91 : vector<288x128xf32>
    %93 = vector.broadcast %86 : vector<288x1xf32> to vector<288x128xf32>
    %94 = arith.mulf %92, %93 : vector<288x128xf32>
    %95 = arith.truncf %94 : vector<288x128xf32> to vector<288x128xbf16>
    %c5_49 = arith.constant 5 : index
    %c0_50 = arith.constant 0 : index
    %c0_51 = arith.constant 0 : index
    %96 = vector.load %arg2[%c5_49, %c0_50, %c0_51] : memref<9x128x128xbf16, #tpu.memory_space<vmem>>, vector<1x128x128xbf16>
    %97 = vector.shape_cast %96 : vector<1x128x128xbf16> to vector<128x128xbf16>
    %cst_52 = arith.constant dense<0.000000e+00> : vector<288x128xf32>
    %98 = tpu.matmul %95, %97, %cst_52 {dimension_numbers = #tpu.dot_dimension_numbers<[1], [0], [0], [1], [0, 0, 1, 1], [], []>} : vector<288x128xbf16>, vector<128x128xbf16>, vector<288x128xf32> -> vector<288x128xf32>
    %99 = arith.addf %83, %98 : vector<288x128xf32>
    %c0_53 = arith.constant 0 : index
    %c41 = arith.constant 41 : index
    %c0_54 = arith.constant 0 : index
    %100 = vector.load %arg1[%c0_53, %c41, %c0_54] : memref<1x336x128xf32, #tpu.memory_space<vmem>>, vector<1x288x128xf32>
    %101 = vector.shape_cast %100 : vector<1x288x128xf32> to vector<288x128xf32>
    %c41_55 = arith.constant 41 : index
    %c0_56 = arith.constant 0 : index
    %102 = vector.load %arg3[%c41_55, %c0_56] : memref<336x1xf32, #tpu.memory_space<vmem>>, vector<288x1xf32>
    %103 = vector.broadcast %3 : vector<1x128xf32> to vector<288x128xf32>
    %104 = arith.mulf %101, %103 : vector<288x128xf32>
    %105 = vector.broadcast %4 : vector<1x128xf32> to vector<288x128xf32>
    %106 = arith.addf %104, %105 : vector<288x128xf32>
    %cst_57 = arith.constant 0.000000e+00 : f32
    %107 = vector.broadcast %cst_57 : f32 to vector<288x128xf32>
    %108 = arith.maximumf %106, %107 : vector<288x128xf32>
    %109 = vector.broadcast %102 : vector<288x1xf32> to vector<288x128xf32>
    %110 = arith.mulf %108, %109 : vector<288x128xf32>
    %111 = arith.truncf %110 : vector<288x128xf32> to vector<288x128xbf16>
    %c6_58 = arith.constant 6 : index
    %c0_59 = arith.constant 0 : index
    %c0_60 = arith.constant 0 : index
    %112 = vector.load %arg2[%c6_58, %c0_59, %c0_60] : memref<9x128x128xbf16, #tpu.memory_space<vmem>>, vector<1x128x128xbf16>
    %113 = vector.shape_cast %112 : vector<1x128x128xbf16> to vector<128x128xbf16>
    %cst_61 = arith.constant dense<0.000000e+00> : vector<288x128xf32>
    %114 = tpu.matmul %111, %113, %cst_61 {dimension_numbers = #tpu.dot_dimension_numbers<[1], [0], [0], [1], [0, 0, 1, 1], [], []>} : vector<288x128xbf16>, vector<128x128xbf16>, vector<288x128xf32> -> vector<288x128xf32>
    %115 = arith.addf %99, %114 : vector<288x128xf32>
    %c0_62 = arith.constant 0 : index
    %c42 = arith.constant 42 : index
    %c0_63 = arith.constant 0 : index
    %116 = vector.load %arg1[%c0_62, %c42, %c0_63] : memref<1x336x128xf32, #tpu.memory_space<vmem>>, vector<1x288x128xf32>
    %117 = vector.shape_cast %116 : vector<1x288x128xf32> to vector<288x128xf32>
    %c42_64 = arith.constant 42 : index
    %c0_65 = arith.constant 0 : index
    %118 = vector.load %arg3[%c42_64, %c0_65] : memref<336x1xf32, #tpu.memory_space<vmem>>, vector<288x1xf32>
    %119 = vector.broadcast %3 : vector<1x128xf32> to vector<288x128xf32>
    %120 = arith.mulf %117, %119 : vector<288x128xf32>
    %121 = vector.broadcast %4 : vector<1x128xf32> to vector<288x128xf32>
    %122 = arith.addf %120, %121 : vector<288x128xf32>
    %cst_66 = arith.constant 0.000000e+00 : f32
    %123 = vector.broadcast %cst_66 : f32 to vector<288x128xf32>
    %124 = arith.maximumf %122, %123 : vector<288x128xf32>
    %125 = vector.broadcast %118 : vector<288x1xf32> to vector<288x128xf32>
    %126 = arith.mulf %124, %125 : vector<288x128xf32>
    %127 = arith.truncf %126 : vector<288x128xf32> to vector<288x128xbf16>
    %c7_67 = arith.constant 7 : index
    %c0_68 = arith.constant 0 : index
    %c0_69 = arith.constant 0 : index
    %128 = vector.load %arg2[%c7_67, %c0_68, %c0_69] : memref<9x128x128xbf16, #tpu.memory_space<vmem>>, vector<1x128x128xbf16>
    %129 = vector.shape_cast %128 : vector<1x128x128xbf16> to vector<128x128xbf16>
    %cst_70 = arith.constant dense<0.000000e+00> : vector<288x128xf32>
    %130 = tpu.matmul %127, %129, %cst_70 {dimension_numbers = #tpu.dot_dimension_numbers<[1], [0], [0], [1], [0, 0, 1, 1], [], []>} : vector<288x128xbf16>, vector<128x128xbf16>, vector<288x128xf32> -> vector<288x128xf32>
    %131 = arith.addf %115, %130 : vector<288x128xf32>
    %c0_71 = arith.constant 0 : index
    %c43 = arith.constant 43 : index
    %c0_72 = arith.constant 0 : index
    %132 = vector.load %arg1[%c0_71, %c43, %c0_72] : memref<1x336x128xf32, #tpu.memory_space<vmem>>, vector<1x288x128xf32>
    %133 = vector.shape_cast %132 : vector<1x288x128xf32> to vector<288x128xf32>
    %c43_73 = arith.constant 43 : index
    %c0_74 = arith.constant 0 : index
    %134 = vector.load %arg3[%c43_73, %c0_74] : memref<336x1xf32, #tpu.memory_space<vmem>>, vector<288x1xf32>
    %135 = vector.broadcast %3 : vector<1x128xf32> to vector<288x128xf32>
    %136 = arith.mulf %133, %135 : vector<288x128xf32>
    %137 = vector.broadcast %4 : vector<1x128xf32> to vector<288x128xf32>
    %138 = arith.addf %136, %137 : vector<288x128xf32>
    %cst_75 = arith.constant 0.000000e+00 : f32
    %139 = vector.broadcast %cst_75 : f32 to vector<288x128xf32>
    %140 = arith.maximumf %138, %139 : vector<288x128xf32>
    %141 = vector.broadcast %134 : vector<288x1xf32> to vector<288x128xf32>
    %142 = arith.mulf %140, %141 : vector<288x128xf32>
    %143 = arith.truncf %142 : vector<288x128xf32> to vector<288x128xbf16>
    %c8 = arith.constant 8 : index
    %c0_76 = arith.constant 0 : index
    %c0_77 = arith.constant 0 : index
    %144 = vector.load %arg2[%c8, %c0_76, %c0_77] : memref<9x128x128xbf16, #tpu.memory_space<vmem>>, vector<1x128x128xbf16>
    %145 = vector.shape_cast %144 : vector<1x128x128xbf16> to vector<128x128xbf16>
    %cst_78 = arith.constant dense<0.000000e+00> : vector<288x128xf32>
    %146 = tpu.matmul %143, %145, %cst_78 {dimension_numbers = #tpu.dot_dimension_numbers<[1], [0], [0], [1], [0, 0, 1, 1], [], []>} : vector<288x128xbf16>, vector<128x128xbf16>, vector<288x128xf32> -> vector<288x128xf32>
    %147 = arith.addf %131, %146 : vector<288x128xf32>
    %c0_79 = arith.constant 0 : index
    %c0_80 = arith.constant 0 : index
    %c0_81 = arith.constant 0 : index
    %148 = vector.load %arg6[%c0_79, %c0_80, %c0_81] : memref<1x288x128xf32, #tpu.memory_space<vmem>>, vector<1x288x128xf32>
    %149 = vector.shape_cast %148 : vector<1x288x128xf32> to vector<288x128xf32>
    %150 = vector.shape_cast %147 : vector<288x128xf32> to vector<1x288x128xf32>
    tpu.vector_store %arg6[%c0_79, %c0_80, %c0_81], %150 {strides = array<i32>} : memref<1x288x128xf32, #tpu.memory_space<vmem>>, vector<1x288x128xf32>,
    %c24_82 = arith.constant 24 : index
    %c0_83 = arith.constant 0 : index
    %151 = vector.load %arg3[%c24_82, %c0_83] : memref<336x1xf32, #tpu.memory_space<vmem>>, vector<288x1xf32>
    %152 = vector.broadcast %151 : vector<288x1xf32> to vector<288x128xf32>
    %153 = arith.mulf %147, %152 : vector<288x128xf32>
    %c0_84 = arith.constant 0 : index
    %c0_85 = arith.constant 0 : index
    %154 = vector.load %arg7[%c0_84, %c0_85] : memref<1x128xf32, #tpu.memory_space<vmem>>, vector<1x128xf32>
    %cst_86 = arith.constant dense<0.000000e+00> : vector<128xf32>
    %155 = vector.multi_reduction <add>, %153, %cst_86 [0] : vector<288x128xf32> to vector<128xf32>
    %156 = vector.shape_cast %155 : vector<128xf32> to vector<1x128xf32>
    %157 = arith.addf %154, %156 : vector<1x128xf32>
    %c0_87 = arith.constant 0 : index
    %c0_88 = arith.constant 0 : index
    %158 = vector.load %arg7[%c0_87, %c0_88] : memref<1x128xf32, #tpu.memory_space<vmem>>, vector<1x128xf32>
    tpu.vector_store %arg7[%c0_87, %c0_88], %157 {strides = array<i32>} : memref<1x128xf32, #tpu.memory_space<vmem>>, vector<1x128xf32>,
    %c0_89 = arith.constant 0 : index
    %c0_90 = arith.constant 0 : index
    %159 = vector.load %arg8[%c0_89, %c0_90] : memref<1x128xf32, #tpu.memory_space<vmem>>, vector<1x128xf32>
    %160 = arith.mulf %153, %147 : vector<288x128xf32>
    %cst_91 = arith.constant dense<0.000000e+00> : vector<128xf32>
    %161 = vector.multi_reduction <add>, %160, %cst_91 [0] : vector<288x128xf32> to vector<128xf32>
    %162 = vector.shape_cast %161 : vector<128xf32> to vector<1x128xf32>
    %163 = arith.addf %159, %162 : vector<1x128xf32>
    %c0_92 = arith.constant 0 : index
    %c0_93 = arith.constant 0 : index
    %164 = vector.load %arg8[%c0_92, %c0_93] : memref<1x128xf32, #tpu.memory_space<vmem>>, vector<1x128xf32>
    tpu.vector_store %arg8[%c0_92, %c0_93], %163 {strides = array<i32>} : memref<1x128xf32, #tpu.memory_space<vmem>>, vector<1x128xf32>,
    return
  }
  func.func @transform_0(%arg0: i32) -> (i32, i32, i32) {
    %c0_i32 = arith.constant 0 : i32
    %c0_i32_0 = arith.constant 0 : i32
    %c0_i32_1 = arith.constant 0 : i32
    return %arg0, %c0_i32, %c0_i32_0 : i32, i32, i32
  }
  func.func @transform_1(%arg0: i32) -> (i32, i32, i32) {
    %c0_i32 = arith.constant 0 : i32
    %c0_i32_0 = arith.constant 0 : i32
    %c0_i32_1 = arith.constant 0 : i32
    %c0_i32_2 = arith.constant 0 : i32
    return %c0_i32, %c0_i32_0, %c0_i32_1 : i32, i32, i32
  }
  func.func @transform_2(%arg0: i32) -> (i32, i32) {
    %c0_i32 = arith.constant 0 : i32
    %c0_i32_0 = arith.constant 0 : i32
    %c0_i32_1 = arith.constant 0 : i32
    return %c0_i32, %c0_i32_0 : i32, i32
  }
  func.func @transform_3(%arg0: i32) -> (i32, i32) {
    %c0_i32 = arith.constant 0 : i32
    %c0_i32_0 = arith.constant 0 : i32
    %c0_i32_1 = arith.constant 0 : i32
    return %c0_i32, %c0_i32_0 : i32, i32
  }
  func.func @transform_4(%arg0: i32) -> (i32, i32) {
    %c0_i32 = arith.constant 0 : i32
    %c0_i32_0 = arith.constant 0 : i32
    %c0_i32_1 = arith.constant 0 : i32
    return %c0_i32, %c0_i32_0 : i32, i32
  }
  func.func @transform_5(%arg0: i32) -> (i32, i32, i32) {
    %c0_i32 = arith.constant 0 : i32
    %c0_i32_0 = arith.constant 0 : i32
    %c0_i32_1 = arith.constant 0 : i32
    return %arg0, %c0_i32, %c0_i32_0 : i32, i32, i32
  }
  func.func @transform_6(%arg0: i32) -> (i32, i32) {
    %c0_i32 = arith.constant 0 : i32
    %c0_i32_0 = arith.constant 0 : i32
    %c0_i32_1 = arith.constant 0 : i32
    return %c0_i32, %c0_i32_0 : i32, i32
  }
  func.func @transform_7(%arg0: i32) -> (i32, i32) {
    %c0_i32 = arith.constant 0 : i32
    %c0_i32_0 = arith.constant 0 : i32
    %c0_i32_1 = arith.constant 0 : i32
    return %c0_i32, %c0_i32_0 : i32, i32
  }
}

module attributes {stable_mosaic.version = 11 : i64} {
  func.func @_final_apply_kernel(%arg0: i32, %arg1: i32, %arg2: memref<1x288x128xf32, #tpu.memory_space<vmem>>, %arg3: memref<1x288x128xf32, #tpu.memory_space<vmem>>, %arg4: memref<1x128xf32, #tpu.memory_space<vmem>>, %arg5: memref<1x128xf32, #tpu.memory_space<vmem>>, %arg6: memref<1x128xf32, #tpu.memory_space<vmem>>, %arg7: memref<1x128xf32, #tpu.memory_space<vmem>>, %arg8: memref<1x288x128xf32, #tpu.memory_space<vmem>>) attributes {dimension_semantics = [#tpu.dimension_semantics<parallel>, #tpu.dimension_semantics<parallel>], iteration_bounds = array<i64: 2, 1>, scalar_prefetch = 0 : i64, scratch_operands = 0 : i64, tpu.core_type = #tpu.core_type<tc>, window_params = [{transform_indices = @transform_0, window_bounds = array<i64: 1, 288, 128>}, {transform_indices = @transform_1, window_bounds = array<i64: 1, 288, 128>}, {pipeline_mode = #tpu.pipeline_mode<synchronous>, transform_indices = @transform_2, window_bounds = array<i64: 1, 128>}, {pipeline_mode = #tpu.pipeline_mode<synchronous>, transform_indices = @transform_3, window_bounds = array<i64: 1, 128>}, {pipeline_mode = #tpu.pipeline_mode<synchronous>, transform_indices = @transform_4, window_bounds = array<i64: 1, 128>}, {pipeline_mode = #tpu.pipeline_mode<synchronous>, transform_indices = @transform_5, window_bounds = array<i64: 1, 128>}, {transform_indices = @transform_6, window_bounds = array<i64: 1, 288, 128>}]} {
    %c0 = arith.constant 0 : index
    %c0_0 = arith.constant 0 : index
    %c0_1 = arith.constant 0 : index
    %0 = vector.load %arg2[%c0, %c0_0, %c0_1] : memref<1x288x128xf32, #tpu.memory_space<vmem>>, vector<1x288x128xf32>
    %1 = vector.shape_cast %0 : vector<1x288x128xf32> to vector<288x128xf32>
    %c0_2 = arith.constant 0 : index
    %c0_3 = arith.constant 0 : index
    %2 = vector.load %arg4[%c0_2, %c0_3] : memref<1x128xf32, #tpu.memory_space<vmem>>, vector<1x128xf32>
    %3 = vector.broadcast %2 : vector<1x128xf32> to vector<288x128xf32>
    %4 = arith.mulf %1, %3 : vector<288x128xf32>
    %c0_4 = arith.constant 0 : index
    %c0_5 = arith.constant 0 : index
    %5 = vector.load %arg5[%c0_4, %c0_5] : memref<1x128xf32, #tpu.memory_space<vmem>>, vector<1x128xf32>
    %6 = vector.broadcast %5 : vector<1x128xf32> to vector<288x128xf32>
    %7 = arith.addf %4, %6 : vector<288x128xf32>
    %cst = arith.constant 0.000000e+00 : f32
    %8 = vector.broadcast %cst : f32 to vector<288x128xf32>
    %9 = arith.maximumf %7, %8 : vector<288x128xf32>
    %c0_6 = arith.constant 0 : index
    %c0_7 = arith.constant 0 : index
    %c0_8 = arith.constant 0 : index
    %10 = vector.load %arg3[%c0_6, %c0_7, %c0_8] : memref<1x288x128xf32, #tpu.memory_space<vmem>>, vector<1x288x128xf32>
    %11 = vector.shape_cast %10 : vector<1x288x128xf32> to vector<288x128xf32>
    %c0_9 = arith.constant 0 : index
    %c0_10 = arith.constant 0 : index
    %12 = vector.load %arg6[%c0_9, %c0_10] : memref<1x128xf32, #tpu.memory_space<vmem>>, vector<1x128xf32>
    %13 = vector.broadcast %12 : vector<1x128xf32> to vector<288x128xf32>
    %14 = arith.mulf %11, %13 : vector<288x128xf32>
    %c0_11 = arith.constant 0 : index
    %c0_12 = arith.constant 0 : index
    %15 = vector.load %arg7[%c0_11, %c0_12] : memref<1x128xf32, #tpu.memory_space<vmem>>, vector<1x128xf32>
    %16 = vector.broadcast %15 : vector<1x128xf32> to vector<288x128xf32>
    %17 = arith.addf %14, %16 : vector<288x128xf32>
    %18 = arith.addf %9, %17 : vector<288x128xf32>
    %c0_13 = arith.constant 0 : index
    %c0_14 = arith.constant 0 : index
    %c0_15 = arith.constant 0 : index
    %19 = vector.load %arg8[%c0_13, %c0_14, %c0_15] : memref<1x288x128xf32, #tpu.memory_space<vmem>>, vector<1x288x128xf32>
    %20 = vector.shape_cast %19 : vector<1x288x128xf32> to vector<288x128xf32>
    %21 = vector.shape_cast %18 : vector<288x128xf32> to vector<1x288x128xf32>
    tpu.vector_store %arg8[%c0_13, %c0_14, %c0_15], %21 {strides = array<i32>} : memref<1x288x128xf32, #tpu.memory_space<vmem>>, vector<1x288x128xf32>,
    return
  }
  func.func @transform_0(%arg0: i32, %arg1: i32) -> (i32, i32, i32) {
    %c0_i32 = arith.constant 0 : i32
    %c0_i32_0 = arith.constant 0 : i32
    return %arg0, %arg1, %c0_i32 : i32, i32, i32
  }
  func.func @transform_1(%arg0: i32, %arg1: i32) -> (i32, i32, i32) {
    %c0_i32 = arith.constant 0 : i32
    %c0_i32_0 = arith.constant 0 : i32
    return %arg0, %arg1, %c0_i32 : i32, i32, i32
  }
  func.func @transform_2(%arg0: i32, %arg1: i32) -> (i32, i32) {
    %c0_i32 = arith.constant 0 : i32
    %c0_i32_0 = arith.constant 0 : i32
    %c0_i32_1 = arith.constant 0 : i32
    return %c0_i32, %c0_i32_0 : i32, i32
  }
  func.func @transform_3(%arg0: i32, %arg1: i32) -> (i32, i32) {
    %c0_i32 = arith.constant 0 : i32
    %c0_i32_0 = arith.constant 0 : i32
    %c0_i32_1 = arith.constant 0 : i32
    return %c0_i32, %c0_i32_0 : i32, i32
  }
  func.func @transform_4(%arg0: i32, %arg1: i32) -> (i32, i32) {
    %c0_i32 = arith.constant 0 : i32
    %c0_i32_0 = arith.constant 0 : i32
    %c0_i32_1 = arith.constant 0 : i32
    return %c0_i32, %c0_i32_0 : i32, i32
  }
  func.func @transform_5(%arg0: i32, %arg1: i32) -> (i32, i32) {
    %c0_i32 = arith.constant 0 : i32
    %c0_i32_0 = arith.constant 0 : i32
    %c0_i32_1 = arith.constant 0 : i32
    return %c0_i32, %c0_i32_0 : i32, i32
  }
  func.func @transform_6(%arg0: i32, %arg1: i32) -> (i32, i32, i32) {
    %c0_i32 = arith.constant 0 : i32
    %c0_i32_0 = arith.constant 0 : i32
    return %arg0, %arg1, %c0_i32 : i32, i32, i32
  }
}

</mosaic_0001>

<bundles_post_ra>
// kernel: double_conv_forward.5
= control target key start
LH: loop header
LB: loop body
LE: loop exit
PB: predicated region body
PF: predicated region fallthrough
CT: control target
= control target key end

     0   :  { %s870_s21 = smov 0   ;;  %s872_s22 = smov 0   ;;  %s1189_s0 = inlined_call_operand.vmem [shape: f32[2,288,128], index: 0, kind: input, shape index: {}]   ;;  %s1190_s1 = inlined_call_operand.vmem [shape: f32[2,288,128], index: 1, kind: input, shape index: {}]   ;;  %s1191_s2 = inlined_call_operand.vmem [shape: f32[1,128], index: 2, kind: input, shape index: {}]   ;;  %s1192_s3 = inlined_call_operand.vmem [shape: f32[1,128], index: 3, kind: input, shape index: {}]   ;;  %s1193_s4 = inlined_call_operand.vmem [shape: f32[1,128], index: 4, kind: input, shape index: {}]   ;;  %s1194_s5 = inlined_call_operand.vmem [shape: f32[1,128], index: 5, kind: input, shape index: {}]   ;;  %s1195_s6 = inlined_call_operand.vmem [shape: f32[2,288,128], index: 6, kind: output, shape index: {}]  }
   0x1   :  { %s874_s23 = smov 0  }
   0x2 LB: > { %s28_s24 = sadd.s32 1, %s829_s22  ;;  %p776_p0 = scmp.ge.s32.totalorder %s833_s23, 1  ;;  %s833_s23 = sphi %s874_s23, %s16_s23   ;;  %s829_s22 = sphi %s872_s22, %s1197_s22   ;;  %s825_s21 = sphi %s870_s21, %s1196_s21  }
   0x3   : > { %p30_p1 = scmp.ge.s32.totalorder %s28_s24, 2  ;;  %p250_p2 = scmp.lt.s32.totalorder %s833_s23, 3 }
   0x5   : > { %s1199_s24 = smov (%p30_p1, %s28_s24), 0  ;;  %p251_p3 = pnand %p776_p0, %p250_p2 }
   0x6   : > { %p298_p4 = scmp.lt.s32.totalorder (!%p251_p3), %s825_s21, 1 }
   0x7   : > { %254 = sbr.rel (%p251_p3) target bundleno = 77 (0x4d), region = 44 }
   0xc   : > { %s1201_s21 = smov (!%p298_p4, %s825_s21), 1  ;;  %v893_v0 = vld [vmem:[%s1191_s2] ss:$0 sm:$0xff] }
   0xd   : > { %s888_s25 = smul.u32 288, %s1201_s21  ;;  %v898_v1 = vld [vmem:[%s1193_s4] ss:$0 sm:$0xff] }
   0xe   : > { %v915_v2 = vld [vmem:[%s1192_s3] ss:$0 sm:$0xff] }
   0xf   : > { %s904_s8 = scalar_lea.vmem %s1189_s0, %s888_s25  ;;  %s910_s11 = scalar_lea.vmem %s1190_s1, %s888_s25  ;;  %v920_v3 = vld [vmem:[%s1194_s5] ss:$0 sm:$0xff] }
  0x10   : > { %v327_v4 = vld [vmem:[%s904_s8] sm:$0xff]  ;;  %v328_v6 = vld [vmem:[%s904_s8 + $0x8] sm:$0xff]  ;;  %v329_v11 = vld [vmem:[%s904_s8 + $0x10] sm:$0xff]  ;;  %s954_s18 = scalar_lea.vmem %s1195_s6, %s888_s25 }
  0x11   : > { %v479_v5 = vld [vmem:[%s910_s11] sm:$0xff]  ;;  %v367_v7 = vmul.f32 %v893_v0, %v327_v4  ;;  %v368_v9 = vmul.f32 %v893_v0, %v328_v6  ;;  %v480_v10 = vld [vmem:[%s910_s11 + $0x8] sm:$0xff]  ;;  %v481_v12 = vld [vmem:[%s910_s11 + $0x10] sm:$0xff]  ;;  %v369_v14 = vmul.f32 %v893_v0, %v329_v11 }
  0x12   : > { %v519_v8 = vmul.f32 %v898_v1, %v479_v5  ;;  %v520_v13 = vmul.f32 %v898_v1, %v480_v10  ;;  %v521_v15 = vmul.f32 %v898_v1, %v481_v12  ;;  %v330_v16 = vld [vmem:[%s904_s8 + $0x18] sm:$0xff]  ;;  %v331_v18 = vld [vmem:[%s904_s8 + $0x20] sm:$0xff]  ;;  %v332_v24 = vld [vmem:[%s904_s8 + $0x28] sm:$0xff] }
  0x13   : > { %v482_v17 = vld [vmem:[%s910_s11 + $0x18] sm:$0xff]  ;;  %v407_v19 = vadd.f32 %v915_v2, %v367_v7  ;;  %v408_v21 = vadd.f32 %v915_v2, %v368_v9  ;;  %v370_v22 = vmul.f32 %v893_v0, %v330_v16  ;;  %v483_v23 = vld [vmem:[%s910_s11 + $0x20] sm:$0xff]  ;;  %v409_v26 = vadd.f32 %v915_v2, %v369_v14  ;;  %v484_v33 = vld [vmem:[%s910_s11 + $0x28] sm:$0xff] }
  0x14   : > { %v559_v20 = vadd.f32 %v920_v3, %v519_v8  ;;  %v560_v25 = vadd.f32 %v920_v3, %v520_v13  ;;  %v561_v27 = vadd.f32 %v920_v3, %v521_v15  ;;  %v522_v28 = vmul.f32 %v898_v1, %v482_v17  ;;  %v333_v38 = vld [vmem:[%s904_s8 + $0x30] sm:$0xff]  ;;  %v334_v44 = vld [vmem:[%s904_s8 + $0x38] sm:$0xff]  ;;  %v335_v50 = vld [vmem:[%s904_s8 + $0x40] sm:$0xff] }
  0x15   : > { %v443_v29 = vmax.f32 %v407_v19, 0.0  ;;  %v444_v30 = vmax.f32 %v408_v21, 0.0  ;;  %v410_v31 = vadd.f32 %v915_v2, %v370_v22  ;;  %v371_v32 = vmul.f32 %v893_v0, %v331_v18  ;;  %v485_v39 = vld [vmem:[%s910_s11 + $0x30] sm:$0xff]  ;;  %v486_v45 = vld [vmem:[%s910_s11 + $0x38] sm:$0xff]  ;;  %v487_v55 = vld [vmem:[%s910_s11 + $0x40] sm:$0xff] }
  0x16   : > { %v445_v34 = vmax.f32 %v409_v26, 0.0  ;;  %v562_v35 = vadd.f32 %v920_v3, %v522_v28  ;;  %v523_v36 = vmul.f32 %v898_v1, %v483_v23  ;;  %v372_v37 = vmul.f32 %v893_v0, %v332_v24  ;;  %v336_v60 = vld [vmem:[%s904_s8 + $0x48] sm:$0xff]  ;;  %v337_v6 = vld [vmem:[%s904_s8 + $0x50] sm:$0xff]  ;;  %v338_v16 = vld [vmem:[%s904_s8 + $0x58] sm:$0xff] }
  0x17   : > { %v595_v40 = vadd.f32 %v559_v20, %v443_v29  ;;  %v596_v41 = vadd.f32 %v560_v25, %v444_v30  ;;  %v446_v42 = vmax.f32 %v410_v31, 0.0  ;;  %v411_v43 = vadd.f32 %v915_v2, %v371_v32  ;;  %v488_v61 = vld [vmem:[%s910_s11 + $0x48] sm:$0xff]  ;;  %v489_v7 = vld [vmem:[%s910_s11 + $0x50] sm:$0xff]  ;;  %v490_v21 = vld [vmem:[%s910_s11 + $0x58] sm:$0xff] }
  0x18   : > { %v597_v46 = vadd.f32 %v561_v27, %v445_v34  ;;  %v563_v47 = vadd.f32 %v920_v3, %v523_v36  ;;  %v412_v48 = vadd.f32 %v915_v2, %v372_v37  ;;  %v524_v49 = vmul.f32 %v898_v1, %v484_v33  ;;  %v339_v22 = vld [vmem:[%s904_s8 + $0x60] sm:$0xff]  ;;  %v340_v28 = vld [vmem:[%s904_s8 + $0x68] sm:$0xff] }
  0x19   : > { %631 = vst [vmem:[%s954_s18] sm:$0xff] %v595_v40  ;;  %v598_v51 = vadd.f32 %v562_v35, %v446_v42  ;;  %v447_v52 = vmax.f32 %v411_v43, 0.0  ;;  %v373_v53 = vmul.f32 %v893_v0, %v333_v38  ;;  %v525_v54 = vmul.f32 %v898_v1, %v485_v39  ;;  %v491_v27 = vld [vmem:[%s910_s11 + $0x60] sm:$0xff]  ;;  %v492_v33 = vld [vmem:[%s910_s11 + $0x68] sm:$0xff]  ;;  %v341_v42 = vld [vmem:[%s904_s8 + $0x70] sm:$0xff] }
  0x1a   : > { %632 = vst [vmem:[%s954_s18 + $0x8] sm:$0xff] %v596_v41  ;;  %v448_v56 = vmax.f32 %v412_v48, 0.0  ;;  %v564_v57 = vadd.f32 %v920_v3, %v524_v49  ;;  %v374_v58 = vmul.f32 %v893_v0, %v334_v44  ;;  %v526_v59 = vmul.f32 %v898_v1, %v486_v45  ;;  %v493_v43 = vld [vmem:[%s910_s11 + $0x70] sm:$0xff]  ;;  %v342_v48 = vld [vmem:[%s904_s8 + $0x78] sm:$0xff] }
  0x1b   : > { %633 = vst [vmem:[%s954_s18 + $0x10] sm:$0xff] %v597_v46  ;;  %v599_v62 = vadd.f32 %v563_v47, %v447_v52  ;;  %v413_v63 = vadd.f32 %v915_v2, %v373_v53  ;;  %v565_v4 = vadd.f32 %v920_v3, %v525_v54  ;;  %v375_v5 = vmul.f32 %v893_v0, %v335_v50  ;;  %v494_v49 = vld [vmem:[%s910_s11 + $0x78] sm:$0xff]  ;;  %v343_v54 = vld [vmem:[%s904_s8 + $0x80] sm:$0xff] }
  0x1c   : > { %634 = vst [vmem:[%s954_s18 + $0x18] sm:$0xff] %v598_v51  ;;  %v600_v8 = vadd.f32 %v564_v57, %v448_v56  ;;  %v414_v9 = vadd.f32 %v915_v2, %v374_v58  ;;  %v566_v10 = vadd.f32 %v920_v3, %v526_v59  ;;  %v527_v11 = vmul.f32 %v898_v1, %v487_v55  ;;  %v495_v59 = vld [vmem:[%s910_s11 + $0x80] sm:$0xff] }
  0x1d   : > { %635 = vst [vmem:[%s954_s18 + $0x20] sm:$0xff] %v599_v62  ;;  %v449_v12 = vmax.f32 %v413_v63, 0.0  ;;  %v415_v13 = vadd.f32 %v915_v2, %v375_v5  ;;  %v376_v14 = vmul.f32 %v893_v0, %v336_v60  ;;  %v528_v15 = vmul.f32 %v898_v1, %v488_v61  ;;  %v496_v5 = vld [vmem:[%s910_s11 + $0x88] sm:$0xff] }
  0x1e   : > { %636 = vst [vmem:[%s954_s18 + $0x28] sm:$0xff] %v600_v8  ;;  %v450_v17 = vmax.f32 %v414_v9, 0.0  ;;  %v567_v18 = vadd.f32 %v920_v3, %v527_v11  ;;  %v377_v19 = vmul.f32 %v893_v0, %v337_v6  ;;  %v529_v20 = vmul.f32 %v898_v1, %v489_v7  ;;  %v497_v11 = vld [vmem:[%s910_s11 + $0x90] sm:$0xff] }
  0x1f   : > { %v601_v23 = vadd.f32 %v565_v4, %v449_v12  ;;  %v451_v24 = vmax.f32 %v415_v13, 0.0  ;;  %v416_v25 = vadd.f32 %v915_v2, %v376_v14  ;;  %v568_v26 = vadd.f32 %v920_v3, %v528_v15  ;;  %v344_v4 = vld [vmem:[%s904_s8 + $0x88] sm:$0xff] }
  0x20   : > { %v602_v29 = vadd.f32 %v566_v10, %v450_v17  ;;  %v417_v30 = vadd.f32 %v915_v2, %v377_v19  ;;  %v569_v31 = vadd.f32 %v920_v3, %v529_v20  ;;  %v378_v32 = vmul.f32 %v893_v0, %v338_v16  ;;  %v345_v10 = vld [vmem:[%s904_s8 + $0x90] sm:$0xff]  ;;  %v346_v20 = vld [vmem:[%s904_s8 + $0x98] sm:$0xff] }
  0x21   : > { %637 = vst [vmem:[%s954_s18 + $0x30] sm:$0xff] %v601_v23  ;;  %v603_v34 = vadd.f32 %v567_v18, %v451_v24  ;;  %v452_v35 = vmax.f32 %v416_v25, 0.0  ;;  %v530_v36 = vmul.f32 %v898_v1, %v490_v21  ;;  %v379_v37 = vmul.f32 %v893_v0, %v339_v22  ;;  %v498_v25 = vld [vmem:[%s910_s11 + $0x98] sm:$0xff] }
  0x22   : > { %638 = vst [vmem:[%s954_s18 + $0x38] sm:$0xff] %v602_v29  ;;  %v453_v38 = vmax.f32 %v417_v30, 0.0  ;;  %v418_v39 = vadd.f32 %v915_v2, %v378_v32  ;;  %v531_v40 = vmul.f32 %v898_v1, %v491_v27  ;;  %v380_v41 = vmul.f32 %v893_v0, %v340_v28  ;;  %v348_v32 = vld [vmem:[%s904_s8 + $0xa8] sm:$0xff] }
  0x23   : > { %639 = vst [vmem:[%s954_s18 + $0x40] sm:$0xff] %v603_v34  ;;  %v604_v44 = vadd.f32 %v568_v26, %v452_v35  ;;  %v570_v45 = vadd.f32 %v920_v3, %v530_v36  ;;  %v419_v46 = vadd.f32 %v915_v2, %v379_v37  ;;  %v532_v47 = vmul.f32 %v898_v1, %v492_v33  ;;  %v347_v26 = vld [vmem:[%s904_s8 + $0xa0] sm:$0xff]  ;;  %v500_v37 = vld [vmem:[%s910_s11 + $0xa8] sm:$0xff] }
  0x24   : > { %v605_v50 = vadd.f32 %v569_v31, %v453_v38  ;;  %v454_v51 = vmax.f32 %v418_v39, 0.0  ;;  %v571_v52 = vadd.f32 %v920_v3, %v531_v40  ;;  %v420_v53 = vadd.f32 %v915_v2, %v380_v41  ;;  %v499_v31 = vld [vmem:[%s910_s11 + $0xa0] sm:$0xff] }
  0x25   : > { %640 = vst [vmem:[%s954_s18 + $0x48] sm:$0xff] %v604_v44  ;;  %v455_v55 = vmax.f32 %v419_v46, 0.0  ;;  %v572_v56 = vadd.f32 %v920_v3, %v532_v47  ;;  %v381_v57 = vmul.f32 %v893_v0, %v341_v42  ;;  %v533_v58 = vmul.f32 %v898_v1, %v493_v43  ;;  %v349_v46 = vld [vmem:[%s904_s8 + $0xb0] sm:$0xff] }
  0x26   : > { %641 = vst [vmem:[%s954_s18 + $0x50] sm:$0xff] %v605_v50  ;;  %v606_v60 = vadd.f32 %v570_v45, %v454_v51  ;;  %v456_v61 = vmax.f32 %v420_v53, 0.0  ;;  %v382_v62 = vmul.f32 %v893_v0, %v342_v48  ;;  %v534_v63 = vmul.f32 %v898_v1, %v494_v49  ;;  %v501_v47 = vld [vmem:[%s910_s11 + $0xb0] sm:$0xff]  ;;  %v502_v53 = vld [vmem:[%s910_s11 + $0xb8] sm:$0xff] }
  0x27   : > { %v607_v6 = vadd.f32 %v571_v52, %v455_v55  ;;  %v421_v7 = vadd.f32 %v915_v2, %v381_v57  ;;  %v573_v8 = vadd.f32 %v920_v3, %v533_v58  ;;  %v383_v9 = vmul.f32 %v893_v0, %v343_v54  ;;  %v350_v52 = vld [vmem:[%s904_s8 + $0xb8] sm:$0xff]  ;;  %v351_v58 = vld [vmem:[%s904_s8 + $0xc0] sm:$0xff] }
  0x28   : > { %642 = vst [vmem:[%s954_s18 + $0x58] sm:$0xff] %v606_v60  ;;  %v608_v12 = vadd.f32 %v572_v56, %v456_v61  ;;  %v422_v13 = vadd.f32 %v915_v2, %v382_v62  ;;  %v574_v14 = vadd.f32 %v920_v3, %v534_v63  ;;  %v535_v15 = vmul.f32 %v898_v1, %v495_v59  ;;  %v503_v63 = vld [vmem:[%s910_s11 + $0xc0] sm:$0xff] }
  0x29   : > { %643 = vst [vmem:[%s954_s18 + $0x60] sm:$0xff] %v607_v6  ;;  %v457_v16 = vmax.f32 %v421_v7, 0.0  ;;  %v423_v17 = vadd.f32 %v915_v2, %v383_v9  ;;  %v384_v18 = vmul.f32 %v893_v0, %v344_v4  ;;  %v536_v19 = vmul.f32 %v898_v1, %v496_v5  ;;  %v504_v9 = vld [vmem:[%s910_s11 + $0xc8] sm:$0xff] }
  0x2a   : > { %644 = vst [vmem:[%s954_s18 + $0x68] sm:$0xff] %v608_v12  ;;  %v458_v21 = vmax.f32 %v422_v13, 0.0  ;;  %v575_v22 = vadd.f32 %v920_v3, %v535_v15  ;;  %v385_v23 = vmul.f32 %v893_v0, %v345_v10  ;;  %v537_v24 = vmul.f32 %v898_v1, %v497_v11  ;;  %v505_v15 = vld [vmem:[%s910_s11 + $0xd0] sm:$0xff] }
  0x2b   : > { %v609_v27 = vadd.f32 %v573_v8, %v457_v16  ;;  %v459_v28 = vmax.f32 %v423_v17, 0.0  ;;  %v424_v29 = vadd.f32 %v915_v2, %v384_v18  ;;  %v576_v30 = vadd.f32 %v920_v3, %v536_v19  ;;  %v352_v8 = vld [vmem:[%s904_s8 + $0xc8] sm:$0xff] }
  0x2c   : > { %v610_v33 = vadd.f32 %v574_v14, %v458_v21  ;;  %v425_v34 = vadd.f32 %v915_v2, %v385_v23  ;;  %v577_v35 = vadd.f32 %v920_v3, %v537_v24  ;;  %v386_v36 = vmul.f32 %v893_v0, %v346_v20  ;;  %v353_v14 = vld [vmem:[%s904_s8 + $0xd0] sm:$0xff]  ;;  %v354_v24 = vld [vmem:[%s904_s8 + $0xd8] sm:$0xff] }
  0x2d   : > { %645 = vst [vmem:[%s954_s18 + $0x70] sm:$0xff] %v609_v27  ;;  %v611_v38 = vadd.f32 %v575_v22, %v459_v28  ;;  %v460_v39 = vmax.f32 %v424_v29, 0.0  ;;  %v538_v40 = vmul.f32 %v898_v1, %v498_v25  ;;  %v387_v41 = vmul.f32 %v893_v0, %v347_v26  ;;  %v506_v29 = vld [vmem:[%s910_s11 + $0xd8] sm:$0xff] }
  0x2e   : > { %646 = vst [vmem:[%s954_s18 + $0x78] sm:$0xff] %v610_v33  ;;  %v461_v42 = vmax.f32 %v425_v34, 0.0  ;;  %v426_v43 = vadd.f32 %v915_v2, %v386_v36  ;;  %v539_v44 = vmul.f32 %v898_v1, %v499_v31  ;;  %v388_v45 = vmul.f32 %v893_v0, %v348_v32  ;;  %v356_v36 = vld [vmem:[%s904_s8 + $0xe8] sm:$0xff] }
  0x2f   : > { %647 = vst [vmem:[%s954_s18 + $0x80] sm:$0xff] %v611_v38  ;;  %v612_v48 = vadd.f32 %v576_v30, %v460_v39  ;;  %v578_v49 = vadd.f32 %v920_v3, %v538_v40  ;;  %v427_v50 = vadd.f32 %v915_v2, %v387_v41  ;;  %v540_v51 = vmul.f32 %v898_v1, %v500_v37  ;;  %v355_v30 = vld [vmem:[%s904_s8 + $0xe0] sm:$0xff]  ;;  %v508_v41 = vld [vmem:[%s910_s11 + $0xe8] sm:$0xff] }
  0x30   : > { %v613_v54 = vadd.f32 %v577_v35, %v461_v42  ;;  %v462_v55 = vmax.f32 %v426_v43, 0.0  ;;  %v579_v56 = vadd.f32 %v920_v3, %v539_v44  ;;  %v428_v57 = vadd.f32 %v915_v2, %v388_v45  ;;  %v507_v35 = vld [vmem:[%s910_s11 + $0xe0] sm:$0xff] }
  0x31   : > { %648 = vst [vmem:[%s954_s18 + $0x88] sm:$0xff] %v612_v48  ;;  %v463_v59 = vmax.f32 %v427_v50, 0.0  ;;  %v580_v60 = vadd.f32 %v920_v3, %v540_v51  ;;  %v389_v61 = vmul.f32 %v893_v0, %v349_v46  ;;  %v541_v62 = vmul.f32 %v898_v1, %v501_v47  ;;  %v357_v50 = vld [vmem:[%s904_s8 + $0xf0] sm:$0xff] }
  0x32   : > { %649 = vst [vmem:[%s954_s18 + $0x90] sm:$0xff] %v613_v54  ;;  %v614_v4 = vadd.f32 %v578_v49, %v462_v55  ;;  %v464_v5 = vmax.f32 %v428_v57, 0.0  ;;  %v390_v6 = vmul.f32 %v893_v0, %v350_v52  ;;  %v542_v7 = vmul.f32 %v898_v1, %v502_v53  ;;  %v509_v51 = vld [vmem:[%s910_s11 + $0xf0] sm:$0xff]  ;;  %v510_v57 = vld [vmem:[%s910_s11 + $0xf8] sm:$0xff] }
  0x33   : > { %v615_v10 = vadd.f32 %v579_v56, %v463_v59  ;;  %v429_v11 = vadd.f32 %v915_v2, %v389_v61  ;;  %v581_v12 = vadd.f32 %v920_v3, %v541_v62  ;;  %v391_v13 = vmul.f32 %v893_v0, %v351_v58  ;;  %v358_v56 = vld [vmem:[%s904_s8 + $0xf8] sm:$0xff]  ;;  %v359_v62 = vld [vmem:[%s904_s8 + $0x100] sm:$0xff] }
  0x34   : > { %650 = vst [vmem:[%s954_s18 + $0x98] sm:$0xff] %v614_v4  ;;  %v616_v16 = vadd.f32 %v580_v60, %v464_v5  ;;  %v430_v17 = vadd.f32 %v915_v2, %v390_v6  ;;  %v582_v18 = vadd.f32 %v920_v3, %v542_v7  ;;  %v543_v19 = vmul.f32 %v898_v1, %v503_v63  ;;  %v511_v7 = vld [vmem:[%s910_s11 + $0x100] sm:$0xff] }
  0x35   : > { %651 = vst [vmem:[%s954_s18 + $0xa0] sm:$0xff] %v615_v10  ;;  %v465_v20 = vmax.f32 %v429_v11, 0.0  ;;  %v431_v21 = vadd.f32 %v915_v2, %v391_v13  ;;  %v392_v22 = vmul.f32 %v893_v0, %v352_v8  ;;  %v544_v23 = vmul.f32 %v898_v1, %v504_v9  ;;  %v512_v13 = vld [vmem:[%s910_s11 + $0x108] sm:$0xff] }
  0x36   : > { %652 = vst [vmem:[%s954_s18 + $0xa8] sm:$0xff] %v616_v16  ;;  %v466_v25 = vmax.f32 %v430_v17, 0.0  ;;  %v583_v26 = vadd.f32 %v920_v3, %v543_v19  ;;  %v393_v27 = vmul.f32 %v893_v0, %v353_v14  ;;  %v545_v28 = vmul.f32 %v898_v1, %v505_v15  ;;  %v513_v19 = vld [vmem:[%s910_s11 + $0x110] sm:$0xff] }
  0x37   : > { %v617_v31 = vadd.f32 %v581_v12, %v465_v20  ;;  %v467_v32 = vmax.f32 %v431_v21, 0.0  ;;  %v432_v33 = vadd.f32 %v915_v2, %v392_v22  ;;  %v584_v34 = vadd.f32 %v920_v3, %v544_v23  ;;  %v360_v12 = vld [vmem:[%s904_s8 + $0x108] sm:$0xff] }
  0x38   : > { %v618_v37 = vadd.f32 %v582_v18, %v466_v25  ;;  %v433_v38 = vadd.f32 %v915_v2, %v393_v27  ;;  %v585_v39 = vadd.f32 %v920_v3, %v545_v28  ;;  %v394_v40 = vmul.f32 %v893_v0, %v354_v24  ;;  %v361_v18 = vld [vmem:[%s904_s8 + $0x110] sm:$0xff]  ;;  %v362_v28 = vld [vmem:[%s904_s8 + $0x118] sm:$0xff] }
  0x39   : > { %653 = vst [vmem:[%s954_s18 + $0xb0] sm:$0xff] %v617_v31  ;;  %v619_v42 = vadd.f32 %v583_v26, %v467_v32  ;;  %v468_v43 = vmax.f32 %v432_v33, 0.0  ;;  %v546_v44 = vmul.f32 %v898_v1, %v506_v29  ;;  %v395_v45 = vmul.f32 %v893_v0, %v355_v30  ;;  %v514_v33 = vld [vmem:[%s910_s11 + $0x118] sm:$0xff] }
  0x3a   : > { %654 = vst [vmem:[%s954_s18 + $0xb8] sm:$0xff] %v618_v37  ;;  %v469_v46 = vmax.f32 %v433_v38, 0.0  ;;  %v434_v47 = vadd.f32 %v915_v2, %v394_v40  ;;  %v547_v48 = vmul.f32 %v898_v1, %v507_v35  ;;  %v396_v49 = vmul.f32 %v893_v0, %v356_v36 }
  0x3b   : > { %655 = vst [vmem:[%s954_s18 + $0xc0] sm:$0xff] %v619_v42  ;;  %v620_v52 = vadd.f32 %v584_v34, %v468_v43  ;;  %v586_v53 = vadd.f32 %v920_v3, %v546_v44  ;;  %v435_v54 = vadd.f32 %v915_v2, %v395_v45  ;;  %v548_v55 = vmul.f32 %v898_v1, %v508_v41 }
  0x3c   : > { %v621_v58 = vadd.f32 %v585_v39, %v469_v46  ;;  %v470_v59 = vmax.f32 %v434_v47, 0.0  ;;  %v587_v60 = vadd.f32 %v920_v3, %v547_v48  ;;  %v436_v61 = vadd.f32 %v915_v2, %v396_v49 }
  0x3d   : > { %656 = vst [vmem:[%s954_s18 + $0xc8] sm:$0xff] %v620_v52  ;;  %v471_v63 = vmax.f32 %v435_v54, 0.0  ;;  %v588_v4 = vadd.f32 %v920_v3, %v548_v55  ;;  %v397_v5 = vmul.f32 %v893_v0, %v357_v50  ;;  %v549_v6 = vmul.f32 %v898_v1, %v509_v51 }
  0x3e   : > { %657 = vst [vmem:[%s954_s18 + $0xd0] sm:$0xff] %v621_v58  ;;  %v622_v8 = vadd.f32 %v586_v53, %v470_v59  ;;  %v472_v9 = vmax.f32 %v436_v61, 0.0  ;;  %v398_v10 = vmul.f32 %v893_v0, %v358_v56  ;;  %v550_v11 = vmul.f32 %v898_v1, %v510_v57 }
  0x3f   : > { %v623_v14 = vadd.f32 %v587_v60, %v471_v63  ;;  %v437_v15 = vadd.f32 %v915_v2, %v397_v5  ;;  %v589_v16 = vadd.f32 %v920_v3, %v549_v6  ;;  %v399_v17 = vmul.f32 %v893_v0, %v359_v62 }
  0x40   : > { %658 = vst [vmem:[%s954_s18 + $0xd8] sm:$0xff] %v622_v8  ;;  %v624_v20 = vadd.f32 %v588_v4, %v472_v9  ;;  %v438_v21 = vadd.f32 %v915_v2, %v398_v10  ;;  %v590_v22 = vadd.f32 %v920_v3, %v550_v11  ;;  %v551_v23 = vmul.f32 %v898_v1, %v511_v7 }
  0x41   : > { %659 = vst [vmem:[%s954_s18 + $0xe0] sm:$0xff] %v623_v14  ;;  %v473_v24 = vmax.f32 %v437_v15, 0.0  ;;  %v439_v25 = vadd.f32 %v915_v2, %v399_v17  ;;  %v400_v26 = vmul.f32 %v893_v0, %v360_v12  ;;  %v552_v27 = vmul.f32 %v898_v1, %v512_v13 }
  0x42   : > { %660 = vst [vmem:[%s954_s18 + $0xe8] sm:$0xff] %v624_v20  ;;  %v474_v29 = vmax.f32 %v438_v21, 0.0  ;;  %v591_v30 = vadd.f32 %v920_v3, %v551_v23  ;;  %v401_v31 = vmul.f32 %v893_v0, %v361_v18  ;;  %v553_v32 = vmul.f32 %v898_v1, %v513_v19 }
  0x43   : > { %v625_v34 = vadd.f32 %v589_v16, %v473_v24  ;;  %v475_v35 = vmax.f32 %v439_v25, 0.0  ;;  %v440_v36 = vadd.f32 %v915_v2, %v400_v26  ;;  %v592_v37 = vadd.f32 %v920_v3, %v552_v27 }
  0x44   : > { %v626_v38 = vadd.f32 %v590_v22, %v474_v29  ;;  %v441_v39 = vadd.f32 %v915_v2, %v401_v31  ;;  %v593_v40 = vadd.f32 %v920_v3, %v553_v32  ;;  %v402_v41 = vmul.f32 %v893_v0, %v362_v28 }
  0x45   : > { %661 = vst [vmem:[%s954_s18 + $0xf0] sm:$0xff] %v625_v34  ;;  %v627_v42 = vadd.f32 %v591_v30, %v475_v35  ;;  %v476_v43 = vmax.f32 %v440_v36, 0.0  ;;  %v554_v44 = vmul.f32 %v898_v1, %v514_v33 }
  0x46   : > { %662 = vst [vmem:[%s954_s18 + $0xf8] sm:$0xff] %v626_v38  ;;  %v477_v45 = vmax.f32 %v441_v39, 0.0  ;;  %v442_v46 = vadd.f32 %v915_v2, %v402_v41 }
  0x47   : > { %663 = vst [vmem:[%s954_s18 + $0x100] sm:$0xff] %v627_v42  ;;  %v628_v47 = vadd.f32 %v592_v37, %v476_v43  ;;  %v594_v48 = vadd.f32 %v920_v3, %v554_v44 }
  0x48   : > { %v629_v49 = vadd.f32 %v593_v40, %v477_v45  ;;  %v478_v50 = vmax.f32 %v442_v46, 0.0 }
  0x49   : > { %664 = vst [vmem:[%s954_s18 + $0x108] sm:$0xff] %v628_v47 }
  0x4a   : > { %665 = vst [vmem:[%s954_s18 + $0x110] sm:$0xff] %v629_v49  ;;  %v630_v51 = vadd.f32 %v594_v48, %v478_v50 }
  0x4c   : > { %666 = vst [vmem:[%s954_s18 + $0x118] sm:$0xff] %v630_v51 }
  0x4d PF: > { %s16_s23 = sadd.s32 1, %s833_s23   ;;  %s1196_s21 = smov %s829_s22 }
  0x4e   : > { %p13_p5 = scmp.ge.s32.totalorder %s16_s23, 4   ;;  %s1197_s22 = smov %s1199_s24 }
  0x50   :  { %15 = sbr.rel (!%p13_p5) target bundleno = 2 (0x2), region = 77 }

// kernel: double_conv_forward.3
= control target key start
LH: loop header
LB: loop body
LE: loop exit
PB: predicated region body
PF: predicated region fallthrough
CT: control target
= control target key end

     0   :  { %s3720_s30 = smov 0   ;;  %s4797_s0 = inlined_call_operand.vmem [shape: f32[2,328,4], index: 0, kind: input, shape index: {}]   ;;  %s4798_s1 = inlined_call_operand.vmem [shape: bf16[9,4,128], index: 1, kind: input, shape index: {}]   ;;  %s4799_s2 = inlined_call_operand.vmem [shape: bf16[4,128], index: 2, kind: input, shape index: {}]   ;;  %s4800_s3 = inlined_call_operand.vmem [shape: f32[336,1], index: 3, kind: input, shape index: {}]   ;;  %s4801_s4 = inlined_call_operand.vmem [shape: f32[2,336,128], index: 4, kind: output, shape index: {0}]   ;;  %s4802_s5 = inlined_call_operand.vmem [shape: f32[2,288,128], index: 5, kind: output, shape index: {1}]   ;;  %s4803_s6 = inlined_call_operand.vmem [shape: f32[1,128], index: 6, kind: output, shape index: {2}]   ;;  %s4804_s7 = inlined_call_operand.vmem [shape: f32[1,128], index: 7, kind: output, shape index: {3}]   ;;  %s4805_s8 = inlined_call_operand.vmem [shape: f32[1,128], index: 8, kind: output, shape index: {4}]   ;;  %s4806_s9 = inlined_call_operand.vmem [shape: f32[1,128], index: 9, kind: output, shape index: {5}]  }
   0x1 LB: > { %s3441_s10 = sadd.s32 4294967295, %s3665_s30   ;;  %p3445_p0 = scmp.ge.s32.totalorder %s3665_s30, 1  ;;  %s3665_s30 = sphi %s3720_s30, %s20_s30  }
   0x2   : > { %p278_p1 = scmp.lt.s32.totalorder %s3665_s30, 3 }
   0x4   : > { %p279_p2 = pnand %p3445_p0, %p278_p1 }
   0x6   : > { %282 = sbr.rel (%p279_p2) target bundleno = 905 (0x389), region = 36 }
   0xb   : > { %p319_p3 = scmp.lt.s32.totalorder %s3441_s10, 1  ;;  %p3449_p4 = scmp.ne.s32.totalorder %s3441_s10, 0 }
   0xd   : > { %s320_s11 = scalar_select %p319_p3, %s3441_s10, 1 }
   0xf   : > { %s3642_s12 = smul.u32 328, %s320_s11 }
  0x10   : > { %s3643_s13 = smul.u32 336, %s320_s11 }
  0x11   : > { %s3731_s16 = scalar_lea.vmem %s4797_s0, %s3642_s12  ;;  %s3644_s17 = smul.u32 288, %s320_s11 }
  0x12   : > { %s3736_s20 = scalar_lea.vmem %s4801_s4, %s3643_s13  ;;  %338 = sbr.rel (%p3449_p4) target bundleno = 28 (0x1c), region = 40 }
  0x13   : > { %s3741_s23 = scalar_lea.vmem %s4802_s5, %s3644_s17 }
  0x17   : > { %v3667_v0 = vmov 0.0  }
  0x18   : > { %339 = vst [vmem:[%s4803_s6] sm:$0x1] %v3667_v0 }
  0x19   : > { %340 = vst [vmem:[%s4804_s7] sm:$0x1] %v3667_v0 }
  0x1a   : > { %341 = vst [vmem:[%s4805_s8] sm:$0x1] %v3667_v0 }
  0x1b   : > { %342 = vst [vmem:[%s4806_s9] sm:$0x1] %v3667_v0 }
  0x1c PF: > { %v3450_v1 = vld [vmem:[%s4798_s1 + $0x2] sm:$0x3]  ;;  %vm509_vm0 = vcmask 1041408   ;;  %v397_v2 = vld [vmem:[%s4798_s1] sm:$0x3]  ;;  %v416_v3 = vld [vmem:[%s3731_s16 + $0x91] sm:$0xff] }
  0x1d   : > { %v511_v4 = vsel %vm509_vm0, %v3450_v1, 0  ;;  %v667_v5 = vsel %vm509_vm0, %v397_v2, 0  ;;  %v417_v6 = vld [vmem:[%s3731_s16 + $0x99] sm:$0xff]  ;;  %v344_v8 = vld [vmem:[%s3731_s16 + $0x8] sm:$0xff]  ;;  %vm454_vm1 = vcmask 31744   ;;  %v361_v11 = vld [vmem:[%s3731_s16 + $0x90] sm:$0xff] }
  0x1e   : > { %v343_v7 = vld [vmem:[%s3731_s16] sm:$0xff]  ;;  %3640 = vmatpush.bf16.msra.mxu2 %v511_v4  ;;  %676 = vmatpush.bf16.msra.mxu1 %v667_v5  ;;  %v443_v9 = vpack.c.bf16 %v417_v6, %v416_v3  ;;  %v362_v12 = vld [vmem:[%s3731_s16 + $0x98] sm:$0xff]  ;;  %v399_v17 = vld [vmem:[%s3731_s16 + $0x9] sm:$0xff] }
  0x1f   : > { %v379_v10 = vpack.c.bf16 %v344_v8, %v343_v7  ;;  %v3487_v13 = vld [vmem:[%s4798_s1 + $0x4] sm:$0x3]  ;;  %3641 = vmatpush.bf16.msra.mxu3 %v667_v5  ;;  %520 = vmatpush.bf16.msra.mxu0 %v511_v4  ;;  %v388_v14 = vpack.c.bf16 %v362_v12, %v361_v11  ;;  %v3506_v18 = vld [vmem:[%s4798_s1 + $0x6] sm:$0x3]  ;;  %v3525_v21 = vld [vmem:[%s4798_s1 + $0x8] sm:$0x3] }
  0x20   : > { %v879_v15 = vsel %vm509_vm0, %v3487_v13, 0  ;;  %v398_v16 = vld [vmem:[%s3731_s16 + $0x1] sm:$0xff]  ;;  %v1127_v20 = vsel %vm509_vm0, %v3506_v18, 0  ;;  %v3544_v22 = vld [vmem:[%s4798_s1 + $0xa] sm:$0x3]  ;;  %v1375_v23 = vsel %vm509_vm0, %v3525_v21, 0 }
  0x21   : > { %v434_v19 = vpack.c.bf16 %v399_v17, %v398_v16  ;;  %3460 = vmatmul.msk.bf16.vlgmr.msra.gmra.mxu2 %vm454_vm1, %v443_v9  ;;  %3469 = vmatmul.msk.bf16.vlgmr.msra.gmra.mxu1 %vm454_vm1, %v379_v10  ;;  %v1623_v24 = vsel %vm509_vm0, %v3544_v22, 0  ;;  %v418_v25 = vld [vmem:[%s3731_s16 + $0xa1] sm:$0xff]  ;;  %v419_v26 = vld [vmem:[%s3731_s16 + $0xa9] sm:$0xff]  ;;  %v346_v28 = vld [vmem:[%s3731_s16 + $0x18] sm:$0xff] }
  0x22   : > { %888 = vmatpush.bf16.msrb.mxu2 %v879_v15  ;;  %3478 = vmatmul.msk.bf16.vlgmr.msra.gmra.mxu3 %vm454_vm1, %v388_v14  ;;  %v345_v27 = vld [vmem:[%s3731_s16 + $0x10] sm:$0xff]  ;;  %v363_v29 = vld [vmem:[%s3731_s16 + $0xa0] sm:$0xff]  ;;  %v364_v30 = vld [vmem:[%s3731_s16 + $0xa8] sm:$0xff]  ;;  %v444_v33 = vpack.c.bf16 %v419_v26, %v418_v25 }
  0x23   : > { %3451 = vmatmul.msk.bf16.vlgmr.msra.gmra.mxu0 %vm454_vm1, %v434_v19  ;;  %1136 = vmatpush.bf16.msrb.mxu3 %v1127_v20  ;;  %v400_v31 = vld [vmem:[%s3731_s16 + $0x11] sm:$0xff]  ;;  %v401_v32 = vld [vmem:[%s3731_s16 + $0x19] sm:$0xff]  ;;  %v380_v34 = vpack.c.bf16 %v346_v28, %v345_v27  ;;  %v389_v35 = vpack.c.bf16 %v364_v30, %v363_v29  ;;  %v348_v40 = vld [vmem:[%s3731_s16 + $0x28] sm:$0xff] }
  0x24   : > { %1384 = vmatpush.bf16.msrb.mxu0 %v1375_v23  ;;  %1632 = vmatpush.bf16.msrb.mxu1 %v1623_v24  ;;  %v435_v36 = vpack.c.bf16 %v401_v32, %v400_v31  ;;  %v420_v37 = vld [vmem:[%s3731_s16 + $0xb1] sm:$0xff]  ;;  %v421_v38 = vld [vmem:[%s3731_s16 + $0xb9] sm:$0xff]  ;;  %v402_v43 = vld [vmem:[%s3731_s16 + $0x21] sm:$0xff] }
  0x25   : > { %v347_v39 = vld [vmem:[%s3731_s16 + $0x20] sm:$0xff]  ;;  %v365_v41 = vld [vmem:[%s3731_s16 + $0xb0] sm:$0xff]  ;;  %v366_v42 = vld [vmem:[%s3731_s16 + $0xb8] sm:$0xff]  ;;  %v445_v45 = vpack.c.bf16 %v421_v38, %v420_v37 }
  0x26   : > { %v403_v44 = vld [vmem:[%s3731_s16 + $0x29] sm:$0xff]  ;;  %v381_v46 = vpack.c.bf16 %v348_v40, %v347_v39  ;;  %v390_v47 = vpack.c.bf16 %v366_v42, %v365_v41  ;;  %v422_v49 = vld [vmem:[%s3731_s16 + $0xc1] sm:$0xff]  ;;  %v350_v52 = vld [vmem:[%s3731_s16 + $0x38] sm:$0xff] }
  0x27   : > { %v436_v48 = vpack.c.bf16 %v403_v44, %v402_v43  ;;  %v423_v50 = vld [vmem:[%s3731_s16 + $0xc9] sm:$0xff]  ;;  %v367_v53 = vld [vmem:[%s3731_s16 + $0xc0] sm:$0xff]  ;;  %v404_v55 = vld [vmem:[%s3731_s16 + $0x31] sm:$0xff] }
  0x28   : > { %v349_v51 = vld [vmem:[%s3731_s16 + $0x30] sm:$0xff]  ;;  %v368_v54 = vld [vmem:[%s3731_s16 + $0xc8] sm:$0xff]  ;;  %v405_v56 = vld [vmem:[%s3731_s16 + $0x39] sm:$0xff]  ;;  %v446_v57 = vpack.c.bf16 %v423_v50, %v422_v49 }
  0x29   : > { %v382_v58 = vpack.c.bf16 %v350_v52, %v349_v51  ;;  %v391_v59 = vpack.c.bf16 %v368_v54, %v367_v53  ;;  %v437_v60 = vpack.c.bf16 %v405_v56, %v404_v55  ;;  %v424_v61 = vld [vmem:[%s3731_s16 + $0xd1] sm:$0xff]  ;;  %v425_v62 = vld [vmem:[%s3731_s16 + $0xd9] sm:$0xff]  ;;  %v352_v0 = vld [vmem:[%s3731_s16 + $0x48] sm:$0xff] }
  0x2a   : > { %v351_v63 = vld [vmem:[%s3731_s16 + $0x40] sm:$0xff]  ;;  %v369_v1 = vld [vmem:[%s3731_s16 + $0xd0] sm:$0xff]  ;;  %v370_v2 = vld [vmem:[%s3731_s16 + $0xd8] sm:$0xff]  ;;  %v447_v5 = vpack.c.bf16 %v425_v62, %v424_v61 }
  0x2b   : > { %v406_v3 = vld [vmem:[%s3731_s16 + $0x41] sm:$0xff]  ;;  %v407_v4 = vld [vmem:[%s3731_s16 + $0x49] sm:$0xff]  ;;  %v383_v6 = vpack.c.bf16 %v352_v0, %v351_v63  ;;  %v392_v7 = vpack.c.bf16 %v370_v2, %v369_v1  ;;  %v354_v12 = vld [vmem:[%s3731_s16 + $0x58] sm:$0xff]  ;;  %v3668_v2 = vmov 0.0  }
  0x2c   : > { %v438_v8 = vpack.c.bf16 %v407_v4, %v406_v3  ;;  %v426_v9 = vld [vmem:[%s3731_s16 + $0xe1] sm:$0xff]  ;;  %v427_v10 = vld [vmem:[%s3731_s16 + $0xe9] sm:$0xff]  ;;  %v408_v15 = vld [vmem:[%s3731_s16 + $0x51] sm:$0xff]  ;;  %2504 = vst [vmem:[%s3736_s20] sm:$0xff] %v3668_v2 }
  0x2d   : > { %v353_v11 = vld [vmem:[%s3731_s16 + $0x50] sm:$0xff]  ;;  %v371_v13 = vld [vmem:[%s3731_s16 + $0xe0] sm:$0xff]  ;;  %v372_v14 = vld [vmem:[%s3731_s16 + $0xe8] sm:$0xff]  ;;  %v448_v17 = vpack.c.bf16 %v427_v10, %v426_v9  ;;  %2505 = vst [vmem:[%s3736_s20 + $0x8] sm:$0xff] %v3668_v2 }
  0x2e   : > { %v409_v16 = vld [vmem:[%s3731_s16 + $0x59] sm:$0xff]  ;;  %v384_v18 = vpack.c.bf16 %v354_v12, %v353_v11  ;;  %v393_v19 = vpack.c.bf16 %v372_v14, %v371_v13  ;;  %v428_v21 = vld [vmem:[%s3731_s16 + $0xf1] sm:$0xff]  ;;  %v356_v24 = vld [vmem:[%s3731_s16 + $0x68] sm:$0xff]  ;;  %2506 = vst [vmem:[%s3736_s20 + $0x10] sm:$0xff] %v3668_v2 }
  0x2f   : > { %v439_v20 = vpack.c.bf16 %v409_v16, %v408_v15  ;;  %v429_v22 = vld [vmem:[%s3731_s16 + $0xf9] sm:$0xff]  ;;  %v373_v25 = vld [vmem:[%s3731_s16 + $0xf0] sm:$0xff]  ;;  %v410_v27 = vld [vmem:[%s3731_s16 + $0x61] sm:$0xff]  ;;  %2543 = vst [vmem:[%s3736_s20 + $0x138] sm:$0xff] %v3668_v2 }
  0x30   : > { %v355_v23 = vld [vmem:[%s3731_s16 + $0x60] sm:$0xff]  ;;  %v374_v26 = vld [vmem:[%s3731_s16 + $0xf8] sm:$0xff]  ;;  %v411_v28 = vld [vmem:[%s3731_s16 + $0x69] sm:$0xff]  ;;  %v449_v29 = vpack.c.bf16 %v429_v22, %v428_v21  ;;  %2544 = vst [vmem:[%s3736_s20 + $0x140] sm:$0xff] %v3668_v2 }
  0x31   : > { %3461 = vmatmul.msk.bf16.gmra.mxu2 %vm454_vm1, %v444_v33  ;;  %3470 = vmatmul.msk.bf16.gmra.mxu1 %vm454_vm1, %v380_v34  ;;  %v385_v30 = vpack.c.bf16 %v356_v24, %v355_v23  ;;  %v394_v31 = vpack.c.bf16 %v374_v26, %v373_v25  ;;  %v440_v32 = vpack.c.bf16 %v411_v28, %v410_v27  ;;  %v430_v33 = vld [vmem:[%s3731_s16 + $0x101] sm:$0xff]  ;;  %v431_v34 = vld [vmem:[%s3731_s16 + $0x109] sm:$0xff]  ;;  %v412_v39 = vld [vmem:[%s3731_s16 + $0x71] sm:$0xff] }
  0x32   : > { %3479 = vmatmul.msk.bf16.gmra.mxu3 %vm454_vm1, %v389_v35  ;;  %v357_v35 = vld [vmem:[%s3731_s16 + $0x70] sm:$0xff]  ;;  %v375_v37 = vld [vmem:[%s3731_s16 + $0x100] sm:$0xff]  ;;  %v376_v38 = vld [vmem:[%s3731_s16 + $0x108] sm:$0xff]  ;;  %v450_v41 = vpack.c.bf16 %v431_v34, %v430_v33  ;;  %2545 = vst [vmem:[%s3736_s20 + $0x148] sm:$0xff] %v3668_v2 }
  0x33   : > { %3452 = vmatmul.msk.bf16.gmra.mxu0 %vm454_vm1, %v435_v36  ;;  %v358_v36 = vld [vmem:[%s3731_s16 + $0x78] sm:$0xff]  ;;  %v395_v43 = vpack.c.bf16 %v376_v38, %v375_v37  ;;  %v3601_v49 = vld [vmem:[%s4798_s1 + $0x10] sm:$0x3]  ;;  %v359_v53 = vld [vmem:[%s3731_s16 + $0x80] sm:$0xff] }
  0x34   : > { %v413_v40 = vld [vmem:[%s3731_s16 + $0x79] sm:$0xff]  ;;  %v386_v42 = vpack.c.bf16 %v358_v36, %v357_v35  ;;  %v432_v50 = vld [vmem:[%s3731_s16 + $0x111] sm:$0xff]  ;;  %v2367_v52 = vsel %vm509_vm0, %v3601_v49, 0  ;;  %v360_v54 = vld [vmem:[%s3731_s16 + $0x88] sm:$0xff] }
  0x35   : > { %v441_v44 = vpack.c.bf16 %v413_v40, %v412_v39  ;;  %v433_v51 = vld [vmem:[%s3731_s16 + $0x119] sm:$0xff]  ;;  %v377_v55 = vld [vmem:[%s3731_s16 + $0x110] sm:$0xff]  ;;  %2376 = vmatpush.bf16.msra.mxu0 %v2367_v52  ;;  %v768_v11 = vld [vmem:[%s3731_s16 + $0x2] sm:$0xff] }
  0x36   : > { %v378_v56 = vld [vmem:[%s3731_s16 + $0x118] sm:$0xff]  ;;  %v2600_v0 = vld [vmem:[%s4799_s2] sm:$0x3]  ;;  %v769_v12 = vld [vmem:[%s3731_s16 + $0xa] sm:$0xff] }
  0x37   : > { %v396_v62 = vpack.c.bf16 %v378_v56, %v377_v55  ;;  %v2656_v3 = vsel %vm509_vm0, %v2600_v0, 0  ;;  %v1016_v13 = vld [vmem:[%s3731_s16 + $0x12] sm:$0xff]  ;;  %v1513_v15 = vld [vmem:[%s3731_s16 + $0x1c] sm:$0xff]  ;;  %v804_v21 = vpack.c.bf16 %v769_v12, %v768_v11  ;;  %v1514_v36 = vld [vmem:[%s3731_s16 + $0x24] sm:$0xff] }
  0x38   : > { %2665 = vmatpush.bf16.msra.mxu1 %v2656_v3  ;;  %v1512_v14 = vld [vmem:[%s3731_s16 + $0x14] sm:$0xff]  ;;  %v1018_v35 = vld [vmem:[%s3731_s16 + $0x22] sm:$0xff]  ;;  %v1515_v37 = vld [vmem:[%s3731_s16 + $0x2c] sm:$0xff] }
  0x39   : > { %v1017_v16 = vld [vmem:[%s3731_s16 + $0x1a] sm:$0xff]  ;;  %v1548_v22 = vpack.c.bf16 %v1513_v15, %v1512_v14  ;;  %v1019_v38 = vld [vmem:[%s3731_s16 + $0x2a] sm:$0xff]  ;;  %v1020_v56 = vld [vmem:[%s3731_s16 + $0x32] sm:$0xff] }
  0x3a   : > { %v1052_v25 = vpack.c.bf16 %v1017_v16, %v1016_v13  ;;  %v1266_v39 = vld [vmem:[%s3731_s16 + $0x23] sm:$0xff]  ;;  %v1267_v40 = vld [vmem:[%s3731_s16 + $0x2b] sm:$0xff] }
  0x3b   : > { %v1022_v16 = vld [vmem:[%s3731_s16 + $0x42] sm:$0xff] }
  0x41   : > { %3462 = vmatmul.msk.bf16.gmra.mxu2 %vm454_vm1, %v445_v45  ;;  %3471 = vmatmul.msk.bf16.gmra.mxu1 %vm454_vm1, %v381_v46  ;;  %v3563_v45 = vld [vmem:[%s4798_s1 + $0xc] sm:$0x3]  ;;  %v3582_v46 = vld [vmem:[%s4798_s1 + $0xe] sm:$0x3] }
  0x42   : > { %3480 = vmatmul.msk.bf16.gmra.mxu3 %vm454_vm1, %v390_v47  ;;  %v1871_v47 = vsel %vm509_vm0, %v3563_v45, 0 }
  0x43   : > { %3453 = vmatmul.msk.bf16.gmra.mxu0 %vm454_vm1, %v436_v48  ;;  %v2119_v48 = vsel %vm509_vm0, %v3582_v46, 0  ;;  %1880 = vmatpush.bf16.msra.mxu2 %v1871_v47  ;;  %v1053_v46 = vpack.c.bf16 %v1019_v38, %v1018_v35  ;;  %v1301_v47 = vpack.c.bf16 %v1267_v40, %v1266_v39 }
  0x44   : > { %2128 = vmatpush.bf16.msra.mxu3 %v2119_v48 }
  0x51   : > { %3463 = vmatmul.msk.bf16.gmra.mxu2 %vm454_vm1, %v446_v57  ;;  %3472 = vmatmul.msk.bf16.gmra.mxu1 %vm454_vm1, %v382_v58  ;;  %v414_v57 = vld [vmem:[%s3731_s16 + $0x81] sm:$0xff]  ;;  %v415_v58 = vld [vmem:[%s3731_s16 + $0x89] sm:$0xff] }
  0x52   : > { %3481 = vmatmul.msk.bf16.gmra.mxu3 %vm454_vm1, %v391_v59  ;;  %v451_v59 = vpack.c.bf16 %v433_v51, %v432_v50  ;;  %v442_v63 = vpack.c.bf16 %v415_v58, %v414_v57  ;;  %v1516_v57 = vld [vmem:[%s3731_s16 + $0x34] sm:$0xff]  ;;  %v1517_v58 = vld [vmem:[%s3731_s16 + $0x3c] sm:$0xff] }
  0x53   : > { %3454 = vmatmul.msk.bf16.gmra.mxu0 %vm454_vm1, %v437_v60  ;;  %v387_v60 = vpack.c.bf16 %v360_v54, %v359_v53  ;;  %v3962_v0 = vpack.c.bf16 %v1517_v58, %v1516_v57 }
  0x61   : > { %3464 = vmatmul.msk.bf16.gmra.mxu2 %vm454_vm1, %v447_v5  ;;  %3473 = vmatmul.msk.bf16.gmra.mxu1 %vm454_vm1, %v383_v6 }
  0x62   : > { %3482 = vmatmul.msk.bf16.gmra.mxu3 %vm454_vm1, %v392_v7 }
  0x63   : > { %3455 = vmatmul.msk.bf16.gmra.mxu0 %vm454_vm1, %v438_v8 }
  0x71   : > { %3465 = vmatmul.msk.bf16.gmra.mxu2 %vm454_vm1, %v448_v17  ;;  %3474 = vmatmul.msk.bf16.gmra.mxu1 %vm454_vm1, %v384_v18  ;;  %v1264_v17 = vld [vmem:[%s3731_s16 + $0x13] sm:$0xff]  ;;  %v1265_v18 = vld [vmem:[%s3731_s16 + $0x1b] sm:$0xff] }
  0x72   : > { %3483 = vmatmul.msk.bf16.gmra.mxu3 %vm454_vm1, %v393_v19  ;;  %v1300_v26 = vpack.c.bf16 %v1265_v18, %v1264_v17  ;;  %v1518_v17 = vld [vmem:[%s3731_s16 + $0x44] sm:$0xff]  ;;  %v1519_v18 = vld [vmem:[%s3731_s16 + $0x4c] sm:$0xff] }
  0x73   : > { %3456 = vmatmul.msk.bf16.gmra.mxu0 %vm454_vm1, %v439_v20 }
  0x81   : > { %3466 = vmatmul.msk.bf16.gmra.mxu2 %vm454_vm1, %v449_v29  ;;  %3475 = vmatmul.msk.bf16.gmra.mxu1 %vm454_vm1, %v385_v30 }
  0x82   : > { %3484 = vmatmul.msk.bf16.gmra.mxu3 %vm454_vm1, %v394_v31 }
  0x83   : > { %3457 = vmatmul.msk.bf16.gmra.mxu0 %vm454_vm1, %v440_v32 }
  0x91   : > { %3467 = vmatmul.msk.bf16.gmra.mxu2 %vm454_vm1, %v450_v41  ;;  %3476 = vmatmul.msk.bf16.gmra.mxu1 %vm454_vm1, %v386_v42 }
  0x92   : > { %3485 = vmatmul.msk.bf16.gmra.mxu3 %vm454_vm1, %v395_v43  ;;  %v3941_v43 = vpack.c.bf16 %v1515_v37, %v1514_v36 }
  0x93   : > { %3458 = vmatmul.msk.bf16.gmra.mxu0 %vm454_vm1, %v441_v44 }
  0x9e   : > { %v678_v61 = vpop.f32.mrf.mxu1 }
  0xa0   : > { %v522_v1 = vpop.f32.mrf.mxu0 }
  0xa1   : > { %v3900_v4 = vadd.f32 %v678_v61, %v522_v1  ;;  %3468 = vmatmul.msk.bf16.gmra.mxu2 %vm454_vm1, %v451_v59  ;;  %3477 = vmatmul.msk.bf16.gmra.mxu1 %vm454_vm1, %v387_v60  ;;  %v1021_v59 = vld [vmem:[%s3731_s16 + $0x3a] sm:$0xff] }
  0xa2   : > { %3486 = vmatmul.msk.bf16.gmra.mxu3 %vm454_vm1, %v396_v62  ;;  %v1268_v60 = vld [vmem:[%s3731_s16 + $0x33] sm:$0xff]  ;;  %v1269_v61 = vld [vmem:[%s3731_s16 + $0x3b] sm:$0xff]  ;;  %v1054_v3 = vpack.c.bf16 %v1021_v59, %v1020_v56 }
  0xa3   : > { %3459 = vmatmul.msk.bf16.gmra.mxu0 %vm454_vm1, %v442_v63 }
  0xa4   : > { %v567_v5 = vpop.f32.mrf.mxu2 }
  0xa5   : > { %v723_v6 = vpop.f32.mrf.mxu3 }
  0xa6   : > { %v3911_v7 = vadd.f32 %v723_v6, %v567_v5  ;;  %v680_v8 = vpop.f32.mrf.mxu1  ;;  %v1302_v5 = vpack.c.bf16 %v1269_v61, %v1268_v60 }
  0xa8   : > { %v524_v9 = vpop.f32.mrf.mxu0 }
  0xa9   : > { %v3913_v10 = vadd.f32 %v680_v8, %v524_v9 }
  0xac   : > { %v569_v19 = vpop.f32.mrf.mxu2 }
  0xad   : > { %v725_v20 = vpop.f32.mrf.mxu3 }
  0xae   : > { %v3923_v23 = vadd.f32 %v725_v20, %v569_v19  ;;  %v683_v24 = vpop.f32.mrf.mxu1  ;;  %v1023_v19 = vld [vmem:[%s3731_s16 + $0x4a] sm:$0xff] }
  0xaf   : > { %v1270_v20 = vld [vmem:[%s3731_s16 + $0x43] sm:$0xff] }
  0xb0   : > { %v527_v27 = vpop.f32.mrf.mxu0 }
  0xb1   : > { %v3925_v28 = vadd.f32 %v683_v24, %v527_v27  ;;  %3488 = vmatmul.msk.bf16.vlgmr.msrb.gmra.mxu2 %vm454_vm1, %v804_v21  ;;  %3545 = vmatmul.msk.bf16.vlgmr.msrb.gmra.mxu1 %vm454_vm1, %v1548_v22  ;;  %v1271_v21 = vld [vmem:[%s3731_s16 + $0x4b] sm:$0xff] }
  0xb2   : > { %3507 = vmatmul.msk.bf16.vlgmr.msrb.gmra.mxu3 %vm454_vm1, %v1052_v25 }
  0xb3   : > { %3526 = vmatmul.msk.bf16.vlgmr.msrb.gmra.mxu0 %vm454_vm1, %v1300_v26 }
  0xb4   : > { %v572_v29 = vpop.f32.mrf.mxu2 }
  0xb5   : > { %v728_v30 = vpop.f32.mrf.mxu3 }
  0xb6   : > { %v3931_v31 = vadd.f32 %v728_v30, %v572_v29  ;;  %v685_v32 = vpop.f32.mrf.mxu1  ;;  %v1055_v29 = vpack.c.bf16 %v1023_v19, %v1022_v16  ;;  %v1303_v30 = vpack.c.bf16 %v1271_v21, %v1270_v20  ;;  %v1275_v16 = vld [vmem:[%s3731_s16 + $0x6b] sm:$0xff] }
  0xb8   : > { %v529_v33 = vpop.f32.mrf.mxu0 }
  0xb9   : > { %v3933_v34 = vadd.f32 %v685_v32, %v529_v33 }
  0xbc   : > { %v574_v41 = vpop.f32.mrf.mxu2 }
  0xbd   : > { %v730_v42 = vpop.f32.mrf.mxu3 }
  0xbe   : > { %v3943_v44 = vadd.f32 %v730_v42, %v574_v41  ;;  %v688_v45 = vpop.f32.mrf.mxu1  ;;  %v1024_v41 = vld [vmem:[%s3731_s16 + $0x52] sm:$0xff] }
  0xbf   : > { %v1520_v42 = vld [vmem:[%s3731_s16 + $0x54] sm:$0xff] }
  0xc0   : > { %v532_v48 = vpop.f32.mrf.mxu0 }
  0xc1   : > { %v3945_v49 = vadd.f32 %v688_v45, %v532_v48  ;;  %3489 = vmatmul.msk.bf16.gmra.mxu2 %vm454_vm1, %v1052_v25  ;;  %3546 = vmatmul.msk.bf16.gmra.mxu1 %vm454_vm1, %v3941_v43  ;;  %v3983_v25 = vpack.c.bf16 %v1519_v18, %v1518_v17  ;;  %v1521_v45 = vld [vmem:[%s3731_s16 + $0x5c] sm:$0xff] }
  0xc2   : > { %3508 = vmatmul.msk.bf16.gmra.mxu3 %vm454_vm1, %v1053_v46  ;;  %v1273_v48 = vld [vmem:[%s3731_s16 + $0x5b] sm:$0xff] }
  0xc3   : > { %3527 = vmatmul.msk.bf16.gmra.mxu0 %vm454_vm1, %v1301_v47  ;;  %v1272_v47 = vld [vmem:[%s3731_s16 + $0x53] sm:$0xff] }
  0xc4   : > { %v577_v50 = vpop.f32.mrf.mxu2  ;;  %v1304_v58 = vpack.c.bf16 %v1273_v48, %v1272_v47  ;;  %v1276_v47 = vld [vmem:[%s3731_s16 + $0x73] sm:$0xff]  ;;  %v1277_v48 = vld [vmem:[%s3731_s16 + $0x7b] sm:$0xff] }
  0xc5   : > { %v733_v51 = vpop.f32.mrf.mxu3 }
  0xc6   : > { %v3952_v52 = vadd.f32 %v733_v51, %v577_v50  ;;  %v690_v53 = vpop.f32.mrf.mxu1 }
  0xc8   : > { %v534_v54 = vpop.f32.mrf.mxu0 }
  0xc9   : > { %v3954_v55 = vadd.f32 %v690_v53, %v534_v54  ;;  %v4004_v53 = vpack.c.bf16 %v1521_v45, %v1520_v42  ;;  %v1524_v42 = vld [vmem:[%s3731_s16 + $0x74] sm:$0xff]  ;;  %v1525_v45 = vld [vmem:[%s3731_s16 + $0x7c] sm:$0xff] }
  0xcc   : > { %v579_v62 = vpop.f32.mrf.mxu2 }
  0xcd   : > { %v735_v63 = vpop.f32.mrf.mxu3 }
  0xce   : > { %v3964_v1 = vadd.f32 %v735_v63, %v579_v62  ;;  %v693_v2 = vpop.f32.mrf.mxu1 }
  0xd0   : > { %v537_v6 = vpop.f32.mrf.mxu0 }
  0xd1   : > { %v3966_v8 = vadd.f32 %v693_v2, %v537_v6  ;;  %3490 = vmatmul.msk.bf16.gmra.mxu2 %vm454_vm1, %v1053_v46  ;;  %3547 = vmatmul.msk.bf16.gmra.mxu1 %vm454_vm1, %v3962_v0  ;;  %v1025_v46 = vld [vmem:[%s3731_s16 + $0x5a] sm:$0xff]  ;;  %v1026_v6 = vld [vmem:[%s3731_s16 + $0x62] sm:$0xff] }
  0xd2   : > { %3509 = vmatmul.msk.bf16.gmra.mxu3 %vm454_vm1, %v1054_v3  ;;  %v1056_v57 = vpack.c.bf16 %v1025_v46, %v1024_v41  ;;  %v1028_v41 = vld [vmem:[%s3731_s16 + $0x72] sm:$0xff]  ;;  %v1029_v46 = vld [vmem:[%s3731_s16 + $0x7a] sm:$0xff] }
  0xd3   : > { %3528 = vmatmul.msk.bf16.gmra.mxu0 %vm454_vm1, %v1302_v5 }
  0xd4   : > { %v582_v9 = vpop.f32.mrf.mxu2 }
  0xd5   : > { %v738_v11 = vpop.f32.mrf.mxu3 }
  0xd6   : > { %v3973_v12 = vadd.f32 %v738_v11, %v582_v9  ;;  %v695_v13 = vpop.f32.mrf.mxu1  ;;  %v1522_v9 = vld [vmem:[%s3731_s16 + $0x64] sm:$0xff]  ;;  %v1523_v11 = vld [vmem:[%s3731_s16 + $0x6c] sm:$0xff] }
  0xd7   : > { %v4025_v19 = vpack.c.bf16 %v1523_v11, %v1522_v9 }
  0xd8   : > { %v539_v14 = vpop.f32.mrf.mxu0 }
  0xd9   : > { %v3975_v15 = vadd.f32 %v695_v13, %v539_v14  ;;  %v1027_v13 = vld [vmem:[%s3731_s16 + $0x6a] sm:$0xff] }
  0xda   : > { %v1274_v14 = vld [vmem:[%s3731_s16 + $0x63] sm:$0xff] }
  0xdc   : > { %v584_v22 = vpop.f32.mrf.mxu2 }
  0xdd   : > { %v740_v24 = vpop.f32.mrf.mxu3 }
  0xde   : > { %v3985_v26 = vadd.f32 %v740_v24, %v584_v22  ;;  %v698_v27 = vpop.f32.mrf.mxu1  ;;  %v1057_v22 = vpack.c.bf16 %v1027_v13, %v1026_v6  ;;  %v1305_v24 = vpack.c.bf16 %v1275_v16, %v1274_v14  ;;  %v1030_v16 = vld [vmem:[%s3731_s16 + $0x82] sm:$0xff] }
  0xe0   : > { %v542_v32 = vpop.f32.mrf.mxu0 }
  0xe1   : > { %v3987_v33 = vadd.f32 %v698_v27, %v542_v32  ;;  %3491 = vmatmul.msk.bf16.gmra.mxu2 %vm454_vm1, %v1054_v3  ;;  %3548 = vmatmul.msk.bf16.gmra.mxu1 %vm454_vm1, %v3983_v25 }
  0xe2   : > { %3510 = vmatmul.msk.bf16.gmra.mxu3 %vm454_vm1, %v1055_v29 }
  0xe3   : > { %3529 = vmatmul.msk.bf16.gmra.mxu0 %vm454_vm1, %v1303_v30 }
  0xe4   : > { %v587_v35 = vpop.f32.mrf.mxu2 }
  0xe5   : > { %v743_v36 = vpop.f32.mrf.mxu3 }
  0xe6   : > { %v3994_v37 = vadd.f32 %v743_v36, %v587_v35  ;;  %v700_v38 = vpop.f32.mrf.mxu1 }
  0xe8   : > { %v544_v39 = vpop.f32.mrf.mxu0 }
  0xe9   : > { %v3996_v40 = vadd.f32 %v700_v38, %v544_v39 }
  0xec   : > { %v589_v50 = vpop.f32.mrf.mxu2 }
  0xed   : > { %v745_v51 = vpop.f32.mrf.mxu3 }
  0xee   : > { %v4006_v54 = vadd.f32 %v745_v51, %v589_v50  ;;  %v703_v56 = vpop.f32.mrf.mxu1 }
  0xf0   : > { %v547_v59 = vpop.f32.mrf.mxu0 }
  0xf1   : > { %v4008_v60 = vadd.f32 %v703_v56, %v547_v59  ;;  %3492 = vmatmul.msk.bf16.gmra.mxu2 %vm454_vm1, %v1055_v29  ;;  %3549 = vmatmul.msk.bf16.gmra.mxu1 %vm454_vm1, %v4004_v53  ;;  %v1554_v56 = vpack.c.bf16 %v1525_v45, %v1524_v42  ;;  %v1058_v59 = vpack.c.bf16 %v1029_v46, %v1028_v41 }
  0xf2   : > { %3511 = vmatmul.msk.bf16.gmra.mxu3 %vm454_vm1, %v1056_v57 }
  0xf3   : > { %3530 = vmatmul.msk.bf16.gmra.mxu0 %vm454_vm1, %v1304_v58 }
  0xf4   : > { %v592_v61 = vpop.f32.mrf.mxu2 }
  0xf5   : > { %v748_v62 = vpop.f32.mrf.mxu3 }
  0xf6   : > { %v4015_v63 = vadd.f32 %v748_v62, %v592_v61  ;;  %v705_v2 = vpop.f32.mrf.mxu1  ;;  %v1306_v61 = vpack.c.bf16 %v1277_v48, %v1276_v47 }
  0xf8   : > { %v549_v3 = vpop.f32.mrf.mxu0 }
  0xf9   : > { %v4017_v5 = vadd.f32 %v705_v2, %v549_v3 }
  0xfc   : > { %v594_v17 = vpop.f32.mrf.mxu2 }
  0xfd   : > { %v750_v18 = vpop.f32.mrf.mxu3 }
  0xfe   : > { %v4027_v20 = vadd.f32 %v750_v18, %v594_v17  ;;  %v708_v21 = vpop.f32.mrf.mxu1  ;;  %v1526_v17 = vld [vmem:[%s3731_s16 + $0x84] sm:$0xff]  ;;  %v1527_v18 = vld [vmem:[%s3731_s16 + $0x8c] sm:$0xff] }
 0x100   : > { %v552_v27 = vpop.f32.mrf.mxu0 }
 0x101   : > { %v4029_v29 = vadd.f32 %v708_v21, %v552_v27  ;;  %3493 = vmatmul.msk.bf16.gmra.mxu2 %vm454_vm1, %v1056_v57  ;;  %3550 = vmatmul.msk.bf16.gmra.mxu1 %vm454_vm1, %v4025_v19  ;;  %v1031_v21 = vld [vmem:[%s3731_s16 + $0x8a] sm:$0xff] }
 0x102   : > { %3512 = vmatmul.msk.bf16.gmra.mxu3 %vm454_vm1, %v1057_v22  ;;  %v1059_v41 = vpack.c.bf16 %v1031_v21, %v1030_v16 }
 0x103   : > { %3531 = vmatmul.msk.bf16.gmra.mxu0 %vm454_vm1, %v1305_v24  ;;  %v1278_v24 = vld [vmem:[%s3731_s16 + $0x83] sm:$0xff] }
 0x104   : > { %v597_v30 = vpop.f32.mrf.mxu2 }
 0x105   : > { %v753_v32 = vpop.f32.mrf.mxu3 }
 0x106   : > { %v4036_v35 = vadd.f32 %v753_v32, %v597_v30  ;;  %v710_v36 = vpop.f32.mrf.mxu1  ;;  %v1555_v32 = vpack.c.bf16 %v1527_v18, %v1526_v17 }
 0x108   : > { %v554_v38 = vpop.f32.mrf.mxu0 }
 0x109   : > { %v4038_v39 = vadd.f32 %v710_v36, %v554_v38 }
 0x10c   : > { %v599_v50 = vpop.f32.mrf.mxu2 }
 0x10d   : > { %v755_v51 = vpop.f32.mrf.mxu3 }
 0x10e   : > { %v4046_v57 = vadd.f32 %v755_v51, %v599_v50  ;;  %v713_v58 = vpop.f32.mrf.mxu1 }
 0x110   : > { %v557_v62 = vpop.f32.mrf.mxu0 }
 0x111   : > { %v4048_v2 = vadd.f32 %v713_v58, %v557_v62  ;;  %3494 = vmatmul.msk.bf16.gmra.mxu2 %vm454_vm1, %v1057_v22  ;;  %3551 = vmatmul.msk.bf16.gmra.mxu1 %vm454_vm1, %v1554_v56  ;;  %v1279_v22 = vld [vmem:[%s3731_s16 + $0x8b] sm:$0xff]  ;;  %v1528_v62 = vld [vmem:[%s3731_s16 + $0x94] sm:$0xff] }
 0x112   : > { %3513 = vmatmul.msk.bf16.gmra.mxu3 %vm454_vm1, %v1058_v59  ;;  %v1307_v42 = vpack.c.bf16 %v1279_v22, %v1278_v24 }
 0x113   : > { %3532 = vmatmul.msk.bf16.gmra.mxu0 %vm454_vm1, %v1306_v61  ;;  %v1032_v61 = vld [vmem:[%s3731_s16 + $0x92] sm:$0xff] }
 0x114   : > { %v602_v3 = vpop.f32.mrf.mxu2 }
 0x115   : > { %v758_v6 = vpop.f32.mrf.mxu3 }
 0x116   : > { %v4054_v9 = vadd.f32 %v758_v6, %v602_v3  ;;  %v715_v11 = vpop.f32.mrf.mxu1  ;;  %v1529_v3 = vld [vmem:[%s3731_s16 + $0x9c] sm:$0xff] }
 0x117   : > { %v1033_v6 = vld [vmem:[%s3731_s16 + $0x9a] sm:$0xff]  ;;  %v1556_v17 = vpack.c.bf16 %v1529_v3, %v1528_v62  ;;  %v1035_v62 = vld [vmem:[%s3731_s16 + $0xaa] sm:$0xff] }
 0x118   : > { %v559_v13 = vpop.f32.mrf.mxu0  ;;  %v1060_v24 = vpack.c.bf16 %v1033_v6, %v1032_v61  ;;  %v1531_v61 = vld [vmem:[%s3731_s16 + $0xac] sm:$0xff] }
 0x119   : > { %v4056_v14 = vadd.f32 %v715_v11, %v559_v13  ;;  %v1280_v11 = vld [vmem:[%s3731_s16 + $0x93] sm:$0xff]  ;;  %v1283_v3 = vld [vmem:[%s3731_s16 + $0xab] sm:$0xff] }
 0x11c   : > { %v604_v27 = vpop.f32.mrf.mxu2 }
 0x11d   : > { %v760_v30 = vpop.f32.mrf.mxu3 }
 0x11e   : > { %v4064_v36 = vadd.f32 %v760_v30, %v604_v27  ;;  %v718_v38 = vpop.f32.mrf.mxu1 }
 0x120   : > { %v562_v45 = vpop.f32.mrf.mxu0 }
 0x121   : > { %v4066_v46 = vadd.f32 %v718_v38, %v562_v45  ;;  %3495 = vmatmul.msk.bf16.gmra.mxu2 %vm454_vm1, %v1058_v59  ;;  %3552 = vmatmul.msk.bf16.gmra.mxu1 %vm454_vm1, %v1555_v32  ;;  %v1281_v59 = vld [vmem:[%s3731_s16 + $0x9b] sm:$0xff] }
 0x122   : > { %3514 = vmatmul.msk.bf16.gmra.mxu3 %vm454_vm1, %v1059_v41  ;;  %v1308_v22 = vpack.c.bf16 %v1281_v59, %v1280_v11 }
 0x123   : > { %3533 = vmatmul.msk.bf16.gmra.mxu0 %vm454_vm1, %v1307_v42 }
 0x124   : > { %v607_v47 = vpop.f32.mrf.mxu2 }
 0x125   : > { %v763_v48 = vpop.f32.mrf.mxu3 }
 0x126   : > { %v4072_v50 = vadd.f32 %v763_v48, %v607_v47  ;;  %v720_v51 = vpop.f32.mrf.mxu1 }
 0x128   : > { %v564_v56 = vpop.f32.mrf.mxu0 }
 0x129   : > { %v4074_v58 = vadd.f32 %v720_v51, %v564_v56  ;;  %v1034_v51 = vld [vmem:[%s3731_s16 + $0xa2] sm:$0xff] }
 0x12a   : > { %v1530_v56 = vld [vmem:[%s3731_s16 + $0xa4] sm:$0xff] }
 0x12c   : > { %v609_v13 = vpop.f32.mrf.mxu2 }
 0x12d   : > { %v765_v16 = vpop.f32.mrf.mxu3 }
 0x12e   : > { %v4082_v18 = vadd.f32 %v765_v16, %v609_v13  ;;  %v1634_v21 = vpop.f32.mrf.mxu1  ;;  %v1557_v16 = vpack.c.bf16 %v1531_v61, %v1530_v56  ;;  %v1036_v61 = vld [vmem:[%s3731_s16 + $0xb2] sm:$0xff] }
 0x130   : > { %v1386_v27 = vpop.f32.mrf.mxu0 }
 0x131   : > { %3496 = vmatmul.msk.bf16.gmra.mxu2 %vm454_vm1, %v1059_v41  ;;  %3553 = vmatmul.msk.bf16.gmra.mxu1 %vm454_vm1, %v1556_v17  ;;  %v1282_v41 = vld [vmem:[%s3731_s16 + $0xa3] sm:$0xff] }
 0x132   : > { %3515 = vmatmul.msk.bf16.gmra.mxu3 %vm454_vm1, %v1060_v24 }
 0x133   : > { %3534 = vmatmul.msk.bf16.gmra.mxu0 %vm454_vm1, %v1308_v22  ;;  %v1309_v22 = vpack.c.bf16 %v1283_v3, %v1282_v41  ;;  %v1037_v41 = vld [vmem:[%s3731_s16 + $0xba] sm:$0xff] }
 0x134   : > { %v890_v30 = vpop.f32.mrf.mxu2  ;;  %v1284_v3 = vld [vmem:[%s3731_s16 + $0xb3] sm:$0xff] }
 0x135   : > { %v980_v32 = vadd.f32 %v890_v30, %v3900_v4  ;;  %v1138_v38 = vpop.f32.mrf.mxu3  ;;  %v1061_v4 = vpack.c.bf16 %v1035_v62, %v1034_v51  ;;  %v1533_v62 = vld [vmem:[%s3731_s16 + $0xbc] sm:$0xff] }
 0x136   : > { %v1636_v42 = vpop.f32.mrf.mxu1 }
 0x137   : > { %v1228_v45 = vadd.f32 %v1138_v38, %v980_v32 }
 0x138   : > { %v1388_v47 = vpop.f32.mrf.mxu0 }
 0x139   : > { %v1476_v48 = vadd.f32 %v1386_v27, %v1228_v45 }
 0x13b   : > { %v4095_v6 = vadd.f32 %v1634_v21, %v1476_v48 }
 0x13c   : > { %v892_v11 = vpop.f32.mrf.mxu2 }
 0x13d   : > { %v981_v59 = vadd.f32 %v892_v11, %v3913_v10  ;;  %v1140_v13 = vpop.f32.mrf.mxu3  ;;  %v1285_v11 = vld [vmem:[%s3731_s16 + $0xbb] sm:$0xff] }
 0x13e   : > { %v1639_v17 = vpop.f32.mrf.mxu1 }
 0x13f   : > { %v1229_v30 = vadd.f32 %v1140_v13, %v981_v59 }
 0x140   : > { %v1391_v27 = vpop.f32.mrf.mxu0 }
 0x141   : > { %v1477_v32 = vadd.f32 %v1388_v47, %v1229_v30  ;;  %3497 = vmatmul.msk.bf16.gmra.mxu2 %vm454_vm1, %v1060_v24  ;;  %3554 = vmatmul.msk.bf16.gmra.mxu1 %vm454_vm1, %v1557_v16  ;;  %v1532_v24 = vld [vmem:[%s3731_s16 + $0xb4] sm:$0xff] }
 0x142   : > { %3516 = vmatmul.msk.bf16.gmra.mxu3 %vm454_vm1, %v1061_v4 }
 0x143   : > { %3535 = vmatmul.msk.bf16.gmra.mxu0 %vm454_vm1, %v1309_v22  ;;  %v4102_v10 = vadd.f32 %v1636_v42, %v1477_v32  ;;  %v1558_v22 = vpack.c.bf16 %v1533_v62, %v1532_v24  ;;  %v1310_v32 = vpack.c.bf16 %v1285_v11, %v1284_v3  ;;  %v1038_v62 = vld [vmem:[%s3731_s16 + $0xc2] sm:$0xff]  ;;  %v1039_v3 = vld [vmem:[%s3731_s16 + $0xca] sm:$0xff] }
 0x144   : > { %v895_v21 = vpop.f32.mrf.mxu2  ;;  %v1286_v11 = vld [vmem:[%s3731_s16 + $0xc3] sm:$0xff] }
 0x145   : > { %v982_v38 = vadd.f32 %v895_v21, %v3925_v28  ;;  %v1143_v45 = vpop.f32.mrf.mxu3  ;;  %v1062_v28 = vpack.c.bf16 %v1037_v41, %v1036_v61  ;;  %v1535_v41 = vld [vmem:[%s3731_s16 + $0xcc] sm:$0xff] }
 0x146   : > { %v1641_v48 = vpop.f32.mrf.mxu1 }
 0x147   : > { %v1230_v51 = vadd.f32 %v1143_v45, %v982_v38 }
 0x148   : > { %v1393_v47 = vpop.f32.mrf.mxu0 }
 0x149   : > { %v1478_v56 = vadd.f32 %v1391_v27, %v1230_v51 }
 0x14b   : > { %v4111_v59 = vadd.f32 %v1639_v17, %v1478_v56 }
 0x14c   : > { %v897_v13 = vpop.f32.mrf.mxu2 }
 0x14d   : > { %v983_v42 = vadd.f32 %v897_v13, %v3933_v34  ;;  %v1145_v16 = vpop.f32.mrf.mxu3  ;;  %v1287_v13 = vld [vmem:[%s3731_s16 + $0xcb] sm:$0xff] }
 0x14e   : > { %v1644_v30 = vpop.f32.mrf.mxu1 }
 0x14f   : > { %v1231_v21 = vadd.f32 %v1145_v16, %v983_v42 }
 0x150   : > { %v1396_v27 = vpop.f32.mrf.mxu0 }
 0x151   : > { %v1479_v38 = vadd.f32 %v1393_v47, %v1231_v21  ;;  %3498 = vmatmul.msk.bf16.gmra.mxu2 %vm454_vm1, %v1061_v4  ;;  %3555 = vmatmul.msk.bf16.gmra.mxu1 %vm454_vm1, %v1558_v22  ;;  %v1534_v4 = vld [vmem:[%s3731_s16 + $0xc4] sm:$0xff] }
 0x152   : > { %3517 = vmatmul.msk.bf16.gmra.mxu3 %vm454_vm1, %v1062_v28 }
 0x153   : > { %3536 = vmatmul.msk.bf16.gmra.mxu0 %vm454_vm1, %v1310_v32  ;;  %v4118_v34 = vadd.f32 %v1641_v48, %v1479_v38  ;;  %v1559_v32 = vpack.c.bf16 %v1535_v41, %v1534_v4  ;;  %v1311_v38 = vpack.c.bf16 %v1287_v13, %v1286_v11  ;;  %v1040_v41 = vld [vmem:[%s3731_s16 + $0xd2] sm:$0xff]  ;;  %v1041_v11 = vld [vmem:[%s3731_s16 + $0xda] sm:$0xff] }
 0x154   : > { %v900_v17 = vpop.f32.mrf.mxu2  ;;  %v1288_v13 = vld [vmem:[%s3731_s16 + $0xd3] sm:$0xff] }
 0x155   : > { %v984_v45 = vadd.f32 %v900_v17, %v3945_v49  ;;  %v1148_v51 = vpop.f32.mrf.mxu3  ;;  %v1063_v49 = vpack.c.bf16 %v1039_v3, %v1038_v62  ;;  %v1537_v3 = vld [vmem:[%s3731_s16 + $0xdc] sm:$0xff] }
 0x156   : > { %v1646_v56 = vpop.f32.mrf.mxu1 }
 0x157   : > { %v1232_v61 = vadd.f32 %v1148_v51, %v984_v45 }
 0x158   : > { %v1398_v47 = vpop.f32.mrf.mxu0 }
 0x159   : > { %v1480_v24 = vadd.f32 %v1396_v27, %v1232_v61 }
 0x15b   : > { %v4127_v42 = vadd.f32 %v1644_v30, %v1480_v24 }
 0x15c   : > { %v902_v16 = vpop.f32.mrf.mxu2 }
 0x15d   : > { %v985_v48 = vadd.f32 %v902_v16, %v3954_v55  ;;  %v1150_v22 = vpop.f32.mrf.mxu3  ;;  %v1289_v16 = vld [vmem:[%s3731_s16 + $0xdb] sm:$0xff] }
 0x15e   : > { %v1649_v21 = vpop.f32.mrf.mxu1 }
 0x15f   : > { %v1233_v17 = vadd.f32 %v1150_v22, %v985_v48 }
 0x160   : > { %v1401_v27 = vpop.f32.mrf.mxu0 }
 0x161   : > { %v1481_v45 = vadd.f32 %v1398_v47, %v1233_v17  ;;  %3499 = vmatmul.msk.bf16.gmra.mxu2 %vm454_vm1, %v1062_v28  ;;  %3556 = vmatmul.msk.bf16.gmra.mxu1 %vm454_vm1, %v1559_v32  ;;  %v1536_v28 = vld [vmem:[%s3731_s16 + $0xd4] sm:$0xff] }
 0x162   : > { %3518 = vmatmul.msk.bf16.gmra.mxu3 %vm454_vm1, %v1063_v49 }
 0x163   : > { %3537 = vmatmul.msk.bf16.gmra.mxu0 %vm454_vm1, %v1311_v38  ;;  %v4134_v55 = vadd.f32 %v1646_v56, %v1481_v45  ;;  %v1560_v38 = vpack.c.bf16 %v1537_v3, %v1536_v28  ;;  %v1312_v45 = vpack.c.bf16 %v1289_v16, %v1288_v13  ;;  %v1042_v3 = vld [vmem:[%s3731_s16 + $0xe2] sm:$0xff]  ;;  %v1043_v13 = vld [vmem:[%s3731_s16 + $0xea] sm:$0xff] }
 0x164   : > { %v905_v30 = vpop.f32.mrf.mxu2  ;;  %v1290_v16 = vld [vmem:[%s3731_s16 + $0xe3] sm:$0xff] }
 0x165   : > { %v986_v51 = vadd.f32 %v905_v30, %v3966_v8  ;;  %v1153_v61 = vpop.f32.mrf.mxu3  ;;  %v1064_v8 = vpack.c.bf16 %v1041_v11, %v1040_v41  ;;  %v1539_v11 = vld [vmem:[%s3731_s16 + $0xec] sm:$0xff] }
 0x166   : > { %v1651_v24 = vpop.f32.mrf.mxu1 }
 0x167   : > { %v1234_v62 = vadd.f32 %v1153_v61, %v986_v51 }
 0x168   : > { %v1403_v47 = vpop.f32.mrf.mxu0 }
 0x169   : > { %v1482_v4 = vadd.f32 %v1401_v27, %v1234_v62 }
 0x16b   : > { %v4143_v48 = vadd.f32 %v1649_v21, %v1482_v4 }
 0x16c   : > { %v907_v22 = vpop.f32.mrf.mxu2 }
 0x16d   : > { %v987_v56 = vadd.f32 %v907_v22, %v3975_v15  ;;  %v1155_v32 = vpop.f32.mrf.mxu3  ;;  %v1291_v22 = vld [vmem:[%s3731_s16 + $0xeb] sm:$0xff] }
 0x16e   : > { %v1654_v17 = vpop.f32.mrf.mxu1 }
 0x16f   : > { %v1235_v30 = vadd.f32 %v1155_v32, %v987_v56 }
 0x170   : > { %v1406_v27 = vpop.f32.mrf.mxu0 }
 0x171   : > { %v1483_v51 = vadd.f32 %v1403_v47, %v1235_v30  ;;  %3500 = vmatmul.msk.bf16.gmra.mxu2 %vm454_vm1, %v1063_v49  ;;  %3557 = vmatmul.msk.bf16.gmra.mxu1 %vm454_vm1, %v1560_v38  ;;  %v1538_v49 = vld [vmem:[%s3731_s16 + $0xe4] sm:$0xff] }
 0x172   : > { %3519 = vmatmul.msk.bf16.gmra.mxu3 %vm454_vm1, %v1064_v8 }
 0x173   : > { %3538 = vmatmul.msk.bf16.gmra.mxu0 %vm454_vm1, %v1312_v45  ;;  %v4150_v15 = vadd.f32 %v1651_v24, %v1483_v51  ;;  %v1561_v45 = vpack.c.bf16 %v1539_v11, %v1538_v49  ;;  %v1313_v51 = vpack.c.bf16 %v1291_v22, %v1290_v16  ;;  %v1044_v11 = vld [vmem:[%s3731_s16 + $0xf2] sm:$0xff]  ;;  %v1045_v16 = vld [vmem:[%s3731_s16 + $0xfa] sm:$0xff] }
 0x174   : > { %v910_v21 = vpop.f32.mrf.mxu2  ;;  %v1292_v22 = vld [vmem:[%s3731_s16 + $0xf3] sm:$0xff] }
 0x175   : > { %v988_v61 = vadd.f32 %v910_v21, %v3987_v33  ;;  %v1158_v62 = vpop.f32.mrf.mxu3  ;;  %v1065_v33 = vpack.c.bf16 %v1043_v13, %v1042_v3  ;;  %v1541_v13 = vld [vmem:[%s3731_s16 + $0xfc] sm:$0xff] }
 0x176   : > { %v1656_v4 = vpop.f32.mrf.mxu1 }
 0x177   : > { %v1236_v41 = vadd.f32 %v1158_v62, %v988_v61 }
 0x178   : > { %v1408_v47 = vpop.f32.mrf.mxu0 }
 0x179   : > { %v1484_v28 = vadd.f32 %v1406_v27, %v1236_v41 }
 0x17b   : > { %v4159_v56 = vadd.f32 %v1654_v17, %v1484_v28 }
 0x17c   : > { %v912_v32 = vpop.f32.mrf.mxu2 }
 0x17d   : > { %v989_v24 = vadd.f32 %v912_v32, %v3996_v40  ;;  %v1160_v38 = vpop.f32.mrf.mxu3  ;;  %v1293_v32 = vld [vmem:[%s3731_s16 + $0xfb] sm:$0xff] }
 0x17e   : > { %v1659_v30 = vpop.f32.mrf.mxu1 }
 0x17f   : > { %v1237_v21 = vadd.f32 %v1160_v38, %v989_v24 }
 0x180   : > { %v1411_v27 = vpop.f32.mrf.mxu0 }
 0x181   : > { %v1485_v61 = vadd.f32 %v1408_v47, %v1237_v21  ;;  %3501 = vmatmul.msk.bf16.gmra.mxu2 %vm454_vm1, %v1064_v8  ;;  %3558 = vmatmul.msk.bf16.gmra.mxu1 %vm454_vm1, %v1561_v45  ;;  %v1540_v8 = vld [vmem:[%s3731_s16 + $0xf4] sm:$0xff] }
 0x182   : > { %3520 = vmatmul.msk.bf16.gmra.mxu3 %vm454_vm1, %v1065_v33 }
 0x183   : > { %3539 = vmatmul.msk.bf16.gmra.mxu0 %vm454_vm1, %v1313_v51  ;;  %v4166_v40 = vadd.f32 %v1656_v4, %v1485_v61  ;;  %v1562_v51 = vpack.c.bf16 %v1541_v13, %v1540_v8  ;;  %v1314_v61 = vpack.c.bf16 %v1293_v32, %v1292_v22  ;;  %v1046_v13 = vld [vmem:[%s3731_s16 + $0x102] sm:$0xff]  ;;  %v1047_v22 = vld [vmem:[%s3731_s16 + $0x10a] sm:$0xff] }
 0x184   : > { %v915_v17 = vpop.f32.mrf.mxu2  ;;  %v1294_v32 = vld [vmem:[%s3731_s16 + $0x103] sm:$0xff] }
 0x185   : > { %v990_v62 = vadd.f32 %v915_v17, %v4008_v60  ;;  %v1163_v41 = vpop.f32.mrf.mxu3  ;;  %v1066_v60 = vpack.c.bf16 %v1045_v16, %v1044_v11  ;;  %v1543_v16 = vld [vmem:[%s3731_s16 + $0x10c] sm:$0xff] }
 0x186   : > { %v1661_v28 = vpop.f32.mrf.mxu1 }
 0x187   : > { %v1238_v3 = vadd.f32 %v1163_v41, %v990_v62 }
 0x188   : > { %v1413_v47 = vpop.f32.mrf.mxu0 }
 0x189   : > { %v1486_v49 = vadd.f32 %v1411_v27, %v1238_v3 }
 0x18b   : > { %v4175_v24 = vadd.f32 %v1659_v30, %v1486_v49 }
 0x18c   : > { %v917_v38 = vpop.f32.mrf.mxu2 }
 0x18d   : > { %v991_v4 = vadd.f32 %v917_v38, %v4017_v5  ;;  %v1165_v45 = vpop.f32.mrf.mxu3  ;;  %v1295_v38 = vld [vmem:[%s3731_s16 + $0x10b] sm:$0xff] }
 0x18e   : > { %v1664_v21 = vpop.f32.mrf.mxu1 }
 0x18f   : > { %v1239_v17 = vadd.f32 %v1165_v45, %v991_v4 }
 0x190   : > { %v1416_v27 = vpop.f32.mrf.mxu0 }
 0x191   : > { %v1487_v62 = vadd.f32 %v1413_v47, %v1239_v17  ;;  %3502 = vmatmul.msk.bf16.gmra.mxu2 %vm454_vm1, %v1065_v33  ;;  %3559 = vmatmul.msk.bf16.gmra.mxu1 %vm454_vm1, %v1562_v51  ;;  %v1542_v33 = vld [vmem:[%s3731_s16 + $0x104] sm:$0xff] }
 0x192   : > { %3521 = vmatmul.msk.bf16.gmra.mxu3 %vm454_vm1, %v1066_v60 }
 0x193   : > { %3540 = vmatmul.msk.bf16.gmra.mxu0 %vm454_vm1, %v1314_v61  ;;  %v4182_v5 = vadd.f32 %v1661_v28, %v1487_v62  ;;  %v1563_v61 = vpack.c.bf16 %v1543_v16, %v1542_v33  ;;  %v1315_v62 = vpack.c.bf16 %v1295_v38, %v1294_v32  ;;  %v1048_v16 = vld [vmem:[%s3731_s16 + $0x112] sm:$0xff]  ;;  %v1049_v32 = vld [vmem:[%s3731_s16 + $0x11a] sm:$0xff] }
 0x194   : > { %v920_v30 = vpop.f32.mrf.mxu2  ;;  %v1296_v38 = vld [vmem:[%s3731_s16 + $0x113] sm:$0xff] }
 0x195   : > { %v992_v41 = vadd.f32 %v920_v30, %v4029_v29  ;;  %v1168_v3 = vpop.f32.mrf.mxu3  ;;  %v1067_v29 = vpack.c.bf16 %v1047_v22, %v1046_v13  ;;  %v1545_v22 = vld [vmem:[%s3731_s16 + $0x11c] sm:$0xff] }
 0x196   : > { %v1666_v49 = vpop.f32.mrf.mxu1 }
 0x197   : > { %v1240_v11 = vadd.f32 %v1168_v3, %v992_v41 }
 0x198   : > { %v1418_v47 = vpop.f32.mrf.mxu0 }
 0x199   : > { %v1488_v8 = vadd.f32 %v1416_v27, %v1240_v11 }
 0x19b   : > { %v4191_v4 = vadd.f32 %v1664_v21, %v1488_v8 }
 0x19c   : > { %v922_v45 = vpop.f32.mrf.mxu2 }
 0x19d   : > { %v993_v28 = vadd.f32 %v922_v45, %v4038_v39  ;;  %v1170_v51 = vpop.f32.mrf.mxu3  ;;  %v1297_v45 = vld [vmem:[%s3731_s16 + $0x11b] sm:$0xff] }
 0x19e   : > { %v1669_v17 = vpop.f32.mrf.mxu1 }
 0x19f   : > { %v1241_v30 = vadd.f32 %v1170_v51, %v993_v28 }
 0x1a0   : > { %v1421_v27 = vpop.f32.mrf.mxu0 }
 0x1a1   : > { %v1489_v41 = vadd.f32 %v1418_v47, %v1241_v30  ;;  %3503 = vmatmul.msk.bf16.gmra.mxu2 %vm454_vm1, %v1066_v60  ;;  %3560 = vmatmul.msk.bf16.gmra.mxu1 %vm454_vm1, %v1563_v61  ;;  %v1544_v60 = vld [vmem:[%s3731_s16 + $0x114] sm:$0xff] }
 0x1a2   : > { %3522 = vmatmul.msk.bf16.gmra.mxu3 %vm454_vm1, %v1067_v29 }
 0x1a3   : > { %3541 = vmatmul.msk.bf16.gmra.mxu0 %vm454_vm1, %v1315_v62  ;;  %v4198_v39 = vadd.f32 %v1666_v49, %v1489_v41  ;;  %v1564_v62 = vpack.c.bf16 %v1545_v22, %v1544_v60  ;;  %v1316_v41 = vpack.c.bf16 %v1297_v45, %v1296_v38  ;;  %v1050_v22 = vld [vmem:[%s3731_s16 + $0x122] sm:$0xff]  ;;  %v1051_v38 = vld [vmem:[%s3731_s16 + $0x12a] sm:$0xff] }
 0x1a4   : > { %v925_v21 = vpop.f32.mrf.mxu2  ;;  %v1298_v45 = vld [vmem:[%s3731_s16 + $0x123] sm:$0xff] }
 0x1a5   : > { %v994_v3 = vadd.f32 %v925_v21, %v4048_v2  ;;  %v1173_v11 = vpop.f32.mrf.mxu3  ;;  %v1068_v2 = vpack.c.bf16 %v1049_v32, %v1048_v16  ;;  %v1547_v32 = vld [vmem:[%s3731_s16 + $0x12c] sm:$0xff] }
 0x1a6   : > { %v1671_v8 = vpop.f32.mrf.mxu1 }
 0x1a7   : > { %v1242_v13 = vadd.f32 %v1173_v11, %v994_v3 }
 0x1a8   : > { %v1423_v47 = vpop.f32.mrf.mxu0 }
 0x1a9   : > { %v1490_v33 = vadd.f32 %v1421_v27, %v1242_v13 }
 0x1ab   : > { %v4207_v28 = vadd.f32 %v1669_v17, %v1490_v33 }
 0x1ac   : > { %v927_v51 = vpop.f32.mrf.mxu2 }
 0x1ad   : > { %v995_v49 = vadd.f32 %v927_v51, %v4056_v14  ;;  %v1175_v61 = vpop.f32.mrf.mxu3  ;;  %v1299_v51 = vld [vmem:[%s3731_s16 + $0x12b] sm:$0xff] }
 0x1ae   : > { %v1674_v30 = vpop.f32.mrf.mxu1 }
 0x1af   : > { %v1243_v21 = vadd.f32 %v1175_v61, %v995_v49 }
 0x1b0   : > { %v1426_v27 = vpop.f32.mrf.mxu0 }
 0x1b1   : > { %v1491_v3 = vadd.f32 %v1423_v47, %v1243_v21  ;;  %3504 = vmatmul.msk.bf16.gmra.mxu2 %vm454_vm1, %v1067_v29  ;;  %3561 = vmatmul.msk.bf16.gmra.mxu1 %vm454_vm1, %v1564_v62  ;;  %v1546_v29 = vld [vmem:[%s3731_s16 + $0x124] sm:$0xff] }
 0x1b2   : > { %3523 = vmatmul.msk.bf16.gmra.mxu3 %vm454_vm1, %v1068_v2 }
 0x1b3   : > { %3542 = vmatmul.msk.bf16.gmra.mxu0 %vm454_vm1, %v1316_v41  ;;  %v4214_v14 = vadd.f32 %v1671_v8, %v1491_v3  ;;  %v1565_v41 = vpack.c.bf16 %v1547_v32, %v1546_v29  ;;  %v1317_v3 = vpack.c.bf16 %v1299_v51, %v1298_v45  ;;  %v2008_v45 = vld [vmem:[%s3731_s16 + $0x25] sm:$0xff]  ;;  %v2546_v51 = vld [vmem:[%s3731_s16 + $0x13] sm:$0xff] }
 0x1b4   : > { %v930_v17 = vpop.f32.mrf.mxu2 }
 0x1b5   : > { %v996_v11 = vadd.f32 %v930_v17, %v4066_v46  ;;  %v1178_v13 = vpop.f32.mrf.mxu3  ;;  %v1069_v46 = vpack.c.bf16 %v1051_v38, %v1050_v22  ;;  %v3669_v17 = vmov 0  }
 0x1b6   : > { %v1676_v33 = vpop.f32.mrf.mxu1  ;;  %3656 = vset.pattern.permute.xlu0 %v3669_v17  ;;  %3657 = vset.pattern.permute.xlu1 %v3669_v17 }
 0x1b7   : > { %v1244_v16 = vadd.f32 %v1178_v13, %v996_v11  ;;  %3658 = vset.pattern.permute.xlu2 %v3669_v17 }
 0x1b8   : > { %v1428_v47 = vpop.f32.mrf.mxu0 }
 0x1b9   : > { %v1492_v60 = vadd.f32 %v1426_v27, %v1244_v16  ;;  %v2793_v27 = vld [vmem:[%s4800_s3 + $0x18] sm:$0xff] }
 0x1ba   : > { %2831 = vperm.xlu0 %3656, %v2793_v27  }
 0x1bb   : > { %v4223_v49 = vadd.f32 %v1674_v30, %v1492_v60 }
 0x1bc   : > { %v932_v61 = vpop.f32.mrf.mxu2 }
 0x1bd   : > { %v997_v8 = vadd.f32 %v932_v61, %v4074_v58  ;;  %v1180_v62 = vpop.f32.mrf.mxu3  ;;  %v2547_v61 = vld [vmem:[%s3731_s16 + $0x1b] sm:$0xff] }
 0x1be   : > { %v1679_v21 = vpop.f32.mrf.mxu1  ;;  %v2582_v27 = vpack.c.bf16 %v2547_v61, %v2546_v51  ;;  %v2010_v51 = vld [vmem:[%s3731_s16 + $0x35] sm:$0xff]  ;;  %v2548_v61 = vld [vmem:[%s3731_s16 + $0x23] sm:$0xff] }
 0x1bf   : > { %v1245_v11 = vadd.f32 %v1180_v62, %v997_v8  ;;  %v2009_v8 = vld [vmem:[%s3731_s16 + $0x2d] sm:$0xff] }
 0x1c0   : > { %v1431_v13 = vpop.f32.mrf.mxu0  ;;  %v2257_v62 = vld [vmem:[%s3731_s16 + $0x2e] sm:$0xff] }
 0x1c1   : > { %v1493_v30 = vadd.f32 %v1428_v47, %v1245_v11  ;;  %3505 = vmatmul.msk.bf16.gmra.mxu2 %vm454_vm1, %v1068_v2  ;;  %3562 = vmatmul.msk.bf16.gmra.mxu1 %vm454_vm1, %v1565_v41  ;;  %v2794_v2 = vld [vmem:[%s4800_s3 + $0x20] sm:$0xff] }
 0x1c2   : > { %3524 = vmatmul.msk.bf16.gmra.mxu3 %vm454_vm1, %v1069_v46  ;;  %2836 = vperm.xlu0 %3656, %v2794_v2  }
 0x1c3   : > { %3543 = vmatmul.msk.bf16.gmra.mxu0 %vm454_vm1, %v1317_v3  ;;  %v4233_v58 = vadd.f32 %v1676_v33, %v1493_v30  ;;  %v2795_v33 = vld [vmem:[%s4800_s3 + $0x28] sm:$0xff] }
 0x1c4   : > { %v935_v16 = vpop.f32.mrf.mxu2  ;;  %2841 = vperm.xlu1 %3657, %v2795_v33  }
 0x1c5   : > { %v998_v60 = vadd.f32 %v935_v16, %v3911_v7  ;;  %v1183_v47 = vpop.f32.mrf.mxu3  ;;  %v2256_v7 = vld [vmem:[%s3731_s16 + $0x26] sm:$0xff] }
 0x1c6   : > { %v1681_v22 = vpop.f32.mrf.mxu1  ;;  %v2292_v30 = vpack.c.bf16 %v2257_v62, %v2256_v7  ;;  %v2011_v7 = vld [vmem:[%s3731_s16 + $0x3d] sm:$0xff] }
 0x1c7   : > { %v1246_v29 = vadd.f32 %v1183_v47, %v998_v60  ;;  %v2258_v62 = vld [vmem:[%s3731_s16 + $0x36] sm:$0xff] }
 0x1c8   : > { %v1433_v32 = vpop.f32.mrf.mxu0 }
 0x1c9   : > { %v1494_v38 = vadd.f32 %v1431_v13, %v1246_v29  ;;  %v2044_v13 = vpack.c.bf16 %v2009_v8, %v2008_v45  ;;  %v2549_v8 = vld [vmem:[%s3731_s16 + $0x2b] sm:$0xff] }
 0x1cb   : > { %v4248_v41 = vadd.f32 %v1679_v21, %v1494_v38 }
 0x1cc   : > { %v937_v46 = vpop.f32.mrf.mxu2 }
 0x1cd   : > { %v999_v3 = vadd.f32 %v937_v46, %v3923_v23  ;;  %v1185_v17 = vpop.f32.mrf.mxu3  ;;  %v2796_v23 = vld [vmem:[%s4800_s3 + $0x30] sm:$0xff]  ;;  %v2259_v46 = vld [vmem:[%s3731_s16 + $0x3e] sm:$0xff] }
 0x1ce   : > { %v1684_v11 = vpop.f32.mrf.mxu1  ;;  %2846 = vperm.xlu1 %3657, %v2796_v23  }
 0x1cf   : > { %v1247_v16 = vadd.f32 %v1185_v17, %v999_v3 }
 0x1d0   : > { %v1436_v60 = vpop.f32.mrf.mxu0 }
 0x1d1   : > { %v1495_v47 = vadd.f32 %v1433_v32, %v1247_v16  ;;  %3564 = vmatmul.msk.bf16.vlgmr.msra.gmra.mxu2 %vm454_vm1, %v3941_v43  ;;  %3620 = vmatmul.msk.bf16.vlgmr.msra.gmra.mxu1 %vm454_vm1, %v2582_v27  ;;  %v2293_v16 = vpack.c.bf16 %v2259_v46, %v2258_v62  ;;  %v2260_v62 = vld [vmem:[%s3731_s16 + $0x46] sm:$0xff] }
 0x1d2   : > { %3583 = vmatmul.msk.bf16.vlgmr.msra.gmra.mxu3 %vm454_vm1, %v2044_v13  ;;  %v2583_v13 = vpack.c.bf16 %v2549_v8, %v2548_v61  ;;  %v2550_v61 = vld [vmem:[%s3731_s16 + $0x33] sm:$0xff]  ;;  %v2551_v8 = vld [vmem:[%s3731_s16 + $0x3b] sm:$0xff] }
 0x1d3   : > { %3602 = vmatmul.msk.bf16.vlgmr.msra.gmra.mxu0 %vm454_vm1, %v2292_v30  ;;  %v4259_v21 = vadd.f32 %v1681_v22, %v1495_v47 }
 0x1d4   : > { %v940_v2 = vpop.f32.mrf.mxu2 }
 0x1d5   : > { %v1000_v43 = vadd.f32 %v940_v2, %v3931_v31  ;;  %v1188_v29 = vpop.f32.mrf.mxu3  ;;  %v2045_v31 = vpack.c.bf16 %v2011_v7, %v2010_v51  ;;  %v2012_v51 = vld [vmem:[%s3731_s16 + $0x45] sm:$0xff]  ;;  %v2013_v7 = vld [vmem:[%s3731_s16 + $0x4d] sm:$0xff] }
 0x1d6   : > { %v1686_v32 = vpop.f32.mrf.mxu1 }
 0x1d7   : > { %v1248_v38 = vadd.f32 %v1188_v29, %v1000_v43 }
 0x1d8   : > { %v1438_v33 = vpop.f32.mrf.mxu0 }
 0x1d9   : > { %v1496_v45 = vadd.f32 %v1436_v60, %v1248_v38 }
 0x1db   : > { %v4268_v3 = vadd.f32 %v1684_v11, %v1496_v45 }
 0x1dc   : > { %v942_v17 = vpop.f32.mrf.mxu2 }
 0x1dd   : > { %v1001_v22 = vadd.f32 %v942_v17, %v3943_v44  ;;  %v1190_v27 = vpop.f32.mrf.mxu3 }
 0x1de   : > { %v1689_v30 = vpop.f32.mrf.mxu1 }
 0x1df   : > { %v1249_v47 = vadd.f32 %v1190_v27, %v1001_v22  ;;  %v2584_v27 = vpack.c.bf16 %v2551_v8, %v2550_v61  ;;  %v2014_v61 = vld [vmem:[%s3731_s16 + $0x55] sm:$0xff]  ;;  %v2552_v8 = vld [vmem:[%s3731_s16 + $0x43] sm:$0xff] }
 0x1e0   : > { %v1441_v23 = vpop.f32.mrf.mxu0 }
 0x1e1   : > { %v1497_v60 = vadd.f32 %v1438_v33, %v1249_v47  ;;  %3565 = vmatmul.msk.bf16.gmra.mxu2 %vm454_vm1, %v3962_v0  ;;  %3621 = vmatmul.msk.bf16.gmra.mxu1 %vm454_vm1, %v2583_v13  ;;  %v2799_v0 = vld [vmem:[%s4800_s3 + $0x48] sm:$0xff] }
 0x1e2   : > { %3584 = vmatmul.msk.bf16.gmra.mxu3 %vm454_vm1, %v2045_v31  ;;  %2861 = vperm.xlu0 %3656, %v2799_v0   ;;  %v2046_v31 = vpack.c.bf16 %v2013_v7, %v2012_v51  ;;  %v2798_v51 = vld [vmem:[%s4800_s3 + $0x40] sm:$0xff]  ;;  %v2553_v7 = vld [vmem:[%s3731_s16 + $0x4b] sm:$0xff] }
 0x1e3   : > { %3603 = vmatmul.msk.bf16.gmra.mxu0 %vm454_vm1, %v2293_v16  ;;  %v4276_v44 = vadd.f32 %v1686_v32, %v1497_v60  ;;  %v2261_v32 = vld [vmem:[%s3731_s16 + $0x4e] sm:$0xff] }
 0x1e4   : > { %v945_v11 = vpop.f32.mrf.mxu2  ;;  %v2294_v16 = vpack.c.bf16 %v2261_v32, %v2260_v62  ;;  %v2015_v62 = vld [vmem:[%s3731_s16 + $0x5d] sm:$0xff] }
 0x1e5   : > { %v1002_v2 = vadd.f32 %v945_v11, %v3952_v52  ;;  %v1193_v43 = vpop.f32.mrf.mxu3  ;;  %v2262_v32 = vld [vmem:[%s3731_s16 + $0x56] sm:$0xff] }
 0x1e6   : > { %v1691_v29 = vpop.f32.mrf.mxu1 }
 0x1e7   : > { %v1250_v38 = vadd.f32 %v1193_v43, %v1002_v2 }
 0x1e8   : > { %v1443_v33 = vpop.f32.mrf.mxu0 }
 0x1e9   : > { %v1498_v45 = vadd.f32 %v1441_v23, %v1250_v38 }
 0x1eb   : > { %v4288_v46 = vadd.f32 %v1689_v30, %v1498_v45  ;;  %v2800_v30 = vld [vmem:[%s4800_s3 + $0x50] sm:$0xff] }
 0x1ec   : > { %v947_v17 = vpop.f32.mrf.mxu2  ;;  %2866 = vperm.xlu1 %3657, %v2800_v30  }
 0x1ed   : > { %v1003_v52 = vadd.f32 %v947_v17, %v3964_v1  ;;  %v1195_v22 = vpop.f32.mrf.mxu3  ;;  %v2797_v1 = vld [vmem:[%s4800_s3 + $0x38] sm:$0xff] }
 0x1ee   : > { %v1694_v13 = vpop.f32.mrf.mxu1  ;;  %2851 = vperm.xlu2 %3658, %v2797_v1   ;;  %v2263_v17 = vld [vmem:[%s3731_s16 + $0x5e] sm:$0xff] }
 0x1ef   : > { %v1251_v47 = vadd.f32 %v1195_v22, %v1003_v52 }
 0x1f0   : > { %v1446_v23 = vpop.f32.mrf.mxu0 }
 0x1f1   : > { %v1499_v60 = vadd.f32 %v1443_v33, %v1251_v47  ;;  %3566 = vmatmul.msk.bf16.gmra.mxu2 %vm454_vm1, %v3983_v25  ;;  %3622 = vmatmul.msk.bf16.gmra.mxu1 %vm454_vm1, %v2584_v27  ;;  %v2585_v27 = vpack.c.bf16 %v2553_v7, %v2552_v8  ;;  %v2295_v47 = vpack.c.bf16 %v2263_v17, %v2262_v32  ;;  %v2555_v8 = vld [vmem:[%s3731_s16 + $0x5b] sm:$0xff]  ;;  %v2017_v7 = vld [vmem:[%s3731_s16 + $0x6d] sm:$0xff] }
 0x1f2   : > { %3585 = vmatmul.msk.bf16.gmra.mxu3 %vm454_vm1, %v2046_v31 }
 0x1f3   : > { %3604 = vmatmul.msk.bf16.gmra.mxu0 %vm454_vm1, %v2294_v16  ;;  %v4302_v25 = vadd.f32 %v1691_v29, %v1499_v60  ;;  %v2047_v16 = vpack.c.bf16 %v2015_v62, %v2014_v61  ;;  %v2554_v61 = vld [vmem:[%s3731_s16 + $0x53] sm:$0xff]  ;;  %v2264_v62 = vld [vmem:[%s3731_s16 + $0x66] sm:$0xff] }
 0x1f4   : > { %v950_v11 = vpop.f32.mrf.mxu2 }
 0x1f5   : > { %v1004_v2 = vadd.f32 %v950_v11, %v3973_v12  ;;  %v1198_v43 = vpop.f32.mrf.mxu3 }
 0x1f6   : > { %v1696_v38 = vpop.f32.mrf.mxu1  ;;  %2856 = vperm.xlu2 %3658, %v2798_v51   ;;  %v2016_v51 = vld [vmem:[%s3731_s16 + $0x65] sm:$0xff] }
 0x1f7   : > { %v1252_v33 = vadd.f32 %v1198_v43, %v1004_v2 }
 0x1f8   : > { %v1448_v45 = vpop.f32.mrf.mxu0 }
 0x1f9   : > { %v1500_v0 = vadd.f32 %v1446_v23, %v1252_v33 }
 0x1fb   : > { %v4314_v29 = vadd.f32 %v1694_v13, %v1500_v0  ;;  %v2803_v0 = vld [vmem:[%s4800_s3 + $0x68] sm:$0xff] }
 0x1fc   : > { %v952_v52 = vpop.f32.mrf.mxu2  ;;  %2881 = vperm.xlu1 %3657, %v2803_v0   ;;  %v2805_v0 = vld [vmem:[%s4800_s3 + $0x78] sm:$0xff] }
 0x1fd   : > { %v1005_v12 = vadd.f32 %v952_v52, %v3985_v26  ;;  %v1200_v22 = vpop.f32.mrf.mxu3  ;;  %v2802_v26 = vld [vmem:[%s4800_s3 + $0x60] sm:$0xff] }
 0x1fe   : > { %v1699_v31 = vpop.f32.mrf.mxu1  ;;  %2876 = vperm.xlu0 %3656, %v2802_v26  }
 0x1ff   : > { %v1253_v23 = vadd.f32 %v1200_v22, %v1005_v12  ;;  %v2586_v12 = vpack.c.bf16 %v2555_v8, %v2554_v61  ;;  %v2556_v61 = vld [vmem:[%s3731_s16 + $0x63] sm:$0xff] }
 0x200   : > { %v1451_v60 = vpop.f32.mrf.mxu0  ;;  %v2019_v8 = vld [vmem:[%s3731_s16 + $0x7d] sm:$0xff] }
 0x201   : > { %v1501_v1 = vadd.f32 %v1448_v45, %v1253_v23  ;;  %3567 = vmatmul.msk.bf16.gmra.mxu2 %vm454_vm1, %v4004_v53  ;;  %3623 = vmatmul.msk.bf16.gmra.mxu1 %vm454_vm1, %v2585_v27  ;;  %v2048_v27 = vpack.c.bf16 %v2017_v7, %v2016_v51  ;;  %v2018_v51 = vld [vmem:[%s3731_s16 + $0x75] sm:$0xff] }
 0x202   : > { %3586 = vmatmul.msk.bf16.gmra.mxu3 %vm454_vm1, %v2047_v16  ;;  %v2266_v7 = vld [vmem:[%s3731_s16 + $0x76] sm:$0xff] }
 0x203   : > { %3605 = vmatmul.msk.bf16.gmra.mxu0 %vm454_vm1, %v2295_v47  ;;  %v4325_v13 = vadd.f32 %v1696_v38, %v1501_v1  ;;  %v2265_v38 = vld [vmem:[%s3731_s16 + $0x6e] sm:$0xff] }
 0x204   : > { %v955_v30 = vpop.f32.mrf.mxu2  ;;  %v2296_v16 = vpack.c.bf16 %v2265_v38, %v2264_v62  ;;  %v2267_v62 = vld [vmem:[%s3731_s16 + $0x7e] sm:$0xff] }
 0x205   : > { %v1006_v53 = vadd.f32 %v955_v30, %v3994_v37  ;;  %v1203_v11 = vpop.f32.mrf.mxu3 }
 0x206   : > { %v1701_v2 = vpop.f32.mrf.mxu1  ;;  %2891 = vperm.xlu0 %3656, %v2805_v0   ;;  %v1773_v0 = vld [vmem:[%s3731_s16 + $0x8c] sm:$0xff] }
 0x207   : > { %v1254_v43 = vadd.f32 %v1203_v11, %v1006_v53 }
 0x208   : > { %v1453_v33 = vpop.f32.mrf.mxu0 }
 0x209   : > { %v1502_v45 = vadd.f32 %v1451_v60, %v1254_v43 }
 0x20b   : > { %v4337_v32 = vadd.f32 %v1699_v31, %v1502_v45  ;;  %v1771_v45 = vld [vmem:[%s3731_s16 + $0x7c] sm:$0xff] }
 0x20c   : > { %v957_v17 = vpop.f32.mrf.mxu2 }
 0x20d   : > { %v1007_v37 = vadd.f32 %v957_v17, %v4006_v54  ;;  %v1205_v52 = vpop.f32.mrf.mxu3  ;;  %v2801_v54 = vld [vmem:[%s4800_s3 + $0x58] sm:$0xff] }
 0x20e   : > { %v1704_v22 = vpop.f32.mrf.mxu1  ;;  %2871 = vperm.xlu2 %3658, %v2801_v54  }
 0x20f   : > { %v1255_v47 = vadd.f32 %v1205_v52, %v1007_v37 }
 0x210   : > { %v1456_v23 = vpop.f32.mrf.mxu0 }
 0x211   : > { %v1503_v60 = vadd.f32 %v1453_v33, %v1255_v47  ;;  %3568 = vmatmul.msk.bf16.gmra.mxu2 %vm454_vm1, %v4025_v19  ;;  %3624 = vmatmul.msk.bf16.gmra.mxu1 %vm454_vm1, %v2586_v12  ;;  %v1770_v33 = vld [vmem:[%s3731_s16 + $0x74] sm:$0xff]  ;;  %v2297_v47 = vpack.c.bf16 %v2267_v62, %v2266_v7  ;;  %v2268_v7 = vld [vmem:[%s3731_s16 + $0x86] sm:$0xff] }
 0x212   : > { %3587 = vmatmul.msk.bf16.gmra.mxu3 %vm454_vm1, %v2048_v27  ;;  %v1801_v52 = vpack.c.bf16 %v1771_v45, %v1770_v33  ;;  %v1772_v45 = vld [vmem:[%s3731_s16 + $0x84] sm:$0xff]  ;;  %v2269_v62 = vld [vmem:[%s3731_s16 + $0x8e] sm:$0xff] }
 0x213   : > { %3606 = vmatmul.msk.bf16.gmra.mxu0 %vm454_vm1, %v2296_v16  ;;  %v4348_v31 = vadd.f32 %v1701_v2, %v1503_v60  ;;  %v2557_v2 = vld [vmem:[%s3731_s16 + $0x6b] sm:$0xff]  ;;  %v2049_v16 = vpack.c.bf16 %v2019_v8, %v2018_v51 }
 0x214   : > { %v960_v1 = vpop.f32.mrf.mxu2  ;;  %v2587_v12 = vpack.c.bf16 %v2557_v2, %v2556_v61  ;;  %v2804_v51 = vld [vmem:[%s4800_s3 + $0x70] sm:$0xff]  ;;  %v2020_v61 = vld [vmem:[%s3731_s16 + $0x85] sm:$0xff] }
 0x215   : > { %v1008_v19 = vadd.f32 %v960_v1, %v4015_v63  ;;  %v1208_v26 = vpop.f32.mrf.mxu3  ;;  %v2558_v2 = vld [vmem:[%s3731_s16 + $0x73] sm:$0xff] }
 0x216   : > { %v1706_v30 = vpop.f32.mrf.mxu1  ;;  %2886 = vperm.xlu2 %3658, %v2804_v51   ;;  %v2021_v8 = vld [vmem:[%s3731_s16 + $0x8d] sm:$0xff]  ;;  %v1775_v51 = vld [vmem:[%s3731_s16 + $0x9c] sm:$0xff] }
 0x217   : > { %v1256_v53 = vadd.f32 %v1208_v26, %v1008_v19 }
 0x218   : > { %v1458_v11 = vpop.f32.mrf.mxu0 }
 0x219   : > { %v1504_v43 = vadd.f32 %v1456_v23, %v1256_v53 }
 0x21b   : > { %v4362_v38 = vadd.f32 %v1704_v22, %v1504_v43 }
 0x21c   : > { %v962_v63 = vpop.f32.mrf.mxu2 }
 0x21d   : > { %v1009_v17 = vadd.f32 %v962_v63, %v4027_v20  ;;  %v1210_v37 = vpop.f32.mrf.mxu3  ;;  %v2806_v20 = vld [vmem:[%s4800_s3 + $0x80] sm:$0xff] }
 0x21e   : > { %v1709_v27 = vpop.f32.mrf.mxu1  ;;  %2896 = vperm.xlu1 %3657, %v2806_v20  }
 0x21f   : > { %v1257_v23 = vadd.f32 %v1210_v37, %v1009_v17 }
 0x220   : > { %v1461_v60 = vpop.f32.mrf.mxu0 }
 0x221   : > { %v1505_v54 = vadd.f32 %v1458_v11, %v1257_v23  ;;  %3569 = vmatmul.msk.bf16.gmra.mxu2 %vm454_vm1, %v1801_v52  ;;  %3625 = vmatmul.msk.bf16.gmra.mxu1 %vm454_vm1, %v2587_v12  ;;  %v1802_v52 = vpack.c.bf16 %v1773_v0, %v1772_v45  ;;  %v2298_v23 = vpack.c.bf16 %v2269_v62, %v2268_v7  ;;  %v1774_v0 = vld [vmem:[%s3731_s16 + $0x94] sm:$0xff]  ;;  %v2271_v62 = vld [vmem:[%s3731_s16 + $0x9e] sm:$0xff] }
 0x222   : > { %3588 = vmatmul.msk.bf16.gmra.mxu3 %vm454_vm1, %v2049_v16  ;;  %v2270_v7 = vld [vmem:[%s3731_s16 + $0x96] sm:$0xff] }
 0x223   : > { %3607 = vmatmul.msk.bf16.gmra.mxu0 %vm454_vm1, %v2297_v47  ;;  %v4372_v22 = vadd.f32 %v1706_v30, %v1505_v54  ;;  %v2559_v30 = vld [vmem:[%s3731_s16 + $0x7b] sm:$0xff]  ;;  %v2050_v47 = vpack.c.bf16 %v2021_v8, %v2020_v61 }
 0x224   : > { %v965_v1 = vpop.f32.mrf.mxu2  ;;  %v2588_v12 = vpack.c.bf16 %v2559_v30, %v2558_v2  ;;  %v2022_v61 = vld [vmem:[%s3731_s16 + $0x95] sm:$0xff]  ;;  %v2560_v2 = vld [vmem:[%s3731_s16 + $0x83] sm:$0xff]  ;;  %v2561_v30 = vld [vmem:[%s3731_s16 + $0x8b] sm:$0xff] }
 0x225   : > { %v1010_v19 = vadd.f32 %v965_v1, %v4036_v35  ;;  %v1213_v26 = vpop.f32.mrf.mxu3  ;;  %v2023_v8 = vld [vmem:[%s3731_s16 + $0x9d] sm:$0xff] }
 0x226   : > { %v1711_v53 = vpop.f32.mrf.mxu1 }
 0x227   : > { %v1258_v11 = vadd.f32 %v1213_v26, %v1010_v19 }
 0x228   : > { %v1463_v43 = vpop.f32.mrf.mxu0 }
 0x229   : > { %v1506_v33 = vadd.f32 %v1461_v60, %v1258_v11 }
 0x22b   : > { %v4386_v63 = vadd.f32 %v1709_v27, %v1506_v33 }
 0x22c   : > { %v967_v35 = vpop.f32.mrf.mxu2 }
 0x22d   : > { %v1011_v17 = vadd.f32 %v967_v35, %v4046_v57  ;;  %v1215_v37 = vpop.f32.mrf.mxu3  ;;  %v2808_v57 = vld [vmem:[%s4800_s3 + $0x90] sm:$0xff] }
 0x22e   : > { %v1714_v16 = vpop.f32.mrf.mxu1  ;;  %2906 = vperm.xlu0 %3656, %v2808_v57  }
 0x22f   : > { %v1259_v60 = vadd.f32 %v1215_v37, %v1011_v17 }
 0x230   : > { %v1466_v54 = vpop.f32.mrf.mxu0 }
 0x231   : > { %v1507_v20 = vadd.f32 %v1463_v43, %v1259_v60  ;;  %3570 = vmatmul.msk.bf16.gmra.mxu2 %vm454_vm1, %v1802_v52  ;;  %3626 = vmatmul.msk.bf16.gmra.mxu1 %vm454_vm1, %v2588_v12  ;;  %v1803_v52 = vpack.c.bf16 %v1775_v51, %v1774_v0  ;;  %v2589_v12 = vpack.c.bf16 %v2561_v30, %v2560_v2  ;;  %v1776_v51 = vld [vmem:[%s3731_s16 + $0xa4] sm:$0xff]  ;;  %v2562_v30 = vld [vmem:[%s3731_s16 + $0x93] sm:$0xff] }
 0x232   : > { %3589 = vmatmul.msk.bf16.gmra.mxu3 %vm454_vm1, %v2050_v47  ;;  %v2299_v60 = vpack.c.bf16 %v2271_v62, %v2270_v7  ;;  %v2024_v2 = vld [vmem:[%s3731_s16 + $0xa5] sm:$0xff]  ;;  %v2025_v7 = vld [vmem:[%s3731_s16 + $0xad] sm:$0xff] }
 0x233   : > { %3608 = vmatmul.msk.bf16.gmra.mxu0 %vm454_vm1, %v2298_v23  ;;  %v4396_v27 = vadd.f32 %v1711_v53, %v1507_v20  ;;  %v2051_v23 = vpack.c.bf16 %v2023_v8, %v2022_v61  ;;  %v1777_v61 = vld [vmem:[%s3731_s16 + $0xac] sm:$0xff]  ;;  %v2563_v8 = vld [vmem:[%s3731_s16 + $0x9b] sm:$0xff] }
 0x234   : > { %v970_v1 = vpop.f32.mrf.mxu2  ;;  %v2272_v62 = vld [vmem:[%s3731_s16 + $0xa6] sm:$0xff] }
 0x235   : > { %v1012_v19 = vadd.f32 %v970_v1, %v4054_v9  ;;  %v1218_v26 = vpop.f32.mrf.mxu3  ;;  %v2809_v9 = vld [vmem:[%s4800_s3 + $0x98] sm:$0xff]  ;;  %v2807_v1 = vld [vmem:[%s4800_s3 + $0x88] sm:$0xff] }
 0x236   : > { %v1716_v11 = vpop.f32.mrf.mxu1  ;;  %2911 = vperm.xlu1 %3657, %v2809_v9   ;;  %2901 = vperm.xlu2 %3658, %v2807_v1  }
 0x237   : > { %v1260_v43 = vadd.f32 %v1218_v26, %v1012_v19 }
 0x238   : > { %v1468_v33 = vpop.f32.mrf.mxu0 }
 0x239   : > { %v1508_v45 = vadd.f32 %v1466_v54, %v1260_v43 }
 0x23b   : > { %v4407_v35 = vadd.f32 %v1714_v16, %v1508_v45 }
 0x23c   : > { %v972_v53 = vpop.f32.mrf.mxu2 }
 0x23d   : > { %v1013_v17 = vadd.f32 %v972_v53, %v4064_v36  ;;  %v1220_v37 = vpop.f32.mrf.mxu3  ;;  %v2273_v53 = vld [vmem:[%s3731_s16 + $0xae] sm:$0xff] }
 0x23e   : > { %v1719_v47 = vpop.f32.mrf.mxu1 }
 0x23f   : > { %v1261_v54 = vadd.f32 %v1220_v37, %v1013_v17  ;;  %v2811_v17 = vld [vmem:[%s4800_s3 + $0xa8] sm:$0xff] }
 0x240   : > { %v1471_v20 = vpop.f32.mrf.mxu0  ;;  %2921 = vperm.xlu0 %3656, %v2811_v17   ;;  %v2026_v17 = vld [vmem:[%s3731_s16 + $0xb5] sm:$0xff] }
 0x241   : > { %v1509_v57 = vadd.f32 %v1468_v33, %v1261_v54  ;;  %3571 = vmatmul.msk.bf16.gmra.mxu2 %vm454_vm1, %v1803_v52  ;;  %3627 = vmatmul.msk.bf16.gmra.mxu1 %vm454_vm1, %v2589_v12  ;;  %v1804_v12 = vpack.c.bf16 %v1777_v61, %v1776_v51  ;;  %v2052_v54 = vpack.c.bf16 %v2025_v7, %v2024_v2 }
 0x242   : > { %3590 = vmatmul.msk.bf16.gmra.mxu3 %vm454_vm1, %v2051_v23  ;;  %v2590_v23 = vpack.c.bf16 %v2563_v8, %v2562_v30 }
 0x243   : > { %3609 = vmatmul.msk.bf16.gmra.mxu0 %vm454_vm1, %v2299_v60  ;;  %v4417_v36 = vadd.f32 %v1716_v11, %v1509_v57  ;;  %v4425_v11 = vpop.permute.xlu0 %2831 }
 0x244   : > { %v975_v16 = vpop.f32.mrf.mxu2 }
 0x245   : > { %v1014_v19 = vadd.f32 %v975_v16, %v4072_v50  ;;  %v1223_v26 = vpop.f32.mrf.mxu3 }
 0x246   : > { %v1721_v43 = vpop.f32.mrf.mxu1 }
 0x247   : > { %v1262_v33 = vadd.f32 %v1223_v26, %v1014_v19 }
 0x248   : > { %v1473_v45 = vpop.f32.mrf.mxu0 }
 0x249   : > { %v1510_v0 = vadd.f32 %v1471_v20, %v1262_v33  ;;  %v2300_v20 = vpack.c.bf16 %v2273_v53, %v2272_v62  ;;  %v2812_v33 = vld [vmem:[%s4800_s3 + $0xb0] sm:$0xff] }
 0x24a   : > { %2926 = vperm.xlu1 %3657, %v2812_v33   ;;  %v1778_v53 = vld [vmem:[%s3731_s16 + $0xb4] sm:$0xff] }
 0x24b   : > { %v4433_v9 = vadd.f32 %v1719_v47, %v1510_v0  ;;  %v2837_v26 = vpop.permute.xlu0 %2836 }
 0x24c   : > { %v977_v50 = vpop.f32.mrf.mxu2 }
 0x24d   : > { %4807 = vst [vmem:[#allocation2_spill] sm:$0xff] %v4433_v9  ;;  %v1015_v37 = vadd.f32 %v977_v50, %v4082_v18  ;;  %v1225_v52 = vpop.f32.mrf.mxu3  ;;  %v1779_v50 = vld [vmem:[%s3731_s16 + $0xbc] sm:$0xff] }
 0x24e   : > { %v2667_v60 = vpop.f32.mrf.mxu1 }
 0x24f   : > { %v1263_v57 = vadd.f32 %v1225_v52, %v1015_v37  ;;  %2757 = vst [vmem:[%s3741_s23] sm:$0xff] %v2667_v60  ;;  %v3045_v18 = vmul.f32 %v4425_v11, %v2667_v60  ;;  %v2564_v37 = vld [vmem:[%s3731_s16 + $0xa3] sm:$0xff]  ;;  %v2565_v52 = vld [vmem:[%s3731_s16 + $0xab] sm:$0xff] }
 0x250   : > { %v2378_v16 = vpop.f32.mrf.mxu0 }
 0x251   : > { %v1511_v1 = vadd.f32 %v1473_v45, %v1263_v57  ;;  %3572 = vmatmul.msk.bf16.gmra.mxu2 %vm454_vm1, %v1804_v12  ;;  %3628 = vmatmul.msk.bf16.gmra.mxu1 %vm454_vm1, %v2590_v23  ;;  %v3250_v61 = vmul.f32 %v3045_v18, %v2667_v60  ;;  %v2027_v23 = vld [vmem:[%s3731_s16 + $0xbd] sm:$0xff] }
 0x252   : > { %3591 = vmatmul.msk.bf16.gmra.mxu3 %vm454_vm1, %v2052_v54  ;;  %v2274_v60 = vld [vmem:[%s3731_s16 + $0xb6] sm:$0xff]  ;;  %v2275_v54 = vld [vmem:[%s3731_s16 + $0xbe] sm:$0xff] }
 0x253   : > { %3610 = vmatmul.msk.bf16.gmra.mxu0 %vm454_vm1, %v2300_v20  ;;  %v4445_v47 = vadd.f32 %v1721_v43, %v1511_v1  ;;  %v2810_v57 = vld [vmem:[%s4800_s3 + $0xa0] sm:$0xff] }
 0x254   : > { %v1882_v19 = vpop.f32.mrf.mxu2  ;;  %2916 = vperm.xlu2 %3658, %v2810_v57  }
 0x255   : > { %4808 = vst [vmem:[#allocation3_spill] sm:$0xff] %v4445_v47  ;;  %v1972_v45 = vadd.f32 %v1882_v19, %v4095_v6  ;;  %v2130_v0 = vpop.f32.mrf.mxu3  ;;  %v2842_v6 = vpop.permute.xlu1 %2841  ;;  %v2591_v19 = vpack.c.bf16 %v2565_v52, %v2564_v37 }
 0x256   : > { %v2669_v51 = vpop.f32.mrf.mxu1 }
 0x257   : > { %v2220_v43 = vadd.f32 %v2130_v0, %v1972_v45  ;;  %2758 = vst [vmem:[%s3741_s23 + $0x8] sm:$0xff] %v2669_v51  ;;  %v3046_v2 = vmul.f32 %v2837_v26, %v2669_v51  ;;  %v2053_v45 = vpack.c.bf16 %v2027_v23, %v2026_v17  ;;  %v2301_v0 = vpack.c.bf16 %v2275_v54, %v2274_v60 }
 0x258   : > { %v2380_v30 = vpop.f32.mrf.mxu0 }
 0x259   : > { %v2468_v8 = vadd.f32 %v2378_v16, %v2220_v43  ;;  %v3206_v7 = vadd.f32 %v3046_v2, %v3045_v18  ;;  %v3251_v62 = vmul.f32 %v3046_v2, %v2669_v51  ;;  %v1805_v18 = vpack.c.bf16 %v1779_v50, %v1778_v53 }
 0x25b   : > { %2507 = vst [vmem:[%s3736_s20 + $0x18] sm:$0xff] %v2468_v8  ;;  %v3286_v12 = vadd.f32 %v3251_v62, %v3250_v61  ;;  %v3009_v2 = vmul.f32 %v4425_v11, %v2468_v8  ;;  %v2814_v11 = vld [vmem:[%s4800_s3 + $0xc0] sm:$0xff] }
 0x25c   : > { %v1884_v20 = vpop.f32.mrf.mxu2  ;;  %2936 = vperm.xlu0 %3656, %v2814_v11  }
 0x25d   : > { %v1973_v16 = vadd.f32 %v1884_v20, %v4102_v10  ;;  %v2132_v1 = vpop.f32.mrf.mxu3  ;;  %v2847_v17 = vpop.permute.xlu1 %2846 }
 0x25e   : > { %v2672_v33 = vpop.f32.mrf.mxu1 }
 0x25f   : > { %v2221_v51 = vadd.f32 %v2132_v1, %v1973_v16  ;;  %2759 = vst [vmem:[%s3741_s23 + $0x10] sm:$0xff] %v2672_v33  ;;  %v3047_v61 = vmul.f32 %v2842_v6, %v2672_v33  ;;  %v1780_v16 = vld [vmem:[%s3731_s16 + $0xc4] sm:$0xff]  ;;  %v1781_v1 = vld [vmem:[%s3731_s16 + $0xcc] sm:$0xff] }
 0x260   : > { %v2383_v43 = vpop.f32.mrf.mxu0 }
 0x261   : > { %v2469_v62 = vadd.f32 %v2380_v30, %v2221_v51  ;;  %v3207_v47 = vadd.f32 %v3206_v7, %v3047_v61  ;;  %v3252_v9 = vmul.f32 %v3047_v61, %v2672_v33  ;;  %3573 = vmatmul.msk.bf16.gmra.mxu2 %vm454_vm1, %v1805_v18  ;;  %3629 = vmatmul.msk.bf16.gmra.mxu1 %vm454_vm1, %v2591_v19  ;;  %v4482_v18 = vpop.permute.xlu2 %2851  ;;  %v2028_v19 = vld [vmem:[%s3731_s16 + $0xc5] sm:$0xff]  ;;  %v2566_v33 = vld [vmem:[%s3731_s16 + $0xb3] sm:$0xff] }
 0x262   : > { %3592 = vmatmul.msk.bf16.gmra.mxu3 %vm454_vm1, %v2053_v45  ;;  %v3126_v30 = vmul.f32 %v3009_v2, %v2468_v8  ;;  %v2567_v45 = vld [vmem:[%s3731_s16 + $0xbb] sm:$0xff]  ;;  %v2029_v61 = vld [vmem:[%s3731_s16 + $0xcd] sm:$0xff] }
 0x263   : > { %3611 = vmatmul.msk.bf16.gmra.mxu0 %vm454_vm1, %v2301_v0  ;;  %2508 = vst [vmem:[%s3736_s20 + $0x20] sm:$0xff] %v2469_v62  ;;  %v3010_v10 = vmul.f32 %v2837_v26, %v2469_v62  ;;  %v3287_v53 = vadd.f32 %v3286_v12, %v3252_v9  ;;  %v2815_v9 = vld [vmem:[%s4800_s3 + $0xc8] sm:$0xff] }
 0x264   : > { %v1887_v50 = vpop.f32.mrf.mxu2  ;;  %2941 = vperm.xlu1 %3657, %v2815_v9  }
 0x265   : > { %v3082_v7 = vadd.f32 %v3010_v10, %v3009_v2  ;;  %v3127_v37 = vmul.f32 %v3010_v10, %v2469_v62  ;;  %v1974_v52 = vadd.f32 %v1887_v50, %v4111_v59  ;;  %v2135_v23 = vpop.f32.mrf.mxu3  ;;  %v2276_v2 = vld [vmem:[%s3731_s16 + $0xc6] sm:$0xff]  ;;  %v2277_v62 = vld [vmem:[%s3731_s16 + $0xce] sm:$0xff]  ;;  %v1806_v50 = vpack.c.bf16 %v1781_v1, %v1780_v16 }
 0x266   : > { %v2674_v60 = vpop.f32.mrf.mxu1 }
 0x267   : > { %v3162_v26 = vadd.f32 %v3127_v37, %v3126_v30  ;;  %v2222_v12 = vadd.f32 %v2135_v23, %v1974_v52  ;;  %2760 = vst [vmem:[%s3741_s23 + $0x18] sm:$0xff] %v2674_v60  ;;  %v3048_v8 = vmul.f32 %v2847_v17, %v2674_v60  ;;  %v2592_v52 = vpack.c.bf16 %v2567_v45, %v2566_v33 }
 0x268   : > { %v2385_v54 = vpop.f32.mrf.mxu0 }
 0x269   : > { %v2470_v59 = vadd.f32 %v2383_v43, %v2222_v12  ;;  %v3253_v20 = vmul.f32 %v3048_v8, %v2674_v60  ;;  %v3208_v57 = vadd.f32 %v3207_v47, %v3048_v8  ;;  %v2817_v47 = vld [vmem:[%s4800_s3 + $0xd8] sm:$0xff]  ;;  %v2818_v60 = vld [vmem:[%s4800_s3 + $0xe0] sm:$0xff] }
 0x26a   : > { %2951 = vperm.xlu0 %3656, %v2817_v47  }
 0x26b   : > { %2509 = vst [vmem:[%s3736_s20 + $0x28] sm:$0xff] %v2470_v59  ;;  %v3011_v0 = vmul.f32 %v2842_v6, %v2470_v59  ;;  %v3288_v51 = vadd.f32 %v3287_v53, %v3253_v20  ;;  %v2054_v6 = vpack.c.bf16 %v2029_v61, %v2028_v19  ;;  %v2302_v53 = vpack.c.bf16 %v2277_v62, %v2276_v2  ;;  %v2857_v19 = vpop.permute.xlu2 %2856 }
 0x26c   : > { %v1889_v10 = vpop.f32.mrf.mxu2  ;;  %2956 = vperm.xlu1 %3657, %v2818_v60   ;;  %v2031_v60 = vld [vmem:[%s3731_s16 + $0xdd] sm:$0xff] }
 0x26d   : > { %v3083_v43 = vadd.f32 %v3082_v7, %v3011_v0  ;;  %v3128_v11 = vmul.f32 %v3011_v0, %v2470_v59  ;;  %v1975_v30 = vadd.f32 %v1889_v10, %v4118_v34  ;;  %v2137_v37 = vpop.f32.mrf.mxu3 }
 0x26e   : > { %v2677_v23 = vpop.f32.mrf.mxu1 }
 0x26f   : > { %v3163_v9 = vadd.f32 %v3162_v26, %v3128_v11  ;;  %v2223_v12 = vadd.f32 %v2137_v37, %v1975_v30  ;;  %2761 = vst [vmem:[%s3741_s23 + $0x20] sm:$0xff] %v2677_v23  ;;  %v3049_v8 = vmul.f32 %v4482_v18, %v2677_v23  ;;  %v1782_v11 = vld [vmem:[%s3731_s16 + $0xd4] sm:$0xff]  ;;  %v1783_v30 = vld [vmem:[%s3731_s16 + $0xdc] sm:$0xff] }
 0x270   : > { %v2388_v7 = vpop.f32.mrf.mxu0  ;;  %v2030_v37 = vld [vmem:[%s3731_s16 + $0xd5] sm:$0xff] }
 0x271   : > { %v2471_v59 = vadd.f32 %v2385_v54, %v2223_v12  ;;  %v3209_v34 = vadd.f32 %v3208_v57, %v3049_v8  ;;  %v3254_v20 = vmul.f32 %v3049_v8, %v2677_v23  ;;  %3574 = vmatmul.msk.bf16.gmra.mxu2 %vm454_vm1, %v1806_v50  ;;  %3630 = vmatmul.msk.bf16.gmra.mxu1 %vm454_vm1, %v2592_v52  ;;  %v2813_v54 = vld [vmem:[%s4800_s3 + $0xb8] sm:$0xff]  ;;  %v2820_v57 = vld [vmem:[%s4800_s3 + $0xf0] sm:$0xff]  ;;  %v2568_v52 = vld [vmem:[%s3731_s16 + $0xc3] sm:$0xff] }
 0x272   : > { %3593 = vmatmul.msk.bf16.gmra.mxu3 %vm454_vm1, %v2054_v6  ;;  %2931 = vperm.xlu2 %3658, %v2813_v54   ;;  %v2569_v23 = vld [vmem:[%s3731_s16 + $0xcb] sm:$0xff]  ;;  %v2279_v12 = vld [vmem:[%s3731_s16 + $0xde] sm:$0xff] }
 0x273   : > { %3612 = vmatmul.msk.bf16.gmra.mxu0 %vm454_vm1, %v2302_v53  ;;  %2510 = vst [vmem:[%s3736_s20 + $0x30] sm:$0xff] %v2471_v59  ;;  %v3012_v16 = vmul.f32 %v2847_v17, %v2471_v59  ;;  %v3289_v26 = vadd.f32 %v3288_v51, %v3254_v20  ;;  %2966 = vperm.xlu0 %3656, %v2820_v57   ;;  %v2821_v51 = vld [vmem:[%s4800_s3 + $0xf8] sm:$0xff] }
 0x274   : > { %v1892_v1 = vpop.f32.mrf.mxu2  ;;  %2971 = vperm.xlu1 %3657, %v2821_v51   ;;  %v1807_v20 = vpack.c.bf16 %v1783_v30, %v1782_v11  ;;  %v2593_v57 = vpack.c.bf16 %v2569_v23, %v2568_v52  ;;  %v2867_v30 = vpop.permute.xlu1 %2866 }
 0x275   : > { %v3084_v33 = vadd.f32 %v3083_v43, %v3012_v16  ;;  %v3129_v45 = vmul.f32 %v3012_v16, %v2471_v59  ;;  %v1976_v0 = vadd.f32 %v1892_v1, %v4127_v42  ;;  %v2140_v61 = vpop.f32.mrf.mxu3  ;;  %v2862_v59 = vpop.permute.xlu0 %2861 }
 0x276   : > { %v2679_v17 = vpop.f32.mrf.mxu1 }
 0x277   : > { %v3164_v2 = vadd.f32 %v3163_v9, %v3129_v45  ;;  %v2224_v62 = vadd.f32 %v2140_v61, %v1976_v0  ;;  %2762 = vst [vmem:[%s3741_s23 + $0x28] sm:$0xff] %v2679_v17  ;;  %v3050_v10 = vmul.f32 %v2857_v19, %v2679_v17  ;;  %v2278_v9 = vld [vmem:[%s3731_s16 + $0xd6] sm:$0xff] }
 0x278   : > { %v2390_v42 = vpop.f32.mrf.mxu0  ;;  %v2303_v45 = vpack.c.bf16 %v2279_v12, %v2278_v9  ;;  %v2824_v0 = vld [vmem:[%s4800_s3 + $0x110] sm:$0xff] }
 0x279   : > { %v2472_v50 = vadd.f32 %v2388_v7, %v2224_v62  ;;  %v3255_v47 = vmul.f32 %v3050_v10, %v2679_v17  ;;  %v3210_v43 = vadd.f32 %v3209_v34, %v3050_v10  ;;  %v2823_v7 = vld [vmem:[%s4800_s3 + $0x108] sm:$0xff] }
 0x27b   : > { %2511 = vst [vmem:[%s3736_s20 + $0x38] sm:$0xff] %v2472_v50  ;;  %v3013_v6 = vmul.f32 %v4482_v18, %v2472_v50  ;;  %v3290_v53 = vadd.f32 %v3289_v26, %v3255_v47  ;;  %2981 = vperm.xlu0 %3656, %v2823_v7   ;;  %v2055_v26 = vpack.c.bf16 %v2031_v60, %v2030_v37 }
 0x27c   : > { %v1894_v8 = vpop.f32.mrf.mxu2  ;;  %2986 = vperm.xlu1 %3657, %v2824_v0   ;;  %v2280_v0 = vld [vmem:[%s3731_s16 + $0xe6] sm:$0xff] }
 0x27d   : > { %v3085_v34 = vadd.f32 %v3084_v33, %v3013_v6  ;;  %v3130_v16 = vmul.f32 %v3013_v6, %v2472_v50  ;;  %v1977_v1 = vadd.f32 %v1894_v8, %v4134_v55  ;;  %v2142_v54 = vpop.f32.mrf.mxu3  ;;  %v2816_v55 = vld [vmem:[%s4800_s3 + $0xd0] sm:$0xff] }
 0x27e   : > { %v2682_v18 = vpop.f32.mrf.mxu1  ;;  %2946 = vperm.xlu2 %3658, %v2816_v55  }
 0x27f   : > { %v3165_v61 = vadd.f32 %v3164_v2, %v3130_v16  ;;  %v2225_v17 = vadd.f32 %v2142_v54, %v1977_v1  ;;  %2763 = vst [vmem:[%s3741_s23 + $0x30] sm:$0xff] %v2682_v18  ;;  %v3051_v51 = vmul.f32 %v2862_v59, %v2682_v18  ;;  %v1785_v16 = vld [vmem:[%s3731_s16 + $0xec] sm:$0xff] }
 0x280   : > { %v2393_v62 = vpop.f32.mrf.mxu0  ;;  %v2032_v1 = vld [vmem:[%s3731_s16 + $0xe5] sm:$0xff]  ;;  %v2570_v54 = vld [vmem:[%s3731_s16 + $0xd3] sm:$0xff] }
 0x281   : > { %v2473_v33 = vadd.f32 %v2390_v42, %v2225_v17  ;;  %v3211_v10 = vadd.f32 %v3210_v43, %v3051_v51  ;;  %v3256_v50 = vmul.f32 %v3051_v51, %v2682_v18  ;;  %3575 = vmatmul.msk.bf16.gmra.mxu2 %vm454_vm1, %v1807_v20  ;;  %3631 = vmatmul.msk.bf16.gmra.mxu1 %vm454_vm1, %v2593_v57  ;;  %v2826_v42 = vld [vmem:[%s4800_s3 + $0x120] sm:$0xff]  ;;  %v2872_v51 = vpop.permute.xlu2 %2871 }
 0x282   : > { %3594 = vmatmul.msk.bf16.gmra.mxu3 %vm454_vm1, %v2055_v26  ;;  %v2571_v57 = vld [vmem:[%s3731_s16 + $0xdb] sm:$0xff] }
 0x283   : > { %3613 = vmatmul.msk.bf16.gmra.mxu0 %vm454_vm1, %v2303_v45  ;;  %2512 = vst [vmem:[%s3736_s20 + $0x40] sm:$0xff] %v2473_v33  ;;  %v3014_v2 = vmul.f32 %v2857_v19, %v2473_v33  ;;  %v3291_v47 = vadd.f32 %v3290_v53, %v3256_v50  ;;  %2996 = vperm.xlu0 %3656, %v2826_v42   ;;  %v2827_v19 = vld [vmem:[%s4800_s3 + $0x128] sm:$0xff] }
 0x284   : > { %v1897_v11 = vpop.f32.mrf.mxu2  ;;  %3001 = vperm.xlu1 %3657, %v2827_v19   ;;  %v2033_v45 = vld [vmem:[%s3731_s16 + $0xed] sm:$0xff] }
 0x285   : > { %v3086_v43 = vadd.f32 %v3085_v34, %v3014_v2  ;;  %v3131_v37 = vmul.f32 %v3014_v2, %v2473_v33  ;;  %v1978_v52 = vadd.f32 %v1897_v11, %v4143_v48  ;;  %v2145_v23 = vpop.f32.mrf.mxu3  ;;  %v2819_v48 = vld [vmem:[%s4800_s3 + $0xe8] sm:$0xff]  ;;  %v2594_v2 = vpack.c.bf16 %v2571_v57, %v2570_v54  ;;  %v2825_v57 = vld [vmem:[%s4800_s3 + $0x118] sm:$0xff] }
 0x286   : > { %v2684_v6 = vpop.f32.mrf.mxu1  ;;  %v1784_v34 = vld [vmem:[%s3731_s16 + $0xe4] sm:$0xff]  ;;  %2961 = vperm.xlu2 %3658, %v2819_v48   ;;  %v2056_v42 = vpack.c.bf16 %v2033_v45, %v2032_v1  ;;  %v2877_v48 = vpop.permute.xlu0 %2876 }
 0x287   : > { %v3166_v53 = vadd.f32 %v3165_v61, %v3131_v37  ;;  %v2226_v60 = vadd.f32 %v2145_v23, %v1978_v52  ;;  %2764 = vst [vmem:[%s3741_s23 + $0x38] sm:$0xff] %v2684_v6  ;;  %v3052_v9 = vmul.f32 %v2867_v30, %v2684_v6  ;;  %v2281_v61 = vld [vmem:[%s3731_s16 + $0xee] sm:$0xff]  ;;  %v1808_v55 = vpack.c.bf16 %v1785_v16, %v1784_v34 }
 0x288   : > { %v2395_v12 = vpop.f32.mrf.mxu0  ;;  %v2304_v37 = vpack.c.bf16 %v2281_v61, %v2280_v0  ;;  %v1787_v0 = vld [vmem:[%s3731_s16 + $0xfc] sm:$0xff] }
 0x289   : > { %v2474_v8 = vadd.f32 %v2393_v62, %v2226_v60  ;;  %v3257_v20 = vmul.f32 %v3052_v9, %v2684_v6  ;;  %v3212_v7 = vadd.f32 %v3211_v10, %v3052_v9  ;;  %v2822_v6 = vld [vmem:[%s4800_s3 + $0x100] sm:$0xff]  ;;  %v2034_v61 = vld [vmem:[%s3731_s16 + $0xf5] sm:$0xff] }
 0x28b   : > { %2513 = vst [vmem:[%s3736_s20 + $0x48] sm:$0xff] %v2474_v8  ;;  %v3015_v18 = vmul.f32 %v2862_v59, %v2474_v8  ;;  %v3292_v26 = vadd.f32 %v3291_v47, %v3257_v20 }
 0x28c   : > { %v1899_v17 = vpop.f32.mrf.mxu2 }
 0x28d   : > { %v3087_v33 = vadd.f32 %v3086_v43, %v3015_v18  ;;  %v3132_v62 = vmul.f32 %v3015_v18, %v2474_v8  ;;  %v1979_v10 = vadd.f32 %v1899_v17, %v4150_v15  ;;  %v2147_v50 = vpop.f32.mrf.mxu3  ;;  %v2572_v17 = vld [vmem:[%s3731_s16 + $0xe3] sm:$0xff] }
 0x28e   : > { %v2687_v11 = vpop.f32.mrf.mxu1  ;;  %2976 = vperm.xlu2 %3658, %v2822_v6  }
 0x28f   : > { %v3167_v59 = vadd.f32 %v3166_v53, %v3132_v62  ;;  %v2227_v47 = vadd.f32 %v2147_v50, %v1979_v10  ;;  %2765 = vst [vmem:[%s3741_s23 + $0x40] sm:$0xff] %v2687_v11  ;;  %v3053_v52 = vmul.f32 %v2872_v51, %v2687_v11  ;;  %v2035_v10 = vld [vmem:[%s3731_s16 + $0xfd] sm:$0xff] }
 0x290   : > { %v2398_v23 = vpop.f32.mrf.mxu0  ;;  %v2282_v50 = vld [vmem:[%s3731_s16 + $0xf6] sm:$0xff] }
 0x291   : > { %v2475_v19 = vadd.f32 %v2395_v12, %v2227_v47  ;;  %v3213_v43 = vadd.f32 %v3212_v7, %v3053_v52  ;;  %v3258_v60 = vmul.f32 %v3053_v52, %v2687_v11  ;;  %3576 = vmatmul.msk.bf16.gmra.mxu2 %vm454_vm1, %v1808_v55  ;;  %3632 = vmatmul.msk.bf16.gmra.mxu1 %vm454_vm1, %v2594_v2  ;;  %v2573_v55 = vld [vmem:[%s3731_s16 + $0xeb] sm:$0xff]  ;;  %v2283_v2 = vld [vmem:[%s3731_s16 + $0xfe] sm:$0xff] }
 0x292   : > { %3595 = vmatmul.msk.bf16.gmra.mxu3 %vm454_vm1, %v2056_v42  ;;  %v2882_v42 = vpop.permute.xlu1 %2881  ;;  %v2595_v6 = vpack.c.bf16 %v2573_v55, %v2572_v17 }
 0x293   : > { %3614 = vmatmul.msk.bf16.gmra.mxu0 %vm454_vm1, %v2304_v37  ;;  %2514 = vst [vmem:[%s3736_s20 + $0x50] sm:$0xff] %v2475_v19  ;;  %v3016_v15 = vmul.f32 %v2867_v30, %v2475_v19  ;;  %v3293_v53 = vadd.f32 %v3292_v26, %v3258_v60  ;;  %v2305_v60 = vpack.c.bf16 %v2283_v2, %v2282_v50  ;;  %v2574_v50 = vld [vmem:[%s3731_s16 + $0xf3] sm:$0xff]  ;;  %v2575_v2 = vld [vmem:[%s3731_s16 + $0xfb] sm:$0xff] }
 0x294   : > { %v1902_v9 = vpop.f32.mrf.mxu2 }
 0x295   : > { %v3088_v12 = vadd.f32 %v3087_v33, %v3016_v15  ;;  %v3133_v8 = vmul.f32 %v3016_v15, %v2475_v19  ;;  %v1980_v20 = vadd.f32 %v1902_v9, %v4159_v56  ;;  %v2150_v7 = vpop.f32.mrf.mxu3  ;;  %v1786_v56 = vld [vmem:[%s3731_s16 + $0xf4] sm:$0xff] }
 0x296   : > { %v2689_v34 = vpop.f32.mrf.mxu1  ;;  %2991 = vperm.xlu2 %3658, %v2825_v57   ;;  %v1809_v37 = vpack.c.bf16 %v1787_v0, %v1786_v56 }
 0x297   : > { %v3168_v16 = vadd.f32 %v3167_v59, %v3133_v8  ;;  %v2228_v1 = vadd.f32 %v2150_v7, %v1980_v20  ;;  %2766 = vst [vmem:[%s3741_s23 + $0x48] sm:$0xff] %v2689_v34  ;;  %v3054_v30 = vmul.f32 %v2877_v48, %v2689_v34  ;;  %v2828_v8 = vld [vmem:[%s4800_s3 + $0x130] sm:$0xff] }
 0x298   : > { %v2400_v54 = vpop.f32.mrf.mxu0 }
 0x299   : > { %v2476_v18 = vadd.f32 %v2398_v23, %v2228_v1  ;;  %v3259_v26 = vmul.f32 %v3054_v30, %v2689_v34  ;;  %v3214_v45 = vadd.f32 %v3213_v43, %v3054_v30  ;;  %v2057_v43 = vpack.c.bf16 %v2035_v10, %v2034_v61  ;;  %v2887_v1 = vpop.permute.xlu2 %2886  ;;  %v2036_v10 = vld [vmem:[%s3731_s16 + $0x105] sm:$0xff] }
 0x29b   : > { %2515 = vst [vmem:[%s3736_s20 + $0x58] sm:$0xff] %v2476_v18  ;;  %v3017_v33 = vmul.f32 %v2872_v51, %v2476_v18  ;;  %v3294_v62 = vadd.f32 %v3293_v53, %v3259_v26 }
 0x29c   : > { %v1904_v11 = vpop.f32.mrf.mxu2 }
 0x29d   : > { %v3089_v59 = vadd.f32 %v3088_v12, %v3017_v33  ;;  %v3134_v47 = vmul.f32 %v3017_v33, %v2476_v18  ;;  %v1981_v52 = vadd.f32 %v1904_v11, %v4166_v40  ;;  %v2152_v23 = vpop.f32.mrf.mxu3  ;;  %v1788_v33 = vld [vmem:[%s3731_s16 + $0x104] sm:$0xff] }
 0x29e   : > { %v2692_v19 = vpop.f32.mrf.mxu1  ;;  %3006 = vperm.xlu2 %3658, %v2828_v8  }
 0x29f   : > { %v3169_v51 = vadd.f32 %v3168_v16, %v3134_v47  ;;  %v2229_v15 = vadd.f32 %v2152_v23, %v1981_v52  ;;  %2767 = vst [vmem:[%s3741_s23 + $0x50] sm:$0xff] %v2692_v19  ;;  %v3055_v53 = vmul.f32 %v2882_v42, %v2692_v19  ;;  %v2285_v47 = vld [vmem:[%s3731_s16 + $0x10e] sm:$0xff]  ;;  %v2892_v23 = vpop.permute.xlu0 %2891 }
 0x2a0   : > { %v2403_v9 = vpop.f32.mrf.mxu0 }
 0x2a1   : > { %v2477_v20 = vadd.f32 %v2400_v54, %v2229_v15  ;;  %v3215_v12 = vadd.f32 %v3214_v45, %v3055_v53  ;;  %v3260_v7 = vmul.f32 %v3055_v53, %v2692_v19  ;;  %3577 = vmatmul.msk.bf16.gmra.mxu2 %vm454_vm1, %v1809_v37  ;;  %3633 = vmatmul.msk.bf16.gmra.mxu1 %vm454_vm1, %v2595_v6  ;;  %v2037_v37 = vld [vmem:[%s3731_s16 + $0x10d] sm:$0xff] }
 0x2a2   : > { %3596 = vmatmul.msk.bf16.gmra.mxu3 %vm454_vm1, %v2057_v43  ;;  %v2596_v15 = vpack.c.bf16 %v2575_v2, %v2574_v50  ;;  %v1791_v50 = vld [vmem:[%s3731_s16 + $0x11c] sm:$0xff] }
 0x2a3   : > { %3615 = vmatmul.msk.bf16.gmra.mxu0 %vm454_vm1, %v2305_v60  ;;  %2516 = vst [vmem:[%s3736_s20 + $0x60] sm:$0xff] %v2477_v20  ;;  %v3018_v40 = vmul.f32 %v2877_v48, %v2477_v20  ;;  %v3295_v34 = vadd.f32 %v3294_v62, %v3260_v7  ;;  %v1789_v62 = vld [vmem:[%s3731_s16 + $0x10c] sm:$0xff]  ;;  %v2038_v2 = vld [vmem:[%s3731_s16 + $0x115] sm:$0xff] }
 0x2a4   : > { %v1907_v16 = vpop.f32.mrf.mxu2  ;;  %v1810_v6 = vpack.c.bf16 %v1789_v62, %v1788_v33 }
 0x2a5   : > { %v3090_v30 = vadd.f32 %v3089_v59, %v3018_v40  ;;  %v3135_v54 = vmul.f32 %v3018_v40, %v2477_v20  ;;  %v1982_v57 = vadd.f32 %v1907_v16, %v4175_v24  ;;  %v2155_v18 = vpop.f32.mrf.mxu3  ;;  %v2284_v59 = vld [vmem:[%s3731_s16 + $0x106] sm:$0xff] }
 0x2a6   : > { %v2694_v26 = vpop.f32.mrf.mxu1  ;;  %v2306_v8 = vpack.c.bf16 %v2285_v47, %v2284_v59  ;;  %v2039_v59 = vld [vmem:[%s3731_s16 + $0x11d] sm:$0xff] }
 0x2a7   : > { %v3170_v45 = vadd.f32 %v3169_v51, %v3135_v54  ;;  %v2230_v56 = vadd.f32 %v2155_v18, %v1982_v57  ;;  %2768 = vst [vmem:[%s3741_s23 + $0x58] sm:$0xff] %v2694_v26  ;;  %v3056_v48 = vmul.f32 %v2887_v1, %v2694_v26  ;;  %v2897_v57 = vpop.permute.xlu1 %2896  ;;  %v2286_v47 = vld [vmem:[%s3731_s16 + $0x116] sm:$0xff] }
 0x2a8   : > { %v2405_v0 = vpop.f32.mrf.mxu0 }
 0x2a9   : > { %v2478_v61 = vadd.f32 %v2403_v9, %v2230_v56  ;;  %v3261_v17 = vmul.f32 %v3056_v48, %v2694_v26  ;;  %v3216_v55 = vadd.f32 %v3215_v12, %v3056_v48  ;;  %v2058_v9 = vpack.c.bf16 %v2037_v37, %v2036_v10  ;;  %v1790_v10 = vld [vmem:[%s3731_s16 + $0x114] sm:$0xff] }
 0x2ab   : > { %2517 = vst [vmem:[%s3736_s20 + $0x68] sm:$0xff] %v2478_v61  ;;  %v3019_v24 = vmul.f32 %v2882_v42, %v2478_v61  ;;  %v3296_v11 = vadd.f32 %v3295_v34, %v3261_v17 }
 0x2ac   : > { %v1909_v52 = vpop.f32.mrf.mxu2 }
 0x2ad   : > { %v3091_v19 = vadd.f32 %v3090_v30, %v3019_v24  ;;  %v3136_v43 = vmul.f32 %v3019_v24, %v2478_v61  ;;  %v1983_v60 = vadd.f32 %v1909_v52, %v4182_v5  ;;  %v2157_v51 = vpop.f32.mrf.mxu3  ;;  %v2576_v24 = vld [vmem:[%s3731_s16 + $0x103] sm:$0xff] }
 0x2ae   : > { %v2697_v53 = vpop.f32.mrf.mxu1  ;;  %v2287_v52 = vld [vmem:[%s3731_s16 + $0x11e] sm:$0xff] }
 0x2af   : > { %v3171_v20 = vadd.f32 %v3170_v45, %v3136_v43  ;;  %v2231_v42 = vadd.f32 %v2157_v51, %v1983_v60  ;;  %2769 = vst [vmem:[%s3741_s23 + $0x60] sm:$0xff] %v2697_v53  ;;  %v3057_v12 = vmul.f32 %v2892_v23, %v2697_v53  ;;  %v1811_v43 = vpack.c.bf16 %v1791_v50, %v1790_v10  ;;  %v1792_v10 = vld [vmem:[%s3731_s16 + $0x124] sm:$0xff]  ;;  %v1793_v50 = vld [vmem:[%s3731_s16 + $0x12c] sm:$0xff] }
 0x2b0   : > { %v2408_v7 = vpop.f32.mrf.mxu0 }
 0x2b1   : > { %v2479_v40 = vadd.f32 %v2405_v0, %v2231_v42  ;;  %v3217_v34 = vadd.f32 %v3216_v55, %v3057_v12  ;;  %v3262_v16 = vmul.f32 %v3057_v12, %v2697_v53  ;;  %3578 = vmatmul.msk.bf16.gmra.mxu2 %vm454_vm1, %v1810_v6  ;;  %3634 = vmatmul.msk.bf16.gmra.mxu1 %vm454_vm1, %v2596_v15 }
 0x2b2   : > { %3597 = vmatmul.msk.bf16.gmra.mxu3 %vm454_vm1, %v2058_v9  ;;  %v2307_v42 = vpack.c.bf16 %v2287_v52, %v2286_v47  ;;  %v2289_v47 = vld [vmem:[%s3731_s16 + $0x12e] sm:$0xff] }
 0x2b3   : > { %3616 = vmatmul.msk.bf16.gmra.mxu0 %vm454_vm1, %v2306_v8  ;;  %2518 = vst [vmem:[%s3736_s20 + $0x70] sm:$0xff] %v2479_v40  ;;  %v3020_v5 = vmul.f32 %v2887_v1, %v2479_v40  ;;  %v3297_v30 = vadd.f32 %v3296_v11, %v3262_v16  ;;  %v2577_v11 = vld [vmem:[%s3731_s16 + $0x10b] sm:$0xff] }
 0x2b4   : > { %v1912_v54 = vpop.f32.mrf.mxu2  ;;  %v2597_v9 = vpack.c.bf16 %v2577_v11, %v2576_v24  ;;  %v2578_v24 = vld [vmem:[%s3731_s16 + $0x113] sm:$0xff]  ;;  %v2579_v11 = vld [vmem:[%s3731_s16 + $0x11b] sm:$0xff] }
 0x2b5   : > { %v3092_v18 = vadd.f32 %v3091_v19, %v3020_v5  ;;  %v3137_v26 = vmul.f32 %v3020_v5, %v2479_v40  ;;  %v1984_v45 = vadd.f32 %v1912_v54, %v4191_v4  ;;  %v2160_v56 = vpop.f32.mrf.mxu3  ;;  %v2902_v19 = vpop.permute.xlu2 %2901 }
 0x2b6   : > { %v2699_v48 = vpop.f32.mrf.mxu1 }
 0x2b7   : > { %v3172_v0 = vadd.f32 %v3171_v20, %v3137_v26  ;;  %v2232_v61 = vadd.f32 %v2160_v56, %v1984_v45  ;;  %2770 = vst [vmem:[%s3741_s23 + $0x68] sm:$0xff] %v2699_v48  ;;  %v3058_v1 = vmul.f32 %v2897_v57, %v2699_v48  ;;  %v2059_v20 = vpack.c.bf16 %v2039_v59, %v2038_v2  ;;  %v2040_v2 = vld [vmem:[%s3731_s16 + $0x125] sm:$0xff] }
 0x2b8   : > { %v2410_v17 = vpop.f32.mrf.mxu0  ;;  %v2288_v59 = vld [vmem:[%s3731_s16 + $0x126] sm:$0xff] }
 0x2b9   : > { %v2480_v55 = vadd.f32 %v2408_v7, %v2232_v61  ;;  %v3218_v33 = vadd.f32 %v3217_v34, %v3058_v1  ;;  %v3263_v62 = vmul.f32 %v3058_v1, %v2699_v48 }
 0x2bb   : > { %2519 = vst [vmem:[%s3736_s20 + $0x78] sm:$0xff] %v2480_v55  ;;  %v3021_v4 = vmul.f32 %v2892_v23, %v2480_v55  ;;  %v3298_v37 = vadd.f32 %v3297_v30, %v3263_v62 }
 0x2bc   : > { %v1914_v6 = vpop.f32.mrf.mxu2 }
 0x2bd   : > { %v3093_v60 = vadd.f32 %v3092_v18, %v3021_v4  ;;  %v3138_v51 = vmul.f32 %v3021_v4, %v2480_v55  ;;  %v1985_v15 = vadd.f32 %v1914_v6, %v4198_v39  ;;  %v2162_v53 = vpop.f32.mrf.mxu3  ;;  %v2907_v18 = vpop.permute.xlu0 %2906 }
 0x2be   : > { %v2702_v8 = vpop.f32.mrf.mxu1  ;;  %v2912_v6 = vpop.permute.xlu1 %2911 }
 0x2bf   : > { %v3173_v12 = vadd.f32 %v3172_v0, %v3138_v51  ;;  %v2233_v23 = vadd.f32 %v2162_v53, %v1985_v15  ;;  %2771 = vst [vmem:[%s3741_s23 + $0x70] sm:$0xff] %v2702_v8  ;;  %v3059_v7 = vmul.f32 %v2902_v19, %v2702_v8 }
 0x2c0   : > { %v2413_v40 = vpop.f32.mrf.mxu0 }
 0x2c1   : > { %v2481_v34 = vadd.f32 %v2410_v17, %v2233_v23  ;;  %v3219_v16 = vadd.f32 %v3218_v33, %v3059_v7  ;;  %v3264_v5 = vmul.f32 %v3059_v7, %v2702_v8  ;;  %3579 = vmatmul.msk.bf16.gmra.mxu2 %vm454_vm1, %v1811_v43  ;;  %3635 = vmatmul.msk.bf16.gmra.mxu1 %vm454_vm1, %v2597_v9 }
 0x2c2   : > { %3598 = vmatmul.msk.bf16.gmra.mxu3 %vm454_vm1, %v2059_v20  ;;  %v1812_v43 = vpack.c.bf16 %v1793_v50, %v1792_v10  ;;  %v2598_v9 = vpack.c.bf16 %v2579_v11, %v2578_v24  ;;  %v2042_v10 = vld [vmem:[%s3731_s16 + $0x135] sm:$0xff]  ;;  %v2580_v50 = vld [vmem:[%s3731_s16 + $0x123] sm:$0xff] }
 0x2c3   : > { %3617 = vmatmul.msk.bf16.gmra.mxu0 %vm454_vm1, %v2307_v42  ;;  %2520 = vst [vmem:[%s3736_s20 + $0x80] sm:$0xff] %v2481_v34  ;;  %v3022_v39 = vmul.f32 %v2897_v57, %v2481_v34  ;;  %v3299_v30 = vadd.f32 %v3298_v37, %v3264_v5  ;;  %v2041_v37 = vld [vmem:[%s3731_s16 + $0x12d] sm:$0xff]  ;;  %v2308_v42 = vpack.c.bf16 %v2289_v47, %v2288_v59  ;;  %v2043_v11 = vld [vmem:[%s3731_s16 + $0x13d] sm:$0xff] }
 0x2c4   : > { %v1917_v54 = vpop.f32.mrf.mxu2  ;;  %v2060_v20 = vpack.c.bf16 %v2041_v37, %v2040_v2  ;;  %v2581_v2 = vld [vmem:[%s3731_s16 + $0x12b] sm:$0xff] }
 0x2c5   : > { %v3094_v26 = vadd.f32 %v3093_v60, %v3022_v39  ;;  %v3139_v45 = vmul.f32 %v3022_v39, %v2481_v34  ;;  %v1986_v56 = vadd.f32 %v1917_v54, %v4207_v28  ;;  %v2165_v48 = vpop.f32.mrf.mxu3  ;;  %v2922_v59 = vpop.permute.xlu0 %2921 }
 0x2c6   : > { %v2704_v0 = vpop.f32.mrf.mxu1 }
 0x2c7   : > { %v3174_v61 = vadd.f32 %v3173_v12, %v3139_v45  ;;  %v2234_v1 = vadd.f32 %v2165_v48, %v1986_v56  ;;  %2772 = vst [vmem:[%s3741_s23 + $0x78] sm:$0xff] %v2704_v0  ;;  %v3060_v57 = vmul.f32 %v2907_v18, %v2704_v0 }
 0x2c8   : > { %v2415_v17 = vpop.f32.mrf.mxu0 }
 0x2c9   : > { %v2482_v55 = vadd.f32 %v2413_v40, %v2234_v1  ;;  %v3220_v33 = vadd.f32 %v3219_v16, %v3060_v57  ;;  %v3265_v62 = vmul.f32 %v3060_v57, %v2704_v0 }
 0x2cb   : > { %2521 = vst [vmem:[%s3736_s20 + $0x88] sm:$0xff] %v2482_v55  ;;  %v3023_v28 = vmul.f32 %v2902_v19, %v2482_v55  ;;  %v3300_v4 = vadd.f32 %v3299_v30, %v3265_v62  ;;  %v2917_v30 = vpop.permute.xlu2 %2916  ;;  %v1795_v62 = vld [vmem:[%s3731_s16 + $0x13c] sm:$0xff] }
 0x2cc   : > { %v1919_v52 = vpop.f32.mrf.mxu2 }
 0x2cd   : > { %v3095_v60 = vadd.f32 %v3094_v26, %v3023_v28  ;;  %v3140_v51 = vmul.f32 %v3023_v28, %v2482_v55  ;;  %v1987_v15 = vadd.f32 %v1919_v52, %v4214_v14  ;;  %v2167_v53 = vpop.f32.mrf.mxu3  ;;  %v2290_v28 = vld [vmem:[%s3731_s16 + $0x136] sm:$0xff] }
 0x2ce   : > { %v2707_v8 = vpop.f32.mrf.mxu1 }
 0x2cf   : > { %v3175_v12 = vadd.f32 %v3174_v61, %v3140_v51  ;;  %v2235_v19 = vadd.f32 %v2167_v53, %v1987_v15  ;;  %2773 = vst [vmem:[%s3741_s23 + $0x80] sm:$0xff] %v2707_v8  ;;  %v3061_v23 = vmul.f32 %v2912_v6, %v2707_v8  ;;  %v2599_v15 = vpack.c.bf16 %v2581_v2, %v2580_v50 }
 0x2d0   : > { %v2418_v7 = vpop.f32.mrf.mxu0 }
 0x2d1   : > { %v2483_v40 = vadd.f32 %v2415_v17, %v2235_v19  ;;  %v3221_v34 = vadd.f32 %v3220_v33, %v3061_v23  ;;  %v3266_v16 = vmul.f32 %v3061_v23, %v2707_v8  ;;  %3580 = vmatmul.msk.bf16.gmra.mxu2 %vm454_vm1, %v1812_v43  ;;  %3636 = vmatmul.msk.bf16.gmra.mxu1 %vm454_vm1, %v2598_v9  ;;  %v1794_v33 = vld [vmem:[%s3731_s16 + $0x134] sm:$0xff] }
 0x2d2   : > { %3599 = vmatmul.msk.bf16.gmra.mxu3 %vm454_vm1, %v2060_v20  ;;  %v1813_v47 = vpack.c.bf16 %v1795_v62, %v1794_v33  ;;  %v2061_v9 = vpack.c.bf16 %v2043_v11, %v2042_v10 }
 0x2d3   : > { %3618 = vmatmul.msk.bf16.gmra.mxu0 %vm454_vm1, %v2308_v42  ;;  %2522 = vst [vmem:[%s3736_s20 + $0x90] sm:$0xff] %v2483_v40  ;;  %v3024_v14 = vmul.f32 %v2907_v18, %v2483_v40  ;;  %v3301_v5 = vadd.f32 %v3300_v4, %v3266_v16  ;;  %v2291_v4 = vld [vmem:[%s3731_s16 + $0x13e] sm:$0xff]  ;;  %v2927_v16 = vpop.permute.xlu1 %2926 }
 0x2d4   : > { %v1922_v39 = vpop.f32.mrf.mxu2  ;;  %v2309_v8 = vpack.c.bf16 %v2291_v4, %v2290_v28 }
 0x2d5   : > { %v3096_v54 = vadd.f32 %v3095_v60, %v3024_v14  ;;  %v3141_v26 = vmul.f32 %v3024_v14, %v2483_v40  ;;  %v1988_v45 = vadd.f32 %v1922_v39, %v4223_v49  ;;  %v2170_v56 = vpop.f32.mrf.mxu3 }
 0x2d6   : > { %v2709_v48 = vpop.f32.mrf.mxu1 }
 0x2d7   : > { %v3176_v0 = vadd.f32 %v3175_v12, %v3141_v26  ;;  %v2236_v61 = vadd.f32 %v2170_v56, %v1988_v45  ;;  %2774 = vst [vmem:[%s3741_s23 + $0x88] sm:$0xff] %v2709_v48  ;;  %v3062_v18 = vmul.f32 %v2917_v30, %v2709_v48 }
 0x2d8   : > { %v2420_v1 = vpop.f32.mrf.mxu0 }
 0x2d9   : > { %v2484_v57 = vadd.f32 %v2418_v7, %v2236_v61  ;;  %v3222_v17 = vadd.f32 %v3221_v34, %v3062_v18  ;;  %v3267_v55 = vmul.f32 %v3062_v18, %v2709_v48 }
 0x2db   : > { %2523 = vst [vmem:[%s3736_s20 + $0x98] sm:$0xff] %v2484_v57  ;;  %v3025_v49 = vmul.f32 %v2912_v6, %v2484_v57  ;;  %v3302_v24 = vadd.f32 %v3301_v5, %v3267_v55  ;;  %v2932_v55 = vpop.permute.xlu2 %2931 }
 0x2dc   : > { %v1924_v37 = vpop.f32.mrf.mxu2 }
 0x2dd   : > { %v3097_v52 = vadd.f32 %v3096_v54, %v3025_v49  ;;  %v3142_v43 = vmul.f32 %v3025_v49, %v2484_v57  ;;  %v1989_v60 = vadd.f32 %v1924_v37, %v4233_v58  ;;  %v2172_v51 = vpop.f32.mrf.mxu3 }
 0x2de   : > { %v2712_v53 = vpop.f32.mrf.mxu1 }
 0x2df   : > { %v3177_v20 = vadd.f32 %v3176_v0, %v3142_v43  ;;  %v2237_v6 = vadd.f32 %v2172_v51, %v1989_v60  ;;  %2775 = vst [vmem:[%s3741_s23 + $0x90] sm:$0xff] %v2712_v53  ;;  %v3063_v42 = vmul.f32 %v2922_v59, %v2712_v53  ;;  %v2937_v43 = vpop.permute.xlu0 %2936 }
 0x2e0   : > { %v2423_v12 = vpop.f32.mrf.mxu0 }
 0x2e1   : > { %v2485_v19 = vadd.f32 %v2420_v1, %v2237_v6  ;;  %v3223_v23 = vadd.f32 %v3222_v17, %v3063_v42  ;;  %v3268_v7 = vmul.f32 %v3063_v42, %v2712_v53  ;;  %3581 = vmatmul.msk.bf16.gmra.mxu2 %vm454_vm1, %v1813_v47  ;;  %3637 = vmatmul.msk.bf16.gmra.mxu1 %vm454_vm1, %v2599_v15 }
 0x2e2   : > { %3600 = vmatmul.msk.bf16.gmra.mxu3 %vm454_vm1, %v2061_v9 }
 0x2e3   : > { %3619 = vmatmul.msk.bf16.gmra.mxu0 %vm454_vm1, %v2309_v8  ;;  %2524 = vst [vmem:[%s3736_s20 + $0xa0] sm:$0xff] %v2485_v19  ;;  %v3026_v58 = vmul.f32 %v2917_v30, %v2485_v19  ;;  %v3303_v40 = vadd.f32 %v3302_v24, %v3268_v7 }
 0x2e4   : > { %v1927_v34 = vpop.f32.mrf.mxu2 }
 0x2e5   : > { %v3098_v14 = vadd.f32 %v3097_v52, %v3026_v58  ;;  %v3143_v5 = vmul.f32 %v3026_v58, %v2485_v19  ;;  %v1990_v39 = vadd.f32 %v1927_v34, %v4248_v41  ;;  %v2175_v54 = vpop.f32.mrf.mxu3 }
 0x2e6   : > { %v2714_v26 = vpop.f32.mrf.mxu1 }
 0x2e7   : > { %v3178_v45 = vadd.f32 %v3177_v20, %v3143_v5  ;;  %v2238_v56 = vadd.f32 %v2175_v54, %v1990_v39  ;;  %2776 = vst [vmem:[%s3741_s23 + $0x98] sm:$0xff] %v2714_v26  ;;  %v3064_v48 = vmul.f32 %v2927_v16, %v2714_v26 }
 0x2e8   : > { %v2425_v0 = vpop.f32.mrf.mxu0 }
 0x2e9   : > { %v2486_v61 = vadd.f32 %v2423_v12, %v2238_v56  ;;  %v3224_v18 = vadd.f32 %v3223_v23, %v3064_v48  ;;  %v3269_v1 = vmul.f32 %v3064_v48, %v2714_v26 }
 0x2eb   : > { %2525 = vst [vmem:[%s3736_s20 + $0xa8] sm:$0xff] %v2486_v61  ;;  %v3027_v30 = vmul.f32 %v2922_v59, %v2486_v61  ;;  %v3304_v57 = vadd.f32 %v3303_v40, %v3269_v1 }
 0x2ec   : > { %v1929_v17 = vpop.f32.mrf.mxu2 }
 0x2ed   : > { %v3099_v33 = vadd.f32 %v3098_v14, %v3027_v30  ;;  %v3144_v62 = vmul.f32 %v3027_v30, %v2486_v61  ;;  %v1991_v41 = vadd.f32 %v1929_v17, %v4259_v21  ;;  %v2177_v10 = vpop.f32.mrf.mxu3  ;;  %v2942_v14 = vpop.permute.xlu1 %2941 }
 0x2ee   : > { %v2717_v50 = vpop.f32.mrf.mxu1 }
 0x2ef   : > { %v3179_v2 = vadd.f32 %v3178_v45, %v3144_v62  ;;  %v2239_v49 = vadd.f32 %v2177_v10, %v1991_v41  ;;  %2777 = vst [vmem:[%s3741_s23 + $0xa0] sm:$0xff] %v2717_v50  ;;  %v3065_v24 = vmul.f32 %v2932_v55, %v2717_v50 }
 0x2f0   : > { %v2428_v11 = vpop.f32.mrf.mxu0 }
 0x2f1   : > { %v2487_v28 = vadd.f32 %v2425_v0, %v2239_v49  ;;  %v3225_v4 = vadd.f32 %v3224_v18, %v3065_v24  ;;  %v3270_v37 = vmul.f32 %v3065_v24, %v2717_v50 }
 0x2f3   : > { %2526 = vst [vmem:[%s3736_s20 + $0xb0] sm:$0xff] %v2487_v28  ;;  %v3028_v59 = vmul.f32 %v2927_v16, %v2487_v28  ;;  %v3305_v47 = vadd.f32 %v3304_v57, %v3270_v37 }
 0x2f4   : > { %v1932_v52 = vpop.f32.mrf.mxu2 }
 0x2f5   : > { %v3100_v60 = vadd.f32 %v3099_v33, %v3028_v59  ;;  %v3145_v51 = vmul.f32 %v3028_v59, %v2487_v28  ;;  %v1992_v21 = vadd.f32 %v1932_v52, %v4268_v3  ;;  %v2180_v15 = vpop.f32.mrf.mxu3  ;;  %v2952_v52 = vpop.permute.xlu0 %2951 }
 0x2f6   : > { %v2719_v53 = vpop.f32.mrf.mxu1 }
 0x2f7   : > { %v3180_v9 = vadd.f32 %v3179_v2, %v3145_v51  ;;  %v2240_v8 = vadd.f32 %v2180_v15, %v1992_v21  ;;  %2778 = vst [vmem:[%s3741_s23 + $0xa8] sm:$0xff] %v2719_v53  ;;  %v3066_v20 = vmul.f32 %v2937_v43, %v2719_v53 }
 0x2f8   : > { %v2430_v6 = vpop.f32.mrf.mxu0 }
 0x2f9   : > { %v2488_v42 = vadd.f32 %v2428_v11, %v2240_v8  ;;  %v3226_v12 = vadd.f32 %v3225_v4, %v3066_v20  ;;  %v3271_v19 = vmul.f32 %v3066_v20, %v2719_v53 }
 0x2fb   : > { %2527 = vst [vmem:[%s3736_s20 + $0xb8] sm:$0xff] %v2488_v42  ;;  %v3029_v23 = vmul.f32 %v2932_v55, %v2488_v42  ;;  %v3306_v7 = vadd.f32 %v3305_v47, %v3271_v19  ;;  %v2947_v55 = vpop.permute.xlu2 %2946 }
 0x2fc   : > { %v1934_v58 = vpop.f32.mrf.mxu2 }
 0x2fd   : > { %v3101_v40 = vadd.f32 %v3100_v60, %v3029_v23  ;;  %v3146_v34 = vmul.f32 %v3029_v23, %v2488_v42  ;;  %v1993_v3 = vadd.f32 %v1934_v58, %v4276_v44  ;;  %v2182_v16 = vpop.f32.mrf.mxu3 }
 0x2fe   : > { %v2722_v5 = vpop.f32.mrf.mxu1 }
 0x2ff   : > { %v3181_v39 = vadd.f32 %v3180_v9, %v3146_v34  ;;  %v2241_v54 = vadd.f32 %v2182_v16, %v1993_v3  ;;  %2779 = vst [vmem:[%s3741_s23 + $0xb0] sm:$0xff] %v2722_v5  ;;  %v3067_v26 = vmul.f32 %v2942_v14, %v2722_v5 }
 0x300   : > { %v2433_v45 = vpop.f32.mrf.mxu0 }
 0x301   : > { %v2489_v56 = vadd.f32 %v2430_v6, %v2241_v54  ;;  %v3227_v48 = vadd.f32 %v3226_v12, %v3067_v26  ;;  %v3272_v0 = vmul.f32 %v3067_v26, %v2722_v5 }
 0x303   : > { %2528 = vst [vmem:[%s3736_s20 + $0xc0] sm:$0xff] %v2489_v56  ;;  %v3030_v61 = vmul.f32 %v2937_v43, %v2489_v56  ;;  %v3307_v18 = vadd.f32 %v3306_v7, %v3272_v0 }
 0x304   : > { %v1937_v1 = vpop.f32.mrf.mxu2 }
 0x305   : > { %v3102_v30 = vadd.f32 %v3101_v40, %v3030_v61  ;;  %v3147_v57 = vmul.f32 %v3030_v61, %v2489_v56  ;;  %v1994_v44 = vadd.f32 %v1937_v1, %v4288_v46  ;;  %v2185_v17 = vpop.f32.mrf.mxu3  ;;  %v4701_v61 = vpop.permute.xlu1 %2956 }
 0x306   : > { %v2724_v33 = vpop.f32.mrf.mxu1 }
 0x307   : > { %v3182_v62 = vadd.f32 %v3181_v39, %v3147_v57  ;;  %v2242_v41 = vadd.f32 %v2185_v17, %v1994_v44  ;;  %2780 = vst [vmem:[%s3741_s23 + $0xb8] sm:$0xff] %v2724_v33  ;;  %v3068_v10 = vmul.f32 %v2947_v55, %v2724_v33 }
 0x308   : > { %v2435_v50 = vpop.f32.mrf.mxu0 }
 0x309   : > { %v2490_v2 = vadd.f32 %v2433_v45, %v2242_v41  ;;  %v3228_v49 = vadd.f32 %v3227_v48, %v3068_v10  ;;  %v3273_v24 = vmul.f32 %v3068_v10, %v2724_v33  ;;  %v4710_v10 = vpop.permute.xlu2 %2961 }
 0x30b   : > { %2529 = vst [vmem:[%s3736_s20 + $0xc8] sm:$0xff] %v2490_v2  ;;  %v3031_v11 = vmul.f32 %v2942_v14, %v2490_v2  ;;  %v3308_v28 = vadd.f32 %v3307_v18, %v3273_v24 }
 0x30c   : > { %v1939_v4 = vpop.f32.mrf.mxu2 }
 0x30d   : > { %v3103_v37 = vadd.f32 %v3102_v30, %v3031_v11  ;;  %v3148_v59 = vmul.f32 %v3031_v11, %v2490_v2  ;;  %v1995_v46 = vadd.f32 %v1939_v4, %v4302_v25  ;;  %v2187_v47 = vpop.f32.mrf.mxu3 }
 0x30e   : > { %v2727_v43 = vpop.f32.mrf.mxu1 }
 0x30f   : > { %v3183_v60 = vadd.f32 %v3182_v62, %v3148_v59  ;;  %v2243_v51 = vadd.f32 %v2187_v47, %v1995_v46  ;;  %2781 = vst [vmem:[%s3741_s23 + $0xc0] sm:$0xff] %v2727_v43  ;;  %v3069_v21 = vmul.f32 %v2952_v52, %v2727_v43  ;;  %v2967_v47 = vpop.permute.xlu0 %2966 }
 0x310   : > { %v2438_v15 = vpop.f32.mrf.mxu0 }
 0x311   : > { %v2491_v53 = vadd.f32 %v2435_v50, %v2243_v51  ;;  %v4685_v9 = vadd.f32 %v3228_v49, %v3069_v21  ;;  %v3274_v8 = vmul.f32 %v3069_v21, %v2727_v43 }
 0x313   : > { %2530 = vst [vmem:[%s3736_s20 + $0xd0] sm:$0xff] %v2491_v53  ;;  %v3032_v20 = vmul.f32 %v2947_v55, %v2491_v53  ;;  %v4688_v6 = vadd.f32 %v3308_v28, %v3274_v8 }
 0x314   : > { %v1942_v42 = vpop.f32.mrf.mxu2 }
 0x315   : > { %v3104_v25 = vadd.f32 %v3103_v37, %v3032_v20  ;;  %v3149_v12 = vmul.f32 %v3032_v20, %v2491_v53  ;;  %v1996_v19 = vadd.f32 %v1942_v42, %v4314_v29  ;;  %v2190_v23 = vpop.f32.mrf.mxu3 }
 0x316   : > { %v4691_v7 = vpop.f32.mrf.mxu1 }
 0x317   : > { %v3184_v58 = vadd.f32 %v3183_v60, %v3149_v12  ;;  %v2244_v40 = vadd.f32 %v2190_v23, %v1996_v19  ;;  %2782 = vst [vmem:[%s3741_s23 + $0xc8] sm:$0xff] %v4691_v7 }
 0x318   : > { %v2440_v34 = vpop.f32.mrf.mxu0 }
 0x319   : > { %v2492_v3 = vadd.f32 %v2438_v15, %v2244_v40 }
 0x31b   : > { %2531 = vst [vmem:[%s3736_s20 + $0xd8] sm:$0xff] %v2492_v3  ;;  %v3033_v16 = vmul.f32 %v2952_v52, %v2492_v3 }
 0x31c   : > { %v1944_v14 = vpop.f32.mrf.mxu2 }
 0x31d   : > { %v3105_v5 = vadd.f32 %v3104_v25, %v3033_v16  ;;  %v3150_v39 = vmul.f32 %v3033_v16, %v2492_v3  ;;  %v1997_v54 = vadd.f32 %v1944_v14, %v4325_v13  ;;  %v2192_v26 = vpop.f32.mrf.mxu3  ;;  %v2972_v25 = vpop.permute.xlu1 %2971 }
 0x31e   : > { %v4697_v29 = vpop.f32.mrf.mxu1 }
 0x31f   : > { %v3185_v45 = vadd.f32 %v3184_v58, %v3150_v39  ;;  %v2245_v56 = vadd.f32 %v2192_v26, %v1997_v54  ;;  %2783 = vst [vmem:[%s3741_s23 + $0xd0] sm:$0xff] %v4697_v29  ;;  %v2977_v39 = vpop.permute.xlu2 %2976 }
 0x320   : > { %v2443_v48 = vpop.f32.mrf.mxu0 }
 0x321   : > { %v2493_v0 = vadd.f32 %v2440_v34, %v2245_v56 }
 0x323   : > { %2532 = vst [vmem:[%s3736_s20 + $0xe0] sm:$0xff] %v2493_v0  ;;  %v3034_v18 = vmul.f32 %v4701_v61, %v2493_v0 }
 0x324   : > { %v1947_v1 = vpop.f32.mrf.mxu2 }
 0x325   : > { %v3106_v30 = vadd.f32 %v3105_v5, %v3034_v18  ;;  %v3151_v57 = vmul.f32 %v3034_v18, %v2493_v0  ;;  %v1998_v13 = vadd.f32 %v1947_v1, %v4337_v32  ;;  %v2195_v44 = vpop.f32.mrf.mxu3 }
 0x326   : > { %v4706_v17 = vpop.f32.mrf.mxu1 }
 0x327   : > { %v3186_v55 = vadd.f32 %v3185_v45, %v3151_v57  ;;  %v2246_v33 = vadd.f32 %v2195_v44, %v1998_v13  ;;  %2784 = vst [vmem:[%s3741_s23 + $0xd8] sm:$0xff] %v4706_v17  ;;  %v2982_v13 = vpop.permute.xlu0 %2981 }
 0x328   : > { %v2445_v62 = vpop.f32.mrf.mxu0 }
 0x329   : > { %v2494_v41 = vadd.f32 %v2443_v48, %v2246_v33 }
 0x32b   : > { %2533 = vst [vmem:[%s3736_s20 + $0xe8] sm:$0xff] %v2494_v41  ;;  %v3035_v50 = vmul.f32 %v4710_v10, %v2494_v41 }
 0x32c   : > { %v1949_v2 = vpop.f32.mrf.mxu2 }
 0x32d   : > { %v3107_v49 = vadd.f32 %v3106_v30, %v3035_v50  ;;  %v3152_v24 = vmul.f32 %v3035_v50, %v2494_v41  ;;  %v1999_v32 = vadd.f32 %v1949_v2, %v4348_v31  ;;  %v2197_v11 = vpop.f32.mrf.mxu3  ;;  %v3070_v50 = vmul.f32 %v4701_v61, %v4691_v7 }
 0x32e   : > { %v4715_v28 = vpop.f32.mrf.mxu1 }
 0x32f   : > { %v3187_v4 = vadd.f32 %v3186_v55, %v3152_v24  ;;  %v2247_v37 = vadd.f32 %v2197_v11, %v1999_v32  ;;  %2785 = vst [vmem:[%s3741_s23 + $0xe0] sm:$0xff] %v4715_v28  ;;  %v3071_v32 = vmul.f32 %v4710_v10, %v4697_v29 }
 0x330   : > { %v2448_v59 = vpop.f32.mrf.mxu0 }
 0x331   : > { %v2495_v46 = vadd.f32 %v2445_v62, %v2247_v37  ;;  %v3275_v37 = vmul.f32 %v3070_v50, %v4691_v7  ;;  %v3276_v61 = vmul.f32 %v3071_v32, %v4697_v29 }
 0x333   : > { %2534 = vst [vmem:[%s3736_s20 + $0xf0] sm:$0xff] %v2495_v46  ;;  %v3036_v52 = vmul.f32 %v2967_v47, %v2495_v46  ;;  %v3310_v7 = vadd.f32 %v4688_v6, %v3275_v37 }
 0x334   : > { %v1952_v43 = vpop.f32.mrf.mxu2 }
 0x335   : > { %v3108_v60 = vadd.f32 %v3107_v49, %v3036_v52  ;;  %v3153_v51 = vmul.f32 %v3036_v52, %v2495_v46  ;;  %v2000_v21 = vadd.f32 %v1952_v43, %v4362_v38  ;;  %v2200_v31 = vpop.f32.mrf.mxu3  ;;  %v3230_v52 = vadd.f32 %v4685_v9, %v3070_v50 }
 0x336   : > { %v4721_v15 = vpop.f32.mrf.mxu1  ;;  %v3073_v43 = vmul.f32 %v2972_v25, %v4715_v28  ;;  %v3311_v29 = vadd.f32 %v3310_v7, %v3276_v61 }
 0x337   : > { %v3188_v53 = vadd.f32 %v3187_v4, %v3153_v51  ;;  %v2248_v8 = vadd.f32 %v2200_v31, %v2000_v21  ;;  %2786 = vst [vmem:[%s3741_s23 + $0xe8] sm:$0xff] %v4721_v15  ;;  %v2987_v4 = vpop.permute.xlu1 %2986 }
 0x338   : > { %v2450_v20 = vpop.f32.mrf.mxu0 }
 0x339   : > { %v2496_v42 = vadd.f32 %v2448_v59, %v2248_v8  ;;  %v3072_v59 = vmul.f32 %v2967_v47, %v4706_v17  ;;  %v3074_v8 = vmul.f32 %v2977_v39, %v4721_v15 }
 0x33b   : > { %2535 = vst [vmem:[%s3736_s20 + $0xf8] sm:$0xff] %v2496_v42  ;;  %v3037_v12 = vmul.f32 %v2972_v25, %v2496_v42  ;;  %v3277_v47 = vmul.f32 %v3072_v59, %v4706_v17 }
 0x33c   : > { %v1954_v19 = vpop.f32.mrf.mxu2 }
 0x33d   : > { %v3109_v23 = vadd.f32 %v3108_v60, %v3037_v12  ;;  %v3154_v58 = vmul.f32 %v3037_v12, %v2496_v42  ;;  %v2001_v40 = vadd.f32 %v1954_v19, %v4372_v22  ;;  %v2202_v38 = vpop.f32.mrf.mxu3  ;;  %v3278_v12 = vmul.f32 %v3073_v43, %v4715_v28 }
 0x33e   : > { %v4727_v34 = vpop.f32.mrf.mxu1 }
 0x33f   : > { %v3189_v3 = vadd.f32 %v3188_v53, %v3154_v58  ;;  %v2249_v16 = vadd.f32 %v2202_v38, %v2001_v40  ;;  %2787 = vst [vmem:[%s3741_s23 + $0xf0] sm:$0xff] %v4727_v34  ;;  %v3231_v53 = vadd.f32 %v3230_v52, %v3071_v32  ;;  %v3075_v19 = vmul.f32 %v2982_v13, %v4727_v34 }
 0x340   : > { %v2453_v14 = vpop.f32.mrf.mxu0  ;;  %v3312_v58 = vadd.f32 %v3311_v29, %v3277_v47  ;;  %v3279_v40 = vmul.f32 %v3074_v8, %v4721_v15 }
 0x341   : > { %v2497_v5 = vadd.f32 %v2450_v20, %v2249_v16  ;;  %v3232_v25 = vadd.f32 %v3231_v53, %v3072_v59  ;;  %v4809_v59 = vld [vmem:[#allocation2_spill] sm:$0xff] }
 0x342   : > { %v3313_v16 = vadd.f32 %v3312_v58, %v3278_v12 }
 0x343   : > { %2536 = vst [vmem:[%s3736_s20 + $0x100] sm:$0xff] %v2497_v5  ;;  %v3038_v54 = vmul.f32 %v2977_v39, %v2497_v5  ;;  %v3233_v6 = vadd.f32 %v3232_v25, %v3073_v43 }
 0x344   : > { %v1957_v26 = vpop.f32.mrf.mxu2 }
 0x345   : > { %v3110_v45 = vadd.f32 %v3109_v23, %v3038_v54  ;;  %v3155_v56 = vmul.f32 %v3038_v54, %v2497_v5  ;;  %v2002_v48 = vadd.f32 %v1957_v26, %v4386_v63  ;;  %v2205_v22 = vpop.f32.mrf.mxu3  ;;  %v2992_v23 = vpop.permute.xlu2 %2991  ;;  %v3280_v5 = vmul.f32 %v3075_v19, %v4727_v34 }
 0x346   : > { %v4733_v0 = vpop.f32.mrf.mxu1 }
 0x347   : > { %v3190_v18 = vadd.f32 %v3189_v3, %v3155_v56  ;;  %v2250_v1 = vadd.f32 %v2205_v22, %v2002_v48  ;;  %2788 = vst [vmem:[%s3741_s23 + $0xf8] sm:$0xff] %v4733_v0  ;;  %v3076_v17 = vmul.f32 %v2987_v4, %v4733_v0  ;;  %v2997_v3 = vpop.permute.xlu0 %2996  ;;  %v3314_v22 = vadd.f32 %v3313_v16, %v3279_v40 }
 0x348   : > { %v2455_v57 = vpop.f32.mrf.mxu0 }
 0x349   : > { %v2498_v30 = vadd.f32 %v2453_v14, %v2250_v1  ;;  %v3234_v14 = vadd.f32 %v3233_v6, %v3074_v8  ;;  %v3315_v34 = vadd.f32 %v3314_v22, %v3280_v5 }
 0x34b   : > { %2537 = vst [vmem:[%s3736_s20 + $0x108] sm:$0xff] %v2498_v30  ;;  %v3039_v44 = vmul.f32 %v2982_v13, %v2498_v30  ;;  %v3235_v15 = vadd.f32 %v3234_v14, %v3075_v19 }
 0x34c   : > { %v1959_v55 = vpop.f32.mrf.mxu2 }
 0x34d   : > { %v3111_v33 = vadd.f32 %v3110_v45, %v3039_v44  ;;  %v3156_v62 = vmul.f32 %v3039_v44, %v2498_v30  ;;  %v2003_v41 = vadd.f32 %v1959_v55, %v4396_v27  ;;  %v2207_v63 = vpop.f32.mrf.mxu3  ;;  %v3002_v44 = vpop.permute.xlu1 %3001  ;;  %v3236_v55 = vadd.f32 %v3235_v15, %v3076_v17 }
 0x34e   : > { %v2747_v2 = vpop.f32.mrf.mxu1  ;;  %v3007_v52 = vpop.permute.xlu2 %3006 }
 0x34f   : > { %v3191_v49 = vadd.f32 %v3190_v18, %v3156_v62  ;;  %v2251_v24 = vadd.f32 %v2207_v63, %v2003_v41  ;;  %2789 = vst [vmem:[%s3741_s23 + $0x100] sm:$0xff] %v2747_v2  ;;  %v3077_v39 = vmul.f32 %v2992_v23, %v2747_v2  ;;  %v3281_v18 = vmul.f32 %v3076_v17, %v4733_v0 }
 0x350   : > { %v2458_v27 = vpop.f32.mrf.mxu0 }
 0x351   : > { %v2499_v11 = vadd.f32 %v2455_v57, %v2251_v24  ;;  %v3316_v63 = vadd.f32 %v3315_v34, %v3281_v18  ;;  %v3237_v50 = vadd.f32 %v3236_v55, %v3077_v39 }
 0x353   : > { %2538 = vst [vmem:[%s3736_s20 + $0x110] sm:$0xff] %v2499_v11  ;;  %v3040_v46 = vmul.f32 %v2987_v4, %v2499_v11 }
 0x354   : > { %v1962_v60 = vpop.f32.mrf.mxu2 }
 0x355   : > { %v3112_v51 = vadd.f32 %v3111_v33, %v3040_v46  ;;  %v3157_v21 = vmul.f32 %v3040_v46, %v2499_v11  ;;  %v2004_v10 = vadd.f32 %v1962_v60, %v4407_v35  ;;  %v2210_v31 = vpop.f32.mrf.mxu3  ;;  %v3282_v33 = vmul.f32 %v3077_v39, %v2747_v2 }
 0x356   : > { %v2749_v20 = vpop.f32.mrf.mxu1 }
 0x357   : > { %v3192_v9 = vadd.f32 %v3191_v49, %v3157_v21  ;;  %v2252_v42 = vadd.f32 %v2210_v31, %v2004_v10  ;;  %2790 = vst [vmem:[%s3741_s23 + $0x108] sm:$0xff] %v2749_v20  ;;  %v3078_v1 = vmul.f32 %v2997_v3, %v2749_v20  ;;  %v3317_v24 = vadd.f32 %v3316_v63, %v3282_v33 }
 0x358   : > { %v2460_v45 = vpop.f32.mrf.mxu0 }
 0x359   : > { %v2500_v35 = vadd.f32 %v2458_v27, %v2252_v42  ;;  %v3238_v32 = vadd.f32 %v3237_v50, %v3078_v1 }
 0x35b   : > { %2539 = vst [vmem:[%s3736_s20 + $0x118] sm:$0xff] %v2500_v35  ;;  %v3041_v38 = vmul.f32 %v2992_v23, %v2500_v35 }
 0x35c   : > { %v1964_v28 = vpop.f32.mrf.mxu2 }
 0x35d   : > { %v3113_v54 = vadd.f32 %v3112_v51, %v3041_v38  ;;  %v3158_v26 = vmul.f32 %v3041_v38, %v2500_v35  ;;  %v2005_v56 = vadd.f32 %v1964_v28, %v4417_v36  ;;  %v2212_v48 = vpop.f32.mrf.mxu3  ;;  %v3283_v36 = vmul.f32 %v3078_v1, %v2749_v20  ;;  %v4810_v35 = vld [vmem:[#allocation3_spill] sm:$0xff] }
 0x35e   : > { %v2752_v30 = vpop.f32.mrf.mxu1 }
 0x35f   : > { %v3193_v57 = vadd.f32 %v3192_v9, %v3158_v26  ;;  %v2253_v13 = vadd.f32 %v2212_v48, %v2005_v56  ;;  %2791 = vst [vmem:[%s3741_s23 + $0x110] sm:$0xff] %v2752_v30  ;;  %v3079_v41 = vmul.f32 %v3002_v44, %v2752_v30  ;;  %v3318_v2 = vadd.f32 %v3317_v24, %v3283_v36  ;;  %v3249_v48 = vld [vmem:[%s4806_s9] sm:$0x1] }
 0x360   : > { %v2463_v51 = vpop.f32.mrf.mxu0  ;;  %v3081_v36 = vld [vmem:[%s4803_s6] sm:$0x1] }
 0x361   : > { %v2501_v62 = vadd.f32 %v2460_v45, %v2253_v13  ;;  %v3284_v37 = vmul.f32 %v3079_v41, %v2752_v30  ;;  %v3239_v60 = vadd.f32 %v3238_v32, %v3079_v41  ;;  %v3125_v32 = vld [vmem:[%s4804_s7] sm:$0x1] }
 0x363   : > { %2540 = vst [vmem:[%s3736_s20 + $0x120] sm:$0xff] %v2501_v62  ;;  %v3042_v49 = vmul.f32 %v2997_v3, %v2501_v62  ;;  %v3319_v31 = vadd.f32 %v3318_v2, %v3284_v37 }
 0x364   : > { %v1967_v0 = vpop.f32.mrf.mxu2 }
 0x365   : > { %v3114_v11 = vadd.f32 %v3113_v54, %v3042_v49  ;;  %v3159_v4 = vmul.f32 %v3042_v49, %v2501_v62  ;;  %v2006_v46 = vadd.f32 %v1967_v0, %v4809_v59  ;;  %v2215_v27 = vpop.f32.mrf.mxu3  ;;  %v3205_v54 = vld [vmem:[%s4805_s8] sm:$0x1] }
 0x366   : > { %v2754_v61 = vpop.f32.mrf.mxu1 }
 0x367   : > { %v3194_v43 = vadd.f32 %v3193_v57, %v3159_v4  ;;  %v2254_v21 = vadd.f32 %v2215_v27, %v2006_v46  ;;  %2792 = vst [vmem:[%s3741_s23 + $0x118] sm:$0xff] %v2754_v61  ;;  %v3080_v10 = vmul.f32 %v3007_v52, %v2754_v61 }
 0x368   : > { %v2465_v14 = vpop.f32.mrf.mxu0 }
 0x369   : > { %v2502_v7 = vadd.f32 %v2463_v51, %v2254_v21  ;;  %v3240_v53 = vadd.f32 %v3239_v60, %v3080_v10  ;;  %v3285_v47 = vmul.f32 %v3080_v10, %v2754_v61 }
 0x36b   : > { %2541 = vst [vmem:[%s3736_s20 + $0x128] sm:$0xff] %v2502_v7  ;;  %v3043_v8 = vmul.f32 %v3002_v44, %v2502_v7  ;;  %v3241_v20 = vrot.slane %v3240_v53, 4  ;;  %v3320_v9 = vadd.f32 %v3319_v31, %v3285_v47 }
 0x36c   : > { %v1969_v42 = vpop.f32.mrf.mxu2 }
 0x36d   : > { %v3115_v29 = vadd.f32 %v3114_v11, %v3043_v8  ;;  %v3160_v25 = vmul.f32 %v3043_v8, %v2502_v7  ;;  %v3242_v12 = vadd.f32 %v3241_v20, %v3240_v53  ;;  %v3321_v19 = vrot.slane %v3320_v9, 4  ;;  %v2217_v17 = vpop.f32.mrf.mxu3 }
 0x36e   : > { %v2007_v23 = vadd.f32 %v1969_v42, %v4810_v35 }
 0x36f   : > { %v3195_v58 = vadd.f32 %v3194_v43, %v3160_v25  ;;  %v3243_v6 = vrot.slane %v3242_v12, 2  ;;  %v3322_v40 = vadd.f32 %v3321_v19, %v3320_v9 }
 0x370   : > { %v2255_v38 = vadd.f32 %v2217_v17, %v2007_v23 }
 0x371   : > { %v3244_v3 = vadd.f32 %v3243_v6, %v3242_v12  ;;  %v3323_v16 = vrot.slane %v3322_v40, 2 }
 0x372   : > { %v2503_v5 = vadd.f32 %v2465_v14, %v2255_v38 }
 0x373   : > { %v3245_v39 = vrot.slane %v3244_v3, 1  ;;  %v3324_v28 = vadd.f32 %v3323_v16, %v3322_v40 }
 0x374   : > { %2542 = vst [vmem:[%s3736_s20 + $0x130] sm:$0xff] %v2503_v5  ;;  %v3044_v26 = vmul.f32 %v3007_v52, %v2503_v5 }
 0x375   : > { %v3246_v45 = vadd.f32 %v3245_v39, %v3244_v3  ;;  %v3325_v56 = vrot.slane %v3324_v28, 1 }
 0x376   : > { %v3116_v22 = vadd.f32 %v3115_v29, %v3044_v26  ;;  %v3161_v15 = vmul.f32 %v3044_v26, %v2503_v5 }
 0x377   : > { %v3247_v18 = vadd.f32 %v3246_v45, %v3205_v54  ;;  %v3326_v1 = vadd.f32 %v3325_v56, %v3324_v28 }
 0x378   : > { %v3117_v30 = vrot.slane %v3116_v22, 4  ;;  %v3196_v57 = vadd.f32 %v3195_v58, %v3161_v15 }
 0x379   : > { %3248 = vst [vmem:[%s4805_s8] sm:$0x1] %v3247_v18  ;;  %v3327_v13 = vadd.f32 %v3326_v1, %v3249_v48 }
 0x37a   : > { %v3118_v44 = vadd.f32 %v3117_v30, %v3116_v22  ;;  %v3197_v34 = vrot.slane %v3196_v57, 4 }
 0x37b   : > { %3328 = vst [vmem:[%s4806_s9] sm:$0x1] %v3327_v13 }
 0x37c   : > { %v3119_v55 = vrot.slane %v3118_v44, 2  ;;  %v3198_v33 = vadd.f32 %v3197_v34, %v3196_v57 }
 0x37e   : > { %v3120_v62 = vadd.f32 %v3119_v55, %v3118_v44  ;;  %v3199_v41 = vrot.slane %v3198_v33, 2 }
 0x380   : > { %v3121_v63 = vrot.slane %v3120_v62, 1  ;;  %v3200_v50 = vadd.f32 %v3199_v41, %v3198_v33 }
 0x382   : > { %v3122_v49 = vadd.f32 %v3121_v63, %v3120_v62  ;;  %v3201_v24 = vrot.slane %v3200_v50, 1 }
 0x384   : > { %v3123_v0 = vadd.f32 %v3122_v49, %v3081_v36  ;;  %v3202_v11 = vadd.f32 %v3201_v24, %v3200_v50 }
 0x386   : > { %3124 = vst [vmem:[%s4803_s6] sm:$0x1] %v3123_v0  ;;  %v3203_v4 = vadd.f32 %v3202_v11, %v3125_v32 }
 0x388   : > { %3204 = vst [vmem:[%s4804_s7] sm:$0x1] %v3203_v4 }
 0x389 PF: > { %s20_s30 = sadd.s32 1, %s3665_s30  }
 0x38a   : > { %p17_p5 = scmp.ge.s32.totalorder %s20_s30, 4  }
 0x38c   :  { %19 = sbr.rel (!%p17_p5) target bundleno = 1 (0x1), region = 122 }

// kernel: double_conv_forward.4
= control target key start
LH: loop header
LB: loop body
LE: loop exit
PB: predicated region body
PF: predicated region fallthrough
CT: control target
= control target key end

     0   :  { %s6821_s24 = smov 0   ;;  %s11144_s0 = inlined_call_operand.vmem [shape: f32[2,336,128], index: 0, kind: input, shape index: {}]   ;;  %s11145_s1 = inlined_call_operand.vmem [shape: bf16[9,128,128], index: 1, kind: input, shape index: {}]   ;;  %s11146_s2 = inlined_call_operand.vmem [shape: f32[336,1], index: 2, kind: input, shape index: {}]   ;;  %s11147_s3 = inlined_call_operand.vmem [shape: f32[1,128], index: 3, kind: input, shape index: {}]   ;;  %s11148_s4 = inlined_call_operand.vmem [shape: f32[1,128], index: 4, kind: input, shape index: {}]   ;;  %s11149_s5 = inlined_call_operand.vmem [shape: f32[2,288,128], index: 5, kind: output, shape index: {0}]   ;;  %s11150_s6 = inlined_call_operand.vmem [shape: f32[1,128], index: 6, kind: output, shape index: {1}]   ;;  %s11151_s7 = inlined_call_operand.vmem [shape: f32[1,128], index: 7, kind: output, shape index: {2}]  }
   0x1 LB: > { %s6220_s25 = sadd.s32 4294967295, %s6777_s24   ;;  %p6224_p0 = scmp.ge.s32.totalorder %s6777_s24, 1  ;;  %s6777_s24 = sphi %s6821_s24, %s18_s24  }
   0x2   : > { %p232_p1 = scmp.lt.s32.totalorder %s6777_s24, 3 }
   0x4   : > { %p233_p2 = pnand %p6224_p0, %p232_p1 }
   0x6   : > { %236 = sbr.rel (%p233_p2) target bundleno = 1328 (0x530), region = 40 }
   0xb   : > { %p264_p3 = scmp.lt.s32.totalorder %s6220_s25, 1  ;;  %p6227_p4 = scmp.ne.s32.totalorder %s6220_s25, 0 }
   0xd   : > { %s265_s26 = scalar_select %p264_p3, %s6220_s25, 1 }
   0xe   : > { %277 = sbr.rel (%p6227_p4) target bundleno = 22 (0x16), region = 44 }
   0xf   : > { %s6742_s27 = smul.u32 336, %s265_s26 }
  0x10   : > { %s6743_s28 = smul.u32 288, %s265_s26 }
  0x11   : > { %s6832_s8 = scalar_lea.vmem %s11144_s0, %s6742_s27 }
  0x12   : > { %s6837_s11 = scalar_lea.vmem %s11149_s5, %s6743_s28 }
  0x13   : > { %v6779_v0 = vmov 0.0  }
  0x14   : > { %278 = vst [vmem:[%s11150_s6] sm:$0x1] %v6779_v0 }
  0x15   : > { %279 = vst [vmem:[%s11151_s7] sm:$0x1] %v6779_v0 }
  0x16 PF: > { %v322_v1 = vld [vmem:[%s11146_s2 + $0x25] sm:$0xff]  ;;  %v320_v2 = vld [vmem:[%s11146_s2 + $0x15] sm:$0xff]  ;;  %v6780_v4 = vmov 0   ;;  %v323_v5 = vld [vmem:[%s11146_s2 + $0x2d] sm:$0xff] }
  0x17   : > { %v318_v3 = vld [vmem:[%s11146_s2 + $0x5] sm:$0xff]  ;;  %6756 = vset.pattern.permute.xlu2 %v6780_v4  ;;  %6755 = vset.pattern.permute.xlu1 %v6780_v4  ;;  %v321_v6 = vld [vmem:[%s11146_s2 + $0x1d] sm:$0xff]  ;;  %v319_v7 = vld [vmem:[%s11146_s2 + $0xd] sm:$0xff] }
  0x18   : > { %6754 = vset.pattern.permute.xlu0 %v6780_v4  ;;  %490 = vperm.xlu2 %6756, %v322_v1   ;;  %v326_v8 = vld [vmem:[%s11146_s2 + $0x45] sm:$0xff]  ;;  %v325_v9 = vld [vmem:[%s11146_s2 + $0x3d] sm:$0xff]  ;;  %v324_v10 = vld [vmem:[%s11146_s2 + $0x35] sm:$0xff] }
  0x19   : > { %480 = vperm.xlu1 %6755, %v320_v2   ;;  %470 = vperm.xlu0 %6754, %v318_v3   ;;  %v329_v11 = vld [vmem:[%s11146_s2 + $0x5d] sm:$0xff]  ;;  %v328_v12 = vld [vmem:[%s11146_s2 + $0x55] sm:$0xff]  ;;  %v327_v13 = vld [vmem:[%s11146_s2 + $0x4d] sm:$0xff] }
  0x1a   : > { %v332_v14 = vld [vmem:[%s11146_s2 + $0x75] sm:$0xff]  ;;  %v331_v15 = vld [vmem:[%s11146_s2 + $0x6d] sm:$0xff]  ;;  %v330_v16 = vld [vmem:[%s11146_s2 + $0x65] sm:$0xff] }
  0x1b   : > { %v335_v17 = vld [vmem:[%s11146_s2 + $0x8d] sm:$0xff]  ;;  %v334_v18 = vld [vmem:[%s11146_s2 + $0x85] sm:$0xff]  ;;  %v333_v19 = vld [vmem:[%s11146_s2 + $0x7d] sm:$0xff] }
  0x1c   : > { %v338_v20 = vld [vmem:[%s11146_s2 + $0xa5] sm:$0xff]  ;;  %v337_v21 = vld [vmem:[%s11146_s2 + $0x9d] sm:$0xff]  ;;  %v336_v22 = vld [vmem:[%s11146_s2 + $0x95] sm:$0xff] }
  0x1d   : > { %v341_v23 = vld [vmem:[%s11146_s2 + $0xbd] sm:$0xff]  ;;  %v340_v24 = vld [vmem:[%s11146_s2 + $0xb5] sm:$0xff]  ;;  %v339_v25 = vld [vmem:[%s11146_s2 + $0xad] sm:$0xff] }
  0x1e   : > { %v344_v26 = vld [vmem:[%s11146_s2 + $0xd5] sm:$0xff]  ;;  %v343_v27 = vld [vmem:[%s11146_s2 + $0xcd] sm:$0xff]  ;;  %v342_v28 = vld [vmem:[%s11146_s2 + $0xc5] sm:$0xff] }
  0x1f   : > { %v347_v29 = vld [vmem:[%s11146_s2 + $0xed] sm:$0xff]  ;;  %v346_v30 = vld [vmem:[%s11146_s2 + $0xe5] sm:$0xff]  ;;  %v345_v31 = vld [vmem:[%s11146_s2 + $0xdd] sm:$0xff] }
  0x20   : > { %495 = vperm.xlu2 %6756, %v323_v5   ;;  %v350_v32 = vld [vmem:[%s11146_s2 + $0x105] sm:$0xff]  ;;  %v349_v33 = vld [vmem:[%s11146_s2 + $0xfd] sm:$0xff]  ;;  %v348_v34 = vld [vmem:[%s11146_s2 + $0xf5] sm:$0xff] }
  0x21   : > { %485 = vperm.xlu1 %6755, %v321_v6   ;;  %475 = vperm.xlu0 %6754, %v319_v7   ;;  %v353_v35 = vld [vmem:[%s11146_s2 + $0x11d] sm:$0xff]  ;;  %v352_v36 = vld [vmem:[%s11146_s2 + $0x115] sm:$0xff]  ;;  %v351_v37 = vld [vmem:[%s11146_s2 + $0x10d] sm:$0xff] }
  0x22   : > { %v756_v39 = vld [vmem:[%s11146_s2 + $0x16] sm:$0xff]  ;;  %v755_v40 = vld [vmem:[%s11146_s2 + $0xe] sm:$0xff]  ;;  %v754_v41 = vld [vmem:[%s11146_s2 + $0x6] sm:$0xff] }
  0x23   : > { %v759_v43 = vld [vmem:[%s11146_s2 + $0x2e] sm:$0xff]  ;;  %v758_v44 = vld [vmem:[%s11146_s2 + $0x26] sm:$0xff]  ;;  %v757_v45 = vld [vmem:[%s11146_s2 + $0x1e] sm:$0xff] }
  0x24   : > { %v762_v47 = vld [vmem:[%s11146_s2 + $0x46] sm:$0xff]  ;;  %v761_v48 = vld [vmem:[%s11146_s2 + $0x3e] sm:$0xff]  ;;  %v760_v49 = vld [vmem:[%s11146_s2 + $0x36] sm:$0xff] }
  0x25   : > { %v765_v53 = vld [vmem:[%s11146_s2 + $0x5e] sm:$0xff]  ;;  %v764_v54 = vld [vmem:[%s11146_s2 + $0x56] sm:$0xff]  ;;  %v763_v55 = vld [vmem:[%s11146_s2 + $0x4e] sm:$0xff] }
  0x26   : > { %v768_v59 = vld [vmem:[%s11146_s2 + $0x76] sm:$0xff]  ;;  %v767_v60 = vld [vmem:[%s11146_s2 + $0x6e] sm:$0xff]  ;;  %v766_v61 = vld [vmem:[%s11146_s2 + $0x66] sm:$0xff] }
  0x27   : > { %v771_v1 = vld [vmem:[%s11146_s2 + $0x8e] sm:$0xff]  ;;  %v770_v2 = vld [vmem:[%s11146_s2 + $0x86] sm:$0xff]  ;;  %v769_v3 = vld [vmem:[%s11146_s2 + $0x7e] sm:$0xff] }
  0x28   : > { %510 = vperm.xlu2 %6756, %v326_v8   ;;  %v774_v7 = vld [vmem:[%s11146_s2 + $0xa6] sm:$0xff]  ;;  %v773_v8 = vld [vmem:[%s11146_s2 + $0x9e] sm:$0xff] }
  0x29   : > { %505 = vperm.xlu1 %6755, %v325_v9   ;;  %500 = vperm.xlu0 %6754, %v324_v10   ;;  %v772_v9 = vld [vmem:[%s11146_s2 + $0x96] sm:$0xff] }
  0x30   : > { %525 = vperm.xlu2 %6756, %v329_v11  }
  0x31   : > { %520 = vperm.xlu1 %6755, %v328_v12   ;;  %515 = vperm.xlu0 %6754, %v327_v13   ;;  %v777_v13 = vld [vmem:[%s11146_s2 + $0xbe] sm:$0xff] }
  0x38   : > { %540 = vperm.xlu2 %6756, %v332_v14   ;;  %v776_v14 = vld [vmem:[%s11146_s2 + $0xb6] sm:$0xff] }
  0x39   : > { %535 = vperm.xlu1 %6755, %v331_v15   ;;  %530 = vperm.xlu0 %6754, %v330_v16   ;;  %v775_v15 = vld [vmem:[%s11146_s2 + $0xae] sm:$0xff]  ;;  %v6661_v16 = vld [vmem:[%s11145_s1 + $0x78] sm:$0xff] }
  0x3a   : > { %1197 = vmatpush.bf16.msra.mxu0 %v6661_v16  ;;  %6718 = vmatpush.bf16.msra.mxu1 %v6661_v16 }
  0x3b   : > { %6719 = vmatpush.bf16.msra.mxu2 %v6661_v16  ;;  %6720 = vmatpush.bf16.msra.mxu3 %v6661_v16  ;;  %v7189_v16 = vld [vmem:[%s11146_s2 + $0x1f] sm:$0xff] }
  0x40   : > { %555 = vperm.xlu2 %6756, %v335_v17  }
  0x41   : > { %550 = vperm.xlu1 %6755, %v334_v18   ;;  %545 = vperm.xlu0 %6754, %v333_v19  }
  0x48   : > { %570 = vperm.xlu2 %6756, %v338_v20   ;;  %v6660_v20 = vld [vmem:[%s11145_s1 + $0x70] sm:$0xff] }
  0x49   : > { %565 = vperm.xlu1 %6755, %v337_v21   ;;  %560 = vperm.xlu0 %6754, %v336_v22   ;;  %v780_v21 = vld [vmem:[%s11146_s2 + $0xd6] sm:$0xff]  ;;  %v779_v22 = vld [vmem:[%s11146_s2 + $0xce] sm:$0xff] }
  0x4a   : > { %1198 = vmatpush.bf16.msra.mxu0 %v6660_v20  ;;  %6721 = vmatpush.bf16.msra.mxu1 %v6660_v20 }
  0x4b   : > { %6722 = vmatpush.bf16.msra.mxu2 %v6660_v20  ;;  %6723 = vmatpush.bf16.msra.mxu3 %v6660_v20 }
  0x50   : > { %585 = vperm.xlu2 %6756, %v341_v23   ;;  %v778_v23 = vld [vmem:[%s11146_s2 + $0xc6] sm:$0xff] }
  0x51   : > { %580 = vperm.xlu1 %6755, %v340_v24   ;;  %575 = vperm.xlu0 %6754, %v339_v25   ;;  %v6659_v24 = vld [vmem:[%s11145_s1 + $0x68] sm:$0xff] }
  0x52   : > { %1199 = vmatpush.bf16.msra.mxu0 %v6659_v24  ;;  %6724 = vmatpush.bf16.msra.mxu1 %v6659_v24 }
  0x53   : > { %6725 = vmatpush.bf16.msra.mxu2 %v6659_v24  ;;  %6726 = vmatpush.bf16.msra.mxu3 %v6659_v24 }
  0x58   : > { %600 = vperm.xlu2 %6756, %v344_v26  }
  0x59   : > { %595 = vperm.xlu1 %6755, %v343_v27   ;;  %590 = vperm.xlu0 %6754, %v342_v28   ;;  %v6658_v28 = vld [vmem:[%s11145_s1 + $0x60] sm:$0xff] }
  0x5a   : > { %1200 = vmatpush.bf16.msra.mxu0 %v6658_v28  ;;  %6727 = vmatpush.bf16.msra.mxu1 %v6658_v28 }
  0x5b   : > { %6728 = vmatpush.bf16.msra.mxu2 %v6658_v28  ;;  %6729 = vmatpush.bf16.msra.mxu3 %v6658_v28 }
  0x60   : > { %615 = vperm.xlu2 %6756, %v347_v29   ;;  %v783_v29 = vld [vmem:[%s11146_s2 + $0xee] sm:$0xff] }
  0x61   : > { %610 = vperm.xlu1 %6755, %v346_v30   ;;  %605 = vperm.xlu0 %6754, %v345_v31   ;;  %v782_v30 = vld [vmem:[%s11146_s2 + $0xe6] sm:$0xff]  ;;  %v781_v31 = vld [vmem:[%s11146_s2 + $0xde] sm:$0xff] }
  0x68   : > { %630 = vperm.xlu2 %6756, %v350_v32   ;;  %v6657_v32 = vld [vmem:[%s11145_s1 + $0x58] sm:$0xff] }
  0x69   : > { %625 = vperm.xlu1 %6755, %v349_v33   ;;  %620 = vperm.xlu0 %6754, %v348_v34  }
  0x6a   : > { %1201 = vmatpush.bf16.msra.mxu0 %v6657_v32  ;;  %6730 = vmatpush.bf16.msra.mxu1 %v6657_v32 }
  0x6b   : > { %6731 = vmatpush.bf16.msra.mxu2 %v6657_v32  ;;  %6732 = vmatpush.bf16.msra.mxu3 %v6657_v32  ;;  %v7217_v32 = vld [vmem:[%s11146_s2 + $0x3f] sm:$0xff] }
  0x70   : > { %645 = vperm.xlu2 %6756, %v353_v35  }
  0x71   : > { %640 = vperm.xlu1 %6755, %v352_v36   ;;  %635 = vperm.xlu0 %6754, %v351_v37   ;;  %v6656_v36 = vld [vmem:[%s11145_s1 + $0x50] sm:$0xff]  ;;  %v786_v37 = vld [vmem:[%s11146_s2 + $0x106] sm:$0xff] }
  0x72   : > { %v6953_v38 = vpop.permute.xlu2 %490  ;;  %1202 = vmatpush.bf16.msra.mxu0 %v6656_v36  ;;  %6733 = vmatpush.bf16.msra.mxu1 %v6656_v36 }
  0x73   : > { %6734 = vmatpush.bf16.msra.mxu2 %v6656_v36  ;;  %6735 = vmatpush.bf16.msra.mxu3 %v6656_v36  ;;  %v7222_v36 = vld [vmem:[%s11146_s2 + $0x37] sm:$0xff] }
  0x78   : > { %910 = vperm.xlu2 %6756, %v756_v39   ;;  %v785_v39 = vld [vmem:[%s11146_s2 + $0xfe] sm:$0xff] }
  0x79   : > { %905 = vperm.xlu1 %6755, %v755_v40   ;;  %900 = vperm.xlu0 %6754, %v754_v41   ;;  %v784_v40 = vld [vmem:[%s11146_s2 + $0xf6] sm:$0xff]  ;;  %v6655_v41 = vld [vmem:[%s11145_s1 + $0x48] sm:$0xff] }
  0x7a   : > { %v6964_v42 = vpop.permute.xlu2 %495  ;;  %1203 = vmatpush.bf16.msra.mxu0 %v6655_v41  ;;  %6736 = vmatpush.bf16.msra.mxu1 %v6655_v41 }
  0x7b   : > { %11224 = vst [vmem:[#allocation2_spill] sm:$0xff] %v6964_v42  ;;  %6737 = vmatpush.bf16.msra.mxu2 %v6655_v41  ;;  %6738 = vmatpush.bf16.msra.mxu3 %v6655_v41 }
  0x80   : > { %925 = vperm.xlu2 %6756, %v759_v43  }
  0x81   : > { %920 = vperm.xlu1 %6755, %v758_v44   ;;  %915 = vperm.xlu0 %6754, %v757_v45  }
  0x82   : > { %v6975_v46 = vpop.permute.xlu2 %510 }
  0x83   : > { %11225 = vst [vmem:[#allocation3_spill] sm:$0xff] %v6975_v46 }
  0x88   : > { %940 = vperm.xlu2 %6756, %v762_v47   ;;  %v6654_v47 = vld [vmem:[%s11145_s1 + $0x40] sm:$0xff] }
  0x89   : > { %935 = vperm.xlu1 %6755, %v761_v48   ;;  %930 = vperm.xlu0 %6754, %v760_v49   ;;  %v789_v48 = vld [vmem:[%s11146_s2 + $0x11e] sm:$0xff]  ;;  %v788_v49 = vld [vmem:[%s11146_s2 + $0x116] sm:$0xff] }
  0x8a   : > { %v6986_v50 = vpop.permute.xlu2 %525  ;;  %1204 = vmatpush.bf16.msra.mxu0 %v6654_v47  ;;  %6739 = vmatpush.bf16.msra.mxu1 %v6654_v47 }
  0x8b   : > { %11226 = vst [vmem:[#allocation4_spill] sm:$0xff] %v6986_v50  ;;  %v6988_v51 = vpop.permute.xlu1 %480  ;;  %v6990_v52 = vpop.permute.xlu0 %470  ;;  %6740 = vmatpush.bf16.msra.mxu2 %v6654_v47  ;;  %6741 = vmatpush.bf16.msra.mxu3 %v6654_v47 }
  0x90   : > { %955 = vperm.xlu2 %6756, %v765_v53   ;;  %v787_v53 = vld [vmem:[%s11146_s2 + $0x10e] sm:$0xff] }
  0x91   : > { %950 = vperm.xlu1 %6755, %v764_v54   ;;  %945 = vperm.xlu0 %6754, %v763_v55  }
  0x92   : > { %v7001_v56 = vpop.permute.xlu2 %540 }
  0x93   : > { %11227 = vst [vmem:[#allocation5_spill] sm:$0xff] %v7001_v56  ;;  %v7003_v57 = vpop.permute.xlu1 %485  ;;  %v7005_v58 = vpop.permute.xlu0 %475  ;;  %v7373_v56 = vld [vmem:[%s11146_s2 + $0xd7] sm:$0xff] }
  0x94   : > { %11256 = vst [vmem:[#allocation34_spill] sm:$0xff] %v7373_v56 }
  0x98   : > { %970 = vperm.xlu2 %6756, %v768_v59  }
  0x99   : > { %965 = vperm.xlu1 %6755, %v767_v60   ;;  %960 = vperm.xlu0 %6754, %v766_v61   ;;  %v7154_v60 = vld [vmem:[%s11146_s2 + $0x17] sm:$0xff]  ;;  %v1480_v61 = vld [vmem:[%s11146_s2 + $0xf] sm:$0xff] }
  0x9a   : > { %v7016_v62 = vpop.permute.xlu2 %555 }
  0x9b   : > { %11228 = vst [vmem:[#allocation6_spill] sm:$0xff] %v7016_v62  ;;  %v7018_v63 = vpop.permute.xlu1 %505  ;;  %v7020_v0 = vpop.permute.xlu0 %500 }
  0x9c   : > { %11229 = vst [vmem:[#allocation7_spill] sm:$0xff] %v7018_v63 }
  0x9d   : > { %11230 = vst [vmem:[#allocation8_spill] sm:$0xff] %v7020_v0 }
  0xa0   : > { %985 = vperm.xlu2 %6756, %v771_v1   ;;  %v1479_v1 = vld [vmem:[%s11146_s2 + $0x7] sm:$0xff] }
  0xa1   : > { %980 = vperm.xlu1 %6755, %v770_v2   ;;  %975 = vperm.xlu0 %6754, %v769_v3  }
  0xa2   : > { %v7031_v4 = vpop.permute.xlu2 %570 }
  0xa3   : > { %11231 = vst [vmem:[#allocation9_spill] sm:$0xff] %v7031_v4  ;;  %v7033_v5 = vpop.permute.xlu1 %520  ;;  %v7035_v6 = vpop.permute.xlu0 %515 }
  0xa4   : > { %11232 = vst [vmem:[#allocation10_spill] sm:$0xff] %v7033_v5 }
  0xa5   : > { %11233 = vst [vmem:[#allocation11_spill] sm:$0xff] %v7035_v6 }
  0xa8   : > { %1000 = vperm.xlu2 %6756, %v774_v7  }
  0xa9   : > { %995 = vperm.xlu1 %6755, %v773_v8   ;;  %990 = vperm.xlu0 %6754, %v772_v9   ;;  %v7172_v8 = vld [vmem:[%s11146_s2 + $0x2f] sm:$0xff] }
  0xaa   : > { %v7046_v10 = vpop.permute.xlu2 %585  ;;  %v719_v9 = vld [vmem:[%s6832_s8 + $0xe] sm:$0xff] }
  0xab   : > { %11234 = vst [vmem:[#allocation12_spill] sm:$0xff] %v7046_v10  ;;  %v7048_v11 = vpop.permute.xlu1 %535  ;;  %v7050_v12 = vpop.permute.xlu0 %530 }
  0xac   : > { %11235 = vst [vmem:[#allocation13_spill] sm:$0xff] %v7048_v11 }
  0xad   : > { %11236 = vst [vmem:[#allocation14_spill] sm:$0xff] %v7050_v12 }
  0xb0   : > { %1015 = vperm.xlu2 %6756, %v777_v13   ;;  %v718_v13 = vld [vmem:[%s6832_s8 + $0x6] sm:$0xff] }
  0xb1   : > { %1010 = vperm.xlu1 %6755, %v776_v14   ;;  %1005 = vperm.xlu0 %6754, %v775_v15   ;;  %v7179_v14 = vld [vmem:[%s11147_s3] ss:$0 sm:$0xff]  ;;  %v7184_v15 = vld [vmem:[%s11146_s2 + $0x27] sm:$0xff] }
  0xb2   : > { %v7064_v17 = vpop.permute.xlu2 %600  ;;  %v791_v20 = vmul.f32 %v7179_v14, %v719_v9 }
  0xb3   : > { %11237 = vst [vmem:[#allocation15_spill] sm:$0xff] %v7064_v17  ;;  %v7066_v18 = vpop.permute.xlu1 %550  ;;  %v7068_v19 = vpop.permute.xlu0 %545  ;;  %v7295_v17 = vld [vmem:[%s11146_s2 + $0x87] sm:$0xff] }
  0xb4   : > { %11238 = vst [vmem:[#allocation16_spill] sm:$0xff] %v7066_v18  ;;  %v732_v18 = vld [vmem:[%s6832_s8 + $0x76] sm:$0xff] }
  0xb5   : > { %11239 = vst [vmem:[#allocation17_spill] sm:$0xff] %v7068_v19  ;;  %v739_v19 = vld [vmem:[%s6832_s8 + $0xae] sm:$0xff] }
  0xb8   : > { %1030 = vperm.xlu2 %6756, %v780_v21   ;;  %v790_v21 = vmul.f32 %v7179_v14, %v718_v13  ;;  %v7237_v13 = vld [vmem:[%s11146_s2 + $0x57] sm:$0xff] }
  0xb9   : > { %1025 = vperm.xlu1 %6755, %v779_v22   ;;  %1020 = vperm.xlu0 %6754, %v778_v23   ;;  %v7199_v22 = vld [vmem:[%s11148_s4] ss:$0 sm:$0xff] }
  0xba   : > { %v7085_v25 = vpop.permute.xlu2 %615 }
  0xbb   : > { %11240 = vst [vmem:[#allocation18_spill] sm:$0xff] %v7085_v25  ;;  %v7087_v26 = vpop.permute.xlu1 %565  ;;  %v7089_v27 = vpop.permute.xlu0 %560 }
  0xbc   : > { %11241 = vst [vmem:[#allocation19_spill] sm:$0xff] %v7087_v26 }
  0xbd   : > { %11242 = vst [vmem:[#allocation20_spill] sm:$0xff] %v7089_v27 }
  0xc0   : > { %1045 = vperm.xlu2 %6756, %v783_v29   ;;  %v827_v29 = vadd.f32 %v7199_v22, %v791_v20  ;;  %v7242_v20 = vld [vmem:[%s11146_s2 + $0x4f] sm:$0xff] }
  0xc1   : > { %1040 = vperm.xlu1 %6755, %v782_v30   ;;  %1035 = vperm.xlu0 %6754, %v781_v31   ;;  %v826_v30 = vadd.f32 %v7199_v22, %v790_v21  ;;  %v7212_v31 = vld [vmem:[%s11146_s2 + $0x47] sm:$0xff] }
  0xc2   : > { %v7106_v33 = vpop.permute.xlu2 %630 }
  0xc3   : > { %11243 = vst [vmem:[#allocation21_spill] sm:$0xff] %v7106_v33  ;;  %v7108_v34 = vpop.permute.xlu1 %580  ;;  %v7110_v35 = vpop.permute.xlu0 %575 }
  0xc4   : > { %11244 = vst [vmem:[#allocation22_spill] sm:$0xff] %v7108_v34  ;;  %v7322_v34 = vld [vmem:[%s11146_s2 + $0x9f] sm:$0xff] }
  0xc5   : > { %11245 = vst [vmem:[#allocation23_spill] sm:$0xff] %v7110_v35  ;;  %v724_v35 = vld [vmem:[%s6832_s8 + $0x36] sm:$0xff] }
  0xc8   : > { %1060 = vperm.xlu2 %6756, %v786_v37   ;;  %v863_v37 = vmax.f32 %v827_v29, 0.0 }
  0xc9   : > { %1055 = vperm.xlu1 %6755, %v785_v39   ;;  %1050 = vperm.xlu0 %6754, %v784_v40   ;;  %v862_v39 = vmax.f32 %v826_v30, 0.0 }
  0xca   : > { %v7127_v43 = vpop.permute.xlu2 %645 }
  0xcb   : > { %11246 = vst [vmem:[#allocation24_spill] sm:$0xff] %v7127_v43  ;;  %v7129_v44 = vpop.permute.xlu1 %595  ;;  %v7131_v45 = vpop.permute.xlu0 %590 }
  0xcc   : > { %11247 = vst [vmem:[#allocation25_spill] sm:$0xff] %v7129_v44  ;;  %v730_v44 = vld [vmem:[%s6832_s8 + $0x66] sm:$0xff] }
  0xcd   : > { %11248 = vst [vmem:[#allocation26_spill] sm:$0xff] %v7131_v45  ;;  %v731_v45 = vld [vmem:[%s6832_s8 + $0x6e] sm:$0xff] }
  0xd0   : > { %1075 = vperm.xlu2 %6756, %v789_v48   ;;  %v721_v48 = vld [vmem:[%s6832_s8 + $0x1e] sm:$0xff] }
  0xd1   : > { %1070 = vperm.xlu1 %6755, %v788_v49   ;;  %1065 = vperm.xlu0 %6754, %v787_v53   ;;  %v793_v21 = vmul.f32 %v7179_v14, %v721_v48  ;;  %v7257_v48 = vld [vmem:[%s11146_s2 + $0x77] sm:$0xff] }
  0xd2   : > { %v7145_v54 = vpop.permute.xlu2 %910 }
  0xd3   : > { %v7147_v55 = vpop.permute.xlu1 %610  ;;  %v7149_v59 = vpop.permute.xlu0 %605 }
  0xd4   : > { %11249 = vst [vmem:[#allocation27_spill] sm:$0xff] %v7147_v55  ;;  %v723_v55 = vld [vmem:[%s6832_s8 + $0x2e] sm:$0xff] }
  0xd5   : > { %11250 = vst [vmem:[#allocation28_spill] sm:$0xff] %v7149_v59 }
  0xd8   : > { %1635 = vperm.xlu2 %6756, %v7154_v60  }
  0xd9   : > { %1630 = vperm.xlu1 %6755, %v1480_v61   ;;  %1625 = vperm.xlu0 %6754, %v1479_v1   ;;  %v720_v61 = vld [vmem:[%s6832_s8 + $0x16] sm:$0xff]  ;;  %v7232_v1 = vld [vmem:[%s11146_s2 + $0x5f] sm:$0xff] }
  0xda   : > { %v7163_v2 = vpop.permute.xlu2 %925  ;;  %v792_v29 = vmul.f32 %v7179_v14, %v720_v61 }
  0xdb   : > { %v7165_v3 = vpop.permute.xlu1 %625  ;;  %v7167_v7 = vpop.permute.xlu0 %620 }
  0xdc   : > { %11251 = vst [vmem:[#allocation29_spill] sm:$0xff] %v7165_v3 }
  0xdd   : > { %11252 = vst [vmem:[#allocation30_spill] sm:$0xff] %v7167_v7 }
  0xe0   : > { %1650 = vperm.xlu2 %6756, %v7172_v8  }
  0xe1   : > { %1645 = vperm.xlu1 %6755, %v7184_v15   ;;  %1640 = vperm.xlu0 %6754, %v7189_v16  }
  0xe2   : > { %v7201_v23 = vpop.permute.xlu2 %940 }
  0xe3   : > { %v7203_v24 = vpop.permute.xlu1 %640  ;;  %v7205_v28 = vpop.permute.xlu0 %635 }
  0xe4   : > { %11253 = vst [vmem:[#allocation31_spill] sm:$0xff] %v7203_v24 }
  0xe5   : > { %11254 = vst [vmem:[#allocation32_spill] sm:$0xff] %v7205_v28  ;;  %v722_v28 = vld [vmem:[%s6832_s8 + $0x26] sm:$0xff] }
  0xe8   : > { %1665 = vperm.xlu2 %6756, %v7212_v31  }
  0xe9   : > { %1660 = vperm.xlu1 %6755, %v7217_v32   ;;  %1655 = vperm.xlu0 %6754, %v7222_v36  }
  0xea   : > { %v956_v40 = vpop.permute.xlu2 %955 }
  0xeb   : > { %v906_v41 = vpop.permute.xlu1 %905  ;;  %v901_v47 = vpop.permute.xlu0 %900 }
  0xec   : > { %v1079_v49 = vmul.f32 %v906_v41, %v863_v37  ;;  %v1078_v53 = vmul.f32 %v901_v47, %v862_v39  ;;  %v829_v37 = vadd.f32 %v7199_v22, %v793_v21  ;;  %v828_v47 = vadd.f32 %v7199_v22, %v792_v29  ;;  %v7268_v21 = vld [vmem:[%s11146_s2 + $0x67] sm:$0xff] }
  0xee   : > { %v1114_v9 = vpack.c.bf16 %v1079_v49, %v1078_v53  ;;  %v729_v49 = vld [vmem:[%s6832_s8 + $0x5e] sm:$0xff]  ;;  %v728_v53 = vld [vmem:[%s6832_s8 + $0x56] sm:$0xff]  ;;  %v865_v61 = vmax.f32 %v829_v37, 0.0  ;;  %v864_v29 = vmax.f32 %v828_v47, 0.0 }
  0xef   : > { %v801_v43 = vmul.f32 %v7179_v14, %v729_v49  ;;  %v800_v24 = vmul.f32 %v7179_v14, %v728_v53  ;;  %v7289_v53 = vld [vmem:[%s11146_s2 + $0x8f] sm:$0xff] }
  0xf0   : > { %1205 = vmatmul.bf16.vlgmr.msra.gmra.mxu0 %v1114_v9  ;;  %1680 = vperm.xlu2 %6756, %v7232_v1   ;;  %v7263_v9 = vld [vmem:[%s11146_s2 + $0x6f] sm:$0xff]  ;;  %v1080_v47 = vmul.f32 %v7145_v54, %v864_v29  ;;  %v795_v54 = vmul.f32 %v7179_v14, %v723_v55 }
  0xf1   : > { %1675 = vperm.xlu1 %6755, %v7237_v13   ;;  %1670 = vperm.xlu0 %6754, %v7242_v20   ;;  %v837_v49 = vadd.f32 %v7199_v22, %v801_v43  ;;  %v836_v25 = vadd.f32 %v7199_v22, %v800_v24  ;;  %v7300_v43 = vld [vmem:[%s11146_s2 + $0x7f] sm:$0xff] }
  0xf2   : > { %v7249_v30 = vpop.permute.xlu2 %970  ;;  %v831_v55 = vadd.f32 %v7199_v22, %v795_v54  ;;  %v7327_v54 = vld [vmem:[%s11146_s2 + $0x97] sm:$0xff] }
  0xf3   : > { %v921_v39 = vpop.permute.xlu1 %920  ;;  %v916_v41 = vpop.permute.xlu0 %915  ;;  %v873_v24 = vmax.f32 %v837_v49, 0.0  ;;  %v872_v29 = vmax.f32 %v836_v25, 0.0  ;;  %v7317_v25 = vld [vmem:[%s11146_s2 + $0xa7] sm:$0xff] }
  0xf4   : > { %v1081_v37 = vmul.f32 %v916_v41, %v865_v61  ;;  %v794_v41 = vmul.f32 %v7179_v14, %v722_v28 }
  0xf5   : > { %v1089_v49 = vmul.f32 %v956_v40, %v873_v24  ;;  %v803_v40 = vmul.f32 %v7179_v14, %v731_v45  ;;  %v802_v24 = vmul.f32 %v7179_v14, %v730_v44 }
  0xf6   : > { %v1115_v61 = vpack.c.bf16 %v1081_v37, %v1080_v47  ;;  %v830_v28 = vadd.f32 %v7199_v22, %v794_v41 }
  0xf7   : > { %v838_v4 = vadd.f32 %v7199_v22, %v802_v24  ;;  %v7351_v24 = vld [vmem:[%s11146_s2 + $0xb7] sm:$0xff] }
  0xf8   : > { %1695 = vperm.xlu2 %6756, %v7257_v48   ;;  %v866_v10 = vmax.f32 %v830_v28, 0.0 }
  0xf9   : > { %1690 = vperm.xlu1 %6755, %v7263_v9   ;;  %1685 = vperm.xlu0 %6754, %v7268_v21   ;;  %v874_v26 = vmax.f32 %v838_v4, 0.0 }
  0xfa   : > { %v7275_v33 = vpop.permute.xlu2 %985  ;;  %v1082_v28 = vmul.f32 %v921_v39, %v866_v10  ;;  %v796_v10 = vmul.f32 %v7179_v14, %v724_v35 }
  0xfb   : > { %v7278_v7 = vpop.permute.xlu1 %935  ;;  %v7280_v3 = vpop.permute.xlu0 %930 }
  0xfc   : > { %v832_v35 = vadd.f32 %v7199_v22, %v796_v10  ;;  %v7385_v10 = vld [vmem:[%s11146_s2 + $0xc7] sm:$0xff] }
 0x100   : > { %1210 = vmatmul.bf16.gmra.mxu0 %v1115_v61  ;;  %1710 = vperm.xlu2 %6756, %v7289_v53  }
 0x101   : > { %1705 = vperm.xlu1 %6755, %v7295_v17   ;;  %1700 = vperm.xlu0 %6754, %v7300_v43  }
 0x102   : > { %v7307_v37 = vpop.permute.xlu2 %1000 }
 0x103   : > { %v951_v47 = vpop.permute.xlu1 %950  ;;  %v7309_v59 = vpop.permute.xlu0 %945 }
 0x104   : > { %v1088_v61 = vmul.f32 %v951_v47, %v872_v29  ;;  %v867_v29 = vmax.f32 %v831_v55, 0.0  ;;  %v725_v47 = vld [vmem:[%s6832_s8 + $0x3e] sm:$0xff] }
 0x105   : > { %v797_v55 = vmul.f32 %v7179_v14, %v725_v47 }
 0x106   : > { %v1119_v41 = vpack.c.bf16 %v1089_v49, %v1088_v61  ;;  %v839_v61 = vadd.f32 %v7199_v22, %v803_v40  ;;  %v1083_v44 = vmul.f32 %v7163_v2, %v867_v29  ;;  %v7356_v2 = vld [vmem:[%s11146_s2 + $0xaf] sm:$0xff] }
 0x107   : > { %v833_v4 = vadd.f32 %v7199_v22, %v797_v55  ;;  %v868_v55 = vmax.f32 %v832_v35, 0.0  ;;  %v6653_v35 = vld [vmem:[%s11145_s1 + $0x38] sm:$0xff] }
 0x108   : > { %1230 = vmatmul.bf16.vlgmr.msra.gmra.mxu1 %v1119_v41  ;;  %1725 = vperm.xlu2 %6756, %v7317_v25   ;;  %v7345_v41 = vld [vmem:[%s11146_s2 + $0xbf] sm:$0xff]  ;;  %v875_v39 = vmax.f32 %v839_v61, 0.0  ;;  %v1116_v40 = vpack.c.bf16 %v1083_v44, %v1082_v28 }
 0x109   : > { %1720 = vperm.xlu1 %6755, %v7322_v34   ;;  %1715 = vperm.xlu0 %6754, %v7327_v54   ;;  %11255 = vst [vmem:[#allocation33_spill] sm:$0xff] %v7345_v41  ;;  %v733_v44 = vld [vmem:[%s6832_s8 + $0x7e] sm:$0xff]  ;;  %v869_v12 = vmax.f32 %v833_v4, 0.0  ;;  %v811_v4 = vmul.f32 %v7179_v14, %v739_v19 }
 0x10a   : > { %v7335_v49 = vpop.permute.xlu2 %1015  ;;  %1344 = vmatpush.bf16.msrb.mxu1 %v6653_v35 }
 0x10b   : > { %v966_v45 = vpop.permute.xlu1 %965  ;;  %v961_v27 = vpop.permute.xlu0 %960  ;;  %v847_v6 = vadd.f32 %v7199_v22, %v811_v4 }
 0x10c   : > { %v1091_v29 = vmul.f32 %v966_v45, %v875_v39  ;;  %v1090_v28 = vmul.f32 %v961_v27, %v874_v26  ;;  %v805_v45 = vmul.f32 %v7179_v14, %v733_v44  ;;  %v7380_v27 = vld [vmem:[%s11146_s2 + $0xcf] sm:$0xff]  ;;  %v804_v39 = vmul.f32 %v7179_v14, %v732_v18 }
 0x10d   : > { %v1084_v18 = vmul.f32 %v7280_v3, %v868_v55  ;;  %v726_v3 = vld [vmem:[%s6832_s8 + $0x46] sm:$0xff]  ;;  %v7417_v55 = vld [vmem:[%s11146_s2 + $0xef] sm:$0xff] }
 0x10e   : > { %v1120_v26 = vpack.c.bf16 %v1091_v29, %v1090_v28  ;;  %v1085_v29 = vmul.f32 %v7278_v7, %v869_v12  ;;  %v727_v28 = vld [vmem:[%s6832_s8 + $0x4e] sm:$0xff]  ;;  %v841_v44 = vadd.f32 %v7199_v22, %v805_v45  ;;  %v840_v5 = vadd.f32 %v7199_v22, %v804_v39  ;;  %11257 = vst [vmem:[#allocation35_spill] sm:$0xff] %v7417_v55  ;;  %v7427_v39 = vld [vmem:[%s11146_s2 + $0xdf] sm:$0xff] }
 0x10f   : > { %v6652_v12 = vld [vmem:[%s11145_s1 + $0x30] sm:$0xff]  ;;  %v799_v7 = vmul.f32 %v7179_v14, %v727_v28  ;;  %11259 = vst [vmem:[#allocation37_spill] sm:$0xff] %v7427_v39  ;;  %v798_v4 = vmul.f32 %v7179_v14, %v726_v3 }
 0x110   : > { %1215 = vmatmul.bf16.gmra.mxu0 %v1116_v40  ;;  %1740 = vperm.xlu2 %6756, %v7345_v41   ;;  %v738_v40 = vld [vmem:[%s6832_s8 + $0xa6] sm:$0xff]  ;;  %v877_v45 = vmax.f32 %v841_v44, 0.0  ;;  %v1117_v35 = vpack.c.bf16 %v1085_v29, %v1084_v18  ;;  %v876_v28 = vmax.f32 %v840_v5, 0.0  ;;  %v883_v29 = vmax.f32 %v847_v6, 0.0  ;;  %v740_v5 = vld [vmem:[%s6832_s8 + $0xb6] sm:$0xff] }
 0x111   : > { %1735 = vperm.xlu1 %6755, %v7351_v24   ;;  %1730 = vperm.xlu0 %6754, %v7356_v2   ;;  %v810_v11 = vmul.f32 %v7179_v14, %v738_v40  ;;  %v6651_v18 = vld [vmem:[%s11145_s1 + $0x28] sm:$0xff]  ;;  %v835_v44 = vadd.f32 %v7199_v22, %v799_v7 }
 0x112   : > { %v7363_v47 = vpop.permute.xlu2 %1030  ;;  %1345 = vmatpush.bf16.msrb.mxu1 %v6652_v12  ;;  %v1092_v0 = vmul.f32 %v7249_v30, %v876_v28  ;;  %v7454_v30 = vld [vmem:[%s11146_s2 + $0x107] sm:$0xff]  ;;  %v6649_v28 = vld [vmem:[%s11145_s1 + $0x18] sm:$0xff] }
 0x113   : > { %v7365_v61 = vpop.permute.xlu1 %980  ;;  %v976_v62 = vpop.permute.xlu0 %975  ;;  %v846_v50 = vadd.f32 %v7199_v22, %v810_v11  ;;  %v7422_v11 = vld [vmem:[%s11146_s2 + $0xe7] sm:$0xff]  ;;  %11260 = vst [vmem:[#allocation38_spill] sm:$0xff] %v7454_v30 }
 0x114   : > { %11258 = vst [vmem:[#allocation36_spill] sm:$0xff] %v7422_v11  ;;  %v1093_v12 = vmul.f32 %v976_v62, %v877_v45  ;;  %v871_v62 = vmax.f32 %v835_v44, 0.0  ;;  %v741_v45 = vld [vmem:[%s6832_s8 + $0xbe] sm:$0xff] }
 0x115   : > { %v882_v46 = vmax.f32 %v846_v50, 0.0  ;;  %v734_v50 = vld [vmem:[%s6832_s8 + $0x86] sm:$0xff] }
 0x116   : > { %1346 = vmatpush.bf16.msrb.mxu1 %v6651_v18  ;;  %v806_v18 = vmul.f32 %v7179_v14, %v734_v50  ;;  %v1121_v41 = vpack.c.bf16 %v1093_v12, %v1092_v0 }
 0x117   : > { %v1098_v63 = vmul.f32 %v7307_v37, %v882_v46  ;;  %v7459_v46 = vld [vmem:[%s11146_s2 + $0xff] sm:$0xff]  ;;  %v7464_v37 = vld [vmem:[%s11146_s2 + $0xf7] sm:$0xff] }
 0x118   : > { %1235 = vmatmul.bf16.gmra.mxu1 %v1120_v26  ;;  %1755 = vperm.xlu2 %6756, %v7373_v56   ;;  %v6650_v56 = vld [vmem:[%s11145_s1 + $0x20] sm:$0xff] }
 0x119   : > { %1750 = vperm.xlu1 %6755, %v7380_v27   ;;  %1745 = vperm.xlu0 %6754, %v7385_v10  }
 0x11a   : > { %v7400_v40 = vpop.permute.xlu2 %1045  ;;  %1347 = vmatpush.bf16.msrb.mxu1 %v6650_v56  ;;  %v1087_v56 = vmul.f32 %v7309_v59, %v871_v62  ;;  %v6648_v59 = vld [vmem:[%s11145_s1 + $0x10] sm:$0xff] }
 0x11b   : > { %v7402_v19 = vpop.permute.xlu1 %995  ;;  %v7404_v26 = vpop.permute.xlu0 %990 }
 0x11e   : > { %1348 = vmatpush.bf16.msrb.mxu1 %v6649_v28 }
 0x120   : > { %1220 = vmatmul.bf16.gmra.mxu0 %v1117_v35  ;;  %1770 = vperm.xlu2 %6756, %v7417_v55   ;;  %v834_v55 = vadd.f32 %v7199_v22, %v798_v4 }
 0x121   : > { %1765 = vperm.xlu1 %6755, %v7422_v11   ;;  %1760 = vperm.xlu0 %6754, %v7427_v39   ;;  %v735_v39 = vld [vmem:[%s6832_s8 + $0x8e] sm:$0xff]  ;;  %v812_v11 = vmul.f32 %v7179_v14, %v740_v5  ;;  %v748_v5 = vld [vmem:[%s6832_s8 + $0xf6] sm:$0xff] }
 0x122   : > { %v7437_v3 = vpop.permute.xlu2 %1060  ;;  %v870_v4 = vmax.f32 %v834_v55, 0.0  ;;  %v807_v0 = vmul.f32 %v7179_v14, %v735_v39  ;;  %v842_v55 = vadd.f32 %v7199_v22, %v806_v18  ;;  %1349 = vmatpush.bf16.msrb.mxu1 %v6648_v59  ;;  %v7504_v18 = vld [vmem:[%s11146_s2 + $0x10f] sm:$0xff]  ;;  %v820_v28 = vmul.f32 %v7179_v14, %v748_v5 }
 0x123   : > { %v1011_v35 = vpop.permute.xlu1 %1010  ;;  %v1006_v6 = vpop.permute.xlu0 %1005  ;;  %v848_v39 = vadd.f32 %v7199_v22, %v812_v11  ;;  %v749_v11 = vld [vmem:[%s6832_s8 + $0xfe] sm:$0xff]  ;;  %11263 = vst [vmem:[#allocation41_spill] sm:$0xff] %v7504_v18  ;;  %v743_v59 = vld [vmem:[%s6832_s8 + $0xce] sm:$0xff] }
 0x124   : > { %v1099_v7 = vmul.f32 %v1006_v6, %v883_v29  ;;  %v1086_v44 = vmul.f32 %v7201_v23, %v870_v4  ;;  %v843_v12 = vadd.f32 %v7199_v22, %v807_v0  ;;  %v878_v6 = vmax.f32 %v842_v55, 0.0  ;;  %v7499_v23 = vld [vmem:[%s11146_s2 + $0x117] sm:$0xff] }
 0x125   : > { %11262 = vst [vmem:[#allocation40_spill] sm:$0xff] %v7499_v23 }
 0x126   : > { %v1124_v42 = vpack.c.bf16 %v1099_v7, %v1098_v63  ;;  %v813_v63 = vmul.f32 %v7179_v14, %v741_v45  ;;  %v884_v7 = vmax.f32 %v848_v39, 0.0  ;;  %v1118_v62 = vpack.c.bf16 %v1087_v56, %v1086_v44  ;;  %v7494_v45 = vld [vmem:[%s11146_s2 + $0x11f] sm:$0xff]  ;;  %v6647_v56 = vld [vmem:[%s11145_s1 + $0x8] sm:$0xff]  ;;  %v736_v44 = vld [vmem:[%s6832_s8 + $0x96] sm:$0xff] }
 0x127   : > { %11261 = vst [vmem:[#allocation39_spill] sm:$0xff] %v7494_v45  ;;  %v879_v4 = vmax.f32 %v843_v12, 0.0  ;;  %v1094_v55 = vmul.f32 %v7365_v61, %v878_v6  ;;  %v737_v39 = vld [vmem:[%s6832_s8 + $0x9e] sm:$0xff]  ;;  %1350 = vmatpush.bf16.msrb.mxu1 %v6647_v56  ;;  %v856_v6 = vadd.f32 %v7199_v22, %v820_v28  ;;  %v808_v56 = vmul.f32 %v7179_v14, %v736_v44 }
 0x128   : > { %1240 = vmatmul.bf16.gmra.mxu1 %v1121_v41  ;;  %1255 = vmatmul.bf16.vlgmr.msra.gmra.mxu2 %v1124_v42  ;;  %v849_v50 = vadd.f32 %v7199_v22, %v813_v63  ;;  %v821_v63 = vmul.f32 %v7179_v14, %v749_v11  ;;  %v1100_v12 = vmul.f32 %v1011_v35, %v884_v7  ;;  %v742_v11 = vld [vmem:[%s6832_s8 + $0xc6] sm:$0xff] }
 0x129   : > { %1785 = vperm.xlu2 %6756, %v7454_v30   ;;  %1780 = vperm.xlu1 %6755, %v7459_v46   ;;  %v6646_v35 = vld [vmem:[%s11145_s1] sm:$0xff]  ;;  %v809_v7 = vmul.f32 %v7179_v14, %v737_v39  ;;  %v844_v28 = vadd.f32 %v7199_v22, %v808_v56 }
 0x12a   : > { %1775 = vperm.xlu0 %6754, %v7464_v37   ;;  %v7477_v41 = vpop.permute.xlu2 %1075  ;;  %v885_v0 = vmax.f32 %v849_v50, 0.0  ;;  %v857_v61 = vadd.f32 %v7199_v22, %v821_v63 }
 0x12b   : > { %v7479_v42 = vpop.permute.xlu1 %1025  ;;  %v7481_v29 = vpop.permute.xlu0 %1020  ;;  %1351 = vmatpush.bf16.msrb.mxu1 %v6646_v35  ;;  %v845_v63 = vadd.f32 %v7199_v22, %v809_v7  ;;  %v6667_v7 = vld [vmem:[%s11145_s1 + $0xa8] sm:$0xff] }
 0x12c   : > { %v1101_v30 = vmul.f32 %v7335_v49, %v885_v0  ;;  %v893_v49 = vmax.f32 %v857_v61, 0.0  ;;  %v6669_v0 = vld [vmem:[%s11145_s1 + $0xb8] sm:$0xff] }
 0x12d   : > { %1922 = vmatpush.bf16.msrb.mxu2 %v6669_v0 }
 0x130   : > { %1225 = vmatmul.bf16.gmra.mxu0 %v1118_v62 }
 0x131   : > { %1800 = vperm.xlu2 %6756, %v7494_v45   ;;  %1795 = vperm.xlu1 %6755, %v7499_v23   ;;  %v1095_v45 = vmul.f32 %v7275_v33, %v879_v4  ;;  %v814_v23 = vmul.f32 %v7179_v14, %v742_v11  ;;  %v1125_v33 = vpack.c.bf16 %v1101_v30, %v1100_v12  ;;  %v892_v4 = vmax.f32 %v856_v6, 0.0  ;;  %v751_v12 = vld [vmem:[%s6832_s8 + $0x10e] sm:$0xff] }
 0x132   : > { %1790 = vperm.xlu0 %6754, %v7504_v18   ;;  %v7517_v50 = vpop.permute.xlu2 %1635  ;;  %v815_v18 = vmul.f32 %v7179_v14, %v743_v59  ;;  %v880_v11 = vmax.f32 %v844_v28, 0.0 }
 0x133   : > { %11264 = vst [vmem:[#allocation42_spill] sm:$0xff] %v7517_v50  ;;  %v7521_v5 = vpop.permute.xlu1 %1040  ;;  %v7523_v62 = vpop.permute.xlu0 %1035  ;;  %v1122_v50 = vpack.c.bf16 %v1095_v45, %v1094_v55  ;;  %v850_v45 = vadd.f32 %v7199_v22, %v814_v23 }
 0x134   : > { %v851_v30 = vadd.f32 %v7199_v22, %v815_v18  ;;  %v750_v18 = vld [vmem:[%s6832_s8 + $0x106] sm:$0xff] }
 0x135   : > { %v886_v23 = vmax.f32 %v850_v45, 0.0  ;;  %v822_v35 = vmul.f32 %v7179_v14, %v750_v18  ;;  %v744_v45 = vld [vmem:[%s6832_s8 + $0xd6] sm:$0xff] }
 0x136   : > { %v887_v61 = vmax.f32 %v851_v30, 0.0 }
 0x137   : > { %v1102_v0 = vmul.f32 %v7481_v29, %v886_v23 }
 0x138   : > { %1245 = vmatmul.bf16.gmra.mxu1 %v1122_v50  ;;  %1260 = vmatmul.bf16.gmra.mxu2 %v1125_v33  ;;  %v1096_v33 = vmul.f32 %v7404_v26, %v880_v11 }
 0x139   : > { %2249 = vperm.xlu2 %6756, %v7184_v15   ;;  %2244 = vperm.xlu1 %6755, %v7189_v16   ;;  %v6668_v15 = vld [vmem:[%s11145_s1 + $0xb0] sm:$0xff]  ;;  %v881_v16 = vmax.f32 %v845_v63, 0.0 }
 0x13a   : > { %2239 = vperm.xlu0 %6754, %v7154_v60   ;;  %v7546_v55 = vpop.permute.xlu2 %1650  ;;  %v823_v60 = vmul.f32 %v7179_v14, %v751_v12  ;;  %1923 = vmatpush.bf16.msrb.mxu2 %v6668_v15 }
 0x13b   : > { %v1056_v39 = vpop.permute.xlu1 %1055  ;;  %v1051_v44 = vpop.permute.xlu0 %1050  ;;  %v1097_v56 = vmul.f32 %v7402_v19, %v881_v16  ;;  %v745_v19 = vld [vmem:[%s6832_s8 + $0xde] sm:$0xff] }
 0x13c   : > { %v1109_v50 = vmul.f32 %v1056_v39, %v893_v49  ;;  %v1108_v59 = vmul.f32 %v1051_v44, %v892_v4  ;;  %v283_v49 = vld [vmem:[%s6832_s8 + $0xd] sm:$0xff]  ;;  %v1103_v4 = vmul.f32 %v7479_v42, %v887_v61  ;;  %v859_v28 = vadd.f32 %v7199_v22, %v823_v60  ;;  %v282_v42 = vld [vmem:[%s6832_s8 + $0x5] sm:$0xff]  ;;  %v6665_v16 = vld [vmem:[%s11145_s1 + $0x98] sm:$0xff] }
 0x13d   : > { %v358_v29 = vmul.f32 %v7179_v14, %v283_v49  ;;  %v1123_v44 = vpack.c.bf16 %v1097_v56, %v1096_v33  ;;  %v6664_v56 = vld [vmem:[%s11145_s1 + $0x90] sm:$0xff] }
 0x13e   : > { %v1129_v6 = vpack.c.bf16 %v1109_v50, %v1108_v59  ;;  %1924 = vmatpush.bf16.msrb.mxu2 %v6667_v7  ;;  %v895_v39 = vmax.f32 %v859_v28, 0.0  ;;  %v1126_v12 = vpack.c.bf16 %v1103_v4, %v1102_v0  ;;  %v357_v50 = vmul.f32 %v7179_v14, %v282_v42  ;;  %v6663_v28 = vld [vmem:[%s11145_s1 + $0x88] sm:$0xff] }
 0x13f   : > { %v816_v59 = vmul.f32 %v7179_v14, %v744_v45  ;;  %v397_v11 = vadd.f32 %v7199_v22, %v358_v29 }
 0x140   : > { %1280 = vmatmul.bf16.vlgmr.msra.gmra.mxu3 %v1129_v6  ;;  %v752_v6 = vld [vmem:[%s6832_s8 + $0x116] sm:$0xff]  ;;  %v396_v7 = vadd.f32 %v7199_v22, %v357_v50  ;;  %v747_v50 = vld [vmem:[%s6832_s8 + $0xee] sm:$0xff] }
 0x141   : > { %2264 = vperm.xlu2 %6756, %v7217_v32   ;;  %2259 = vperm.xlu1 %6755, %v7222_v36   ;;  %v858_v32 = vadd.f32 %v7199_v22, %v822_v35  ;;  %v6666_v36 = vld [vmem:[%s11145_s1 + $0xa0] sm:$0xff]  ;;  %v433_v33 = vmax.f32 %v397_v11, 0.0  ;;  %v824_v4 = vmul.f32 %v7179_v14, %v752_v6 }
 0x142   : > { %2254 = vperm.xlu0 %6754, %v7172_v8   ;;  %v7566_v63 = vpop.permute.xlu2 %1665  ;;  %v817_v8 = vmul.f32 %v7179_v14, %v745_v19  ;;  %1925 = vmatpush.bf16.msrb.mxu2 %v6666_v36  ;;  %v432_v19 = vmax.f32 %v396_v7, 0.0 }
 0x143   : > { %v7570_v30 = vpop.permute.xlu1 %1070  ;;  %v1066_v26 = vpop.permute.xlu0 %1065  ;;  %v894_v15 = vmax.f32 %v858_v32, 0.0  ;;  %v285_v32 = vld [vmem:[%s6832_s8 + $0x1d] sm:$0xff]  ;;  %v649_v36 = vmul.f32 %v7005_v58, %v433_v33  ;;  %v860_v29 = vadd.f32 %v7199_v22, %v824_v4 }
 0x144   : > { %v853_v18 = vadd.f32 %v7199_v22, %v817_v8  ;;  %v1111_v61 = vmul.f32 %v1066_v26, %v895_v39  ;;  %v746_v8 = vld [vmem:[%s6832_s8 + $0xe6] sm:$0xff] }
 0x146   : > { %1926 = vmatpush.bf16.msrb.mxu2 %v6665_v16  ;;  %v889_v49 = vmax.f32 %v853_v18, 0.0  ;;  %v896_v16 = vmax.f32 %v860_v29, 0.0 }
 0x148   : > { %1250 = vmatmul.bf16.gmra.mxu1 %v1123_v44  ;;  %1265 = vmatmul.bf16.gmra.mxu2 %v1126_v12  ;;  %v1105_v42 = vmul.f32 %v7523_v62, %v889_v49  ;;  %v6662_v62 = vld [vmem:[%s11145_s1 + $0x80] sm:$0xff]  ;;  %v284_v12 = vld [vmem:[%s6832_s8 + $0x15] sm:$0xff]  ;;  %v1112_v7 = vmul.f32 %v7570_v30, %v896_v16 }
 0x149   : > { %2279 = vperm.xlu2 %6756, %v7237_v13   ;;  %2274 = vperm.xlu1 %6755, %v7242_v20   ;;  %v852_v13 = vadd.f32 %v7199_v22, %v816_v59  ;;  %v1110_v20 = vmul.f32 %v7437_v3, %v894_v15  ;;  %v818_v15 = vmul.f32 %v7179_v14, %v746_v8 }
 0x14a   : > { %2269 = vperm.xlu0 %6754, %v7212_v31   ;;  %v7590_v23 = vpop.permute.xlu2 %1680  ;;  %v753_v31 = vld [vmem:[%s6832_s8 + $0x11e] sm:$0xff]  ;;  %1927 = vmatpush.bf16.msrb.mxu2 %v6664_v56 }
 0x14b   : > { %v7593_v60 = vpop.permute.xlu1 %1630  ;;  %v7595_v35 = vpop.permute.xlu0 %1625  ;;  %v1130_v0 = vpack.c.bf16 %v1111_v61, %v1110_v20  ;;  %v888_v26 = vmax.f32 %v852_v13, 0.0  ;;  %v825_v3 = vmul.f32 %v7179_v14, %v753_v31  ;;  %v854_v6 = vadd.f32 %v7199_v22, %v818_v15  ;;  %v6677_v15 = vld [vmem:[%s11145_s1 + $0xf8] sm:$0xff] }
 0x14c   : > { %2536 = vmatpush.bf16.msrb.mxu3 %v6677_v15  ;;  %v291_v15 = vld [vmem:[%s6832_s8 + $0x4d] sm:$0xff] }
 0x14d   : > { %v1104_v44 = vmul.f32 %v7363_v47, %v888_v26  ;;  %v861_v58 = vadd.f32 %v7199_v22, %v825_v3  ;;  %v819_v47 = vmul.f32 %v7179_v14, %v747_v50  ;;  %v890_v30 = vmax.f32 %v854_v6, 0.0  ;;  %v1444_v3 = vld [vmem:[%s6832_s8 + $0xf] sm:$0xff] }
 0x14e   : > { %1928 = vmatpush.bf16.msrb.mxu2 %v6663_v28  ;;  %v287_v28 = vld [vmem:[%s6832_s8 + $0x2d] sm:$0xff] }
 0x14f   : > { %v1127_v11 = vpack.c.bf16 %v1105_v42, %v1104_v44  ;;  %v897_v18 = vmax.f32 %v861_v58, 0.0  ;;  %v1106_v26 = vmul.f32 %v7521_v5, %v890_v30  ;;  %v1516_v5 = vmul.f32 %v7179_v14, %v1444_v3  ;;  %v11269_v3 = vld [vmem:[#allocation34_spill] sm:$0xff] }
 0x150   : > { %1285 = vmatmul.bf16.gmra.mxu3 %v1130_v0  ;;  %v286_v0 = vld [vmem:[%s6832_s8 + $0x25] sm:$0xff] }
 0x151   : > { %2294 = vperm.xlu2 %6756, %v7263_v9   ;;  %2289 = vperm.xlu1 %6755, %v7268_v21   ;;  %v648_v21 = vmul.f32 %v6990_v52, %v432_v19  ;;  %v359_v52 = vmul.f32 %v7179_v14, %v284_v12  ;;  %v1113_v31 = vmul.f32 %v7477_v41, %v897_v18 }
 0x152   : > { %2284 = vperm.xlu0 %6754, %v7232_v1   ;;  %v7616_v45 = vpop.permute.xlu2 %1695  ;;  %v360_v1 = vmul.f32 %v7179_v14, %v285_v32  ;;  %1929 = vmatpush.bf16.msrb.mxu2 %v6662_v62  ;;  %v1443_v32 = vld [vmem:[%s6832_s8 + $0x7] sm:$0xff]  ;;  %v361_v29 = vmul.f32 %v7179_v14, %v286_v0  ;;  %v11268_v0 = vld [vmem:[#allocation37_spill] sm:$0xff] }
 0x153   : > { %v7619_v39 = vpop.permute.xlu1 %1645  ;;  %v7621_v9 = vpop.permute.xlu0 %1640  ;;  %v684_v59 = vpack.c.bf16 %v649_v36, %v648_v21  ;;  %v1131_v49 = vpack.c.bf16 %v1113_v31, %v1112_v7  ;;  %v288_v7 = vld [vmem:[%s6832_s8 + $0x35] sm:$0xff] }
 0x154   : > { %v399_v61 = vadd.f32 %v7199_v22, %v360_v1  ;;  %v400_v44 = vadd.f32 %v7199_v22, %v361_v29 }
 0x156   : > { %v435_v33 = vmax.f32 %v399_v61, 0.0  ;;  %v436_v50 = vmax.f32 %v400_v44, 0.0  ;;  %v11266_v61 = vld [vmem:[#allocation33_spill] sm:$0xff] }
 0x158   : > { %1270 = vmatmul.bf16.gmra.mxu2 %v1127_v11  ;;  %1352 = vmatmul.bf16.vlgmr.msrb.gmra.mxu1 %v684_v59  ;;  %v651_v19 = vmul.f32 %v7003_v57, %v435_v33  ;;  %v362_v57 = vmul.f32 %v7179_v14, %v287_v28  ;;  %v652_v16 = vmul.f32 %v6953_v38, %v436_v50  ;;  %v11271_v50 = vld [vmem:[#allocation8_spill] sm:$0xff] }
 0x159   : > { %2309 = vperm.xlu2 %6756, %v7295_v17   ;;  %2304 = vperm.xlu1 %6755, %v7300_v43   ;;  %v398_v17 = vadd.f32 %v7199_v22, %v359_v52  ;;  %v855_v43 = vadd.f32 %v7199_v22, %v819_v47  ;;  %v289_v52 = vld [vmem:[%s6832_s8 + $0x3d] sm:$0xff] }
 0x15a   : > { %2299 = vperm.xlu0 %6754, %v7257_v48   ;;  %v7641_v13 = vpop.permute.xlu2 %1710 }
 0x15b   : > { %v7643_v20 = vpop.permute.xlu1 %1660  ;;  %v7645_v56 = vpop.permute.xlu0 %1655  ;;  %v434_v4 = vmax.f32 %v398_v17, 0.0  ;;  %v891_v48 = vmax.f32 %v855_v43, 0.0  ;;  %v1446_v17 = vld [vmem:[%s6832_s8 + $0x1f] sm:$0xff] }
 0x15c   : > { %v1518_v33 = vmul.f32 %v7179_v14, %v1446_v17 }
 0x160   : > { %1290 = vmatmul.bf16.gmra.mxu3 %v1131_v49 }
 0x161   : > { %2324 = vperm.xlu2 %6756, %v7322_v34   ;;  %2319 = vperm.xlu1 %6755, %v7327_v54   ;;  %v650_v34 = vmul.f32 %v6988_v51, %v434_v4  ;;  %v1107_v54 = vmul.f32 %v7400_v40, %v891_v48  ;;  %v401_v51 = vadd.f32 %v7199_v22, %v362_v57  ;;  %v6675_v4 = vld [vmem:[%s11145_s1 + $0xe8] sm:$0xff]  ;;  %v11267_v48 = vld [vmem:[#allocation36_spill] sm:$0xff]  ;;  %v6674_v57 = vld [vmem:[%s11145_s1 + $0xe0] sm:$0xff] }
 0x162   : > { %2314 = vperm.xlu0 %6754, %v7289_v53   ;;  %v7657_v41 = vpop.permute.xlu2 %1725  ;;  %v1515_v53 = vmul.f32 %v7179_v14, %v1443_v32  ;;  %v1552_v40 = vadd.f32 %v7199_v22, %v1516_v5 }
 0x163   : > { %v7661_v36 = vpop.permute.xlu1 %1675  ;;  %v7663_v42 = vpop.permute.xlu0 %1670  ;;  %v1128_v8 = vpack.c.bf16 %v1107_v54, %v1106_v26  ;;  %v685_v21 = vpack.c.bf16 %v651_v19, %v650_v34  ;;  %v7719_v26 = vadd.f32 %v7199_v22, %v1518_v33  ;;  %v11276_v33 = vld [vmem:[#allocation41_spill] sm:$0xff] }
 0x164   : > { %v1551_v58 = vadd.f32 %v7199_v22, %v1515_v53 }
 0x166   : > { %v1587_v59 = vmax.f32 %v1551_v58, 0.0 }
 0x168   : > { %1275 = vmatmul.bf16.gmra.mxu2 %v1128_v8  ;;  %1357 = vmatmul.bf16.gmra.mxu1 %v685_v21  ;;  %v1803_v18 = vmul.f32 %v7595_v35, %v1587_v59  ;;  %v363_v35 = vmul.f32 %v7179_v14, %v288_v7  ;;  %v1590_v8 = vmax.f32 %v7719_v26, 0.0  ;;  %v6673_v21 = vld [vmem:[%s11145_s1 + $0xd8] sm:$0xff]  ;;  %v11272_v59 = vld [vmem:[#allocation35_spill] sm:$0xff]  ;;  %v366_v7 = vmul.f32 %v7179_v14, %v291_v15 }
 0x169   : > { %2339 = vperm.xlu2 %6756, %v7351_v24   ;;  %2334 = vperm.xlu1 %6755, %v7356_v2   ;;  %v437_v24 = vmax.f32 %v401_v51, 0.0  ;;  %v1588_v2 = vmax.f32 %v1552_v40, 0.0  ;;  %v290_v51 = vld [vmem:[%s6832_s8 + $0x45] sm:$0xff] }
 0x16a   : > { %2329 = vperm.xlu0 %6754, %v7317_v25   ;;  %v7678_v62 = vpop.permute.xlu2 %1740  ;;  %v11265_v25 = vld [vmem:[#allocation2_spill] sm:$0xff]  ;;  %v402_v19 = vadd.f32 %v7199_v22, %v363_v35  ;;  %v11270_v40 = vld [vmem:[#allocation7_spill] sm:$0xff] }
 0x16b   : > { %v7680_v12 = vpop.permute.xlu1 %1690  ;;  %v7682_v1 = vpop.permute.xlu0 %1685  ;;  %v653_v11 = vmul.f32 %v11265_v25, %v437_v24  ;;  %v1804_v47 = vmul.f32 %v7593_v60, %v1588_v2  ;;  %v1445_v60 = vld [vmem:[%s6832_s8 + $0x17] sm:$0xff]  ;;  %v1806_v2 = vmul.f32 %v7621_v9, %v1590_v8  ;;  %v1448_v9 = vld [vmem:[%s6832_s8 + $0x2f] sm:$0xff] }
 0x16c   : > { %v1517_v49 = vmul.f32 %v7179_v14, %v1445_v60  ;;  %v438_v53 = vmax.f32 %v402_v19, 0.0  ;;  %v1520_v60 = vmul.f32 %v7179_v14, %v1448_v9  ;;  %v6671_v35 = vld [vmem:[%s11145_s1 + $0xc8] sm:$0xff] }
 0x16d   : > { %v1839_v31 = vpack.c.bf16 %v1804_v47, %v1803_v18  ;;  %v686_v30 = vpack.c.bf16 %v653_v11, %v652_v16  ;;  %v1447_v16 = vld [vmem:[%s6832_s8 + $0x27] sm:$0xff]  ;;  %v6672_v47 = vld [vmem:[%s11145_s1 + $0xd0] sm:$0xff]  ;;  %v365_v18 = vmul.f32 %v7179_v14, %v290_v51 }
 0x16e   : > { %v1553_v29 = vadd.f32 %v7199_v22, %v1517_v49  ;;  %v654_v24 = vmul.f32 %v11271_v50, %v438_v53  ;;  %v11274_v11 = vld [vmem:[#allocation42_spill] sm:$0xff]  ;;  %v1519_v17 = vmul.f32 %v7179_v14, %v1447_v16  ;;  %v405_v49 = vadd.f32 %v7199_v22, %v366_v7  ;;  %v11279_v51 = vld [vmem:[#allocation3_spill] sm:$0xff]  ;;  %v292_v50 = vld [vmem:[%s6832_s8 + $0x55] sm:$0xff] }
 0x16f   : > { %v11281_v15 = vld [vmem:[#allocation39_spill] sm:$0xff]  ;;  %v1450_v16 = vld [vmem:[%s6832_s8 + $0x3f] sm:$0xff] }
 0x170   : > { %v1589_v44 = vmax.f32 %v1553_v29, 0.0  ;;  %v7814_v7 = vld [vmem:[%s11147_s3] ss:$0 sm:$0xff]  ;;  %v2717_v26 = vld [vmem:[%s11146_s2 + $0x68] sm:$0xff] }
 0x171   : > { %2354 = vperm.xlu2 %6756, %v7380_v27   ;;  %2349 = vperm.xlu1 %6755, %v7385_v10   ;;  %v6676_v27 = vld [vmem:[%s11145_s1 + $0xf0] sm:$0xff]  ;;  %v364_v10 = vmul.f32 %v7179_v14, %v289_v52 }
 0x172   : > { %2344 = vperm.xlu0 %6754, %v11266_v61   ;;  %v7695_v6 = vpop.permute.xlu2 %1755  ;;  %2537 = vmatpush.bf16.msrb.mxu3 %v6676_v27 }
 0x173   : > { %v7699_v38 = vpop.permute.xlu1 %1705  ;;  %v7701_v43 = vpop.permute.xlu0 %1700  ;;  %v403_v28 = vadd.f32 %v7199_v22, %v364_v10 }
 0x175   : > { %v439_v5 = vmax.f32 %v403_v28, 0.0  ;;  %v1556_v28 = vadd.f32 %v7199_v22, %v1520_v60 }
 0x176   : > { %2538 = vmatpush.bf16.msrb.mxu3 %v6675_v4  ;;  %v7772_v4 = vadd.f32 %v7199_v22, %v1519_v17 }
 0x177   : > { %v655_v58 = vmul.f32 %v11270_v40, %v439_v5  ;;  %v441_v5 = vmax.f32 %v405_v49, 0.0  ;;  %v7834_v49 = vld [vmem:[%s11148_s4] ss:$0 sm:$0xff] }
 0x178   : > { %1362 = vmatmul.bf16.gmra.mxu1 %v686_v30  ;;  %1930 = vmatmul.bf16.vlgmr.msrb.gmra.mxu2 %v1839_v31  ;;  %v11275_v31 = vld [vmem:[#allocation40_spill] sm:$0xff]  ;;  %v404_v30 = vadd.f32 %v7199_v22, %v365_v18  ;;  %v11163_v53 = vmax.f32 %v7772_v4, 0.0  ;;  %v2127_v22 = vld [vmem:[%s11146_s2 + $0x127] sm:$0xff] }
 0x179   : > { %2369 = vperm.xlu2 %6756, %v11267_v48   ;;  %2364 = vperm.xlu1 %6755, %v11268_v0   ;;  %v687_v27 = vpack.c.bf16 %v655_v58, %v654_v24  ;;  %v11277_v48 = vld [vmem:[#allocation38_spill] sm:$0xff]  ;;  %v11280_v24 = vld [vmem:[#allocation11_spill] sm:$0xff] }
 0x17a   : > { %2359 = vperm.xlu0 %6754, %v11269_v3   ;;  %v7722_v32 = vpop.permute.xlu2 %1770  ;;  %2539 = vmatpush.bf16.msrb.mxu3 %v6674_v57  ;;  %v6670_v3 = vld [vmem:[%s11145_s1 + $0xc0] sm:$0xff]  ;;  %v440_v57 = vmax.f32 %v404_v30, 0.0  ;;  %v2707_v30 = vld [vmem:[%s11146_s2 + $0x18] sm:$0xff] }
 0x17b   : > { %v7724_v34 = vpop.permute.xlu1 %1720  ;;  %v7726_v54 = vpop.permute.xlu0 %1715  ;;  %v293_v58 = vld [vmem:[%s6832_s8 + $0x5d] sm:$0xff] }
 0x17c   : > { %v656_v40 = vmul.f32 %v11279_v51, %v440_v57  ;;  %v368_v17 = vmul.f32 %v7814_v7, %v293_v58 }
 0x17e   : > { %2540 = vmatpush.bf16.msrb.mxu3 %v6673_v21  ;;  %v2128_v21 = vld [vmem:[%s11146_s2 + $0x12f] sm:$0xff] }
 0x181   : > { %2384 = vperm.xlu2 %6756, %v7459_v46   ;;  %2379 = vperm.xlu1 %6755, %v7464_v37   ;;  %v1805_v37 = vmul.f32 %v11274_v11, %v1589_v44  ;;  %v1592_v44 = vmax.f32 %v1556_v28, 0.0  ;;  %v1449_v11 = vld [vmem:[%s6832_s8 + $0x37] sm:$0xff] }
 0x182   : > { %2374 = vperm.xlu0 %6754, %v11272_v59   ;;  %2541 = vmatpush.bf16.msrb.mxu3 %v6672_v47  ;;  %v1807_v59 = vmul.f32 %v7619_v39, %v11163_v53  ;;  %v367_v39 = vmul.f32 %v7814_v7, %v292_v50  ;;  %v1521_v60 = vmul.f32 %v7814_v7, %v1449_v11  ;;  %v11286_v11 = vld [vmem:[#allocation4_spill] sm:$0xff] }
 0x183   : > { %v7747_v25 = vpop.permute.xlu2 %1785  ;;  %v7749_v46 = vpop.permute.xlu1 %1735  ;;  %v1840_v10 = vpack.c.bf16 %v1806_v2, %v1805_v37  ;;  %v657_v2 = vmul.f32 %v11280_v24, %v441_v5  ;;  %v1808_v18 = vmul.f32 %v7546_v55, %v1592_v44  ;;  %v2709_v55 = vld [vmem:[%s11146_s2 + $0x28] sm:$0xff]  ;;  %v2712_v24 = vld [vmem:[%s11146_s2 + $0x40] sm:$0xff] }
 0x184   : > { %11273 = vst [vmem:[#allocation2_spill] sm:$0xff] %v7747_v25  ;;  %v7752_v52 = vpop.permute.xlu0 %1730  ;;  %v406_v28 = vadd.f32 %v7834_v49, %v367_v39  ;;  %v7842_v57 = vadd.f32 %v7834_v49, %v1521_v60 }
 0x185   : > { %v7759_v61 = vpop.f32.mrf.mxu1 }
 0x186   : > { %2542 = vmatpush.bf16.msrb.mxu3 %v6671_v35  ;;  %v688_v35 = vpack.c.bf16 %v657_v2, %v656_v40  ;;  %v442_v40 = vmax.f32 %v406_v28, 0.0  ;;  %v11162_v50 = vmax.f32 %v7842_v57, 0.0  ;;  %v2711_v2 = vld [vmem:[%s11146_s2 + $0x38] sm:$0xff] }
 0x188   : > { %1367 = vmatmul.bf16.gmra.mxu1 %v687_v27  ;;  %1935 = vmatmul.bf16.gmra.mxu2 %v1840_v10  ;;  %v1522_v10 = vmul.f32 %v7814_v7, %v1450_v16 }
 0x189   : > { %2399 = vperm.xlu2 %6756, %v11275_v31   ;;  %2394 = vperm.xlu1 %6755, %v11276_v33   ;;  %v1841_v31 = vpack.c.bf16 %v1808_v18, %v1807_v59  ;;  %v2708_v33 = vld [vmem:[%s11146_s2 + $0x20] sm:$0xff]  ;;  %v2057_v59 = vld [vmem:[%s6832_s8 + $0x17] sm:$0xff] }
 0x18a   : > { %2389 = vperm.xlu0 %6754, %v11277_v48   ;;  %2543 = vmatpush.bf16.msrb.mxu3 %v6670_v3  ;;  %v407_v48 = vadd.f32 %v7834_v49, %v368_v17  ;;  %v7839_v3 = vadd.f32 %v7834_v49, %v1522_v10  ;;  %v2129_v16 = vmul.f32 %v7814_v7, %v2057_v59  ;;  %v11287_v17 = vld [vmem:[#allocation10_spill] sm:$0xff]  ;;  %v295_v10 = vld [vmem:[%s6832_s8 + $0x6d] sm:$0xff] }
 0x18b   : > { %v7775_v14 = vpop.permute.xlu2 %1800  ;;  %v7777_v0 = vpop.permute.xlu1 %1750  ;;  %v658_v39 = vmul.f32 %v11287_v17, %v442_v40  ;;  %v370_v28 = vmul.f32 %v7814_v7, %v295_v10  ;;  %v2713_v17 = vld [vmem:[%s11146_s2 + $0x48] sm:$0xff] }
 0x18c   : > { %11278 = vst [vmem:[#allocation33_spill] sm:$0xff] %v7775_v14  ;;  %v7780_v19 = vpop.permute.xlu0 %1745  ;;  %v443_v44 = vmax.f32 %v407_v48, 0.0  ;;  %v11161_v58 = vmax.f32 %v7839_v3, 0.0 }
 0x18d   : > { %v7785_v29 = vpop.f32.mrf.mxu1 }
 0x18e   : > { %v659_v18 = vmul.f32 %v11286_v11, %v443_v44  ;;  %v1810_v60 = vmul.f32 %v7643_v20, %v11161_v58  ;;  %v1451_v44 = vld [vmem:[%s6832_s8 + $0x47] sm:$0xff]  ;;  %v2165_v20 = vadd.f32 %v7834_v49, %v2129_v16  ;;  %v2714_v11 = vld [vmem:[%s11146_s2 + $0x50] sm:$0xff] }
 0x18f   : > { %v1523_v16 = vmul.f32 %v7814_v7, %v1451_v44 }
 0x191   : > { %2414 = vperm.xlu2 %6756, %v2128_v21   ;;  %2409 = vperm.xlu1 %6755, %v2127_v22  }
 0x192   : > { %2404 = vperm.xlu0 %6754, %v11281_v15   ;;  %v2710_v15 = vld [vmem:[%s11146_s2 + $0x30] sm:$0xff] }
 0x193   : > { %v7804_v37 = vpop.permute.xlu2 %2249  ;;  %v7806_v47 = vpop.permute.xlu1 %1765 }
 0x194   : > { %v7809_v9 = vpop.permute.xlu0 %1760 }
 0x195   : > { %v7818_v27 = vpop.f32.mrf.mxu1 }
 0x196   : > { %11282 = vst [vmem:[#allocation36_spill] sm:$0xff] %v7818_v27 }
 0x198   : > { %1372 = vmatmul.bf16.gmra.mxu1 %v688_v35  ;;  %1940 = vmatmul.bf16.gmra.mxu2 %v1841_v31  ;;  %v1809_v35 = vmul.f32 %v7645_v56, %v11162_v50  ;;  %v294_v31 = vld [vmem:[%s6832_s8 + $0x65] sm:$0xff]  ;;  %v1453_v50 = vld [vmem:[%s6832_s8 + $0x57] sm:$0xff] }
 0x199   : > { %2863 = vperm.xlu2 %6756, %v2709_v55   ;;  %2858 = vperm.xlu1 %6755, %v2708_v33   ;;  %v1452_v55 = vld [vmem:[%s6832_s8 + $0x4f] sm:$0xff] }
 0x19a   : > { %2853 = vperm.xlu0 %6754, %v2707_v30   ;;  %v1524_v56 = vmul.f32 %v7814_v7, %v1452_v55  ;;  %v1842_v59 = vpack.c.bf16 %v1810_v60, %v1809_v35  ;;  %v1559_v55 = vadd.f32 %v7834_v49, %v1523_v16 }
 0x19b   : > { %v7844_v5 = vpop.permute.xlu2 %2264  ;;  %v7846_v21 = vpop.permute.xlu1 %1780 }
 0x19c   : > { %11283 = vst [vmem:[#allocation37_spill] sm:$0xff] %v7846_v21  ;;  %v7848_v22 = vpop.permute.xlu0 %1775  ;;  %v7902_v60 = vadd.f32 %v7834_v49, %v1524_v56 }
 0x19d   : > { %11284 = vst [vmem:[#allocation34_spill] sm:$0xff] %v7848_v22  ;;  %v7850_v51 = vpop.f32.mrf.mxu1 }
 0x19e   : > { %11285 = vst [vmem:[#allocation7_spill] sm:$0xff] %v7850_v51 }
 0x1a1   : > { %2878 = vperm.xlu2 %6756, %v2712_v24   ;;  %2873 = vperm.xlu1 %6755, %v2711_v2   ;;  %v369_v24 = vmul.f32 %v7814_v7, %v294_v31  ;;  %v689_v2 = vpack.c.bf16 %v659_v18, %v658_v39  ;;  %v2201_v18 = vmax.f32 %v2165_v20, 0.0  ;;  %v409_v39 = vadd.f32 %v7834_v49, %v370_v28  ;;  %v2060_v20 = vld [vmem:[%s6832_s8 + $0x2f] sm:$0xff] }
 0x1a2   : > { %2868 = vperm.xlu0 %6754, %v2710_v15   ;;  %v2715_v15 = vld [vmem:[%s11146_s2 + $0x58] sm:$0xff] }
 0x1a3   : > { %v7876_v33 = vpop.permute.xlu2 %2279  ;;  %v7878_v30 = vpop.permute.xlu1 %1795  ;;  %v408_v10 = vadd.f32 %v7834_v49, %v369_v24  ;;  %v445_v24 = vmax.f32 %v409_v39, 0.0  ;;  %v1595_v39 = vmax.f32 %v1559_v55, 0.0 }
 0x1a4   : > { %11288 = vst [vmem:[#allocation8_spill] sm:$0xff] %v7878_v30  ;;  %v7880_v48 = vpop.permute.xlu0 %1790 }
 0x1a5   : > { %11289 = vst [vmem:[#allocation35_spill] sm:$0xff] %v7880_v48  ;;  %v7884_v40 = vpop.f32.mrf.mxu1  ;;  %v444_v56 = vmax.f32 %v408_v10, 0.0  ;;  %v11293_v10 = vld [vmem:[#allocation13_spill] sm:$0xff]  ;;  %v2738_v48 = vld [vmem:[%s11146_s2 + $0x110] sm:$0xff] }
 0x1a6   : > { %11290 = vst [vmem:[#allocation42_spill] sm:$0xff] %v7884_v40  ;;  %v1462_v40 = vld [vmem:[%s6832_s8 + $0x9f] sm:$0xff] }
 0x1a7   : > { %v1534_v21 = vmul.f32 %v7814_v7, %v1462_v40 }
 0x1a8   : > { %1377 = vmatmul.bf16.gmra.mxu1 %v689_v2  ;;  %1945 = vmatmul.bf16.gmra.mxu2 %v1842_v59 }
 0x1a9   : > { %2893 = vperm.xlu2 %6756, %v2715_v15   ;;  %2888 = vperm.xlu1 %6755, %v2714_v11   ;;  %v11164_v11 = vmax.f32 %v7902_v60, 0.0 }
 0x1aa   : > { %2883 = vperm.xlu0 %6754, %v2713_v17   ;;  %v2718_v17 = vld [vmem:[%s11146_s2 + $0x70] sm:$0xff] }
 0x1ab   : > { %v7904_v35 = vpop.permute.xlu2 %2294  ;;  %v2245_v31 = vpop.permute.xlu1 %2244 }
 0x1ac   : > { %v2418_v44 = vmul.f32 %v2245_v31, %v1590_v8  ;;  %v2240_v2 = vpop.permute.xlu0 %2239  ;;  %v7909_v59 = vpop.f32.mrf.mxu2  ;;  %v2716_v8 = vld [vmem:[%s11146_s2 + $0x60] sm:$0xff]  ;;  %v661_v31 = vmul.f32 %v11293_v10, %v445_v24 }
 0x1ad   : > { %11291 = vst [vmem:[#allocation40_spill] sm:$0xff] %v7909_v59  ;;  %v2417_v15 = vmul.f32 %v2240_v2, %v2201_v18  ;;  %v7912_v28 = vpop.f32.mrf.mxu1  ;;  %v2132_v18 = vmul.f32 %v7814_v7, %v2060_v20  ;;  %v11294_v2 = vld [vmem:[#allocation14_spill] sm:$0xff] }
 0x1ae   : > { %11292 = vst [vmem:[#allocation41_spill] sm:$0xff] %v7912_v28  ;;  %v660_v58 = vmul.f32 %v11294_v2, %v444_v56  ;;  %v296_v56 = vld [vmem:[%s6832_s8 + $0x75] sm:$0xff]  ;;  %v1454_v10 = vld [vmem:[%s6832_s8 + $0x5f] sm:$0xff]  ;;  %v2721_v28 = vld [vmem:[%s11146_s2 + $0x88] sm:$0xff] }
 0x1af   : > { %v2453_v16 = vpack.c.bf16 %v2418_v44, %v2417_v15  ;;  %v1812_v44 = vmul.f32 %v7663_v42, %v11164_v11  ;;  %v297_v15 = vld [vmem:[%s6832_s8 + $0x7d] sm:$0xff]  ;;  %v2168_v55 = vadd.f32 %v7834_v49, %v2132_v18 }
 0x1b0   : > { %v372_v42 = vmul.f32 %v7814_v7, %v297_v15  ;;  %v1526_v15 = vmul.f32 %v7814_v7, %v1454_v10 }
 0x1b1   : > { %2544 = vmatmul.bf16.vlgmr.msrb.gmra.mxu3 %v2453_v16  ;;  %2908 = vperm.xlu2 %6756, %v2718_v17   ;;  %v1811_v17 = vmul.f32 %v7566_v63, %v1595_v39  ;;  %v2204_v18 = vmax.f32 %v2168_v55, 0.0  ;;  %v2720_v63 = vld [vmem:[%s11146_s2 + $0x80] sm:$0xff]  ;;  %v2719_v39 = vld [vmem:[%s11146_s2 + $0x78] sm:$0xff] }
 0x1b2   : > { %2903 = vperm.xlu1 %6755, %v2717_v26   ;;  %2898 = vperm.xlu0 %6754, %v2716_v8   ;;  %v1525_v26 = vmul.f32 %v7814_v7, %v1453_v50  ;;  %v690_v8 = vpack.c.bf16 %v661_v31, %v660_v58  ;;  %v411_v58 = vadd.f32 %v7834_v49, %v372_v42 }
 0x1b3   : > { %v7932_v53 = vpop.permute.xlu2 %2309  ;;  %v7934_v20 = vpop.permute.xlu1 %2259  ;;  %v1843_v11 = vpack.c.bf16 %v1812_v44, %v1811_v17 }
 0x1b4   : > { %v2255_v16 = vpop.permute.xlu0 %2254  ;;  %v7938_v24 = vpop.f32.mrf.mxu2  ;;  %v7959_v50 = vadd.f32 %v7834_v49, %v1525_v26 }
 0x1b5   : > { %11295 = vst [vmem:[#allocation38_spill] sm:$0xff] %v7938_v24  ;;  %v7942_v2 = vpop.f32.mrf.mxu1  ;;  %v371_v24 = vmul.f32 %v7814_v7, %v296_v56  ;;  %v2420_v31 = vmul.f32 %v2255_v16, %v2204_v18  ;;  %v1562_v56 = vadd.f32 %v7834_v49, %v1526_v15  ;;  %v447_v16 = vmax.f32 %v411_v58, 0.0  ;;  %v298_v15 = vld [vmem:[%s6832_s8 + $0x85] sm:$0xff]  ;;  %v11300_v58 = vld [vmem:[#allocation17_spill] sm:$0xff] }
 0x1b6   : > { %11296 = vst [vmem:[#allocation3_spill] sm:$0xff] %v7942_v2 }
 0x1b7   : > { %v410_v17 = vadd.f32 %v7834_v49, %v371_v24  ;;  %v2724_v24 = vld [vmem:[%s11146_s2 + $0xa0] sm:$0xff] }
 0x1b8   : > { %1382 = vmatmul.bf16.gmra.mxu1 %v690_v8  ;;  %1950 = vmatmul.bf16.gmra.mxu2 %v1843_v11  ;;  %v11298_v11 = vmax.f32 %v7772_v4, 0.0  ;;  %v11165_v8 = vmax.f32 %v7959_v50, 0.0  ;;  %v2722_v4 = vld [vmem:[%s11146_s2 + $0x90] sm:$0xff] }
 0x1b9   : > { %2923 = vperm.xlu2 %6756, %v2721_v28  }
 0x1ba   : > { %2918 = vperm.xlu1 %6755, %v2720_v63   ;;  %2913 = vperm.xlu0 %6754, %v2719_v39   ;;  %v2419_v42 = vmul.f32 %v7804_v37, %v11298_v11  ;;  %v2723_v63 = vld [vmem:[%s11146_s2 + $0x98] sm:$0xff]  ;;  %v446_v37 = vmax.f32 %v410_v17, 0.0  ;;  %v1598_v39 = vmax.f32 %v1562_v56, 0.0  ;;  %v663_v11 = vmul.f32 %v11300_v58, %v447_v16  ;;  %v299_v16 = vld [vmem:[%s6832_s8 + $0x8d] sm:$0xff] }
 0x1bb   : > { %v7961_v44 = vpop.permute.xlu2 %2324  ;;  %v7963_v55 = vpop.permute.xlu1 %2274  ;;  %v11301_v17 = vld [vmem:[#allocation5_spill] sm:$0xff]  ;;  %v373_v58 = vmul.f32 %v7814_v7, %v298_v15  ;;  %v374_v15 = vmul.f32 %v7814_v7, %v299_v16  ;;  %v2063_v16 = vld [vmem:[%s6832_s8 + $0x47] sm:$0xff] }
 0x1bc   : > { %v7967_v10 = vpop.permute.xlu0 %2269  ;;  %v7969_v28 = vpop.f32.mrf.mxu2  ;;  %v2454_v18 = vpack.c.bf16 %v2420_v31, %v2419_v42  ;;  %v1813_v31 = vmul.f32 %v7661_v36, %v11165_v8  ;;  %v1456_v42 = vld [vmem:[%s6832_s8 + $0x6f] sm:$0xff]  ;;  %v662_v56 = vmul.f32 %v11301_v17, %v446_v37  ;;  %v2727_v37 = vld [vmem:[%s11146_s2 + $0xb8] sm:$0xff] }
 0x1bd   : > { %11297 = vst [vmem:[#allocation11_spill] sm:$0xff] %v7969_v28  ;;  %v7974_v26 = vpop.f32.mrf.mxu1 }
 0x1be   : > { %11299 = vst [vmem:[#allocation39_spill] sm:$0xff] %v7974_v26  ;;  %v1455_v26 = vld [vmem:[%s6832_s8 + $0x67] sm:$0xff] }
 0x1bf   : > { %v1527_v8 = vmul.f32 %v7814_v7, %v1455_v26  ;;  %v412_v26 = vadd.f32 %v7834_v49, %v373_v58 }
 0x1c1   : > { %2549 = vmatmul.bf16.gmra.mxu3 %v2454_v18  ;;  %2938 = vperm.xlu2 %6756, %v2724_v24   ;;  %v1814_v18 = vmul.f32 %v7590_v23, %v1598_v39  ;;  %v2726_v23 = vld [vmem:[%s11146_s2 + $0xb0] sm:$0xff]  ;;  %v2725_v39 = vld [vmem:[%s11146_s2 + $0xa8] sm:$0xff] }
 0x1c2   : > { %2933 = vperm.xlu1 %6755, %v2723_v63   ;;  %2928 = vperm.xlu0 %6754, %v2722_v4   ;;  %v691_v63 = vpack.c.bf16 %v663_v11, %v662_v56  ;;  %v1528_v4 = vmul.f32 %v7814_v7, %v1456_v42  ;;  %v11304_v42 = vmax.f32 %v7842_v57, 0.0  ;;  %v448_v57 = vmax.f32 %v412_v26, 0.0 }
 0x1c3   : > { %v7993_v51 = vpop.permute.xlu2 %2339  ;;  %v7995_v28 = vpop.permute.xlu1 %2289  ;;  %v1844_v14 = vpack.c.bf16 %v1814_v18, %v1813_v31  ;;  %v8024_v31 = vadd.f32 %v7834_v49, %v1527_v8  ;;  %v11307_v8 = vmax.f32 %v7839_v3, 0.0  ;;  %v2729_v3 = vld [vmem:[%s11146_s2 + $0xc8] sm:$0xff] }
 0x1c4   : > { %v7999_v24 = vpop.permute.xlu0 %2284  ;;  %v8001_v59 = vpop.f32.mrf.mxu2  ;;  %v8021_v11 = vadd.f32 %v7834_v49, %v1528_v4  ;;  %v2421_v17 = vmul.f32 %v7934_v20, %v11304_v42 }
 0x1c5   : > { %11302 = vst [vmem:[#allocation4_spill] sm:$0xff] %v8001_v59  ;;  %v8005_v36 = vpop.f32.mrf.mxu1  ;;  %v2422_v4 = vmul.f32 %v7844_v5, %v11307_v8  ;;  %v2728_v5 = vld [vmem:[%s11146_s2 + $0xc0] sm:$0xff]  ;;  %v6685_v8 = vld [vmem:[%s11145_s1 + $0x138] sm:$0xff]  ;;  %v11311_v59 = vmax.f32 %v8024_v31, 0.0 }
 0x1c6   : > { %11303 = vst [vmem:[#allocation10_spill] sm:$0xff] %v8005_v36  ;;  %3150 = vmatpush.bf16.msrb.mxu0 %v6685_v8 }
 0x1c7   : > { %v2455_v42 = vpack.c.bf16 %v2422_v4, %v2421_v17  ;;  %v11310_v17 = vmax.f32 %v8021_v11, 0.0 }
 0x1c8   : > { %1387 = vmatmul.bf16.gmra.mxu1 %v691_v63  ;;  %1955 = vmatmul.bf16.gmra.mxu2 %v1844_v14  ;;  %v413_v14 = vadd.f32 %v7834_v49, %v374_v15  ;;  %v2135_v15 = vmul.f32 %v7814_v7, %v2063_v16  ;;  %v301_v16 = vld [vmem:[%s6832_s8 + $0x9d] sm:$0xff] }
 0x1c9   : > { %2953 = vperm.xlu2 %6756, %v2727_v37   ;;  %v1816_v4 = vmul.f32 %v7680_v12, %v11310_v17  ;;  %v376_v17 = vmul.f32 %v7814_v7, %v301_v16  ;;  %v2732_v16 = vld [vmem:[%s11146_s2 + $0xe0] sm:$0xff] }
 0x1ca   : > { %2948 = vperm.xlu1 %6755, %v2726_v23   ;;  %2943 = vperm.xlu0 %6754, %v2725_v39   ;;  %v2730_v39 = vld [vmem:[%s11146_s2 + $0xd0] sm:$0xff]  ;;  %v449_v26 = vmax.f32 %v413_v14, 0.0 }
 0x1cb   : > { %v8029_v56 = vpop.permute.xlu2 %2354  ;;  %v8031_v18 = vpop.permute.xlu1 %2304  ;;  %v11309_v23 = vld [vmem:[#allocation16_spill] sm:$0xff] }
 0x1cc   : > { %11305 = vst [vmem:[#allocation13_spill] sm:$0xff] %v8029_v56  ;;  %v8035_v58 = vpop.permute.xlu0 %2299  ;;  %v8037_v63 = vpop.f32.mrf.mxu2  ;;  %v664_v20 = vmul.f32 %v11309_v23, %v448_v57  ;;  %v300_v14 = vld [vmem:[%s6832_s8 + $0x95] sm:$0xff]  ;;  %v11313_v57 = vld [vmem:[#allocation6_spill] sm:$0xff] }
 0x1cd   : > { %11306 = vst [vmem:[#allocation14_spill] sm:$0xff] %v8037_v63  ;;  %v8042_v37 = vpop.f32.mrf.mxu1  ;;  %v665_v23 = vmul.f32 %v11313_v57, %v449_v26  ;;  %v2733_v26 = vld [vmem:[%s11146_s2 + $0xe8] sm:$0xff] }
 0x1ce   : > { %11308 = vst [vmem:[#allocation17_spill] sm:$0xff] %v8042_v37  ;;  %v1815_v37 = vmul.f32 %v7682_v1, %v11311_v59  ;;  %v1457_v1 = vld [vmem:[%s6832_s8 + $0x77] sm:$0xff]  ;;  %v1463_v56 = vld [vmem:[%s6832_s8 + $0xa7] sm:$0xff] }
 0x1d1   : > { %2554 = vmatmul.bf16.gmra.mxu3 %v2455_v42  ;;  %2968 = vperm.xlu2 %6756, %v2730_v39   ;;  %v1458_v39 = vld [vmem:[%s6832_s8 + $0x7f] sm:$0xff]  ;;  %v2171_v42 = vadd.f32 %v7834_v49, %v2135_v15  ;;  %v6684_v15 = vld [vmem:[%s11145_s1 + $0x130] sm:$0xff] }
 0x1d2   : > { %2963 = vperm.xlu1 %6755, %v2729_v3   ;;  %2958 = vperm.xlu0 %6754, %v2728_v5   ;;  %v692_v3 = vpack.c.bf16 %v665_v23, %v664_v20  ;;  %v375_v5 = vmul.f32 %v7814_v7, %v300_v14  ;;  %v1530_v8 = vmul.f32 %v7814_v7, %v1458_v39 }
 0x1d3   : > { %v8070_v63 = vpop.permute.xlu2 %2369  ;;  %v8072_v36 = vpop.permute.xlu1 %2319  ;;  %v2207_v57 = vmax.f32 %v2171_v42, 0.0  ;;  %3151 = vmatpush.bf16.msrb.mxu0 %v6684_v15  ;;  %v1529_v20 = vmul.f32 %v7814_v7, %v1457_v1  ;;  %v11315_v42 = vmax.f32 %v7902_v60, 0.0  ;;  %v6682_v60 = vld [vmem:[%s11145_s1 + $0x120] sm:$0xff] }
 0x1d4   : > { %11312 = vst [vmem:[#allocation5_spill] sm:$0xff] %v8070_v63  ;;  %v8075_v30 = vpop.permute.xlu0 %2314  ;;  %v8077_v12 = vpop.f32.mrf.mxu2  ;;  %v1845_v63 = vpack.c.bf16 %v1816_v4, %v1815_v37  ;;  %v6683_v37 = vld [vmem:[%s11145_s1 + $0x128] sm:$0xff]  ;;  %v415_v4 = vadd.f32 %v7834_v49, %v376_v17  ;;  %v414_v14 = vadd.f32 %v7834_v49, %v375_v5  ;;  %v8104_v39 = vadd.f32 %v7834_v49, %v1530_v8 }
 0x1d5   : > { %11314 = vst [vmem:[#allocation16_spill] sm:$0xff] %v8077_v12  ;;  %v8081_v59 = vpop.f32.mrf.mxu1  ;;  %v2731_v12 = vld [vmem:[%s11146_s2 + $0xd8] sm:$0xff]  ;;  %v2424_v23 = vmul.f32 %v7963_v55, %v11315_v42  ;;  %v8115_v17 = vadd.f32 %v7834_v49, %v1529_v20 }
 0x1d6   : > { %v451_v55 = vmax.f32 %v415_v4, 0.0  ;;  %v2734_v4 = vld [vmem:[%s11146_s2 + $0xf0] sm:$0xff]  ;;  %v6681_v42 = vld [vmem:[%s11145_s1 + $0x118] sm:$0xff] }
 0x1d7   : > { %3152 = vmatpush.bf16.msrb.mxu0 %v6683_v37  ;;  %v2735_v37 = vld [vmem:[%s11146_s2 + $0xf8] sm:$0xff]  ;;  %v11323_v25 = vmax.f32 %v8115_v17, 0.0 }
 0x1d8   : > { %1392 = vmatmul.bf16.gmra.mxu1 %v692_v3  ;;  %1960 = vmatmul.bf16.gmra.mxu2 %v1845_v63  ;;  %v2423_v63 = vmul.f32 %v7967_v10, %v2207_v57  ;;  %v2066_v3 = vld [vmem:[%s6832_s8 + $0x5f] sm:$0xff]  ;;  %v450_v10 = vmax.f32 %v414_v14, 0.0  ;;  %v1459_v14 = vld [vmem:[%s6832_s8 + $0x87] sm:$0xff] }
 0x1d9   : > { %2983 = vperm.xlu2 %6756, %v2733_v26   ;;  %v2736_v57 = vld [vmem:[%s11146_s2 + $0x100] sm:$0xff] }
 0x1da   : > { %2978 = vperm.xlu1 %6755, %v2732_v16   ;;  %2973 = vperm.xlu0 %6754, %v2731_v12   ;;  %v2138_v16 = vmul.f32 %v7814_v7, %v2066_v3  ;;  %v2456_v20 = vpack.c.bf16 %v2424_v23, %v2423_v63  ;;  %v11318_v3 = vld [vmem:[#allocation19_spill] sm:$0xff]  ;;  %v11319_v63 = vld [vmem:[#allocation20_spill] sm:$0xff] }
 0x1db   : > { %v8110_v1 = vpop.permute.xlu2 %2384  ;;  %v8112_v15 = vpop.permute.xlu1 %2334  ;;  %3153 = vmatpush.bf16.msrb.mxu0 %v6682_v60  ;;  %v667_v23 = vmul.f32 %v11318_v3, %v451_v55  ;;  %v666_v26 = vmul.f32 %v11319_v63, %v450_v10  ;;  %v303_v60 = vld [vmem:[%s6832_s8 + $0xad] sm:$0xff]  ;;  %v1817_v55 = vmul.f32 %v7616_v45, %v11323_v25  ;;  %v2739_v25 = vld [vmem:[%s11146_s2 + $0x118] sm:$0xff] }
 0x1dc   : > { %11316 = vst [vmem:[#allocation6_spill] sm:$0xff] %v8110_v1  ;;  %v8118_v5 = vpop.permute.xlu0 %2329  ;;  %v8120_v8 = vpop.f32.mrf.mxu2  ;;  %v378_v63 = vmul.f32 %v7814_v7, %v303_v60 }
 0x1dd   : > { %11317 = vst [vmem:[#allocation43_spill] sm:$0xff] %v8120_v8  ;;  %v8122_v12 = vpop.f32.mrf.mxu1  ;;  %v11320_v8 = vmax.f32 %v8104_v39, 0.0 }
 0x1df   : > { %v1818_v1 = vmul.f32 %v7701_v43, %v11320_v8  ;;  %3154 = vmatpush.bf16.msrb.mxu0 %v6681_v42  ;;  %v302_v43 = vld [vmem:[%s6832_s8 + $0xa5] sm:$0xff]  ;;  %v1460_v8 = vld [vmem:[%s6832_s8 + $0x8f] sm:$0xff]  ;;  %v8169_v42 = vpop.f32.mrf.mxu0 }
 0x1e0   : > { %v1532_v60 = vmul.f32 %v7814_v7, %v1460_v8 }
 0x1e1   : > { %2559 = vmatmul.bf16.gmra.mxu3 %v2456_v20  ;;  %2998 = vperm.xlu2 %6756, %v2736_v57   ;;  %v2174_v57 = vadd.f32 %v7834_v49, %v2138_v16  ;;  %v6680_v16 = vld [vmem:[%s11145_s1 + $0x110] sm:$0xff]  ;;  %v1846_v45 = vpack.c.bf16 %v1818_v1, %v1817_v55  ;;  %v6679_v1 = vld [vmem:[%s11145_s1 + $0x108] sm:$0xff] }
 0x1e2   : > { %2993 = vperm.xlu1 %6755, %v2735_v37   ;;  %2988 = vperm.xlu0 %6754, %v2734_v4   ;;  %v693_v4 = vpack.c.bf16 %v667_v23, %v666_v26  ;;  %v2737_v26 = vld [vmem:[%s11146_s2 + $0x108] sm:$0xff]  ;;  %v377_v23 = vmul.f32 %v7814_v7, %v302_v43 }
 0x1e3   : > { %v8150_v20 = vpop.permute.xlu2 %2399  ;;  %v8152_v2 = vpop.permute.xlu1 %2349  ;;  %3155 = vmatpush.bf16.msrb.mxu0 %v6680_v16 }
 0x1e4   : > { %11321 = vst [vmem:[#allocation19_spill] sm:$0xff] %v8150_v20  ;;  %v8157_v10 = vpop.permute.xlu0 %2344  ;;  %v8159_v3 = vpop.f32.mrf.mxu2  ;;  %v1531_v20 = vmul.f32 %v7814_v7, %v1459_v14  ;;  %v417_v14 = vadd.f32 %v7834_v49, %v378_v63  ;;  %v416_v8 = vadd.f32 %v7834_v49, %v377_v23  ;;  %v2742_v23 = vld [vmem:[%s11146_s2 + $0x130] sm:$0xff] }
 0x1e5   : > { %11322 = vst [vmem:[#allocation20_spill] sm:$0xff] %v8152_v2  ;;  %v8163_v37 = vpop.f32.mrf.mxu1 }
 0x1e6   : > { %11324 = vst [vmem:[#allocation44_spill] sm:$0xff] %v8159_v3  ;;  %v2210_v3 = vmax.f32 %v2174_v57, 0.0  ;;  %v8188_v57 = vadd.f32 %v7834_v49, %v1531_v20  ;;  %v11329_v20 = vmax.f32 %v7959_v50, 0.0  ;;  %v2740_v50 = vld [vmem:[%s11146_s2 + $0x120] sm:$0xff] }
 0x1e7   : > { %3156 = vmatpush.bf16.msrb.mxu0 %v6679_v1  ;;  %v452_v1 = vmax.f32 %v416_v8, 0.0 }
 0x1e8   : > { %1397 = vmatmul.bf16.gmra.mxu1 %v693_v4  ;;  %1965 = vmatmul.bf16.gmra.mxu2 %v1846_v45  ;;  %v2426_v55 = vmul.f32 %v7999_v24, %v2210_v3  ;;  %v8197_v4 = vadd.f32 %v7834_v49, %v1532_v60  ;;  %v6678_v3 = vld [vmem:[%s11145_s1 + $0x100] sm:$0xff] }
 0x1e9   : > { %3013 = vperm.xlu2 %6756, %v2739_v25   ;;  %v453_v25 = vmax.f32 %v417_v14, 0.0  ;;  %v11333_v14 = vld [vmem:[#allocation9_spill] sm:$0xff] }
 0x1ea   : > { %3008 = vperm.xlu1 %6755, %v2738_v48   ;;  %3003 = vperm.xlu0 %6754, %v2737_v26   ;;  %v2425_v48 = vmul.f32 %v7876_v33, %v11329_v20  ;;  %v2741_v33 = vld [vmem:[%s11146_s2 + $0x128] sm:$0xff]  ;;  %v8222_v20 = vpop.f32.mrf.mxu0  ;;  %v304_v26 = vld [vmem:[%s6832_s8 + $0xb5] sm:$0xff] }
 0x1eb   : > { %v8191_v16 = vpop.permute.xlu2 %2414  ;;  %v8193_v43 = vpop.permute.xlu1 %2364  ;;  %3157 = vmatpush.bf16.msrb.mxu0 %v6678_v3 }
 0x1ec   : > { %11325 = vst [vmem:[#allocation45_spill] sm:$0xff] %v8191_v16  ;;  %v8199_v45 = vpop.permute.xlu0 %2359  ;;  %v8201_v63 = vpop.f32.mrf.mxu2  ;;  %v2457_v60 = vpack.c.bf16 %v2426_v55, %v2425_v48  ;;  %v11331_v48 = vmax.f32 %v8188_v57, 0.0 }
 0x1ed   : > { %11326 = vst [vmem:[#allocation46_spill] sm:$0xff] %v8193_v43  ;;  %v8206_v24 = vpop.f32.mrf.mxu1  ;;  %v668_v43 = vmul.f32 %v11333_v14, %v452_v1  ;;  %v8252_v1 = vld [vmem:[%s11146_s2 + $0x29] sm:$0xff] }
 0x1ee   : > { %11327 = vst [vmem:[#allocation47_spill] sm:$0xff] %v8199_v45  ;;  %v1819_v16 = vmul.f32 %v7699_v38, %v11331_v48  ;;  %v1461_v45 = vld [vmem:[%s6832_s8 + $0x97] sm:$0xff]  ;;  %v379_v38 = vmul.f32 %v7814_v7, %v304_v26 }
 0x1ef   : > { %11328 = vst [vmem:[#allocation48_spill] sm:$0xff] %v8201_v63  ;;  %v11330_v63 = vld [vmem:[#allocation23_spill] sm:$0xff]  ;;  %v3321_v26 = vld [vmem:[%s11146_s2 + $0x19] sm:$0xff] }
 0x1f0   : > { %v669_v55 = vmul.f32 %v11330_v63, %v453_v25  ;;  %v305_v25 = vld [vmem:[%s6832_s8 + $0xbd] sm:$0xff]  ;;  %11337 = vst [vmem:[#allocation50_spill] sm:$0xff] %v8252_v1  ;;  %v418_v40 = vadd.f32 %v7834_v49, %v379_v38 }
 0x1f1   : > { %2564 = vmatmul.bf16.gmra.mxu3 %v2457_v60  ;;  %3028 = vperm.xlu2 %6756, %v2742_v23   ;;  %v11334_v60 = vmax.f32 %v8197_v4, 0.0 }
 0x1f2   : > { %3023 = vperm.xlu1 %6755, %v2741_v33   ;;  %3018 = vperm.xlu0 %6754, %v2740_v50   ;;  %v694_v50 = vpack.c.bf16 %v669_v55, %v668_v43  ;;  %v380_v43 = vmul.f32 %v7814_v7, %v305_v25  ;;  %v8271_v55 = vpop.f32.mrf.mxu0  ;;  %v1354_v25 = vadd.f32 %v8081_v59, %v8169_v42  ;;  %v454_v59 = vmax.f32 %v418_v40, 0.0  ;;  %v8309_v40 = vld [vmem:[%s11146_s2 + $0x31] sm:$0xff] }
 0x1f3   : > { %v8231_v3 = vpop.permute.xlu2 %2863  ;;  %v8233_v8 = vpop.permute.xlu1 %2379  ;;  %v1820_v23 = vmul.f32 %v7641_v13, %v11334_v60  ;;  %v3322_v13 = vld [vmem:[%s11146_s2 + $0x21] sm:$0xff]  ;;  %v11339_v60 = vmax.f32 %v8024_v31, 0.0  ;;  %11344 = vst [vmem:[#allocation55_spill] sm:$0xff] %v8309_v40 }
 0x1f4   : > { %11332 = vst [vmem:[#allocation23_spill] sm:$0xff] %v8233_v8  ;;  %v8239_v22 = vpop.permute.xlu0 %2374  ;;  %v8241_v63 = vpop.f32.mrf.mxu2  ;;  %v1533_v8 = vmul.f32 %v7814_v7, %v1461_v45  ;;  %v8266_v45 = vadd.f32 %v7834_v49, %v1534_v21  ;;  %v419_v21 = vadd.f32 %v7834_v49, %v380_v43  ;;  %v8298_v43 = vld [vmem:[%s11146_s2 + $0x41] sm:$0xff] }
 0x1f5   : > { %11335 = vst [vmem:[#allocation9_spill] sm:$0xff] %v8239_v22  ;;  %v8245_v33 = vpop.f32.mrf.mxu1  ;;  %v1847_v48 = vpack.c.bf16 %v1820_v23, %v1819_v16  ;;  %v8261_v16 = vpop.f32.mrf.mxu3  ;;  %v2427_v23 = vmul.f32 %v7995_v28, %v11339_v60  ;;  %v2672_v28 = vld [vmem:[%s6832_s8 + $0x20] sm:$0xff]  ;;  %v307_v60 = vld [vmem:[%s6832_s8 + $0xcd] sm:$0xff] }
 0x1f6   : > { %11336 = vst [vmem:[#allocation49_spill] sm:$0xff] %v8241_v63  ;;  %v8269_v14 = vadd.f32 %v7834_v49, %v1533_v8  ;;  %v11166_v42 = vmax.f32 %v8266_v45, 0.0 }
 0x1f7   : > { %11338 = vst [vmem:[#allocation51_spill] sm:$0xff] %v8261_v16  ;;  %v2671_v16 = vld [vmem:[%s6832_s8 + $0x18] sm:$0xff] }
 0x1f8   : > { %1402 = vmatmul.bf16.gmra.mxu1 %v694_v50  ;;  %1970 = vmatmul.bf16.gmra.mxu2 %v1847_v48  ;;  %11343 = vst [vmem:[#allocation54_spill] sm:$0xff] %v8298_v43 }
 0x1f9   : > { %3477 = vperm.xlu2 %6756, %v8252_v1  }
 0x1fa   : > { %3472 = vperm.xlu1 %6755, %v3322_v13   ;;  %3467 = vperm.xlu0 %6754, %v3321_v26   ;;  %v11342_v13 = vmax.f32 %v8021_v11, 0.0  ;;  %v1213_v27 = vpop.f32.mrf.mxu0 }
 0x1fb   : > { %v8278_v38 = vpop.permute.xlu2 %2878  ;;  %v8280_v50 = vpop.permute.xlu1 %2394 }
 0x1fc   : > { %11340 = vst [vmem:[#allocation52_spill] sm:$0xff] %v8280_v50  ;;  %v8283_v8 = vpop.permute.xlu0 %2389  ;;  %v1931_v48 = vpop.f32.mrf.mxu2  ;;  %v2428_v26 = vmul.f32 %v7904_v35, %v11342_v13  ;;  %v8304_v35 = vld [vmem:[%s11146_s2 + $0x39] sm:$0xff]  ;;  %v2743_v13 = vmul.f32 %v7814_v7, %v2671_v16  ;;  %v11346_v50 = vmax.f32 %v8269_v14, 0.0  ;;  %v1464_v16 = vld [vmem:[%s6832_s8 + $0xaf] sm:$0xff] }
 0x1fd   : > { %11341 = vst [vmem:[#allocation53_spill] sm:$0xff] %v8283_v8  ;;  %v8288_v31 = vadd.f32 %v1931_v48, %v1354_v25  ;;  %v8290_v63 = vpop.f32.mrf.mxu1  ;;  %v455_v25 = vmax.f32 %v419_v21, 0.0  ;;  %v2744_v48 = vmul.f32 %v7814_v7, %v2672_v28  ;;  %v1822_v8 = vmul.f32 %v7724_v34, %v11166_v42  ;;  %v8322_v21 = vpop.f32.mrf.mxu3  ;;  %v306_v28 = vld [vmem:[%s6832_s8 + $0xc5] sm:$0xff]  ;;  %v11349_v34 = vld [vmem:[#allocation12_spill] sm:$0xff] }
 0x1fe   : > { %v2458_v11 = vpack.c.bf16 %v2428_v26, %v2427_v23  ;;  %v11345_v23 = vld [vmem:[#allocation22_spill] sm:$0xff]  ;;  %v1821_v22 = vmul.f32 %v7726_v54, %v11346_v50 }
 0x1ff   : > { %v670_v26 = vmul.f32 %v11345_v23, %v454_v59  ;;  %11347 = vst [vmem:[#allocation22_spill] sm:$0xff] %v8322_v21  ;;  %v1356_v59 = vadd.f32 %v8122_v12, %v8222_v20  ;;  %v671_v42 = vmul.f32 %v11349_v34, %v455_v25  ;;  %v2780_v50 = vadd.f32 %v7834_v49, %v2744_v48  ;;  %v8350_v48 = vld [vmem:[%s11146_s2 + $0x59] sm:$0xff] }
 0x200   : > { %v382_v21 = vmul.f32 %v7814_v7, %v307_v60  ;;  %v2779_v12 = vadd.f32 %v7834_v49, %v2743_v13  ;;  %v1536_v25 = vmul.f32 %v7814_v7, %v1464_v16  ;;  %11351 = vst [vmem:[#allocation57_spill] sm:$0xff] %v8350_v48  ;;  %v8355_v60 = vld [vmem:[%s11146_s2 + $0x51] sm:$0xff]  ;;  %v8360_v13 = vld [vmem:[%s11146_s2 + $0x49] sm:$0xff] }
 0x201   : > { %2569 = vmatmul.bf16.gmra.mxu3 %v2458_v11  ;;  %3492 = vperm.xlu2 %6756, %v8298_v43   ;;  %v695_v20 = vpack.c.bf16 %v671_v42, %v670_v26  ;;  %11352 = vst [vmem:[#allocation58_spill] sm:$0xff] %v8355_v60  ;;  %v1535_v42 = vmul.f32 %v7814_v7, %v1463_v56  ;;  %v11354_v56 = vmax.f32 %v8104_v39, 0.0  ;;  %v2674_v39 = vld [vmem:[%s6832_s8 + $0x30] sm:$0xff] }
 0x202   : > { %3487 = vperm.xlu1 %6755, %v8304_v35   ;;  %3482 = vperm.xlu0 %6754, %v8309_v40   ;;  %v1848_v40 = vpack.c.bf16 %v1822_v8, %v1821_v22  ;;  %11353 = vst [vmem:[#allocation59_spill] sm:$0xff] %v8360_v13  ;;  %v2816_v22 = vmax.f32 %v2780_v50, 0.0  ;;  %v2815_v8 = vmax.f32 %v2779_v12, 0.0  ;;  %v421_v26 = vadd.f32 %v7834_v49, %v382_v21 }
 0x203   : > { %v8330_v11 = vpop.permute.xlu2 %2893  ;;  %v8332_v23 = vpop.permute.xlu1 %2409  ;;  %v8367_v16 = vadd.f32 %v7834_v49, %v1536_v25  ;;  %v1359_v21 = vadd.f32 %v8163_v37, %v8271_v55  ;;  %v8382_v50 = vadd.f32 %v7834_v49, %v1535_v42  ;;  %v2673_v55 = vld [vmem:[%s6832_s8 + $0x28] sm:$0xff] }
 0x204   : > { %11348 = vst [vmem:[#allocation56_spill] sm:$0xff] %v8332_v23  ;;  %v8335_v43 = vpop.permute.xlu0 %2404  ;;  %v1933_v54 = vpop.f32.mrf.mxu2  ;;  %v381_v23 = vmul.f32 %v7814_v7, %v306_v28 }
 0x205   : > { %11350 = vst [vmem:[#allocation12_spill] sm:$0xff] %v8335_v43  ;;  %v8340_v1 = vadd.f32 %v1933_v54, %v1356_v59  ;;  %v8342_v2 = vpop.f32.mrf.mxu1  ;;  %v11355_v59 = vmax.f32 %v8115_v17, 0.0  ;;  %v8385_v43 = vpop.f32.mrf.mxu3  ;;  %v11171_v37 = vmax.f32 %v8367_v16, 0.0 }
 0x206   : > { %v420_v28 = vadd.f32 %v7834_v49, %v381_v23  ;;  %11356 = vst [vmem:[#allocation60_spill] sm:$0xff] %v8385_v43  ;;  %v1361_v43 = vadd.f32 %v8206_v24, %v1213_v27 }
 0x207   : > { %v2429_v34 = vmul.f32 %v8035_v58, %v11355_v59 }
 0x208   : > { %1407 = vmatmul.bf16.gmra.mxu1 %v695_v20  ;;  %1975 = vmatmul.bf16.gmra.mxu2 %v1848_v40  ;;  %v2430_v40 = vmul.f32 %v8031_v18, %v11354_v56  ;;  %v457_v56 = vmax.f32 %v421_v26, 0.0  ;;  %v456_v59 = vmax.f32 %v420_v28, 0.0  ;;  %v2746_v26 = vmul.f32 %v7814_v7, %v2674_v39  ;;  %v1465_v28 = vld [vmem:[%s6832_s8 + $0xb7] sm:$0xff] }
 0x209   : > { %3507 = vperm.xlu2 %6756, %v8350_v48   ;;  %v1216_v48 = vpop.f32.mrf.mxu0  ;;  %v1824_v39 = vmul.f32 %v7752_v52, %v11171_v37 }
 0x20a   : > { %3502 = vperm.xlu1 %6755, %v8355_v60   ;;  %3497 = vperm.xlu0 %6754, %v8360_v13  }
 0x20b   : > { %v8379_v23 = vpop.permute.xlu2 %2908  ;;  %v2859_v54 = vpop.permute.xlu1 %2858 }
 0x20c   : > { %v3032_v12 = vmul.f32 %v2859_v54, %v2816_v22  ;;  %v2854_v20 = vpop.permute.xlu0 %2853  ;;  %v1936_v25 = vpop.f32.mrf.mxu2  ;;  %v2459_v22 = vpack.c.bf16 %v2430_v40, %v2429_v34  ;;  %v8396_v54 = vld [vmem:[%s11146_s2 + $0x71] sm:$0xff]  ;;  %v2745_v40 = vmul.f32 %v7814_v7, %v2673_v55 }
 0x20d   : > { %v3031_v18 = vmul.f32 %v2854_v20, %v2815_v8  ;;  %v8387_v17 = vadd.f32 %v1936_v25, %v1359_v21  ;;  %v8389_v58 = vpop.f32.mrf.mxu1  ;;  %11357 = vst [vmem:[#allocation61_spill] sm:$0xff] %v8396_v54  ;;  %v8401_v8 = vld [vmem:[%s11146_s2 + $0x69] sm:$0xff]  ;;  %v8408_v21 = vld [vmem:[%s11146_s2 + $0x61] sm:$0xff]  ;;  %v11360_v34 = vld [vmem:[#allocation25_spill] sm:$0xff]  ;;  %v8440_v60 = vpop.f32.mrf.mxu3 }
 0x20e   : > { %11358 = vst [vmem:[#allocation62_spill] sm:$0xff] %v8401_v8  ;;  %v11361_v20 = vld [vmem:[#allocation26_spill] sm:$0xff]  ;;  %v2781_v27 = vadd.f32 %v7834_v49, %v2745_v40 }
 0x20f   : > { %v3067_v42 = vpack.c.bf16 %v3032_v12, %v3031_v18  ;;  %11359 = vst [vmem:[#allocation63_spill] sm:$0xff] %v8408_v21  ;;  %v673_v12 = vmul.f32 %v11360_v34, %v457_v56  ;;  %v672_v25 = vmul.f32 %v11361_v20, %v456_v59  ;;  %v309_v18 = vld [vmem:[%s6832_s8 + $0xdd] sm:$0xff]  ;;  %v2782_v59 = vadd.f32 %v7834_v49, %v2746_v26 }
 0x210   : > { %v384_v37 = vmul.f32 %v7814_v7, %v309_v18  ;;  %11364 = vst [vmem:[#allocation26_spill] sm:$0xff] %v8440_v60  ;;  %v8445_v18 = vld [vmem:[%s11146_s2 + $0x89] sm:$0xff] }
 0x211   : > { %2574 = vmatmul.bf16.gmra.mxu3 %v2459_v22  ;;  %3158 = vmatmul.bf16.vlgmr.msrb.gmra.mxu0 %v3067_v42  ;;  %v308_v42 = vld [vmem:[%s6832_s8 + $0xd5] sm:$0xff]  ;;  %v11363_v22 = vmax.f32 %v8382_v50, 0.0  ;;  %11365 = vst [vmem:[#allocation64_spill] sm:$0xff] %v8445_v18 }
 0x212   : > { %3522 = vperm.xlu2 %6756, %v8396_v54   ;;  %3517 = vperm.xlu1 %6755, %v8401_v8   ;;  %v1466_v54 = vld [vmem:[%s6832_s8 + $0xbf] sm:$0xff]  ;;  %v1537_v8 = vmul.f32 %v7814_v7, %v1465_v28  ;;  %v383_v13 = vmul.f32 %v7814_v7, %v308_v42 }
 0x213   : > { %3512 = vperm.xlu0 %6754, %v8408_v21   ;;  %v8422_v55 = vpop.permute.xlu2 %2923  ;;  %v8424_v56 = vpop.permute.xlu1 %2873  ;;  %v1823_v52 = vmul.f32 %v7657_v41, %v11363_v22  ;;  %v2818_v41 = vmax.f32 %v2782_v59, 0.0  ;;  %v1538_v40 = vmul.f32 %v7814_v7, %v1466_v54  ;;  %v8456_v28 = vld [vmem:[%s11146_s2 + $0x79] sm:$0xff]  ;;  %v1364_v22 = vadd.f32 %v8245_v33, %v1216_v48 }
 0x214   : > { %11362 = vst [vmem:[#allocation25_spill] sm:$0xff] %v8422_v55  ;;  %v2869_v34 = vpop.permute.xlu0 %2868  ;;  %v1938_v20 = vpop.f32.mrf.mxu2  ;;  %v696_v55 = vpack.c.bf16 %v673_v12, %v672_v25  ;;  %v423_v12 = vadd.f32 %v7834_v49, %v384_v37  ;;  %v8460_v59 = vadd.f32 %v7834_v49, %v1537_v8  ;;  %v422_v54 = vadd.f32 %v7834_v49, %v383_v13 }
 0x215   : > { %v8434_v24 = vadd.f32 %v1938_v20, %v1361_v43  ;;  %v8436_v21 = vpop.f32.mrf.mxu1  ;;  %v1849_v26 = vpack.c.bf16 %v1824_v39, %v1823_v52  ;;  %v8450_v43 = vld [vmem:[%s11146_s2 + $0x81] sm:$0xff]  ;;  %v1218_v25 = vpop.f32.mrf.mxu0  ;;  %v2817_v39 = vmax.f32 %v2781_v27, 0.0  ;;  %v3034_v52 = vmul.f32 %v2869_v34, %v2818_v41  ;;  %v2675_v27 = vld [vmem:[%s6832_s8 + $0x38] sm:$0xff] }
 0x216   : > { %v8475_v20 = vadd.f32 %v7834_v49, %v1538_v40  ;;  %v11178_v41 = vmax.f32 %v8460_v59, 0.0  ;;  %v2676_v40 = vld [vmem:[%s6832_s8 + $0x40] sm:$0xff]  ;;  %v458_v60 = vmax.f32 %v422_v54, 0.0  ;;  %v11372_v54 = vld [vmem:[#allocation28_spill] sm:$0xff] }
 0x217   : > { %v3033_v33 = vmul.f32 %v8231_v3, %v2817_v39  ;;  %v8505_v39 = vld [vmem:[%s11146_s2 + $0x91] sm:$0xff] }
 0x218   : > { %1412 = vmatmul.bf16.gmra.mxu1 %v696_v55  ;;  %1980 = vmatmul.bf16.gmra.mxu2 %v1849_v26  ;;  %v11366_v55 = vmax.f32 %v8197_v4, 0.0  ;;  %v459_v4 = vmax.f32 %v423_v12, 0.0  ;;  %11371 = vst [vmem:[#allocation68_spill] sm:$0xff] %v8505_v39  ;;  %v1468_v3 = vld [vmem:[%s6832_s8 + $0xcf] sm:$0xff] }
 0x219   : > { %v3068_v12 = vpack.c.bf16 %v3034_v52, %v3033_v33  ;;  %v2748_v52 = vmul.f32 %v7814_v7, %v2676_v40 }
 0x21a   : > { %3537 = vperm.xlu2 %6756, %v8445_v18   ;;  %3532 = vperm.xlu1 %6755, %v8450_v43   ;;  %v2432_v42 = vmul.f32 %v8075_v30, %v11366_v55  ;;  %v11368_v30 = vmax.f32 %v8188_v57, 0.0  ;;  %v8499_v57 = vld [vmem:[%s11146_s2 + $0x99] sm:$0xff] }
 0x21b   : > { %3527 = vperm.xlu0 %6754, %v8456_v28   ;;  %v8470_v37 = vpop.permute.xlu2 %2938  ;;  %v8472_v8 = vpop.permute.xlu1 %2888  ;;  %11370 = vst [vmem:[#allocation67_spill] sm:$0xff] %v8499_v57 }
 0x21c   : > { %11367 = vst [vmem:[#allocation65_spill] sm:$0xff] %v8470_v37  ;;  %v8478_v26 = vpop.permute.xlu0 %2883  ;;  %v1941_v13 = vpop.f32.mrf.mxu2  ;;  %v2431_v55 = vmul.f32 %v7932_v53, %v11368_v30  ;;  %v2747_v37 = vmul.f32 %v7814_v7, %v2675_v27  ;;  %v8494_v53 = vld [vmem:[%s11146_s2 + $0xa1] sm:$0xff]  ;;  %v311_v27 = vld [vmem:[%s6832_s8 + $0xed] sm:$0xff]  ;;  %v1825_v30 = vmul.f32 %v7749_v46, %v11178_v41  ;;  %v1366_v46 = vadd.f32 %v8290_v63, %v1218_v25 }
 0x21d   : > { %v8484_v48 = vadd.f32 %v1941_v13, %v1364_v22  ;;  %v8486_v34 = vpop.f32.mrf.mxu1  ;;  %11369 = vst [vmem:[#allocation66_spill] sm:$0xff] %v8494_v53  ;;  %v8508_v22 = vpop.f32.mrf.mxu3  ;;  %v310_v13 = vld [vmem:[%s6832_s8 + $0xe5] sm:$0xff] }
 0x21e   : > { %v2460_v18 = vpack.c.bf16 %v2432_v42, %v2431_v55  ;;  %v675_v42 = vmul.f32 %v11372_v54, %v459_v4  ;;  %11373 = vst [vmem:[#allocation28_spill] sm:$0xff] %v8508_v22  ;;  %v11374_v55 = vld [vmem:[#allocation15_spill] sm:$0xff]  ;;  %v1221_v54 = vpop.f32.mrf.mxu0  ;;  %v2783_v22 = vadd.f32 %v7834_v49, %v2747_v37 }
 0x21f   : > { %v674_v33 = vmul.f32 %v11374_v55, %v458_v60  ;;  %v1467_v4 = vld [vmem:[%s6832_s8 + $0xc7] sm:$0xff]  ;;  %v8536_v60 = vld [vmem:[%s11147_s3] ss:$0 sm:$0xff] }
 0x220   : > { %v386_v49 = vmul.f32 %v8536_v60, %v311_v27  ;;  %v385_v37 = vmul.f32 %v8536_v60, %v310_v13  ;;  %v2819_v27 = vmax.f32 %v2783_v22, 0.0 }
 0x221   : > { %2579 = vmatmul.bf16.gmra.mxu3 %v2460_v18  ;;  %3163 = vmatmul.bf16.gmra.mxu0 %v3068_v12  ;;  %v11376_v18 = vmax.f32 %v8475_v20, 0.0  ;;  %v697_v55 = vpack.c.bf16 %v675_v42, %v674_v33  ;;  %v8555_v42 = vld [vmem:[%s11146_s2 + $0xb9] sm:$0xff] }
 0x222   : > { %3552 = vperm.xlu2 %6756, %v8494_v53   ;;  %3547 = vperm.xlu1 %6755, %v8499_v57   ;;  %v1540_v53 = vmul.f32 %v8536_v60, %v1468_v3  ;;  %11377 = vst [vmem:[#allocation69_spill] sm:$0xff] %v8555_v42  ;;  %v8565_v3 = vld [vmem:[%s11146_s2 + $0xa9] sm:$0xff] }
 0x223   : > { %3542 = vperm.xlu0 %6754, %v8505_v39   ;;  %v8523_v7 = vpop.permute.xlu2 %2953  ;;  %v1826_v40 = vmul.f32 %v7678_v62, %v11376_v18  ;;  %v8543_v62 = vld [vmem:[%s11148_s4] ss:$0 sm:$0xff]  ;;  %v1539_v39 = vmul.f32 %v8536_v60, %v1467_v4  ;;  %11379 = vst [vmem:[#allocation71_spill] sm:$0xff] %v8565_v3 }
 0x224   : > { %11375 = vst [vmem:[#allocation15_spill] sm:$0xff] %v8523_v7  ;;  %v8529_v12 = vpop.permute.xlu1 %2903  ;;  %v8531_v41 = vpop.permute.xlu0 %2898  ;;  %v2784_v63 = vadd.f32 %v8543_v62, %v2748_v52  ;;  %v8560_v52 = vld [vmem:[%s11146_s2 + $0xb1] sm:$0xff]  ;;  %v424_v22 = vadd.f32 %v8543_v62, %v385_v37  ;;  %v8570_v33 = vadd.f32 %v8543_v62, %v1540_v53  ;;  %v3035_v37 = vmul.f32 %v8424_v56, %v2819_v27 }
 0x225   : > { %v1943_v25 = vpop.f32.mrf.mxu2  ;;  %v8546_v18 = vpop.f32.mrf.mxu1  ;;  %v1850_v7 = vpack.c.bf16 %v1826_v40, %v1825_v30  ;;  %11378 = vst [vmem:[#allocation70_spill] sm:$0xff] %v8560_v52  ;;  %v425_v30 = vadd.f32 %v8543_v62, %v386_v49  ;;  %v8573_v4 = vadd.f32 %v8543_v62, %v1539_v39  ;;  %v1369_v53 = vadd.f32 %v8342_v2, %v1221_v54  ;;  %v2678_v39 = vld [vmem:[%s6832_s8 + $0x50] sm:$0xff] }
 0x226   : > { %v8550_v57 = vadd.f32 %v1943_v25, %v1366_v46  ;;  %v2820_v13 = vmax.f32 %v2784_v63, 0.0  ;;  %v8580_v46 = vpop.f32.mrf.mxu3  ;;  %v11184_v2 = vmax.f32 %v8570_v33, 0.0 }
 0x227   : > { %11381 = vst [vmem:[#allocation72_spill] sm:$0xff] %v8580_v46  ;;  %v461_v46 = vmax.f32 %v425_v30, 0.0  ;;  %v11185_v54 = vmax.f32 %v8573_v4, 0.0  ;;  %v8613_v30 = vld [vmem:[%s11146_s2 + $0xc9] sm:$0xff] }
 0x228   : > { %1417 = vmatmul.bf16.gmra.mxu1 %v697_v55  ;;  %1985 = vmatmul.bf16.gmra.mxu2 %v1850_v7  ;;  %v11380_v7 = vmax.f32 %v8269_v14, 0.0  ;;  %v2677_v55 = vld [vmem:[%s6832_s8 + $0x48] sm:$0xff]  ;;  %v11383_v14 = vmax.f32 %v8266_v45, 0.0  ;;  %11385 = vst [vmem:[#allocation75_spill] sm:$0xff] %v8613_v30 }
 0x229   : > { %v2749_v45 = vmul.f32 %v8536_v60, %v2677_v55 }
 0x22a   : > { %3567 = vperm.xlu2 %6756, %v8555_v42   ;;  %3562 = vperm.xlu1 %6755, %v8560_v52   ;;  %v2433_v40 = vmul.f32 %v8072_v36, %v11380_v7  ;;  %v460_v42 = vmax.f32 %v424_v22, 0.0  ;;  %v2434_v36 = vmul.f32 %v7961_v44, %v11383_v14  ;;  %v3036_v7 = vmul.f32 %v8278_v38, %v2820_v13  ;;  %v8608_v13 = vld [vmem:[%s11146_s2 + $0xd1] sm:$0xff] }
 0x22b   : > { %3557 = vperm.xlu0 %6754, %v8565_v3   ;;  %v8584_v49 = vpop.permute.xlu2 %2968  ;;  %v1223_v3 = vpop.f32.mrf.mxu0  ;;  %v2750_v22 = vmul.f32 %v8536_v60, %v2678_v39  ;;  %11384 = vst [vmem:[#allocation74_spill] sm:$0xff] %v8608_v13  ;;  %v11387_v39 = vld [vmem:[#allocation27_spill] sm:$0xff]  ;;  %v1828_v14 = vmul.f32 %v7777_v0, %v11184_v2 }
 0x22c   : > { %11382 = vst [vmem:[#allocation73_spill] sm:$0xff] %v8584_v49  ;;  %v8589_v63 = vpop.permute.xlu1 %2918  ;;  %v8591_v25 = vpop.permute.xlu0 %2913  ;;  %v2461_v44 = vpack.c.bf16 %v2434_v36, %v2433_v40  ;;  %v3069_v38 = vpack.c.bf16 %v3036_v7, %v3035_v37  ;;  %v676_v55 = vmul.f32 %v11387_v39, %v460_v42  ;;  %v313_v40 = vld [vmem:[%s6832_s8 + $0xfd] sm:$0xff]  ;;  %v312_v37 = vld [vmem:[%s6832_s8 + $0xf5] sm:$0xff]  ;;  %v1827_v36 = vmul.f32 %v7780_v19, %v11185_v54 }
 0x22d   : > { %v1946_v56 = vpop.f32.mrf.mxu2  ;;  %v8597_v27 = vpop.f32.mrf.mxu1  ;;  %v11388_v7 = vld [vmem:[#allocation18_spill] sm:$0xff]  ;;  %v1371_v0 = vadd.f32 %v8389_v58, %v1223_v3 }
 0x22e   : > { %v8601_v49 = vadd.f32 %v1946_v56, %v1369_v53  ;;  %v8618_v53 = vld [vmem:[%s11146_s2 + $0xc1] sm:$0xff]  ;;  %v677_v56 = vmul.f32 %v11388_v7, %v461_v46  ;;  %v387_v46 = vmul.f32 %v8536_v60, %v312_v37  ;;  %v1469_v7 = vld [vmem:[%s6832_s8 + $0xd7] sm:$0xff]  ;;  %v1851_v52 = vpack.c.bf16 %v1828_v14, %v1827_v36 }
 0x22f   : > { %11386 = vst [vmem:[#allocation76_spill] sm:$0xff] %v8618_v53  ;;  %v1470_v42 = vld [vmem:[%s6832_s8 + $0xdf] sm:$0xff] }
 0x230   : > { %v698_v54 = vpack.c.bf16 %v677_v56, %v676_v55  ;;  %v8657_v55 = vld [vmem:[%s11146_s2 + $0xe9] sm:$0xff]  ;;  %v8671_v37 = vld [vmem:[%s11146_s2 + $0xd9] sm:$0xff]  ;;  %v426_v56 = vadd.f32 %v8543_v62, %v387_v46 }
 0x231   : > { %2584 = vmatmul.bf16.gmra.mxu3 %v2461_v44  ;;  %3168 = vmatmul.bf16.gmra.mxu0 %v3069_v38  ;;  %v2786_v44 = vadd.f32 %v8543_v62, %v2750_v22  ;;  %v2785_v38 = vadd.f32 %v8543_v62, %v2749_v45  ;;  %v1542_v45 = vmul.f32 %v8536_v60, %v1470_v42  ;;  %v6709_v14 = vld [vmem:[%s11145_s1 + $0x1f8] sm:$0xff] }
 0x232   : > { %3582 = vperm.xlu2 %6756, %v8608_v13   ;;  %3577 = vperm.xlu1 %6755, %v8613_v30   ;;  %v388_v13 = vmul.f32 %v8536_v60, %v313_v40  ;;  %11391 = vst [vmem:[#allocation77_spill] sm:$0xff] %v8657_v55  ;;  %v8662_v40 = vld [vmem:[%s11146_s2 + $0xe1] sm:$0xff] }
 0x233   : > { %3572 = vperm.xlu0 %6754, %v8618_v53   ;;  %v8636_v39 = vpop.permute.xlu2 %2983  ;;  %v2822_v3 = vmax.f32 %v2786_v44, 0.0  ;;  %v1226_v42 = vpop.f32.mrf.mxu0  ;;  %v11392_v44 = vmax.f32 %v8367_v16, 0.0  ;;  %4992 = vmatpush.bf16.msra.mxu3 %v6709_v14  ;;  %v315_v14 = vld [vmem:[%s6832_s8 + $0x10d] sm:$0xff] }
 0x234   : > { %11389 = vst [vmem:[#allocation27_spill] sm:$0xff] %v8636_v39  ;;  %v8639_v2 = vpop.permute.xlu1 %2933  ;;  %v8641_v19 = vpop.permute.xlu0 %2928  ;;  %v427_v36 = vadd.f32 %v8543_v62, %v388_v13  ;;  %v11393_v13 = vmax.f32 %v8382_v50, 0.0  ;;  %v1374_v16 = vadd.f32 %v8436_v21, %v1226_v42 }
 0x235   : > { %11390 = vst [vmem:[#allocation18_spill] sm:$0xff] %v8639_v2  ;;  %v1948_v30 = vpop.f32.mrf.mxu2  ;;  %v2545_v22 = vpop.f32.mrf.mxu3  ;;  %v2821_v2 = vmax.f32 %v2785_v38, 0.0  ;;  %v2436_v38 = vmul.f32 %v8112_v15, %v11392_v44  ;;  %v3038_v46 = vmul.f32 %v8472_v8, %v2822_v3  ;;  %v462_v8 = vmax.f32 %v426_v56, 0.0  ;;  %v6692_v3 = vld [vmem:[%s11145_s1 + $0x170] sm:$0xff] }
 0x236   : > { %v8647_v53 = vadd.f32 %v1948_v30, %v1371_v0  ;;  %v8650_v39 = vadd.f32 %v2545_v22, %v8288_v31  ;;  %v8652_v58 = vpop.f32.mrf.mxu1  ;;  %v6701_v30 = vld [vmem:[%s11145_s1 + $0x1b8] sm:$0xff]  ;;  %v1541_v31 = vmul.f32 %v8536_v60, %v1469_v7  ;;  %v2435_v0 = vmul.f32 %v8118_v5, %v11393_v13  ;;  %v8722_v13 = vld [vmem:[%s11146_s2 + $0x101] sm:$0xff] }
 0x237   : > { %4378 = vmatpush.bf16.msra.mxu2 %v6701_v30  ;;  %v3037_v7 = vmul.f32 %v8478_v26, %v2821_v2  ;;  %v463_v5 = vmax.f32 %v427_v36, 0.0  ;;  %11398 = vst [vmem:[#allocation82_spill] sm:$0xff] %v8722_v13 }
 0x238   : > { %1422 = vmatmul.bf16.gmra.mxu1 %v698_v54  ;;  %1990 = vmatmul.bf16.gmra.mxu2 %v1851_v52  ;;  %v6693_v52 = vld [vmem:[%s11145_s1 + $0x178] sm:$0xff]  ;;  %v8682_v54 = vadd.f32 %v8543_v62, %v1542_v45  ;;  %v8698_v15 = vadd.f32 %v8543_v62, %v1541_v31  ;;  %v2680_v45 = vld [vmem:[%s6832_s8 + $0x60] sm:$0xff] }
 0x239   : > { %3764 = vmatpush.bf16.msra.mxu1 %v6693_v52  ;;  %v2679_v31 = vld [vmem:[%s6832_s8 + $0x58] sm:$0xff]  ;;  %v2462_v52 = vpack.c.bf16 %v2436_v38, %v2435_v0  ;;  %v2752_v36 = vmul.f32 %v8536_v60, %v2680_v45  ;;  %v3070_v56 = vpack.c.bf16 %v3038_v46, %v3037_v7  ;;  %v11400_v7 = vld [vmem:[#allocation30_spill] sm:$0xff] }
 0x23a   : > { %3597 = vperm.xlu2 %6756, %v8657_v55   ;;  %3592 = vperm.xlu1 %6755, %v8662_v40   ;;  %v8733_v38 = vld [vmem:[%s11146_s2 + $0xf1] sm:$0xff]  ;;  %v678_v45 = vmul.f32 %v11400_v7, %v462_v8  ;;  %v1471_v8 = vld [vmem:[%s6832_s8 + $0xe7] sm:$0xff]  ;;  %v11403_v7 = vmax.f32 %v8698_v15, 0.0 }
 0x23b   : > { %3587 = vperm.xlu0 %6754, %v8671_v37   ;;  %v8695_v22 = vpop.permute.xlu2 %2998  ;;  %v11399_v0 = vld [vmem:[#allocation29_spill] sm:$0xff]  ;;  %v1472_v55 = vld [vmem:[%s6832_s8 + $0xef] sm:$0xff] }
 0x23c   : > { %11394 = vst [vmem:[#allocation78_spill] sm:$0xff] %v8695_v22  ;;  %v8702_v30 = vpop.permute.xlu1 %2948  ;;  %v8704_v50 = vpop.permute.xlu0 %2943  ;;  %v679_v46 = vmul.f32 %v11399_v0, %v463_v5  ;;  %v314_v0 = vld [vmem:[%s6832_s8 + $0x105] sm:$0xff] }
 0x23d   : > { %11395 = vst [vmem:[#allocation79_spill] sm:$0xff] %v8702_v30  ;;  %v1951_v26 = vpop.f32.mrf.mxu2  ;;  %v2547_v2 = vpop.f32.mrf.mxu3  ;;  %3765 = vmatpush.bf16.msra.mxu1 %v6692_v3  ;;  %v11401_v3 = vmax.f32 %v8682_v54, 0.0  ;;  %v6690_v30 = vld [vmem:[%s11145_s1 + $0x160] sm:$0xff] }
 0x23e   : > { %11396 = vst [vmem:[#allocation80_spill] sm:$0xff] %v8704_v50  ;;  %v8711_v44 = vadd.f32 %v1951_v26, %v1374_v16  ;;  %v8714_v21 = vadd.f32 %v2547_v2, %v8340_v1  ;;  %v8716_v42 = vpop.f32.mrf.mxu1  ;;  %v8727_v16 = vld [vmem:[%s11146_s2 + $0xf9] sm:$0xff]  ;;  %v2751_v26 = vmul.f32 %v8536_v60, %v2679_v31  ;;  %v6691_v1 = vld [vmem:[%s11145_s1 + $0x168] sm:$0xff]  ;;  %v1228_v31 = vpop.f32.mrf.mxu0 }
 0x23f   : > { %11397 = vst [vmem:[#allocation81_spill] sm:$0xff] %v8716_v42  ;;  %v6717_v2 = vld [vmem:[%s11145_s1 + $0x238] sm:$0xff]  ;;  %v1830_v5 = vmul.f32 %v7809_v9, %v11401_v3  ;;  %v1829_v42 = vmul.f32 %v7695_v6, %v11403_v7  ;;  %v1376_v9 = vadd.f32 %v8486_v34, %v1228_v31  ;;  %v1543_v6 = vmul.f32 %v8536_v60, %v1471_v8 }
 0x240   : > { %5606 = vmatpush.bf16.msra.mxu0 %v6717_v2  ;;  %v2787_v50 = vadd.f32 %v8543_v62, %v2751_v26  ;;  %v8787_v26 = vld [vmem:[%s11146_s2 + $0x111] sm:$0xff] }
 0x241   : > { %2589 = vmatmul.bf16.gmra.mxu3 %v2462_v52  ;;  %3173 = vmatmul.bf16.gmra.mxu0 %v3070_v56  ;;  %v2788_v52 = vadd.f32 %v8543_v62, %v2752_v36  ;;  %v390_v36 = vmul.f32 %v8536_v60, %v315_v14  ;;  %v1852_v34 = vpack.c.bf16 %v1830_v5, %v1829_v42 }
 0x242   : > { %3612 = vperm.xlu2 %6756, %v8722_v13   ;;  %3607 = vperm.xlu1 %6755, %v8727_v16   ;;  %v699_v13 = vpack.c.bf16 %v679_v46, %v678_v45  ;;  %v389_v14 = vmul.f32 %v8536_v60, %v314_v0  ;;  %v8782_v45 = vld [vmem:[%s11146_s2 + $0x119] sm:$0xff]  ;;  %v1544_v42 = vmul.f32 %v8536_v60, %v1472_v55  ;;  %v2823_v8 = vmax.f32 %v2787_v50, 0.0 }
 0x243   : > { %3602 = vperm.xlu0 %6754, %v8733_v38   ;;  %v8753_v56 = vpop.permute.xlu2 %3013  ;;  %3766 = vmatpush.bf16.msra.mxu1 %v6691_v1  ;;  %v2824_v46 = vmax.f32 %v2788_v52, 0.0  ;;  %11406 = vst [vmem:[#allocation84_spill] sm:$0xff] %v8782_v45  ;;  %v429_v5 = vadd.f32 %v8543_v62, %v390_v36  ;;  %v6689_v52 = vld [vmem:[%s11145_s1 + $0x158] sm:$0xff]  ;;  %v2681_v36 = vld [vmem:[%s6832_s8 + $0x68] sm:$0xff] }
 0x244   : > { %11402 = vst [vmem:[#allocation29_spill] sm:$0xff] %v8753_v56  ;;  %v8760_v3 = vpop.permute.xlu1 %2963  ;;  %v8762_v22 = vpop.permute.xlu0 %2958  ;;  %v428_v55 = vadd.f32 %v8543_v62, %v389_v14  ;;  %v3039_v14 = vmul.f32 %v8330_v11, %v2823_v8  ;;  %v2753_v11 = vmul.f32 %v8536_v60, %v2681_v36  ;;  %v8839_v8 = vld [vmem:[%s11146_s2 + $0x131] sm:$0xff] }
 0x245   : > { %11404 = vst [vmem:[#allocation30_spill] sm:$0xff] %v8760_v3  ;;  %v1953_v56 = vpop.f32.mrf.mxu2  ;;  %v2550_v2 = vpop.f32.mrf.mxu3  ;;  %v11414_v36 = vld [vmem:[#allocation32_spill] sm:$0xff] }
 0x246   : > { %11405 = vst [vmem:[#allocation83_spill] sm:$0xff] %v8762_v22  ;;  %v8771_v31 = vadd.f32 %v1953_v56, %v1376_v9  ;;  %v8774_v7 = vadd.f32 %v2550_v2, %v8387_v17  ;;  %v8776_v1 = vpop.f32.mrf.mxu1  ;;  %v8793_v17 = vld [vmem:[%s11146_s2 + $0x109] sm:$0xff]  ;;  %v8800_v56 = vadd.f32 %v8543_v62, %v1543_v6  ;;  %v8813_v9 = vadd.f32 %v8543_v62, %v1544_v42 }
 0x247   : > { %3767 = vmatpush.bf16.msra.mxu1 %v6690_v30  ;;  %v3040_v30 = vmul.f32 %v8531_v41, %v2824_v46  ;;  %v1379_v2 = vadd.f32 %v8546_v18, %v7759_v61  ;;  %11413 = vst [vmem:[#allocation89_spill] sm:$0xff] %v8839_v8 }
 0x248   : > { %1427 = vmatmul.bf16.gmra.mxu1 %v699_v13  ;;  %1995 = vmatmul.bf16.gmra.mxu2 %v1852_v34  ;;  %v11407_v13 = vmax.f32 %v8475_v20, 0.0  ;;  %v465_v20 = vmax.f32 %v429_v5, 0.0  ;;  %v11192_v42 = vmax.f32 %v8800_v56, 0.0 }
 0x249   : > { %v3071_v5 = vpack.c.bf16 %v3040_v30, %v3039_v14  ;;  %v317_v30 = vld [vmem:[%s6832_s8 + $0x11d] sm:$0xff] }
 0x24a   : > { %3627 = vperm.xlu2 %6756, %v8782_v45   ;;  %3622 = vperm.xlu1 %6755, %v8787_v26   ;;  %v2438_v0 = vmul.f32 %v8157_v10, %v11407_v13  ;;  %v11411_v10 = vmax.f32 %v8460_v59, 0.0  ;;  %v464_v59 = vmax.f32 %v428_v55, 0.0  ;;  %v1831_v14 = vmul.f32 %v7806_v47, %v11192_v42 }
 0x24b   : > { %3617 = vperm.xlu0 %6754, %v8793_v17   ;;  %v8810_v50 = vpop.permute.xlu2 %3028  ;;  %3768 = vmatpush.bf16.msra.mxu1 %v6689_v52  ;;  %v6688_v52 = vld [vmem:[%s11145_s1 + $0x150] sm:$0xff]  ;;  %v392_v47 = vmul.f32 %v8536_v60, %v317_v30 }
 0x24c   : > { %11408 = vst [vmem:[#allocation85_spill] sm:$0xff] %v8810_v50  ;;  %v8818_v6 = vpop.permute.xlu1 %2978  ;;  %v8820_v34 = vpop.permute.xlu0 %2973  ;;  %v2437_v41 = vmul.f32 %v7993_v51, %v11411_v10  ;;  %v2682_v50 = vld [vmem:[%s6832_s8 + $0x70] sm:$0xff] }
 0x24d   : > { %11409 = vst [vmem:[#allocation86_spill] sm:$0xff] %v8818_v6  ;;  %v1956_v46 = vpop.f32.mrf.mxu2  ;;  %v2552_v13 = vpop.f32.mrf.mxu3  ;;  %v2754_v10 = vmul.f32 %v8536_v60, %v2682_v50 }
 0x24e   : > { %11410 = vst [vmem:[#allocation87_spill] sm:$0xff] %v8820_v34  ;;  %v8828_v3 = vadd.f32 %v1956_v46, %v1379_v2  ;;  %v8831_v61 = vadd.f32 %v2552_v13, %v8434_v24  ;;  %v8833_v18 = vpop.f32.mrf.mxu1  ;;  %v2463_v51 = vpack.c.bf16 %v2438_v0, %v2437_v41  ;;  %v8844_v24 = vld [vmem:[%s11146_s2 + $0x129] sm:$0xff]  ;;  %v8853_v0 = vld [vmem:[%s11146_s2 + $0x121] sm:$0xff]  ;;  %v681_v2 = vmul.f32 %v11414_v36, %v465_v20  ;;  %v316_v41 = vld [vmem:[%s6832_s8 + $0x115] sm:$0xff] }
 0x24f   : > { %11412 = vst [vmem:[#allocation88_spill] sm:$0xff] %v8833_v18  ;;  %v1474_v46 = vld [vmem:[%s6832_s8 + $0xff] sm:$0xff]  ;;  %v1473_v18 = vld [vmem:[%s6832_s8 + $0xf7] sm:$0xff]  ;;  %v2789_v34 = vadd.f32 %v8543_v62, %v2753_v11  ;;  %3769 = vmatpush.bf16.msra.mxu1 %v6688_v52  ;;  %v6687_v20 = vld [vmem:[%s11145_s1 + $0x148] sm:$0xff]  ;;  %v2790_v6 = vadd.f32 %v8543_v62, %v2754_v10 }
 0x250   : > { %v11415_v13 = vld [vmem:[#allocation21_spill] sm:$0xff]  ;;  %v1546_v42 = vmul.f32 %v8536_v60, %v1474_v46  ;;  %v1545_v22 = vmul.f32 %v8536_v60, %v1473_v18 }
 0x251   : > { %2594 = vmatmul.bf16.gmra.mxu3 %v2463_v51  ;;  %3178 = vmatmul.bf16.gmra.mxu0 %v3071_v5  ;;  %v680_v55 = vmul.f32 %v11415_v13, %v464_v59  ;;  %v11416_v51 = vmax.f32 %v8813_v9, 0.0  ;;  %v1381_v59 = vadd.f32 %v8597_v27, %v7785_v29  ;;  %v391_v13 = vmul.f32 %v8536_v60, %v316_v41 }
 0x252   : > { %3642 = vperm.xlu2 %6756, %v8839_v8   ;;  %3637 = vperm.xlu1 %6755, %v8844_v24   ;;  %v8904_v10 = vadd.f32 %v8543_v62, %v1545_v22  ;;  %v11419_v41 = vmax.f32 %v8573_v4, 0.0  ;;  %v6700_v22 = vld [vmem:[%s11145_s1 + $0x1b0] sm:$0xff] }
 0x253   : > { %3632 = vperm.xlu0 %6754, %v8853_v0   ;;  %v8869_v50 = vpop.permute.xlu2 %3477  ;;  %v1832_v5 = vmul.f32 %v7722_v32, %v11416_v51  ;;  %v700_v52 = vpack.c.bf16 %v681_v2, %v680_v55  ;;  %v2825_v51 = vmax.f32 %v2789_v34, 0.0  ;;  %3770 = vmatpush.bf16.msra.mxu1 %v6687_v20  ;;  %v6686_v55 = vld [vmem:[%s11145_s1 + $0x140] sm:$0xff]  ;;  %v431_v2 = vadd.f32 %v8543_v62, %v392_v47  ;;  %v11418_v34 = vld [vmem:[#allocation55_spill] sm:$0xff] }
 0x254   : > { %v8880_v36 = vpop.permute.xlu1 %2993  ;;  %v8882_v11 = vpop.permute.xlu0 %2988  ;;  %v430_v18 = vadd.f32 %v8543_v62, %v391_v13  ;;  %v11421_v20 = vld [vmem:[#allocation50_spill] sm:$0xff]  ;;  %4379 = vmatpush.bf16.msra.mxu2 %v6700_v22  ;;  %v6708_v22 = vld [vmem:[%s11145_s1 + $0x1f0] sm:$0xff] }
 0x255   : > { %11417 = vst [vmem:[#allocation32_spill] sm:$0xff] %v8880_v36  ;;  %v1958_v8 = vpop.f32.mrf.mxu2  ;;  %v2555_v30 = vpop.f32.mrf.mxu3  ;;  %v1853_v45 = vpack.c.bf16 %v1832_v5, %v1831_v14  ;;  %v11420_v14 = vld [vmem:[#allocation20_spill] sm:$0xff]  ;;  %v467_v13 = vmax.f32 %v431_v2, 0.0  ;;  %4993 = vmatpush.bf16.msra.mxu3 %v6708_v22 }
 0x256   : > { %v8888_v32 = vadd.f32 %v1958_v8, %v1381_v59  ;;  %v8891_v29 = vadd.f32 %v2555_v30, %v8484_v48  ;;  %v8893_v27 = vpop.f32.mrf.mxu1  ;;  %v2826_v8 = vmax.f32 %v2790_v6, 0.0  ;;  %v8901_v48 = vadd.f32 %v8543_v62, %v1546_v42  ;;  %v2684_v6 = vld [vmem:[%s6832_s8 + $0x80] sm:$0xff]  ;;  %v2683_v42 = vld [vmem:[%s6832_s8 + $0x78] sm:$0xff] }
 0x257   : > { %v2439_v46 = vmul.f32 %v11420_v14, %v11419_v41  ;;  %3771 = vmatpush.bf16.msra.mxu1 %v6686_v55  ;;  %v11426_v30 = vld [vmem:[#allocation13_spill] sm:$0xff] }
 0x258   : > { %1432 = vmatmul.bf16.gmra.mxu1 %v700_v52  ;;  %2000 = vmatmul.bf16.gmra.mxu2 %v1853_v45  ;;  %v3041_v45 = vmul.f32 %v8529_v12, %v2825_v51  ;;  %v466_v12 = vmax.f32 %v430_v18, 0.0  ;;  %v11425_v52 = vmax.f32 %v8570_v33, 0.0  ;;  %v3042_v55 = vmul.f32 %v8379_v23, %v2826_v8 }
 0x259   : > { %v11195_v14 = vmax.f32 %v8901_v48, 0.0  ;;  %v2756_v18 = vmul.f32 %v8536_v60, %v2684_v6  ;;  %v2755_v23 = vmul.f32 %v8536_v60, %v2683_v42  ;;  %v1476_v42 = vld [vmem:[%s6832_s8 + $0x10f] sm:$0xff] }
 0x25a   : > { %4091 = vperm.xlu2 %6756, %v8304_v35   ;;  %4086 = vperm.xlu1 %6755, %v11418_v34   ;;  %v11422_v35 = vld [vmem:[#allocation36_spill] sm:$0xff]  ;;  %v2440_v51 = vmul.f32 %v11426_v30, %v11425_v52  ;;  %v3072_v8 = vpack.c.bf16 %v3042_v55, %v3041_v45  ;;  %v11428_v52 = vld [vmem:[#allocation31_spill] sm:$0xff]  ;;  %v11431_v45 = vld [vmem:[#allocation58_spill] sm:$0xff] }
 0x25b   : > { %4081 = vperm.xlu0 %6754, %v11421_v20   ;;  %v8913_v47 = vpop.permute.xlu2 %3492  ;;  %v1384_v5 = vadd.f32 %v8652_v58, %v11422_v35  ;;  %v11196_v58 = vmax.f32 %v8904_v10, 0.0  ;;  %v11433_v55 = vld [vmem:[#allocation24_spill] sm:$0xff] }
 0x25c   : > { %v8922_v59 = vpop.permute.xlu1 %3008  ;;  %v8924_v4 = vpop.permute.xlu0 %3003  ;;  %v2464_v33 = vpack.c.bf16 %v2440_v51, %v2439_v46  ;;  %v11430_v46 = vld [vmem:[#allocation34_spill] sm:$0xff]  ;;  %v11432_v51 = vld [vmem:[#allocation59_spill] sm:$0xff] }
 0x25d   : > { %11423 = vst [vmem:[#allocation21_spill] sm:$0xff] %v8922_v59  ;;  %v1961_v34 = vpop.f32.mrf.mxu2  ;;  %v2557_v41 = vpop.f32.mrf.mxu3  ;;  %v1833_v6 = vmul.f32 %v11430_v46, %v11196_v58  ;;  %v1475_v58 = vld [vmem:[%s6832_s8 + $0x107] sm:$0xff] }
 0x25e   : > { %11424 = vst [vmem:[#allocation55_spill] sm:$0xff] %v8924_v4  ;;  %v8932_v20 = vadd.f32 %v1961_v34, %v1384_v5  ;;  %v8935_v35 = vadd.f32 %v2557_v41, %v8550_v57  ;;  %v8937_v2 = vpop.f32.mrf.mxu1  ;;  %v682_v5 = vmul.f32 %v11428_v52, %v466_v12  ;;  %v11429_v57 = vld [vmem:[#allocation37_spill] sm:$0xff]  ;;  %v683_v34 = vmul.f32 %v11433_v55, %v467_v13  ;;  %v3286_v52 = vld [vmem:[%s6832_s8 + $0x21] sm:$0xff] }
 0x25f   : > { %11427 = vst [vmem:[#allocation20_spill] sm:$0xff] %v8937_v2  ;;  %v1834_v30 = vmul.f32 %v11429_v57, %v11195_v14  ;;  %v2792_v12 = vadd.f32 %v8543_v62, %v2756_v18  ;;  %v2791_v41 = vadd.f32 %v8543_v62, %v2755_v23  ;;  %v3285_v57 = vld [vmem:[%s6832_s8 + $0x19] sm:$0xff]  ;;  %v3358_v2 = vmul.f32 %v8536_v60, %v3286_v52 }
 0x260   : > { %v3357_v22 = vmul.f32 %v8536_v60, %v3285_v57  ;;  %v11440_v52 = vld [vmem:[#allocation62_spill] sm:$0xff]  ;;  %v11442_v57 = vmax.f32 %v8698_v15, 0.0 }
 0x261   : > { %2599 = vmatmul.bf16.gmra.mxu3 %v2464_v33  ;;  %3183 = vmatmul.bf16.gmra.mxu0 %v3072_v8  ;;  %v11434_v33 = vld [vmem:[#allocation54_spill] sm:$0xff]  ;;  %v1854_v55 = vpack.c.bf16 %v1834_v30, %v1833_v6  ;;  %v2827_v4 = vmax.f32 %v2791_v41, 0.0  ;;  %v6716_v30 = vld [vmem:[%s11145_s1 + $0x230] sm:$0xff]  ;;  %v11438_v6 = vmax.f32 %v8682_v54, 0.0  ;;  %v11444_v54 = vld [vmem:[#allocation57_spill] sm:$0xff] }
 0x262   : > { %4106 = vperm.xlu2 %6756, %v11431_v45   ;;  %4101 = vperm.xlu1 %6755, %v11432_v51   ;;  %v701_v45 = vpack.c.bf16 %v683_v34, %v682_v5  ;;  %v1548_v51 = vmul.f32 %v8536_v60, %v1476_v42  ;;  %v1547_v5 = vmul.f32 %v8536_v60, %v1475_v58  ;;  %v11439_v42 = vld [vmem:[#allocation46_spill] sm:$0xff] }
 0x263   : > { %4096 = vperm.xlu0 %6754, %v11434_v33   ;;  %v8958_v8 = vpop.permute.xlu2 %3507  ;;  %v2442_v34 = vmul.f32 %v11439_v42, %v11438_v6  ;;  %v3394_v58 = vadd.f32 %v8543_v62, %v3358_v2  ;;  %v3393_v41 = vadd.f32 %v8543_v62, %v3357_v22  ;;  %5607 = vmatpush.bf16.msra.mxu0 %v6716_v30  ;;  %v2686_v42 = vld [vmem:[%s6832_s8 + $0x90] sm:$0xff] }
 0x264   : > { %v8962_v14 = vpop.permute.xlu1 %3023  ;;  %v8964_v46 = vpop.permute.xlu0 %3018  ;;  %v8998_v6 = vadd.f32 %v8543_v62, %v1547_v5 }
 0x265   : > { %11435 = vst [vmem:[#allocation50_spill] sm:$0xff] %v8962_v14  ;;  %v8968_v13 = vpop.f32.mrf.mxu2  ;;  %v2560_v18 = vpop.f32.mrf.mxu3  ;;  %v2828_v14 = vmax.f32 %v2792_v12, 0.0  ;;  %v11441_v12 = vld [vmem:[#allocation63_spill] sm:$0xff] }
 0x266   : > { %11436 = vst [vmem:[#allocation36_spill] sm:$0xff] %v8964_v46  ;;  %v8971_v23 = vadd.f32 %v2560_v18, %v8601_v49  ;;  %v8973_v33 = vpop.f32.mrf.mxu1  ;;  %v8982_v49 = vadd.f32 %v8543_v62, %v1548_v51  ;;  %v11198_v46 = vmax.f32 %v8998_v6, 0.0 }
 0x267   : > { %11437 = vst [vmem:[#allocation13_spill] sm:$0xff] %v8968_v13  ;;  %v3044_v51 = vmul.f32 %v8589_v63, %v2828_v14  ;;  %v2685_v63 = vld [vmem:[%s6832_s8 + $0x88] sm:$0xff]  ;;  %v3430_v14 = vmax.f32 %v3394_v58, 0.0 }
 0x268   : > { %1437 = vmatmul.bf16.gmra.mxu1 %v701_v45  ;;  %2005 = vmatmul.bf16.gmra.mxu2 %v1854_v55  ;;  %v11443_v45 = vld [vmem:[#allocation47_spill] sm:$0xff]  ;;  %v3043_v55 = vmul.f32 %v8591_v25, %v2827_v4  ;;  %v3429_v25 = vmax.f32 %v3393_v41, 0.0  ;;  %v2757_v58 = vmul.f32 %v8536_v60, %v2685_v63 }
 0x269   : > { %v2441_v18 = vmul.f32 %v11443_v45, %v11442_v57  ;;  %v11197_v57 = vmax.f32 %v8982_v49, 0.0 }
 0x26a   : > { %4121 = vperm.xlu2 %6756, %v11440_v52   ;;  %4116 = vperm.xlu1 %6755, %v11441_v12   ;;  %v11445_v52 = vld [vmem:[#allocation42_spill] sm:$0xff] }
 0x26b   : > { %4111 = vperm.xlu0 %6754, %v11444_v54   ;;  %v1389_v2 = vadd.f32 %v8776_v1, %v11445_v52  ;;  %v2465_v45 = vpack.c.bf16 %v2442_v34, %v2441_v18  ;;  %v2758_v1 = vmul.f32 %v8536_v60, %v2686_v42  ;;  %v3073_v52 = vpack.c.bf16 %v3044_v51, %v3043_v55  ;;  %v11448_v55 = vld [vmem:[#allocation61_spill] sm:$0xff] }
 0x26c   : > { %v9003_v12 = vpop.permute.xlu2 %3522  ;;  %v3473_v22 = vpop.permute.xlu1 %3472  ;;  %v3288_v42 = vld [vmem:[%s6832_s8 + $0x31] sm:$0xff] }
 0x26d   : > { %v3468_v15 = vpop.permute.xlu0 %3467  ;;  %v1966_v13 = vpop.f32.mrf.mxu2  ;;  %v3646_v34 = vmul.f32 %v3473_v22, %v3430_v14  ;;  %v2794_v51 = vadd.f32 %v8543_v62, %v2758_v1  ;;  %v1478_v22 = vld [vmem:[%s6832_s8 + $0x11f] sm:$0xff] }
 0x26e   : > { %v9007_v4 = vadd.f32 %v1966_v13, %v1389_v2  ;;  %v2562_v30 = vpop.f32.mrf.mxu3  ;;  %v9009_v5 = vpop.f32.mrf.mxu1  ;;  %v11447_v13 = vld [vmem:[#allocation35_spill] sm:$0xff]  ;;  %v3645_v18 = vmul.f32 %v3468_v15, %v3429_v25  ;;  %v11449_v2 = vld [vmem:[#allocation2_spill] sm:$0xff]  ;;  %v2793_v15 = vadd.f32 %v8543_v62, %v2757_v58  ;;  %v1550_v58 = vmul.f32 %v8536_v60, %v1478_v22  ;;  %v11455_v22 = vld [vmem:[#allocation64_spill] sm:$0xff] }
 0x26f   : > { %11446 = vst [vmem:[#allocation31_spill] sm:$0xff] %v9009_v5  ;;  %v9013_v54 = vadd.f32 %v2562_v30, %v8647_v53  ;;  %v1836_v41 = vmul.f32 %v11447_v13, %v11197_v57  ;;  %v1477_v53 = vld [vmem:[%s6832_s8 + $0x117] sm:$0xff]  ;;  %v1835_v63 = vmul.f32 %v11449_v2, %v11198_v46  ;;  %v3360_v13 = vmul.f32 %v8536_v60, %v3288_v42 }
 0x270   : > { %v1549_v25 = vmul.f32 %v8536_v60, %v1477_v53  ;;  %v2830_v2 = vmax.f32 %v2794_v51, 0.0  ;;  %v11452_v53 = vld [vmem:[#allocation68_spill] sm:$0xff]  ;;  %v11454_v51 = vld [vmem:[#allocation9_spill] sm:$0xff] }
 0x271   : > { %2604 = vmatmul.bf16.gmra.mxu3 %v2465_v45  ;;  %3188 = vmatmul.bf16.gmra.mxu0 %v3073_v52  ;;  %v1855_v1 = vpack.c.bf16 %v1836_v41, %v1835_v63  ;;  %v3681_v52 = vpack.c.bf16 %v3646_v34, %v3645_v18  ;;  %v9051_v34 = vadd.f32 %v8543_v62, %v3360_v13  ;;  %v11451_v18 = vld [vmem:[#allocation67_spill] sm:$0xff] }
 0x272   : > { %4136 = vperm.xlu2 %6756, %v8450_v43   ;;  %4131 = vperm.xlu1 %6755, %v8456_v28   ;;  %v3287_v43 = vld [vmem:[%s6832_s8 + $0x29] sm:$0xff]  ;;  %v9048_v41 = vadd.f32 %v8543_v62, %v1549_v25  ;;  %v3046_v63 = vmul.f32 %v8641_v19, %v2830_v2 }
 0x273   : > { %4126 = vperm.xlu0 %6754, %v11448_v55   ;;  %v3359_v5 = vmul.f32 %v8536_v60, %v3287_v43  ;;  %v2687_v43 = vld [vmem:[%s6832_s8 + $0x98] sm:$0xff] }
 0x274   : > { %v9029_v30 = vpop.permute.xlu2 %3537  ;;  %v9031_v45 = vpop.permute.xlu1 %3487 }
 0x275   : > { %v3483_v14 = vpop.permute.xlu0 %3482  ;;  %v9036_v28 = vpop.f32.mrf.mxu2  ;;  %v3395_v25 = vadd.f32 %v8543_v62, %v3359_v5  ;;  %v11199_v5 = vmax.f32 %v9051_v34, 0.0 }
 0x276   : > { %11450 = vst [vmem:[#allocation37_spill] sm:$0xff] %v9036_v28  ;;  %v2565_v55 = vpop.f32.mrf.mxu3  ;;  %v9040_v57 = vpop.f32.mrf.mxu1  ;;  %v2829_v28 = vmax.f32 %v2793_v15, 0.0  ;;  %v1586_v15 = vadd.f32 %v8543_v62, %v1550_v58  ;;  %v6699_v58 = vld [vmem:[%s11145_s1 + $0x1a8] sm:$0xff] }
 0x277   : > { %v9043_v46 = vadd.f32 %v2565_v55, %v8711_v44  ;;  %v11453_v44 = vmax.f32 %v8813_v9, 0.0  ;;  %v11458_v9 = vmax.f32 %v8800_v56, 0.0  ;;  %v2759_v56 = vmul.f32 %v8536_v60, %v2687_v43  ;;  %v11463_v43 = vld [vmem:[#allocation8_spill] sm:$0xff]  ;;  %4380 = vmatpush.bf16.msra.mxu2 %v6699_v58 }
 0x278   : > { %2010 = vmatmul.bf16.gmra.mxu2 %v1855_v1  ;;  %3772 = vmatmul.bf16.vlgmr.msra.gmra.mxu1 %v3681_v52  ;;  %v11456_v1 = vld [vmem:[#allocation3_spill] sm:$0xff] }
 0x279   : > { %v2444_v42 = vmul.f32 %v11454_v51, %v11453_v44  ;;  %v1394_v52 = vadd.f32 %v8893_v27, %v11456_v1  ;;  %v11460_v44 = vld [vmem:[#allocation25_spill] sm:$0xff] }
 0x27a   : > { %4151 = vperm.xlu2 %6756, %v11451_v18   ;;  %4146 = vperm.xlu1 %6755, %v11452_v53   ;;  %v11459_v18 = vld [vmem:[#allocation5_spill] sm:$0xff]  ;;  %v3045_v19 = vmul.f32 %v11460_v44, %v2829_v28  ;;  %v3431_v44 = vmax.f32 %v3395_v25, 0.0  ;;  %v11464_v25 = vld [vmem:[#allocation70_spill] sm:$0xff] }
 0x27b   : > { %4141 = vperm.xlu0 %6754, %v11455_v22   ;;  %v2443_v53 = vmul.f32 %v11459_v18, %v11458_v9  ;;  %v2688_v22 = vld [vmem:[%s6832_s8 + $0xa0] sm:$0xff]  ;;  %v1622_v18 = vmax.f32 %v1586_v15, 0.0  ;;  %v3648_v15 = vmul.f32 %v3483_v14, %v11199_v5 }
 0x27c   : > { %v9065_v13 = vpop.permute.xlu2 %3552  ;;  %v9067_v55 = vpop.permute.xlu1 %3502  ;;  %v3074_v9 = vpack.c.bf16 %v3046_v63, %v3045_v19  ;;  %v11462_v63 = vmax.f32 %v9048_v41, 0.0  ;;  %v2795_v19 = vadd.f32 %v8543_v62, %v2759_v56 }
 0x27d   : > { %11457 = vst [vmem:[#allocation34_spill] sm:$0xff] %v9065_v13  ;;  %v9073_v2 = vpop.permute.xlu0 %3497  ;;  %v1971_v51 = vpop.f32.mrf.mxu2  ;;  %v2466_v13 = vpack.c.bf16 %v2444_v42, %v2443_v53  ;;  %v6707_v42 = vld [vmem:[%s11145_s1 + $0x1e8] sm:$0xff] }
 0x27e   : > { %v9078_v59 = vadd.f32 %v1971_v51, %v1394_v52  ;;  %v2567_v27 = vpop.f32.mrf.mxu3  ;;  %v9080_v1 = vpop.f32.mrf.mxu1  ;;  %v2760_v52 = vmul.f32 %v8536_v60, %v2688_v22  ;;  %v11465_v53 = vld [vmem:[#allocation71_spill] sm:$0xff]  ;;  %v11466_v51 = vld [vmem:[#allocation66_spill] sm:$0xff]  ;;  %v11467_v22 = vld [vmem:[#allocation33_spill] sm:$0xff]  ;;  %4994 = vmatpush.bf16.msra.mxu3 %v6707_v42 }
 0x27f   : > { %11461 = vst [vmem:[#allocation58_spill] sm:$0xff] %v9080_v1  ;;  %v9084_v28 = vadd.f32 %v2567_v27, %v8771_v31  ;;  %v1837_v31 = vmul.f32 %v11463_v43, %v11462_v63  ;;  %v1838_v27 = vmul.f32 %v11467_v22, %v1622_v18  ;;  %v3290_v43 = vld [vmem:[%s6832_s8 + $0x41] sm:$0xff] }
 0x280   : > { %v2796_v14 = vadd.f32 %v8543_v62, %v2760_v52  ;;  %v3362_v52 = vmul.f32 %v8536_v60, %v3290_v43  ;;  %v6715_v42 = vld [vmem:[%s11145_s1 + $0x228] sm:$0xff]  ;;  %v11475_v43 = vld [vmem:[#allocation69_spill] sm:$0xff] }
 0x281   : > { %2609 = vmatmul.bf16.gmra.mxu3 %v2466_v13  ;;  %3193 = vmatmul.bf16.gmra.mxu0 %v3074_v9  ;;  %v3289_v13 = vld [vmem:[%s6832_s8 + $0x39] sm:$0xff]  ;;  %v3647_v9 = vmul.f32 %v8869_v50, %v3431_v44  ;;  %v1856_v56 = vpack.c.bf16 %v1838_v27, %v1837_v31  ;;  %v2831_v50 = vmax.f32 %v2795_v19, 0.0  ;;  %v11472_v19 = vld [vmem:[#allocation75_spill] sm:$0xff] }
 0x282   : > { %4166 = vperm.xlu2 %6756, %v11464_v25   ;;  %4161 = vperm.xlu1 %6755, %v11465_v53   ;;  %v2832_v31 = vmax.f32 %v2796_v14, 0.0 }
 0x283   : > { %4156 = vperm.xlu0 %6754, %v11466_v51   ;;  %v3361_v51 = vmul.f32 %v8536_v60, %v3289_v13  ;;  %v3682_v58 = vpack.c.bf16 %v3648_v15, %v3647_v9  ;;  %v11470_v15 = vmax.f32 %v8904_v10, 0.0  ;;  %v11471_v13 = vld [vmem:[#allocation23_spill] sm:$0xff]  ;;  %5608 = vmatpush.bf16.msra.mxu0 %v6715_v42 }
 0x284   : > { %v9105_v1 = vpop.permute.xlu2 %3567  ;;  %v9107_v63 = vpop.permute.xlu1 %3517  ;;  %v2689_v10 = vld [vmem:[%s6832_s8 + $0xa8] sm:$0xff] }
 0x285   : > { %11468 = vst [vmem:[#allocation59_spill] sm:$0xff] %v9105_v1  ;;  %v9111_v25 = vpop.permute.xlu0 %3512  ;;  %v9113_v53 = vpop.f32.mrf.mxu2  ;;  %v2445_v22 = vmul.f32 %v11471_v13, %v11470_v15  ;;  %v9129_v27 = vadd.f32 %v8543_v62, %v3361_v51  ;;  %v3398_v15 = vadd.f32 %v8543_v62, %v3362_v52  ;;  %v11478_v13 = vld [vmem:[#allocation10_spill] sm:$0xff] }
 0x286   : > { %11469 = vst [vmem:[#allocation24_spill] sm:$0xff] %v9113_v53  ;;  %v2570_v5 = vpop.f32.mrf.mxu3  ;;  %v9116_v18 = vpop.f32.mrf.mxu1  ;;  %v2690_v53 = vld [vmem:[%s6832_s8 + $0xb0] sm:$0xff]  ;;  %v1399_v51 = vadd.f32 %v8973_v33, %v11478_v13 }
 0x287   : > { %v9119_v44 = vadd.f32 %v2570_v5, %v8828_v3  ;;  %v11473_v3 = vld [vmem:[#allocation76_spill] sm:$0xff]  ;;  %v11474_v5 = vld [vmem:[#allocation18_spill] sm:$0xff]  ;;  %v2762_v13 = vmul.f32 %v8536_v60, %v2690_v53  ;;  %v3434_v36 = vmax.f32 %v3398_v15, 0.0 }
 0x288   : > { %2015 = vmatmul.bf16.gmra.mxu2 %v1856_v56  ;;  %3777 = vmatmul.bf16.gmra.mxu1 %v3682_v58  ;;  %v3047_v9 = vmul.f32 %v11474_v5, %v2831_v50  ;;  %v11476_v56 = vmax.f32 %v8901_v48, 0.0  ;;  %v11477_v58 = vld [vmem:[#allocation6_spill] sm:$0xff]  ;;  %v11200_v48 = vmax.f32 %v9129_v27, 0.0 }
 0x289   : > { %v2798_v53 = vadd.f32 %v8543_v62, %v2762_v13  ;;  %v11482_v15 = vld [vmem:[#allocation74_spill] sm:$0xff] }
 0x28a   : > { %4181 = vperm.xlu2 %6756, %v11472_v19   ;;  %4176 = vperm.xlu1 %6755, %v11473_v3   ;;  %v2446_v14 = vmul.f32 %v11477_v58, %v11476_v56  ;;  %v11480_v3 = vld [vmem:[#allocation65_spill] sm:$0xff] }
 0x28b   : > { %4171 = vperm.xlu0 %6754, %v11475_v43   ;;  %v3048_v50 = vmul.f32 %v11480_v3, %v2832_v31 }
 0x28c   : > { %v9143_v1 = vpop.permute.xlu2 %3582  ;;  %v9145_v19 = vpop.permute.xlu1 %3532  ;;  %v2467_v43 = vpack.c.bf16 %v2446_v14, %v2445_v22  ;;  %v3649_v14 = vmul.f32 %v9031_v45, %v11200_v48 }
 0x28d   : > { %11479 = vst [vmem:[#allocation54_spill] sm:$0xff] %v9143_v1  ;;  %v9148_v5 = vpop.permute.xlu0 %3527  ;;  %v1976_v42 = vpop.f32.mrf.mxu2  ;;  %v3075_v33 = vpack.c.bf16 %v3048_v50, %v3047_v9  ;;  %v2761_v1 = vmul.f32 %v8536_v60, %v2689_v10  ;;  %v3292_v9 = vld [vmem:[%s6832_s8 + $0x51] sm:$0xff]  ;;  %v3291_v10 = vld [vmem:[%s6832_s8 + $0x49] sm:$0xff] }
 0x28e   : > { %v9151_v56 = vadd.f32 %v1976_v42, %v1399_v51  ;;  %v2572_v58 = vpop.f32.mrf.mxu3  ;;  %v9153_v52 = vpop.f32.mrf.mxu1 }
 0x28f   : > { %11481 = vst [vmem:[#allocation46_spill] sm:$0xff] %v9153_v52  ;;  %v9158_v31 = vadd.f32 %v2572_v58, %v8888_v32  ;;  %v3159_v3 = vpop.f32.mrf.mxu0  ;;  %v2797_v32 = vadd.f32 %v8543_v62, %v2761_v1 }
 0x290   : > { %v9161_v22 = vadd.f32 %v3159_v3, %v8650_v39  ;;  %v3650_v39 = vmul.f32 %v8913_v47, %v3434_v36 }
 0x291   : > { %2614 = vmatmul.bf16.gmra.mxu3 %v2467_v43  ;;  %3198 = vmatmul.bf16.gmra.mxu0 %v3075_v33  ;;  %v3363_v43 = vmul.f32 %v8536_v60, %v3291_v10  ;;  %v2834_v33 = vmax.f32 %v2798_v53, 0.0  ;;  %v2833_v36 = vmax.f32 %v2797_v32, 0.0  ;;  %v11485_v53 = vmax.f32 %v8982_v49, 0.0 }
 0x292   : > { %4196 = vperm.xlu2 %6756, %v8662_v40   ;;  %4191 = vperm.xlu1 %6755, %v8671_v37   ;;  %v3683_v40 = vpack.c.bf16 %v3650_v39, %v3649_v14  ;;  %v3364_v37 = vmul.f32 %v8536_v60, %v3292_v9  ;;  %v11487_v9 = vmax.f32 %v8998_v6, 0.0 }
 0x293   : > { %4186 = vperm.xlu0 %6754, %v11482_v15   ;;  %v9196_v60 = vadd.f32 %v8543_v62, %v3363_v43  ;;  %v11489_v15 = vld [vmem:[#allocation79_spill] sm:$0xff]  ;;  %v2692_v43 = vld [vmem:[%s6832_s8 + $0xc0] sm:$0xff] }
 0x294   : > { %v9174_v51 = vpop.permute.xlu2 %3597  ;;  %v9176_v50 = vpop.permute.xlu1 %3547  ;;  %v9193_v14 = vadd.f32 %v8543_v62, %v3364_v37  ;;  %v3050_v39 = vmul.f32 %v11489_v15, %v2834_v33  ;;  %v2090_v62 = vld [vmem:[%s6832_s8 + $0x11f] sm:$0xff] }
 0x295   : > { %11483 = vst [vmem:[#allocation62_spill] sm:$0xff] %v9174_v51  ;;  %v9178_v42 = vpop.permute.xlu0 %3542  ;;  %v9180_v45 = vpop.f32.mrf.mxu2 }
 0x296   : > { %11484 = vst [vmem:[#allocation63_spill] sm:$0xff] %v9180_v45  ;;  %v2575_v1 = vpop.f32.mrf.mxu3  ;;  %v9184_v58 = vpop.f32.mrf.mxu1 }
 0x297   : > { %v9187_v47 = vadd.f32 %v2575_v1, %v8932_v20  ;;  %v3161_v13 = vpop.f32.mrf.mxu0  ;;  %v11486_v20 = vld [vmem:[#allocation52_spill] sm:$0xff]  ;;  %v11491_v1 = vld [vmem:[#allocation77_spill] sm:$0xff] }
 0x298   : > { %v9190_v3 = vadd.f32 %v3161_v13, %v8714_v21  ;;  %3782 = vmatmul.bf16.gmra.mxu1 %v3683_v40  ;;  %v2448_v32 = vmul.f32 %v11486_v20, %v11485_v53  ;;  %v11488_v21 = vld [vmem:[#allocation53_spill] sm:$0xff]  ;;  %v11490_v40 = vld [vmem:[#allocation80_spill] sm:$0xff] }
 0x299   : > { %v2447_v10 = vmul.f32 %v11488_v21, %v11487_v9  ;;  %v3049_v37 = vmul.f32 %v11490_v40, %v2833_v36  ;;  %v11492_v13 = vld [vmem:[#allocation40_spill] sm:$0xff]  ;;  %v2691_v20 = vld [vmem:[%s6832_s8 + $0xb8] sm:$0xff] }
 0x29a   : > { %4211 = vperm.xlu2 %6756, %v8727_v16   ;;  %4206 = vperm.xlu1 %6755, %v8733_v38   ;;  %v1404_v16 = vadd.f32 %v9040_v57, %v11492_v13  ;;  %v6698_v57 = vld [vmem:[%s11145_s1 + $0x1a0] sm:$0xff] }
 0x29b   : > { %4201 = vperm.xlu0 %6754, %v11491_v1   ;;  %v2468_v40 = vpack.c.bf16 %v2448_v32, %v2447_v10  ;;  %v9234_v1 = vld [vmem:[%s11147_s3] ss:$0 sm:$0xff]  ;;  %v3076_v48 = vpack.c.bf16 %v3050_v39, %v3049_v37  ;;  %4381 = vmatpush.bf16.msra.mxu2 %v6698_v57  ;;  %v11496_v32 = vmax.f32 %v9193_v14, 0.0 }
 0x29c   : > { %v9213_v38 = vpop.permute.xlu2 %3612  ;;  %v9215_v49 = vpop.permute.xlu1 %3562  ;;  %v2162_v13 = vmul.f32 %v9234_v1, %v2090_v62  ;;  %v2763_v9 = vmul.f32 %v9234_v1, %v2691_v20  ;;  %v11497_v62 = vmax.f32 %v9196_v60, 0.0  ;;  %v11498_v20 = vld [vmem:[#allocation82_spill] sm:$0xff] }
 0x29d   : > { %11493 = vst [vmem:[#allocation47_spill] sm:$0xff] %v9213_v38  ;;  %v9217_v53 = vpop.permute.xlu0 %3557  ;;  %v1981_v6 = vpop.f32.mrf.mxu2  ;;  %v3652_v10 = vmul.f32 %v9067_v55, %v11496_v32  ;;  %v3293_v57 = vld [vmem:[%s6832_s8 + $0x59] sm:$0xff]  ;;  %v2694_v38 = vld [vmem:[%s6832_s8 + $0xd0] sm:$0xff] }
 0x29e   : > { %v9222_v36 = vadd.f32 %v1981_v6, %v1404_v16  ;;  %v9224_v21 = vpop.f32.mrf.mxu3  ;;  %v9226_v15 = vpop.f32.mrf.mxu1  ;;  %v2764_v16 = vmul.f32 %v9234_v1, %v2692_v43  ;;  %v3651_v39 = vmul.f32 %v9073_v2, %v11497_v62  ;;  %v3294_v43 = vld [vmem:[%s6832_s8 + $0x61] sm:$0xff] }
 0x29f   : > { %11494 = vst [vmem:[#allocation57_spill] sm:$0xff] %v9224_v21  ;;  %v3164_v6 = vpop.f32.mrf.mxu0 }
 0x2a0   : > { %11495 = vst [vmem:[#allocation42_spill] sm:$0xff] %v9226_v15  ;;  %v9239_v33 = vadd.f32 %v3164_v6, %v8774_v7  ;;  %v6697_v7 = vld [vmem:[%s11145_s1 + $0x198] sm:$0xff]  ;;  %v3684_v32 = vpack.c.bf16 %v3652_v10, %v3651_v39  ;;  %v6706_v39 = vld [vmem:[%s11145_s1 + $0x1e0] sm:$0xff] }
 0x2a1   : > { %2619 = vmatmul.bf16.gmra.mxu3 %v2468_v40  ;;  %3203 = vmatmul.bf16.gmra.mxu0 %v3076_v48  ;;  %v9256_v48 = vld [vmem:[%s11148_s4] ss:$0 sm:$0xff] }
 0x2a2   : > { %4226 = vperm.xlu2 %6756, %v8787_v26   ;;  %4221 = vperm.xlu1 %6755, %v8793_v17   ;;  %v2198_v37 = vadd.f32 %v9256_v48, %v2162_v13  ;;  %v2800_v55 = vadd.f32 %v9256_v48, %v2764_v16  ;;  %v2799_v17 = vadd.f32 %v9256_v48, %v2763_v9 }
 0x2a3   : > { %4216 = vperm.xlu0 %6754, %v11498_v20   ;;  %4382 = vmatpush.bf16.msra.mxu2 %v6697_v7  ;;  %v3366_v13 = vmul.f32 %v9234_v1, %v3294_v43  ;;  %v6696_v20 = vld [vmem:[%s11145_s1 + $0x190] sm:$0xff] }
 0x2a4   : > { %v9262_v2 = vpop.permute.xlu2 %3627  ;;  %v9264_v26 = vpop.permute.xlu1 %3577  ;;  %v2234_v15 = vmax.f32 %v2198_v37, 0.0  ;;  %v2836_v52 = vmax.f32 %v2800_v55, 0.0  ;;  %v2835_v43 = vmax.f32 %v2799_v17, 0.0  ;;  %4995 = vmatpush.bf16.msra.mxu3 %v6706_v39  ;;  %v2091_v17 = vld [vmem:[%s6832_s8 + $0x127] sm:$0xff] }
 0x2a5   : > { %11499 = vst [vmem:[#allocation35_spill] sm:$0xff] %v9262_v2  ;;  %v9268_v40 = vpop.permute.xlu0 %3572  ;;  %v9270_v6 = vpop.f32.mrf.mxu2  ;;  %v9289_v37 = vadd.f32 %v9256_v48, %v3366_v13  ;;  %v2693_v13 = vld [vmem:[%s6832_s8 + $0xc8] sm:$0xff] }
 0x2a6   : > { %11500 = vst [vmem:[#allocation61_spill] sm:$0xff] %v9264_v26  ;;  %v2580_v62 = vpop.f32.mrf.mxu3  ;;  %v9273_v16 = vpop.f32.mrf.mxu1  ;;  %v2092_v2 = vld [vmem:[%s6832_s8 + $0x12f] sm:$0xff] }
 0x2a7   : > { %11501 = vst [vmem:[#allocation2_spill] sm:$0xff] %v9270_v6  ;;  %v9279_v7 = vadd.f32 %v2580_v62, %v9007_v4  ;;  %v3166_v9 = vpop.f32.mrf.mxu0  ;;  %v3365_v6 = vmul.f32 %v9234_v1, %v3293_v57  ;;  %4383 = vmatpush.bf16.msra.mxu2 %v6696_v20  ;;  %v6695_v4 = vld [vmem:[%s11145_s1 + $0x188] sm:$0xff]  ;;  %v11504_v62 = vld [vmem:[#allocation84_spill] sm:$0xff] }
 0x2a8   : > { %v9283_v10 = vadd.f32 %v3166_v9, %v8831_v61  ;;  %3787 = vmatmul.bf16.gmra.mxu1 %v3684_v32  ;;  %v11502_v61 = vld [vmem:[#allocation12_spill] sm:$0xff]  ;;  %v11503_v57 = vld [vmem:[#allocation83_spill] sm:$0xff] }
 0x2a9   : > { %v2450_v55 = vmul.f32 %v11502_v61, %v2234_v15  ;;  %v3052_v32 = vmul.f32 %v11503_v57, %v2836_v52  ;;  %v3401_v20 = vadd.f32 %v9256_v48, %v3365_v6  ;;  %v11507_v15 = vmax.f32 %v9048_v41, 0.0  ;;  %v11508_v61 = vld [vmem:[#allocation19_spill] sm:$0xff]  ;;  %v6694_v41 = vld [vmem:[%s11145_s1 + $0x180] sm:$0xff] }
 0x2aa   : > { %4241 = vperm.xlu2 %6756, %v8844_v24   ;;  %4236 = vperm.xlu1 %6755, %v8853_v0   ;;  %v11505_v24 = vld [vmem:[#allocation11_spill] sm:$0xff] }
 0x2ab   : > { %4231 = vperm.xlu0 %6754, %v11504_v62   ;;  %v1409_v0 = vadd.f32 %v9116_v18, %v11505_v24  ;;  %4384 = vmatpush.bf16.msra.mxu2 %v6695_v4  ;;  %v2449_v21 = vmul.f32 %v11508_v61, %v11507_v15  ;;  %v11509_v52 = vld [vmem:[#allocation15_spill] sm:$0xff]  ;;  %v2163_v4 = vmul.f32 %v9234_v1, %v2091_v17  ;;  %v3437_v6 = vmax.f32 %v3401_v20, 0.0 }
 0x2ac   : > { %v9304_v9 = vpop.permute.xlu2 %3642  ;;  %v9306_v45 = vpop.permute.xlu1 %3592  ;;  %v3051_v57 = vmul.f32 %v11509_v52, %v2835_v43  ;;  %v2765_v15 = vmul.f32 %v9234_v1, %v2693_v13  ;;  %v11513_v17 = vmax.f32 %v9289_v37, 0.0 }
 0x2ad   : > { %11506 = vst [vmem:[#allocation67_spill] sm:$0xff] %v9306_v45  ;;  %v9312_v62 = vpop.permute.xlu0 %3587  ;;  %v1986_v39 = vpop.f32.mrf.mxu2  ;;  %v2469_v43 = vpack.c.bf16 %v2450_v55, %v2449_v21  ;;  %v6714_v21 = vld [vmem:[%s11145_s1 + $0x220] sm:$0xff]  ;;  %v2164_v55 = vmul.f32 %v9234_v1, %v2092_v2  ;;  %v2695_v45 = vld [vmem:[%s6832_s8 + $0xd8] sm:$0xff] }
 0x2ae   : > { %11510 = vst [vmem:[#allocation68_spill] sm:$0xff] %v9312_v62  ;;  %v9317_v51 = vadd.f32 %v1986_v39, %v1409_v0  ;;  %v9319_v18 = vpop.f32.mrf.mxu3  ;;  %v9321_v24 = vpop.f32.mrf.mxu1  ;;  %v3077_v61 = vpack.c.bf16 %v3052_v32, %v3051_v57  ;;  %v3970_v0 = vld [vmem:[%s11146_s2 + $0x141] sm:$0xff]  ;;  %v3969_v39 = vld [vmem:[%s11146_s2 + $0x139] sm:$0xff]  ;;  %v2766_v32 = vmul.f32 %v9234_v1, %v2694_v38  ;;  %v3654_v13 = vmul.f32 %v9111_v25, %v11513_v17  ;;  %v3295_v57 = vld [vmem:[%s6832_s8 + $0x69] sm:$0xff] }
 0x2af   : > { %11511 = vst [vmem:[#allocation9_spill] sm:$0xff] %v9319_v18  ;;  %v3169_v52 = vpop.f32.mrf.mxu0  ;;  %4385 = vmatpush.bf16.msra.mxu2 %v6694_v41  ;;  %v2801_v20 = vadd.f32 %v9256_v48, %v2765_v15  ;;  %v11514_v41 = vld [vmem:[#allocation89_spill] sm:$0xff]  ;;  %5609 = vmatpush.bf16.msra.mxu0 %v6714_v21  ;;  %v3653_v38 = vmul.f32 %v8958_v8, %v3437_v6  ;;  %v3319_v8 = vld [vmem:[%s6832_s8 + $0x129] sm:$0xff] }
 0x2b0   : > { %11512 = vst [vmem:[#allocation64_spill] sm:$0xff] %v9321_v24  ;;  %v9335_v24 = vadd.f32 %v3169_v52, %v8891_v29  ;;  %v2199_v29 = vadd.f32 %v9256_v48, %v2163_v4  ;;  %v2200_v25 = vadd.f32 %v9256_v48, %v2164_v55  ;;  %v3296_v52 = vld [vmem:[%s6832_s8 + $0x71] sm:$0xff]  ;;  %v3367_v15 = vmul.f32 %v9234_v1, %v3295_v57 }
 0x2b1   : > { %2624 = vmatmul.bf16.gmra.mxu3 %v2469_v43  ;;  %3208 = vmatmul.bf16.gmra.mxu0 %v3077_v61  ;;  %v2802_v61 = vadd.f32 %v9256_v48, %v2766_v32  ;;  %v3320_v17 = vld [vmem:[%s6832_s8 + $0x131] sm:$0xff]  ;;  %v2837_v18 = vmax.f32 %v2801_v20, 0.0  ;;  %v4551_v32 = vld [vmem:[%s11146_s2 + $0x3a] sm:$0xff]  ;;  %v3368_v57 = vmul.f32 %v9234_v1, %v3296_v52 }
 0x2b2   : > { %4256 = vperm.xlu2 %6756, %v3970_v0   ;;  %4251 = vperm.xlu1 %6755, %v3969_v39   ;;  %v3685_v39 = vpack.c.bf16 %v3654_v13, %v3653_v38  ;;  %v2235_v6 = vmax.f32 %v2199_v29, 0.0  ;;  %v4550_v13 = vld [vmem:[%s11146_s2 + $0x32] sm:$0xff]  ;;  %v2236_v29 = vmax.f32 %v2200_v25, 0.0  ;;  %v11521_v25 = vld [vmem:[#allocation14_spill] sm:$0xff] }
 0x2b3   : > { %4246 = vperm.xlu0 %6754, %v11514_v41   ;;  %v2838_v20 = vmax.f32 %v2802_v61, 0.0  ;;  %v11519_v52 = vld [vmem:[#allocation56_spill] sm:$0xff]  ;;  %v3404_v26 = vadd.f32 %v9256_v48, %v3368_v57  ;;  %v1414_v61 = vadd.f32 %v9184_v58, %v11521_v25 }
 0x2b4   : > { %v9350_v2 = vpop.permute.xlu2 %4091  ;;  %v9352_v43 = vpop.permute.xlu1 %3607  ;;  %v2451_v62 = vmul.f32 %v11519_v52, %v2235_v6 }
 0x2b5   : > { %11515 = vst [vmem:[#allocation3_spill] sm:$0xff] %v9352_v43  ;;  %v9357_v0 = vpop.permute.xlu0 %3602  ;;  %v9359_v4 = vpop.f32.mrf.mxu2  ;;  %v3440_v57 = vmax.f32 %v3404_v26, 0.0 }
 0x2b6   : > { %11516 = vst [vmem:[#allocation5_spill] sm:$0xff] %v9357_v0  ;;  %v2585_v21 = vpop.f32.mrf.mxu3  ;;  %v9363_v41 = vpop.f32.mrf.mxu1  ;;  %v9385_v0 = vadd.f32 %v9256_v48, %v3367_v15  ;;  %v11523_v15 = vld [vmem:[#allocation45_spill] sm:$0xff] }
 0x2b7   : > { %11517 = vst [vmem:[#allocation25_spill] sm:$0xff] %v9359_v4  ;;  %v9367_v43 = vadd.f32 %v2585_v21, %v9078_v59  ;;  %v3171_v55 = vpop.f32.mrf.mxu0  ;;  %v4549_v59 = vld [vmem:[%s11146_s2 + $0x2a] sm:$0xff]  ;;  %v3392_v21 = vmul.f32 %v9234_v1, %v3320_v17  ;;  %v3391_v4 = vmul.f32 %v9234_v1, %v3319_v8 }
 0x2b8   : > { %v9377_v38 = vadd.f32 %v3171_v55, %v8935_v35  ;;  %3792 = vmatmul.bf16.gmra.mxu1 %v3685_v39  ;;  %v11520_v35 = vld [vmem:[#allocation30_spill] sm:$0xff] }
 0x2b9   : > { %v3053_v55 = vmul.f32 %v11520_v35, %v2837_v18  ;;  %v2696_v39 = vld [vmem:[%s6832_s8 + $0xe0] sm:$0xff]  ;;  %v3428_v6 = vadd.f32 %v9256_v48, %v3392_v21  ;;  %v9404_v52 = vadd.f32 %v9256_v48, %v3391_v4  ;;  %v2767_v21 = vmul.f32 %v9234_v1, %v2695_v45  ;;  %v4554_v4 = vld [vmem:[%s11146_s2 + $0x52] sm:$0xff] }
 0x2ba   : > { %11518 = vst [vmem:[#allocation8_spill] sm:$0xff] %v9377_v38  ;;  %4705 = vperm.xlu2 %6756, %v4551_v32   ;;  %4700 = vperm.xlu1 %6755, %v4550_v13   ;;  %v2452_v38 = vmul.f32 %v11523_v15, %v2236_v29  ;;  %v11524_v32 = vld [vmem:[#allocation73_spill] sm:$0xff]  ;;  %v4552_v45 = vld [vmem:[%s11146_s2 + $0x42] sm:$0xff] }
 0x2bb   : > { %4695 = vperm.xlu0 %6754, %v4549_v59   ;;  %v3054_v13 = vmul.f32 %v11524_v32, %v2838_v20  ;;  %v2768_v20 = vmul.f32 %v9234_v1, %v2696_v39  ;;  %v11529_v39 = vmax.f32 %v9385_v0, 0.0 }
 0x2bc   : > { %v9394_v17 = vpop.permute.xlu2 %4106  ;;  %v9396_v8 = vpop.permute.xlu1 %3622  ;;  %v2470_v29 = vpack.c.bf16 %v2452_v38, %v2451_v62  ;;  %v3464_v38 = vmax.f32 %v3428_v6, 0.0  ;;  %v3656_v6 = vmul.f32 %v9003_v12, %v3440_v57 }
 0x2bd   : > { %11522 = vst [vmem:[#allocation70_spill] sm:$0xff] %v9396_v8  ;;  %v9401_v18 = vpop.permute.xlu0 %3617  ;;  %v1991_v59 = vpop.f32.mrf.mxu2  ;;  %v3078_v15 = vpack.c.bf16 %v3054_v13, %v3053_v55  ;;  %v3655_v13 = vmul.f32 %v9107_v63, %v11529_v39  ;;  %v11531_v63 = vmax.f32 %v9404_v52, 0.0 }
 0x2be   : > { %11525 = vst [vmem:[#allocation71_spill] sm:$0xff] %v9401_v18  ;;  %v9407_v58 = vadd.f32 %v1991_v59, %v1414_v61  ;;  %v9409_v35 = vpop.f32.mrf.mxu3  ;;  %v9411_v25 = vpop.f32.mrf.mxu1  ;;  %v4553_v61 = vld [vmem:[%s11146_s2 + $0x4a] sm:$0xff]  ;;  %v9441_v55 = vmul.f32 %v9304_v9, %v3464_v38 }
 0x2bf   : > { %11526 = vst [vmem:[#allocation66_spill] sm:$0xff] %v9409_v35  ;;  %v3174_v32 = vpop.f32.mrf.mxu0  ;;  %v3899_v59 = vld [vmem:[%s6832_s8 + $0x29] sm:$0xff]  ;;  %v3297_v35 = vld [vmem:[%s6832_s8 + $0x79] sm:$0xff] }
 0x2c0   : > { %11527 = vst [vmem:[#allocation33_spill] sm:$0xff] %v9411_v25  ;;  %v9423_v62 = vadd.f32 %v3174_v32, %v8971_v23  ;;  %v3971_v26 = vmul.f32 %v9234_v1, %v3899_v59  ;;  %v2804_v23 = vadd.f32 %v9256_v48, %v2768_v20  ;;  %v2803_v32 = vadd.f32 %v9256_v48, %v2767_v21  ;;  %v3298_v25 = vld [vmem:[%s6832_s8 + $0x81] sm:$0xff] }
 0x2c1   : > { %2629 = vmatmul.bf16.gmra.mxu3 %v2470_v29  ;;  %3213 = vmatmul.bf16.gmra.mxu0 %v3078_v15  ;;  %11530 = vst [vmem:[#allocation75_spill] sm:$0xff] %v9441_v55  ;;  %v3686_v21 = vpack.c.bf16 %v3656_v6, %v3655_v13  ;;  %v3370_v59 = vmul.f32 %v9234_v1, %v3298_v25  ;;  %v4557_v25 = vld [vmem:[%s11146_s2 + $0x6a] sm:$0xff]  ;;  %v3301_v13 = vld [vmem:[%s6832_s8 + $0x99] sm:$0xff] }
 0x2c2   : > { %11528 = vst [vmem:[#allocation23_spill] sm:$0xff] %v9423_v62  ;;  %4720 = vperm.xlu2 %6756, %v4554_v4   ;;  %4715 = vperm.xlu1 %6755, %v4553_v61   ;;  %v3369_v12 = vmul.f32 %v9234_v1, %v3297_v35  ;;  %v4007_v9 = vadd.f32 %v9256_v48, %v3971_v26  ;;  %v2840_v38 = vmax.f32 %v2804_v23, 0.0  ;;  %v2839_v39 = vmax.f32 %v2803_v32, 0.0  ;;  %v4556_v35 = vld [vmem:[%s11146_s2 + $0x62] sm:$0xff]  ;;  %v6705_v23 = vld [vmem:[%s11145_s1 + $0x1d8] sm:$0xff] }
 0x2c3   : > { %4710 = vperm.xlu0 %6754, %v4552_v45   ;;  %v9478_v32 = vadd.f32 %v9256_v48, %v3370_v59  ;;  %4996 = vmatpush.bf16.msra.mxu3 %v6705_v23  ;;  %v11539_v55 = vld [vmem:[#allocation43_spill] sm:$0xff] }
 0x2c4   : > { %v9438_v29 = vpop.permute.xlu2 %4121  ;;  %v3638_v15 = vpop.permute.xlu1 %3637  ;;  %v9481_v6 = vadd.f32 %v9256_v48, %v3369_v12  ;;  %v1419_v59 = vadd.f32 %v9273_v16, %v11539_v55 }
 0x2c5   : > { %v9445_v4 = vmul.f32 %v3638_v15, %v11531_v63  ;;  %v9447_v61 = vpop.permute.xlu0 %3632  ;;  %v9449_v20 = vpop.f32.mrf.mxu2 }
 0x2c6   : > { %11533 = vst [vmem:[#allocation18_spill] sm:$0xff] %v9447_v61  ;;  %v2590_v57 = vpop.f32.mrf.mxu3  ;;  %v9453_v45 = vpop.f32.mrf.mxu1 }
 0x2c7   : > { %11532 = vst [vmem:[#allocation76_spill] sm:$0xff] %v9445_v4  ;;  %v9459_v63 = vadd.f32 %v2590_v57, %v9151_v56  ;;  %v3176_v61 = vpop.f32.mrf.mxu0  ;;  %v4555_v56 = vld [vmem:[%s11146_s2 + $0x5a] sm:$0xff]  ;;  %v11538_v57 = vld [vmem:[#allocation87_spill] sm:$0xff]  ;;  %v2698_v4 = vld [vmem:[%s6832_s8 + $0xf0] sm:$0xff] }
 0x2c8   : > { %11534 = vst [vmem:[#allocation69_spill] sm:$0xff] %v9449_v20  ;;  %v9469_v26 = vadd.f32 %v3176_v61, %v9013_v54  ;;  %3797 = vmatmul.bf16.gmra.mxu1 %v3686_v21  ;;  %v4043_v54 = vmax.f32 %v4007_v9, 0.0  ;;  %v11537_v61 = vld [vmem:[#allocation86_spill] sm:$0xff]  ;;  %v3055_v15 = vmul.f32 %v11538_v57, %v2839_v39  ;;  %v3373_v20 = vmul.f32 %v9234_v1, %v3301_v13  ;;  %v3304_v13 = vld [vmem:[%s6832_s8 + $0xb1] sm:$0xff] }
 0x2c9   : > { %11535 = vst [vmem:[#allocation6_spill] sm:$0xff] %v9459_v63  ;;  %v3056_v21 = vmul.f32 %v11537_v61, %v2840_v38  ;;  %v3902_v38 = vld [vmem:[%s6832_s8 + $0x41] sm:$0xff] }
 0x2ca   : > { %11536 = vst [vmem:[#allocation10_spill] sm:$0xff] %v9469_v26  ;;  %4735 = vperm.xlu2 %6756, %v4557_v25   ;;  %4730 = vperm.xlu1 %6755, %v4556_v35   ;;  %v11541_v25 = vmax.f32 %v9051_v34, 0.0  ;;  %v2697_v61 = vld [vmem:[%s6832_s8 + $0xe8] sm:$0xff]  ;;  %v2770_v34 = vmul.f32 %v9234_v1, %v2698_v4  ;;  %v4558_v4 = vld [vmem:[%s11146_s2 + $0x72] sm:$0xff] }
 0x2cb   : > { %4725 = vperm.xlu0 %6754, %v4555_v56   ;;  %v3079_v55 = vpack.c.bf16 %v3056_v21, %v3055_v15  ;;  %v4560_v39 = vld [vmem:[%s11146_s2 + $0x82] sm:$0xff]  ;;  %v4559_v15 = vld [vmem:[%s11146_s2 + $0x7a] sm:$0xff]  ;;  %v2769_v21 = vmul.f32 %v9234_v1, %v2697_v61 }
 0x2cc   : > { %v9489_v18 = vpop.permute.xlu2 %4136  ;;  %v4087_v12 = vpop.permute.xlu1 %4086 }
 0x2cd   : > { %11540 = vst [vmem:[#allocation65_spill] sm:$0xff] %v9489_v18  ;;  %v4260_v8 = vmul.f32 %v4087_v12, %v11541_v25  ;;  %v4082_v9 = vpop.permute.xlu0 %4081  ;;  %v1996_v35 = vpop.f32.mrf.mxu2  ;;  %v9505_v12 = vadd.f32 %v9256_v48, %v3373_v20  ;;  %v3974_v20 = vmul.f32 %v9234_v1, %v3902_v38  ;;  %v2806_v38 = vadd.f32 %v9256_v48, %v2770_v34  ;;  %v3905_v18 = vld [vmem:[%s6832_s8 + $0x59] sm:$0xff] }
 0x2ce   : > { %v4259_v56 = vmul.f32 %v4082_v9, %v4043_v54  ;;  %v9497_v23 = vadd.f32 %v1996_v35, %v1419_v59  ;;  %v9499_v57 = vpop.f32.mrf.mxu3  ;;  %v9501_v16 = vpop.f32.mrf.mxu1  ;;  %v11545_v9 = vmax.f32 %v9478_v32, 0.0 }
 0x2cf   : > { %11542 = vst [vmem:[#allocation74_spill] sm:$0xff] %v9499_v57  ;;  %v3179_v25 = vpop.f32.mrf.mxu0  ;;  %v11203_v61 = vmax.f32 %v9505_v12, 0.0 }
 0x2d0   : > { %11543 = vst [vmem:[#allocation52_spill] sm:$0xff] %v9501_v16  ;;  %v4295_v54 = vpack.c.bf16 %v4260_v8, %v4259_v56  ;;  %v9512_v59 = vadd.f32 %v3179_v25, %v9043_v46  ;;  %v3658_v8 = vmul.f32 %v9145_v19, %v11545_v9  ;;  %v11546_v46 = vmax.f32 %v9481_v6, 0.0  ;;  %v6713_v56 = vld [vmem:[%s11145_s1 + $0x218] sm:$0xff] }
 0x2d1   : > { %3218 = vmatmul.bf16.gmra.mxu0 %v3079_v55  ;;  %v3300_v55 = vld [vmem:[%s6832_s8 + $0x91] sm:$0xff]  ;;  %v3376_v25 = vmul.f32 %v9234_v1, %v3304_v13 }
 0x2d2   : > { %11544 = vst [vmem:[#allocation53_spill] sm:$0xff] %v9512_v59  ;;  %v3657_v35 = vmul.f32 %v9148_v5, %v11546_v46  ;;  %4386 = vmatmul.bf16.vlgmr.msra.gmra.mxu2 %v4295_v54  ;;  %4750 = vperm.xlu2 %6756, %v4560_v39   ;;  %v4010_v5 = vadd.f32 %v9256_v48, %v3974_v20  ;;  %v3299_v54 = vld [vmem:[%s6832_s8 + $0x89] sm:$0xff]  ;;  %v2842_v20 = vmax.f32 %v2806_v38, 0.0  ;;  %v4562_v38 = vld [vmem:[%s11146_s2 + $0x92] sm:$0xff] }
 0x2d3   : > { %4745 = vperm.xlu1 %6755, %v4559_v15   ;;  %4740 = vperm.xlu0 %6754, %v4558_v4   ;;  %v2805_v39 = vadd.f32 %v9256_v48, %v2769_v21  ;;  %v3372_v15 = vmul.f32 %v9234_v1, %v3300_v55 }
 0x2d4   : > { %v4152_v19 = vpop.permute.xlu2 %4151  ;;  %v9535_v9 = vpop.permute.xlu1 %4101  ;;  %5610 = vmatpush.bf16.msra.mxu0 %v6713_v56  ;;  %v3687_v13 = vpack.c.bf16 %v3658_v8, %v3657_v35  ;;  %v9550_v56 = vadd.f32 %v9256_v48, %v3376_v25  ;;  %v3371_v8 = vmul.f32 %v9234_v1, %v3299_v54  ;;  %v3307_v35 = vld [vmem:[%s6832_s8 + $0xc9] sm:$0xff]  ;;  %v4046_v55 = vmax.f32 %v4010_v5, 0.0  ;;  %v2699_v54 = vld [vmem:[%s6832_s8 + $0xf8] sm:$0xff] }
 0x2d5   : > { %v9542_v34 = vmul.f32 %v4152_v19, %v11203_v61  ;;  %v4097_v46 = vpop.permute.xlu0 %4096  ;;  %v9544_v16 = vpop.f32.mrf.mxu2  ;;  %v4563_v19 = vld [vmem:[%s11146_s2 + $0x9a] sm:$0xff]  ;;  %v2841_v25 = vmax.f32 %v2805_v39, 0.0  ;;  %v3058_v5 = vmul.f32 %v8882_v11, %v2842_v20 }
 0x2d6   : > { %11547 = vst [vmem:[#allocation79_spill] sm:$0xff] %v9544_v16  ;;  %v2595_v4 = vpop.f32.mrf.mxu3  ;;  %v9547_v57 = vpop.f32.mrf.mxu1  ;;  %v11550_v16 = vld [vmem:[#allocation48_spill] sm:$0xff]  ;;  %v4262_v39 = vmul.f32 %v4097_v46, %v4046_v55 }
 0x2d7   : > { %v9553_v21 = vadd.f32 %v2595_v4, %v9222_v36  ;;  %v3181_v59 = vpop.f32.mrf.mxu0  ;;  %v4561_v36 = vld [vmem:[%s11146_s2 + $0x8a] sm:$0xff]  ;;  %v9570_v4 = vadd.f32 %v9256_v48, %v3372_v15 }
 0x2d8   : > { %v9561_v61 = vadd.f32 %v3181_v59, %v9084_v28  ;;  %3802 = vmatmul.bf16.gmra.mxu1 %v3687_v13  ;;  %v11204_v28 = vmax.f32 %v9550_v56, 0.0  ;;  %v3379_v59 = vmul.f32 %v9234_v1, %v3307_v35  ;;  %v3407_v13 = vadd.f32 %v9256_v48, %v3371_v8 }
 0x2d9   : > { %11548 = vst [vmem:[#allocation80_spill] sm:$0xff] %v9553_v21  ;;  %v2771_v8 = vmul.f32 %v9234_v1, %v2699_v54  ;;  %v4566_v54 = vld [vmem:[%s11146_s2 + $0xb2] sm:$0xff] }
 0x2da   : > { %11549 = vst [vmem:[#allocation77_spill] sm:$0xff] %v9561_v61  ;;  %4765 = vperm.xlu2 %6756, %v4563_v19   ;;  %v1424_v61 = vadd.f32 %v9363_v41, %v11550_v16  ;;  %v11551_v19 = vld [vmem:[#allocation27_spill] sm:$0xff]  ;;  %v11552_v16 = vmax.f32 %v9129_v27, 0.0  ;;  %v3443_v62 = vmax.f32 %v3407_v13, 0.0  ;;  %v11557_v13 = vmax.f32 %v9570_v4, 0.0 }
 0x2db   : > { %4760 = vperm.xlu1 %6755, %v4562_v38   ;;  %4755 = vperm.xlu0 %6754, %v4561_v36   ;;  %v3057_v26 = vmul.f32 %v11551_v19, %v2841_v25  ;;  %v2700_v38 = vld [vmem:[%s6832_s8 + $0x100] sm:$0xff]  ;;  %v9601_v19 = vadd.f32 %v9256_v48, %v3379_v59  ;;  %v3911_v41 = vld [vmem:[%s6832_s8 + $0x89] sm:$0xff]  ;;  %v2807_v59 = vadd.f32 %v9256_v48, %v2771_v8 }
 0x2dc   : > { %v4167_v21 = vpop.permute.xlu2 %4166  ;;  %v9579_v15 = vpop.permute.xlu1 %4116  ;;  %v4261_v46 = vmul.f32 %v9350_v2, %v11552_v16  ;;  %v3310_v27 = vld [vmem:[%s6832_s8 + $0xe1] sm:$0xff] }
 0x2dd   : > { %v9584_v11 = vmul.f32 %v4167_v21, %v11204_v28  ;;  %v9586_v20 = vpop.permute.xlu0 %4111  ;;  %v2001_v35 = vpop.f32.mrf.mxu2  ;;  %v3080_v21 = vpack.c.bf16 %v3058_v5, %v3057_v26  ;;  %11555 = vst [vmem:[#allocation12_spill] sm:$0xff] %v9601_v19  ;;  %v4565_v26 = vld [vmem:[%s11146_s2 + $0xaa] sm:$0xff]  ;;  %v2772_v5 = vmul.f32 %v9234_v1, %v2700_v38  ;;  %v3659_v38 = vmul.f32 %v9029_v30, %v3443_v62  ;;  %v3302_v16 = vld [vmem:[%s6832_s8 + $0xa1] sm:$0xff] }
 0x2de   : > { %v9594_v55 = vadd.f32 %v2001_v35, %v1424_v61  ;;  %v9596_v36 = vpop.f32.mrf.mxu3  ;;  %v9598_v25 = vpop.f32.mrf.mxu1  ;;  %v4296_v63 = vpack.c.bf16 %v4262_v39, %v4261_v46  ;;  %v4564_v61 = vld [vmem:[%s11146_s2 + $0xa2] sm:$0xff]  ;;  %v3660_v39 = vmul.f32 %v9178_v42, %v11557_v13  ;;  %v3382_v35 = vmul.f32 %v9234_v1, %v3310_v27 }
 0x2df   : > { %11553 = vst [vmem:[#allocation40_spill] sm:$0xff] %v9596_v36  ;;  %v3184_v28 = vpop.f32.mrf.mxu0  ;;  %v2808_v42 = vadd.f32 %v9256_v48, %v2772_v5  ;;  %v3303_v5 = vld [vmem:[%s6832_s8 + $0xa9] sm:$0xff] }
 0x2e0   : > { %11554 = vst [vmem:[#allocation82_spill] sm:$0xff] %v9598_v25  ;;  %v9609_v2 = vadd.f32 %v3184_v28, %v9119_v44  ;;  %v3983_v44 = vmul.f32 %v9234_v1, %v3911_v41  ;;  %v11205_v28 = vmax.f32 %v9601_v19, 0.0  ;;  %v3688_v27 = vpack.c.bf16 %v3660_v39, %v3659_v38  ;;  %v3914_v39 = vld [vmem:[%s6832_s8 + $0xa1] sm:$0xff]  ;;  %v3313_v38 = vld [vmem:[%s6832_s8 + $0xf9] sm:$0xff] }
 0x2e1   : > { %3223 = vmatmul.bf16.gmra.mxu0 %v3080_v21  ;;  %v9644_v13 = vadd.f32 %v9256_v48, %v3382_v35  ;;  %v2844_v35 = vmax.f32 %v2808_v42, 0.0  ;;  %v2701_v36 = vld [vmem:[%s6832_s8 + $0x108] sm:$0xff]  ;;  %v11565_v19 = vld [vmem:[#allocation78_spill] sm:$0xff] }
 0x2e2   : > { %11556 = vst [vmem:[#allocation83_spill] sm:$0xff] %v9609_v2  ;;  %4391 = vmatmul.bf16.gmra.mxu2 %v4296_v63  ;;  %4780 = vperm.xlu2 %6756, %v4566_v54   ;;  %v2843_v54 = vmax.f32 %v2807_v59, 0.0  ;;  %v4019_v62 = vadd.f32 %v9256_v48, %v3983_v44  ;;  %v4569_v59 = vld [vmem:[%s11146_s2 + $0xca] sm:$0xff]  ;;  %v4568_v44 = vld [vmem:[%s11146_s2 + $0xc2] sm:$0xff] }
 0x2e3   : > { %4775 = vperm.xlu1 %6755, %v4565_v26   ;;  %4770 = vperm.xlu0 %6754, %v4564_v61   ;;  %v3374_v61 = vmul.f32 %v9234_v1, %v3302_v16  ;;  %11559 = vst [vmem:[#allocation11_spill] sm:$0xff] %v9644_v13  ;;  %v2702_v16 = vld [vmem:[%s6832_s8 + $0x110] sm:$0xff] }
 0x2e4   : > { %v4182_v46 = vpop.permute.xlu2 %4181  ;;  %v9627_v8 = vpop.permute.xlu1 %4131  ;;  %v4055_v2 = vmax.f32 %v4019_v62, 0.0  ;;  %v2774_v42 = vmul.f32 %v9234_v1, %v2702_v16  ;;  %v11564_v62 = vmax.f32 %v9196_v60, 0.0 }
 0x2e5   : > { %v9632_v63 = vmul.f32 %v4182_v46, %v11205_v28  ;;  %v9634_v41 = vpop.permute.xlu0 %4126  ;;  %v9636_v21 = vpop.f32.mrf.mxu2 }
 0x2e6   : > { %11558 = vst [vmem:[#allocation84_spill] sm:$0xff] %v9636_v21  ;;  %v2600_v26 = vpop.f32.mrf.mxu3  ;;  %v9638_v30 = vpop.f32.mrf.mxu1 }
 0x2e7   : > { %v9647_v46 = vadd.f32 %v2600_v26, %v9317_v51  ;;  %v3186_v28 = vpop.f32.mrf.mxu0  ;;  %v4567_v51 = vld [vmem:[%s11146_s2 + $0xba] sm:$0xff]  ;;  %v11562_v26 = vld [vmem:[#allocation32_spill] sm:$0xff] }
 0x2e8   : > { %v9655_v25 = vadd.f32 %v3186_v28, %v9158_v31  ;;  %3807 = vmatmul.bf16.gmra.mxu1 %v3688_v27  ;;  %v3059_v21 = vmul.f32 %v11562_v26, %v2843_v54  ;;  %v3986_v31 = vmul.f32 %v9234_v1, %v3914_v39  ;;  %v3410_v28 = vadd.f32 %v9256_v48, %v3374_v61  ;;  %v11563_v54 = vld [vmem:[#allocation51_spill] sm:$0xff] }
 0x2e9   : > { %11560 = vst [vmem:[#allocation19_spill] sm:$0xff] %v9647_v46  ;;  %v3375_v27 = vmul.f32 %v9234_v1, %v3303_v5  ;;  %v3385_v46 = vmul.f32 %v9234_v1, %v3313_v38  ;;  %v4263_v39 = vmul.f32 %v9535_v9, %v11564_v62  ;;  %v3060_v5 = vmul.f32 %v11565_v19, %v2844_v35  ;;  %v3306_v9 = vld [vmem:[%s6832_s8 + $0xc1] sm:$0xff] }
 0x2ea   : > { %11561 = vst [vmem:[#allocation15_spill] sm:$0xff] %v9655_v25  ;;  %4795 = vperm.xlu2 %6756, %v4569_v59   ;;  %v1429_v59 = vadd.f32 %v9453_v45, %v11563_v54  ;;  %v2773_v25 = vmul.f32 %v9234_v1, %v2701_v36  ;;  %v11566_v38 = vmax.f32 %v9644_v13, 0.0  ;;  %v11568_v54 = vmax.f32 %v9193_v14, 0.0  ;;  %v3316_v14 = vld [vmem:[%s6832_s8 + $0x111] sm:$0xff] }
 0x2eb   : > { %4790 = vperm.xlu1 %6755, %v4568_v44   ;;  %4785 = vperm.xlu0 %6754, %v4567_v51   ;;  %v11567_v51 = vmax.f32 %v9570_v4, 0.0  ;;  %v4022_v4 = vadd.f32 %v9256_v48, %v3986_v31  ;;  %v9705_v13 = vadd.f32 %v9256_v48, %v3385_v46  ;;  %v4571_v46 = vld [vmem:[%s11146_s2 + $0xda] sm:$0xff] }
 0x2ec   : > { %v4197_v26 = vpop.permute.xlu2 %4196  ;;  %v4147_v61 = vpop.permute.xlu1 %4146  ;;  %v4264_v19 = vmul.f32 %v9394_v17, %v11568_v54  ;;  %v3378_v54 = vmul.f32 %v9234_v1, %v3306_v9 }
 0x2ed   : > { %v9682_v44 = vmul.f32 %v4197_v26, %v11566_v38  ;;  %v9686_v16 = vmul.f32 %v4147_v61, %v11567_v51  ;;  %v4142_v45 = vpop.permute.xlu0 %4141  ;;  %v2006_v60 = vpop.f32.mrf.mxu2  ;;  %v3081_v61 = vpack.c.bf16 %v3060_v5, %v3059_v21  ;;  %v3446_v38 = vmax.f32 %v3410_v28, 0.0  ;;  %v4570_v28 = vld [vmem:[%s11146_s2 + $0xd2] sm:$0xff] }
 0x2ee   : > { %v9692_v35 = vmul.f32 %v4142_v45, %v4055_v2  ;;  %v9694_v36 = vadd.f32 %v2006_v60, %v1429_v59  ;;  %v9696_v62 = vpop.f32.mrf.mxu3  ;;  %v9698_v26 = vpop.f32.mrf.mxu1  ;;  %v9702_v51 = vadd.f32 %v9256_v48, %v3375_v27  ;;  %v4572_v2 = vld [vmem:[%s11146_s2 + $0xe2] sm:$0xff]  ;;  %v3917_v59 = vld [vmem:[%s6832_s8 + $0xb9] sm:$0xff]  ;;  %v4297_v45 = vpack.c.bf16 %v4264_v19, %v4263_v39  ;;  %v6704_v27 = vld [vmem:[%s11145_s1 + $0x1d0] sm:$0xff] }
 0x2ef   : > { %11569 = vst [vmem:[#allocation89_spill] sm:$0xff] %v9696_v62  ;;  %v3189_v17 = vpop.f32.mrf.mxu0  ;;  %v3977_v60 = vmul.f32 %v9234_v1, %v3905_v18  ;;  %v2810_v18 = vadd.f32 %v9256_v48, %v2774_v42  ;;  %v2809_v39 = vadd.f32 %v9256_v48, %v2773_v25  ;;  %v4058_v19 = vmax.f32 %v4022_v4, 0.0  ;;  %v11573_v25 = vld [vmem:[#allocation34_spill] sm:$0xff]  ;;  %4997 = vmatpush.bf16.msra.mxu3 %v6704_v27 }
 0x2f0   : > { %11570 = vst [vmem:[#allocation56_spill] sm:$0xff] %v9698_v26  ;;  %v9716_v31 = vadd.f32 %v3189_v17, %v9187_v47  ;;  %v11572_v47 = vmax.f32 %v9505_v12, 0.0  ;;  %v3989_v17 = vmul.f32 %v9234_v1, %v3917_v59  ;;  %v11209_v21 = vmax.f32 %v9702_v51, 0.0 }
 0x2f1   : > { %3228 = vmatmul.bf16.gmra.mxu0 %v3081_v61  ;;  %v11208_v26 = vmax.f32 %v9705_v13, 0.0  ;;  %v3388_v42 = vmul.f32 %v9234_v1, %v3316_v14  ;;  %v3662_v61 = vmul.f32 %v11573_v25, %v3446_v38  ;;  %v4013_v12 = vadd.f32 %v9256_v48, %v3977_v60 }
 0x2f2   : > { %11571 = vst [vmem:[#allocation30_spill] sm:$0xff] %v9716_v31  ;;  %v3661_v5 = vmul.f32 %v9176_v50, %v11572_v47  ;;  %4396 = vmatmul.bf16.gmra.mxu2 %v4297_v45  ;;  %4810 = vperm.xlu2 %6756, %v4572_v2   ;;  %v2846_v2 = vmax.f32 %v2810_v18, 0.0  ;;  %v2845_v4 = vmax.f32 %v2809_v39, 0.0  ;;  %v9750_v60 = vadd.f32 %v9256_v48, %v3378_v54  ;;  %v3309_v47 = vld [vmem:[%s6832_s8 + $0xd9] sm:$0xff] }
 0x2f3   : > { %4805 = vperm.xlu1 %6755, %v4571_v46   ;;  %4800 = vperm.xlu0 %6754, %v4570_v28   ;;  %v4025_v39 = vadd.f32 %v9256_v48, %v3989_v17  ;;  %v9757_v25 = vadd.f32 %v9256_v48, %v3388_v42  ;;  %v3920_v17 = vld [vmem:[%s6832_s8 + $0xd1] sm:$0xff] }
 0x2f4   : > { %v4212_v50 = vpop.permute.xlu2 %4211  ;;  %v4162_v9 = vpop.permute.xlu1 %4161  ;;  %v3689_v38 = vpack.c.bf16 %v3662_v61, %v3661_v5  ;;  %v4049_v61 = vmax.f32 %v4013_v12, 0.0 }
 0x2f5   : > { %v9741_v59 = vmul.f32 %v4212_v50, %v11208_v26  ;;  %v9745_v45 = vmul.f32 %v4162_v9, %v11209_v21  ;;  %v4157_v14 = vpop.permute.xlu0 %4156  ;;  %v9747_v46 = vpop.f32.mrf.mxu2  ;;  %v2704_v50 = vld [vmem:[%s6832_s8 + $0x120] sm:$0xff]  ;;  %v4061_v12 = vmax.f32 %v4025_v39, 0.0  ;;  %v11577_v26 = vld [vmem:[#allocation55_spill] sm:$0xff]  ;;  %v11211_v21 = vmax.f32 %v9750_v60, 0.0 }
 0x2f6   : > { %11574 = vst [vmem:[#allocation14_spill] sm:$0xff] %v9747_v46  ;;  %v9752_v28 = vmul.f32 %v4157_v14, %v4058_v19  ;;  %v2605_v27 = vpop.f32.mrf.mxu3  ;;  %v3773_v18 = vpop.f32.mrf.mxu1  ;;  %v4575_v19 = vld [vmem:[%s11146_s2 + $0xfa] sm:$0xff]  ;;  %v4573_v14 = vld [vmem:[%s11146_s2 + $0xea] sm:$0xff]  ;;  %v3061_v42 = vmul.f32 %v11577_v26, %v2845_v4  ;;  %v3381_v46 = vmul.f32 %v9234_v1, %v3309_v47  ;;  %v11210_v62 = vmax.f32 %v9757_v25, 0.0 }
 0x2f7   : > { %v9762_v9 = vadd.f32 %v2605_v27, %v9407_v58  ;;  %v9764_v5 = vpop.f32.mrf.mxu0  ;;  %v9767_v54 = vadd.f32 %v3773_v18, %v9161_v22  ;;  %v4574_v58 = vld [vmem:[%s11146_s2 + $0xf2] sm:$0xff]  ;;  %v2776_v4 = vmul.f32 %v9234_v1, %v2704_v50 }
 0x2f8   : > { %11575 = vst [vmem:[#allocation45_spill] sm:$0xff] %v9764_v5  ;;  %3812 = vmatmul.bf16.gmra.mxu1 %v3689_v38  ;;  %v6712_v22 = vld [vmem:[%s11145_s1 + $0x210] sm:$0xff]  ;;  %v11576_v27 = vld [vmem:[#allocation21_spill] sm:$0xff]  ;;  %v3992_v38 = vmul.f32 %v9234_v1, %v3920_v17  ;;  %v4265_v17 = vmul.f32 %v9586_v20, %v4049_v61 }
 0x2f9   : > { %v3062_v18 = vmul.f32 %v11576_v27, %v2846_v2  ;;  %5611 = vmatpush.bf16.msra.mxu0 %v6712_v22  ;;  %v11578_v5 = vld [vmem:[#allocation60_spill] sm:$0xff] }
 0x2fa   : > { %4825 = vperm.xlu2 %6756, %v4575_v19   ;;  %v1434_v2 = vadd.f32 %v9547_v57, %v11578_v5  ;;  %v11579_v19 = vmax.f32 %v9289_v37, 0.0  ;;  %v3908_v27 = vld [vmem:[%s6832_s8 + $0x71] sm:$0xff] }
 0x2fb   : > { %4820 = vperm.xlu1 %6755, %v4574_v58   ;;  %4815 = vperm.xlu0 %6754, %v4573_v14   ;;  %v4028_v14 = vadd.f32 %v9256_v48, %v3992_v38 }
 0x2fc   : > { %v4266_v39 = vmul.f32 %v9579_v15, %v11579_v19  ;;  %v4227_v22 = vpop.permute.xlu2 %4226  ;;  %v4177_v26 = vpop.permute.xlu1 %4176  ;;  %v2703_v15 = vld [vmem:[%s6832_s8 + $0x118] sm:$0xff]  ;;  %v3082_v19 = vpack.c.bf16 %v3062_v18, %v3061_v42 }
 0x2fd   : > { %v9801_v47 = vmul.f32 %v4227_v22, %v11210_v62  ;;  %v9805_v57 = vmul.f32 %v4177_v26, %v11211_v21  ;;  %v4172_v37 = vpop.permute.xlu0 %4171  ;;  %v2011_v5 = vpop.f32.mrf.mxu2  ;;  %v9816_v22 = vadd.f32 %v9256_v48, %v3381_v46  ;;  %v3980_v21 = vmul.f32 %v9234_v1, %v3908_v27  ;;  %v4576_v46 = vld [vmem:[%s11146_s2 + $0x102] sm:$0xff] }
 0x2fe   : > { %v9808_v58 = vmul.f32 %v4172_v37, %v4061_v12  ;;  %v9810_v20 = vadd.f32 %v2011_v5, %v1434_v2  ;;  %v9812_v61 = vpop.f32.mrf.mxu3  ;;  %v3775_v50 = vpop.f32.mrf.mxu1  ;;  %v4578_v12 = vld [vmem:[%s11146_s2 + $0x112] sm:$0xff]  ;;  %v3923_v37 = vld [vmem:[%s6832_s8 + $0xe9] sm:$0xff]  ;;  %v4298_v5 = vpack.c.bf16 %v4266_v39, %v4265_v17  ;;  %v2775_v18 = vmul.f32 %v9234_v1, %v2703_v15 }
 0x2ff   : > { %11580 = vst [vmem:[#allocation73_spill] sm:$0xff] %v9801_v47  ;;  %v3194_v62 = vpop.f32.mrf.mxu0  ;;  %v9819_v26 = vadd.f32 %v3775_v50, %v9190_v3  ;;  %v3312_v2 = vld [vmem:[%s6832_s8 + $0xf1] sm:$0xff]  ;;  %v2812_v39 = vadd.f32 %v9256_v48, %v2776_v4  ;;  %v11583_v17 = vmax.f32 %v9550_v56, 0.0  ;;  %v4064_v50 = vmax.f32 %v4028_v14, 0.0 }
 0x300   : > { %11581 = vst [vmem:[#allocation86_spill] sm:$0xff] %v9812_v61  ;;  %v9830_v42 = vadd.f32 %v3194_v62, %v9279_v7  ;;  %v4577_v3 = vld [vmem:[%s11146_s2 + $0x10a] sm:$0xff]  ;;  %v11584_v7 = vmax.f32 %v9702_v51, 0.0  ;;  %v3995_v38 = vmul.f32 %v9234_v1, %v3923_v37  ;;  %v11212_v61 = vmax.f32 %v9816_v22, 0.0  ;;  %v3305_v51 = vld [vmem:[%s6832_s8 + $0xb9] sm:$0xff] }
 0x301   : > { %3233 = vmatmul.bf16.gmra.mxu0 %v3082_v19  ;;  %v3664_v27 = vmul.f32 %v9215_v49, %v11583_v17  ;;  %v3384_v15 = vmul.f32 %v9234_v1, %v3312_v2  ;;  %v4016_v4 = vadd.f32 %v9256_v48, %v3980_v21  ;;  %v2811_v49 = vadd.f32 %v9256_v48, %v2775_v18 }
 0x302   : > { %11582 = vst [vmem:[#allocation87_spill] sm:$0xff] %v9830_v42  ;;  %v3663_v62 = vmul.f32 %v9217_v53, %v11584_v7  ;;  %4401 = vmatmul.bf16.gmra.mxu2 %v4298_v5  ;;  %4840 = vperm.xlu2 %6756, %v4578_v12   ;;  %v11585_v53 = vmax.f32 %v9404_v52, 0.0  ;;  %v2848_v2 = vmax.f32 %v2812_v39, 0.0  ;;  %v4031_v17 = vadd.f32 %v9256_v48, %v3995_v38  ;;  %v3926_v38 = vld [vmem:[%s6832_s8 + $0x101] sm:$0xff]  ;;  %v11591_v42 = vld [vmem:[#allocation29_spill] sm:$0xff] }
 0x303   : > { %4835 = vperm.xlu1 %6755, %v4577_v3   ;;  %4830 = vperm.xlu0 %6754, %v4576_v46   ;;  %v9866_v52 = vadd.f32 %v9256_v48, %v3384_v15  ;;  %v4052_v15 = vmax.f32 %v4016_v4, 0.0 }
 0x304   : > { %v4242_v56 = vpop.permute.xlu2 %4241  ;;  %v4192_v19 = vpop.permute.xlu1 %4191  ;;  %v3690_v21 = vpack.c.bf16 %v3664_v27, %v3663_v62  ;;  %v4579_v27 = vld [vmem:[%s11146_s2 + $0x11a] sm:$0xff]  ;;  %v3377_v62 = vmul.f32 %v9234_v1, %v3305_v51  ;;  %v6703_v51 = vld [vmem:[%s11145_s1 + $0x1c8] sm:$0xff] }
 0x305   : > { %v9854_v5 = vmul.f32 %v4242_v56, %v11585_v53  ;;  %v9858_v14 = vmul.f32 %v4192_v19, %v11212_v61  ;;  %v4187_v12 = vpop.permute.xlu0 %4186  ;;  %v9860_v37 = vpop.f32.mrf.mxu2  ;;  %v9896_v1 = vld [vmem:[%s11147_s3] ss:$0 sm:$0xff]  ;;  %v11213_v53 = vmax.f32 %v9866_v52, 0.0  ;;  %v11590_v61 = vld [vmem:[#allocation28_spill] sm:$0xff]  ;;  %4998 = vmatpush.bf16.msra.mxu3 %v6703_v51 }
 0x306   : > { %11587 = vst [vmem:[#allocation48_spill] sm:$0xff] %v9860_v37  ;;  %v9862_v3 = vmul.f32 %v4187_v12, %v4064_v50  ;;  %v2610_v46 = vpop.f32.mrf.mxu3  ;;  %v3778_v18 = vpop.f32.mrf.mxu1  ;;  %v3315_v50 = vld [vmem:[%s6832_s8 + $0x109] sm:$0xff]  ;;  %v2847_v12 = vmax.f32 %v2811_v49, 0.0  ;;  %v3998_v4 = vmul.f32 %v9896_v1, %v3926_v38  ;;  %v1439_v38 = vadd.f32 %v9638_v30, %v11590_v61 }
 0x307   : > { %11586 = vst [vmem:[#allocation43_spill] sm:$0xff] %v9854_v5  ;;  %v9871_v56 = vadd.f32 %v2610_v46, %v9497_v23  ;;  %v9873_v19 = vpop.f32.mrf.mxu0  ;;  %v9876_v39 = vadd.f32 %v3778_v18, %v9239_v33  ;;  %v5164_v23 = vld [vmem:[%s11146_s2 + $0x33] sm:$0xff]  ;;  %v5163_v33 = vld [vmem:[%s11146_s2 + $0x2b] sm:$0xff]  ;;  %v4067_v18 = vmax.f32 %v4031_v17, 0.0  ;;  %v3387_v49 = vmul.f32 %v9896_v1, %v3315_v50 }
 0x308   : > { %11588 = vst [vmem:[#allocation27_spill] sm:$0xff] %v9873_v19  ;;  %3817 = vmatmul.bf16.gmra.mxu1 %v3690_v21  ;;  %v2705_v46 = vld [vmem:[%s6832_s8 + $0x128] sm:$0xff]  ;;  %v11589_v21 = vld [vmem:[#allocation36_spill] sm:$0xff]  ;;  %v3413_v17 = vadd.f32 %v9256_v48, %v3377_v62 }
 0x309   : > { %v3064_v7 = vmul.f32 %v11589_v21, %v2848_v2  ;;  %v3063_v2 = vmul.f32 %v11591_v42, %v2847_v12  ;;  %v2777_v21 = vmul.f32 %v9896_v1, %v2705_v46  ;;  %v2706_v62 = vld [vmem:[%s6832_s8 + $0x130] sm:$0xff] }
 0x30a   : > { %4845 = vperm.xlu2 %6756, %v4579_v27   ;;  %v4268_v27 = vmul.f32 %v9634_v41, %v4052_v15  ;;  %v11592_v41 = vmax.f32 %v9385_v0, 0.0  ;;  %v6702_v0 = vld [vmem:[%s11145_s1 + $0x1c0] sm:$0xff] }
 0x30b   : > { %5314 = vperm.xlu1 %6755, %v5164_v23   ;;  %5309 = vperm.xlu0 %6754, %v5163_v33   ;;  %v3083_v46 = vpack.c.bf16 %v3064_v7, %v3063_v2  ;;  %v11595_v2 = vmax.f32 %v9750_v60, 0.0 }
 0x30c   : > { %v9909_v37 = vpop.permute.xlu2 %4256  ;;  %v4207_v19 = vpop.permute.xlu1 %4206  ;;  %v4267_v30 = vmul.f32 %v9438_v29, %v11592_v41  ;;  %v3318_v41 = vld [vmem:[%s6832_s8 + $0x121] sm:$0xff]  ;;  %4999 = vmatpush.bf16.msra.mxu3 %v6702_v0 }
 0x30d   : > { %v9915_v50 = vmul.f32 %v4207_v19, %v11213_v53  ;;  %v4202_v23 = vpop.permute.xlu0 %4201  ;;  %v2016_v48 = vpop.f32.mrf.mxu2  ;;  %v9930_v19 = vld [vmem:[%s11148_s4] ss:$0 sm:$0xff]  ;;  %v3390_v0 = vmul.f32 %v9896_v1, %v3318_v41  ;;  %v3308_v53 = vld [vmem:[%s6832_s8 + $0xd1] sm:$0xff] }
 0x30e   : > { %v9921_v61 = vmul.f32 %v4202_v23, %v4067_v18  ;;  %v9923_v15 = vadd.f32 %v2016_v48, %v1439_v38  ;;  %v9925_v42 = vpop.f32.mrf.mxu3  ;;  %v3780_v33 = vpop.f32.mrf.mxu1  ;;  %v4034_v12 = vadd.f32 %v9930_v19, %v3998_v4  ;;  %v9937_v29 = vadd.f32 %v9930_v19, %v3387_v49  ;;  %v5167_v38 = vld [vmem:[%s11146_s2 + $0x4b] sm:$0xff]  ;;  %v3929_v23 = vld [vmem:[%s6832_s8 + $0x119] sm:$0xff]  ;;  %v5166_v49 = vld [vmem:[%s11146_s2 + $0x43] sm:$0xff] }
 0x30f   : > { %11593 = vst [vmem:[#allocation32_spill] sm:$0xff] %v9925_v42  ;;  %v3199_v18 = vpop.f32.mrf.mxu0  ;;  %v9940_v51 = vadd.f32 %v3780_v33, %v9283_v10  ;;  %v3449_v48 = vmax.f32 %v3413_v17, 0.0  ;;  %v4299_v4 = vpack.c.bf16 %v4268_v27, %v4267_v30  ;;  %v5165_v10 = vld [vmem:[%s11146_s2 + $0x3b] sm:$0xff]  ;;  %v2778_v17 = vmul.f32 %v9896_v1, %v2706_v62  ;;  %v11596_v62 = vld [vmem:[#allocation59_spill] sm:$0xff] }
 0x310   : > { %v9950_v7 = vadd.f32 %v3199_v18, %v9367_v43  ;;  %v2813_v27 = vadd.f32 %v9930_v19, %v2777_v21  ;;  %v3666_v43 = vmul.f32 %v9268_v40, %v11595_v2  ;;  %v4070_v30 = vmax.f32 %v4034_v12, 0.0 }
 0x311   : > { %3238 = vmatmul.bf16.gmra.mxu0 %v3083_v46  ;;  %v4001_v33 = vmul.f32 %v9896_v1, %v3929_v23  ;;  %v11214_v18 = vmax.f32 %v9937_v29, 0.0  ;;  %v3665_v46 = vmul.f32 %v11596_v62, %v3449_v48  ;;  %v2814_v60 = vadd.f32 %v9930_v19, %v2778_v17  ;;  %v3933_v48 = vld [vmem:[%s6832_s8 + $0x139] sm:$0xff] }
 0x312   : > { %11594 = vst [vmem:[#allocation51_spill] sm:$0xff] %v9950_v7  ;;  %4406 = vmatmul.bf16.gmra.mxu2 %v4299_v4  ;;  %5329 = vperm.xlu2 %6756, %v5167_v38   ;;  %v2849_v38 = vmax.f32 %v2813_v27, 0.0  ;;  %v3934_v4 = vld [vmem:[%s6832_s8 + $0x141] sm:$0xff]  ;;  %v9979_v62 = vadd.f32 %v9930_v19, %v3390_v0  ;;  %v3380_v0 = vmul.f32 %v9896_v1, %v3308_v53 }
 0x313   : > { %5324 = vperm.xlu1 %6755, %v5166_v49   ;;  %5319 = vperm.xlu0 %6754, %v5165_v10   ;;  %v3691_v23 = vpack.c.bf16 %v3666_v43, %v3665_v46  ;;  %v4037_v10 = vadd.f32 %v9930_v19, %v4001_v33  ;;  %v3932_v33 = vld [vmem:[%s6832_s8 + $0x131] sm:$0xff]  ;;  %v4005_v53 = vmul.f32 %v9896_v1, %v3933_v48  ;;  %v11599_v46 = vld [vmem:[#allocation50_spill] sm:$0xff] }
 0x314   : > { %v4222_v21 = vpop.permute.xlu1 %4221  ;;  %v9981_v17 = vpop.permute.xlu2 %4705  ;;  %v3065_v42 = vmul.f32 %v11599_v46, %v2849_v38  ;;  %v3416_v7 = vadd.f32 %v9930_v19, %v3380_v0  ;;  %v11601_v48 = vld [vmem:[#allocation85_spill] sm:$0xff] }
 0x315   : > { %v9971_v40 = vmul.f32 %v4222_v21, %v11214_v18  ;;  %v4217_v12 = vpop.permute.xlu0 %4216  ;;  %v4073_v21 = vmax.f32 %v4037_v10, 0.0  ;;  %v4041_v46 = vadd.f32 %v9930_v19, %v4005_v53  ;;  %v11604_v0 = vld [vmem:[#allocation65_spill] sm:$0xff]  ;;  %v5171_v53 = vld [vmem:[%s11146_s2 + $0x6b] sm:$0xff] }
 0x316   : > { %v9974_v2 = vmul.f32 %v4217_v12, %v4070_v30  ;;  %v2615_v41 = vpop.f32.mrf.mxu3  ;;  %v3783_v49 = vpop.f32.mrf.mxu1  ;;  %v5169_v30 = vld [vmem:[%s11146_s2 + $0x5b] sm:$0xff]  ;;  %v6711_v12 = vld [vmem:[%s11145_s1 + $0x208] sm:$0xff] }
 0x317   : > { %11597 = vst [vmem:[#allocation78_spill] sm:$0xff] %v9971_v40  ;;  %v9986_v18 = vadd.f32 %v2615_v41, %v9594_v55  ;;  %v9988_v27 = vpop.f32.mrf.mxu0  ;;  %v9991_v43 = vadd.f32 %v3783_v49, %v9335_v24  ;;  %v4580_v55 = vld [vmem:[%s11146_s2 + $0x122] sm:$0xff]  ;;  %v5168_v24 = vld [vmem:[%s11146_s2 + $0x53] sm:$0xff]  ;;  %v2850_v41 = vmax.f32 %v2814_v60, 0.0  ;;  %v4006_v49 = vmul.f32 %v9896_v1, %v3934_v4  ;;  %5612 = vmatpush.bf16.msra.mxu0 %v6711_v12 }
 0x318   : > { %11598 = vst [vmem:[#allocation34_spill] sm:$0xff] %v9988_v27  ;;  %3822 = vmatmul.bf16.gmra.mxu1 %v3691_v23  ;;  %v4004_v23 = vmul.f32 %v9896_v1, %v3932_v33  ;;  %v11216_v27 = vmax.f32 %v9979_v62, 0.0  ;;  %v11600_v60 = vmax.f32 %v9481_v6, 0.0  ;;  %v11607_v40 = vld [vmem:[#allocation8_spill] sm:$0xff] }
 0x319   : > { %v3066_v10 = vmul.f32 %v11601_v48, %v2850_v41 }
 0x31a   : > { %5339 = vperm.xlu2 %6756, %v5169_v30   ;;  %v4269_v4 = vmul.f32 %v9627_v8, %v11600_v60  ;;  %v4042_v30 = vadd.f32 %v9930_v19, %v4006_v49  ;;  %v4040_v41 = vadd.f32 %v9930_v19, %v4004_v23  ;;  %v4514_v60 = vld [vmem:[%s6832_s8 + $0x32] sm:$0xff] }
 0x31b   : > { %4850 = vperm.xlu1 %6755, %v4580_v55   ;;  %5334 = vperm.xlu0 %6754, %v5168_v24   ;;  %v11603_v55 = vmax.f32 %v9478_v32, 0.0  ;;  %v3084_v49 = vpack.c.bf16 %v3066_v10, %v3065_v42  ;;  %v4513_v32 = vld [vmem:[%s6832_s8 + $0x2a] sm:$0xff] }
 0x31c   : > { %v4237_v31 = vpop.permute.xlu1 %4236  ;;  %v4581_v42 = vld [vmem:[%s11146_s2 + $0x12a] sm:$0xff]  ;;  %v4078_v23 = vmax.f32 %v4042_v30, 0.0  ;;  %v10052_v10 = vpop.permute.xlu2 %4720 }
 0x31d   : > { %v10022_v38 = vmul.f32 %v4237_v31, %v11216_v27  ;;  %v4232_v33 = vpop.permute.xlu0 %4231  ;;  %v4270_v24 = vmul.f32 %v11604_v0, %v11603_v55  ;;  %v3452_v27 = vmax.f32 %v3416_v7, 0.0  ;;  %v4077_v7 = vmax.f32 %v4041_v46, 0.0 }
 0x31e   : > { %v10028_v6 = vmul.f32 %v4232_v33, %v4073_v21  ;;  %v10030_v8 = vpop.f32.mrf.mxu3  ;;  %v3785_v12 = vpop.f32.mrf.mxu1  ;;  %v11608_v33 = vld [vmem:[#allocation6_spill] sm:$0xff]  ;;  %v11612_v21 = vld [vmem:[#allocation61_spill] sm:$0xff] }
 0x31f   : > { %11602 = vst [vmem:[#allocation21_spill] sm:$0xff] %v10022_v38  ;;  %v3204_v48 = vpop.f32.mrf.mxu0  ;;  %v10035_v31 = vadd.f32 %v3785_v12, %v11607_v40  ;;  %v4300_v55 = vpack.c.bf16 %v4270_v24, %v4269_v4  ;;  %v5170_v40 = vld [vmem:[%s11146_s2 + $0x63] sm:$0xff]  ;;  %v4586_v4 = vmul.f32 %v9896_v1, %v4514_v60  ;;  %v11610_v24 = vld [vmem:[#allocation12_spill] sm:$0xff]  ;;  %v10061_v38 = vmul.f32 %v9909_v37, %v4078_v23 }
 0x320   : > { %11605 = vst [vmem:[#allocation55_spill] sm:$0xff] %v10028_v6  ;;  %v10044_v0 = vadd.f32 %v3204_v48, %v11608_v33  ;;  %v11611_v12 = vmax.f32 %v11610_v24, 0.0  ;;  %v4076_v33 = vmax.f32 %v4040_v41, 0.0 }
 0x321   : > { %11606 = vst [vmem:[#allocation60_spill] sm:$0xff] %v10030_v8  ;;  %3243 = vmatmul.bf16.gmra.mxu0 %v3084_v49  ;;  %v4585_v8 = vmul.f32 %v9896_v1, %v4513_v32  ;;  %v4622_v49 = vadd.f32 %v9930_v19, %v4586_v4 }
 0x322   : > { %11609 = vst [vmem:[#allocation36_spill] sm:$0xff] %v10044_v0  ;;  %v3667_v48 = vmul.f32 %v11612_v21, %v11611_v12  ;;  %4411 = vmatmul.bf16.gmra.mxu2 %v4300_v55  ;;  %5349 = vperm.xlu2 %6756, %v5171_v53   ;;  %v11613_v0 = vld [vmem:[#allocation54_spill] sm:$0xff] }
 0x323   : > { %4855 = vperm.xlu1 %6755, %v4581_v42   ;;  %5344 = vperm.xlu0 %6754, %v5170_v40   ;;  %v3668_v6 = vmul.f32 %v11613_v0, %v3452_v27  ;;  %11614 = vst [vmem:[#allocation28_spill] sm:$0xff] %v10061_v38  ;;  %v4621_v32 = vadd.f32 %v9930_v19, %v4585_v8  ;;  %v11618_v0 = vld [vmem:[#allocation23_spill] sm:$0xff]  ;;  %v5172_v8 = vld [vmem:[%s11146_s2 + $0x73] sm:$0xff]  ;;  %v4658_v23 = vmax.f32 %v4622_v49, 0.0  ;;  %v11620_v55 = vld [vmem:[#allocation10_spill] sm:$0xff] }
 0x324   : > { %v4252_v30 = vpop.permute.xlu1 %4251  ;;  %v10090_v4 = vpop.permute.xlu2 %4735 }
 0x325   : > { %v10063_v46 = vmul.f32 %v4252_v30, %v4077_v7  ;;  %v4247_v60 = vpop.permute.xlu0 %4246  ;;  %v3692_v24 = vpack.c.bf16 %v3668_v6, %v3667_v48  ;;  %v5174_v6 = vld [vmem:[%s11146_s2 + $0x83] sm:$0xff]  ;;  %v4657_v7 = vmax.f32 %v4621_v32, 0.0 }
 0x326   : > { %v10066_v21 = vmul.f32 %v4247_v60, %v4076_v33  ;;  %v2620_v53 = vpop.f32.mrf.mxu3  ;;  %v3788_v41 = vpop.f32.mrf.mxu1  ;;  %v4516_v30 = vld [vmem:[%s6832_s8 + $0x42] sm:$0xff] }
 0x327   : > { %11615 = vst [vmem:[#allocation29_spill] sm:$0xff] %v10063_v46  ;;  %v10072_v27 = vadd.f32 %v2620_v53, %v9694_v36  ;;  %v10074_v37 = vpop.f32.mrf.mxu0  ;;  %v10077_v42 = vadd.f32 %v3788_v41, %v11618_v0  ;;  %v5173_v36 = vld [vmem:[%s11146_s2 + $0x7b] sm:$0xff] }
 0x328   : > { %11616 = vst [vmem:[#allocation59_spill] sm:$0xff] %v10066_v21  ;;  %3827 = vmatmul.bf16.gmra.mxu1 %v3692_v24  ;;  %v4515_v41 = vld [vmem:[%s6832_s8 + $0x3a] sm:$0xff] }
 0x329   : > { %11617 = vst [vmem:[#allocation50_spill] sm:$0xff] %v10074_v37  ;;  %v11632_v46 = vld [vmem:[#allocation77_spill] sm:$0xff] }
 0x32a   : > { %5364 = vperm.xlu2 %6756, %v5174_v6   ;;  %v11621_v6 = vld [vmem:[#allocation80_spill] sm:$0xff] }
 0x32b   : > { %5359 = vperm.xlu1 %6755, %v5173_v36   ;;  %5354 = vperm.xlu0 %6754, %v5172_v8   ;;  %v5176_v36 = vld [vmem:[%s11146_s2 + $0x93] sm:$0xff]  ;;  %v5175_v8 = vld [vmem:[%s11146_s2 + $0x8b] sm:$0xff] }
 0x32c   : > { %v4701_v12 = vpop.permute.xlu1 %4700 }
 0x32d   : > { %v4874_v48 = vmul.f32 %v4701_v12, %v4658_v23  ;;  %v4696_v33 = vpop.permute.xlu0 %4695  ;;  %v4588_v23 = vmul.f32 %v9896_v1, %v4516_v30 }
 0x32e   : > { %v4873_v60 = vmul.f32 %v4696_v33, %v4657_v7  ;;  %v10093_v24 = vpop.f32.mrf.mxu3  ;;  %v3790_v53 = vpop.f32.mrf.mxu1  ;;  %v11623_v7 = vld [vmem:[#allocation11_spill] sm:$0xff] }
 0x32f   : > { %11619 = vst [vmem:[#allocation85_spill] sm:$0xff] %v10093_v24  ;;  %v3209_v0 = vpop.f32.mrf.mxu0  ;;  %v10097_v40 = vadd.f32 %v3790_v53, %v11620_v55  ;;  %v4582_v55 = vld [vmem:[%s11146_s2 + $0x132] sm:$0xff]  ;;  %v11624_v12 = vmax.f32 %v11623_v7, 0.0  ;;  %v11628_v24 = vpack.c.bf16 %v9686_v16, %v9692_v35  ;;  %v4624_v7 = vadd.f32 %v9930_v19, %v4588_v23  ;;  %v5178_v23 = vld [vmem:[%s11146_s2 + $0xa3] sm:$0xff] }
 0x330   : > { %v4909_v49 = vpack.c.bf16 %v4874_v48, %v4873_v60  ;;  %v10100_v32 = vadd.f32 %v3209_v0, %v11621_v6  ;;  %v11625_v48 = vld [vmem:[#allocation67_spill] sm:$0xff]  ;;  %v11626_v60 = vmax.f32 %v9816_v22, 0.0  ;;  %v11627_v53 = vld [vmem:[#allocation68_spill] sm:$0xff]  ;;  %v4587_v6 = vmul.f32 %v9896_v1, %v4515_v41 }
 0x331   : > { %v3670_v33 = vmul.f32 %v11625_v48, %v11624_v12  ;;  %v10126_v12 = vpop.permute.xlu2 %4750 }
 0x332   : > { %11622 = vst [vmem:[#allocation65_spill] sm:$0xff] %v10100_v32  ;;  %v3669_v0 = vmul.f32 %v11627_v53, %v11626_v60  ;;  %4416 = vmatmul.bf16.gmra.mxu2 %v11628_v24  ;;  %5000 = vmatmul.bf16.vlgmr.msra.gmra.mxu3 %v4909_v49  ;;  %v3311_v32 = vld [vmem:[%s6832_s8 + $0xe9] sm:$0xff]  ;;  %v4623_v60 = vadd.f32 %v9930_v19, %v4587_v6  ;;  %v11630_v24 = vld [vmem:[#allocation53_spill] sm:$0xff] }
 0x333   : > { %5374 = vperm.xlu2 %6756, %v5176_v36   ;;  %5369 = vperm.xlu1 %6755, %v5175_v8   ;;  %v3383_v36 = vmul.f32 %v9896_v1, %v3311_v32  ;;  %v4660_v8 = vmax.f32 %v4624_v7, 0.0  ;;  %v4517_v7 = vld [vmem:[%s6832_s8 + $0x4a] sm:$0xff] }
 0x334   : > { %4860 = vperm.xlu0 %6754, %v4582_v55   ;;  %v10122_v30 = vpop.permute.xlu1 %4715  ;;  %v3693_v48 = vpack.c.bf16 %v3670_v33, %v3669_v0  ;;  %v4583_v55 = vld [vmem:[%s11146_s2 + $0x13a] sm:$0xff]  ;;  %v4659_v33 = vmax.f32 %v4623_v60, 0.0 }
 0x335   : > { %v4711_v22 = vpop.permute.xlu0 %4710  ;;  %v3419_v32 = vadd.f32 %v9930_v19, %v3383_v36 }
 0x336   : > { %v2625_v41 = vpop.f32.mrf.mxu3  ;;  %v3793_v53 = vpop.f32.mrf.mxu1  ;;  %v4876_v0 = vmul.f32 %v4711_v22, %v4660_v8  ;;  %v4589_v22 = vmul.f32 %v9896_v1, %v4517_v7 }
 0x337   : > { %v10130_v16 = vadd.f32 %v2625_v41, %v9810_v20  ;;  %v10132_v35 = vpop.f32.mrf.mxu0  ;;  %v10135_v49 = vadd.f32 %v3793_v53, %v11630_v24  ;;  %v5177_v20 = vld [vmem:[%s11146_s2 + $0x9b] sm:$0xff]  ;;  %v4875_v41 = vmul.f32 %v9981_v17, %v4659_v33  ;;  %v5180_v33 = vld [vmem:[%s11146_s2 + $0xb3] sm:$0xff] }
 0x338   : > { %11629 = vst [vmem:[#allocation8_spill] sm:$0xff] %v10132_v35  ;;  %3832 = vmatmul.bf16.gmra.mxu1 %v3693_v48  ;;  %v4518_v35 = vld [vmem:[%s6832_s8 + $0x52] sm:$0xff]  ;;  %v4584_v17 = vld [vmem:[%s11146_s2 + $0x142] sm:$0xff]  ;;  %v4625_v38 = vadd.f32 %v9930_v19, %v4589_v22 }
 0x339   : > { %v10160_v36 = vpop.permute.xlu2 %4765  ;;  %v4910_v8 = vpack.c.bf16 %v4876_v0, %v4875_v41  ;;  %v11635_v0 = vmax.f32 %v9866_v52, 0.0  ;;  %v4590_v41 = vmul.f32 %v9896_v1, %v4518_v35  ;;  %v11640_v22 = vld [vmem:[#allocation83_spill] sm:$0xff] }
 0x33b   : > { %5384 = vperm.xlu2 %6756, %v5178_v23   ;;  %5379 = vperm.xlu1 %6755, %v5177_v20   ;;  %v3455_v23 = vmax.f32 %v3419_v32, 0.0  ;;  %v11633_v20 = vld [vmem:[#allocation19_spill] sm:$0xff]  ;;  %v4626_v35 = vadd.f32 %v9930_v19, %v4590_v41 }
 0x33c   : > { %4865 = vperm.xlu0 %6754, %v4583_v55   ;;  %v10148_v6 = vpop.permute.xlu1 %4730  ;;  %v5179_v32 = vld [vmem:[%s11146_s2 + $0xab] sm:$0xff]  ;;  %v4520_v41 = vld [vmem:[%s6832_s8 + $0x62] sm:$0xff] }
 0x33d   : > { %v10151_v48 = vpop.permute.xlu0 %4725 }
 0x33e   : > { %v10154_v53 = vpop.f32.mrf.mxu3  ;;  %v3795_v24 = vpop.f32.mrf.mxu1 }
 0x33f   : > { %11631 = vst [vmem:[#allocation6_spill] sm:$0xff] %v10154_v53  ;;  %v3214_v37 = vpop.f32.mrf.mxu0  ;;  %v10158_v60 = vadd.f32 %v3795_v24, %v11632_v46  ;;  %v6710_v46 = vld [vmem:[%s11145_s1 + $0x200] sm:$0xff]  ;;  %v11637_v24 = vpack.c.bf16 %v9752_v28, %v9542_v34 }
 0x340   : > { %v10164_v55 = vadd.f32 %v3214_v37, %v11633_v20  ;;  %v11636_v37 = vld [vmem:[#allocation5_spill] sm:$0xff]  ;;  %v11638_v20 = vld [vmem:[#allocation62_spill] sm:$0xff]  ;;  %5613 = vmatpush.bf16.msra.mxu0 %v6710_v46  ;;  %v4662_v46 = vmax.f32 %v4626_v35, 0.0 }
 0x341   : > { %v3672_v7 = vmul.f32 %v11636_v37, %v11635_v0  ;;  %v3671_v53 = vmul.f32 %v11638_v20, %v3455_v23 }
 0x342   : > { %11634 = vst [vmem:[#allocation12_spill] sm:$0xff] %v10164_v55  ;;  %4421 = vmatmul.bf16.gmra.mxu2 %v11637_v24  ;;  %5005 = vmatmul.bf16.gmra.mxu3 %v4910_v8  ;;  %v3314_v55 = vld [vmem:[%s6832_s8 + $0x101] sm:$0xff]  ;;  %v4878_v35 = vmul.f32 %v10052_v10, %v4662_v46 }
 0x343   : > { %4870 = vperm.xlu2 %6756, %v4584_v17   ;;  %5394 = vperm.xlu1 %6755, %v5180_v33   ;;  %v3694_v0 = vpack.c.bf16 %v3672_v7, %v3671_v53  ;;  %v3386_v28 = vmul.f32 %v9896_v1, %v3314_v55  ;;  %v4661_v33 = vmax.f32 %v4625_v38, 0.0  ;;  %v5183_v53 = vld [vmem:[%s11146_s2 + $0xcb] sm:$0xff]  ;;  %v5182_v55 = vld [vmem:[%s11146_s2 + $0xc3] sm:$0xff]  ;;  %v4519_v24 = vld [vmem:[%s6832_s8 + $0x5a] sm:$0xff] }
 0x344   : > { %5389 = vperm.xlu0 %6754, %v5179_v32   ;;  %v10211_v32 = vpop.permute.xlu2 %4780  ;;  %v5186_v10 = vld [vmem:[%s11146_s2 + $0xe3] sm:$0xff]  ;;  %v5185_v46 = vld [vmem:[%s11146_s2 + $0xdb] sm:$0xff] }
 0x345   : > { %v10188_v5 = vpop.permute.xlu1 %4745  ;;  %v10190_v52 = vpop.permute.xlu0 %4740  ;;  %11641 = vst [vmem:[#allocation54_spill] sm:$0xff] %v10211_v32  ;;  %v3422_v7 = vadd.f32 %v9930_v19, %v3386_v28  ;;  %v4877_v38 = vmul.f32 %v10122_v30, %v4661_v33  ;;  %v11643_v28 = vld [vmem:[#allocation15_spill] sm:$0xff]  ;;  %v4592_v33 = vmul.f32 %v9896_v1, %v4520_v41 }
 0x346   : > { %v2630_v37 = vpop.f32.mrf.mxu3  ;;  %v3798_v34 = vpop.f32.mrf.mxu1  ;;  %v11647_v41 = vld [vmem:[#allocation3_spill] sm:$0xff] }
 0x347   : > { %v10195_v8 = vadd.f32 %v2630_v37, %v9923_v15  ;;  %v10197_v23 = vpop.f32.mrf.mxu0  ;;  %v10200_v17 = vadd.f32 %v3798_v34, %v11640_v22  ;;  %v5181_v15 = vld [vmem:[%s11146_s2 + $0xbb] sm:$0xff]  ;;  %v10221_v37 = vpop.f32.mrf.mxu2  ;;  %v3458_v22 = vmax.f32 %v3422_v7, 0.0  ;;  %v4911_v30 = vpack.c.bf16 %v4878_v35, %v4877_v38  ;;  %v5184_v7 = vld [vmem:[%s11146_s2 + $0xd3] sm:$0xff] }
 0x348   : > { %11639 = vst [vmem:[#allocation61_spill] sm:$0xff] %v10197_v23  ;;  %3837 = vmatmul.bf16.gmra.mxu1 %v3694_v0  ;;  %v11646_v38 = vmax.f32 %v9705_v13, 0.0  ;;  %v4628_v13 = vadd.f32 %v9930_v19, %v4592_v33 }
 0x349   : > { %11642 = vst [vmem:[#allocation23_spill] sm:$0xff] %v10221_v37 }
 0x34b   : > { %5409 = vperm.xlu2 %6756, %v5183_v53   ;;  %5404 = vperm.xlu1 %6755, %v5182_v55   ;;  %v4532_v53 = vld [vmem:[%s6832_s8 + $0xc2] sm:$0xff]  ;;  %v4531_v55 = vld [vmem:[%s6832_s8 + $0xba] sm:$0xff] }
 0x34c   : > { %5399 = vperm.xlu0 %6754, %v5181_v15   ;;  %v4591_v15 = vmul.f32 %v9896_v1, %v4519_v24  ;;  %v3673_v24 = vmul.f32 %v11647_v41, %v11646_v38  ;;  %v4603_v35 = vmul.f32 %v9896_v1, %v4531_v55  ;;  %v10254_v41 = vpop.permute.xlu2 %4795  ;;  %v4536_v55 = vld [vmem:[%s6832_s8 + $0xe2] sm:$0xff] }
 0x34d   : > { %v10217_v20 = vpop.permute.xlu1 %4760  ;;  %v10219_v0 = vpop.permute.xlu0 %4755 }
 0x34e   : > { %v3800_v34 = vpop.f32.mrf.mxu1  ;;  %v4627_v38 = vadd.f32 %v9930_v19, %v4591_v15  ;;  %v4535_v15 = vld [vmem:[%s6832_s8 + $0xda] sm:$0xff] }
 0x34f   : > { %v3219_v23 = vpop.f32.mrf.mxu0  ;;  %v10225_v21 = vadd.f32 %v3800_v34, %v11643_v28  ;;  %v11649_v34 = vld [vmem:[#allocation47_spill] sm:$0xff] }
 0x350   : > { %v10232_v47 = vadd.f32 %v3219_v23, %v9762_v9  ;;  %v11648_v9 = vpack.c.bf16 %v9584_v11, %v9745_v45  ;;  %v4604_v23 = vmul.f32 %v9896_v1, %v4532_v53  ;;  %v3674_v28 = vmul.f32 %v11649_v34, %v3458_v22  ;;  %v4534_v34 = vld [vmem:[%s6832_s8 + $0xd2] sm:$0xff] }
 0x351   : > { %11644 = vst [vmem:[#allocation10_spill] sm:$0xff] %v10225_v21  ;;  %v4639_v22 = vadd.f32 %v9930_v19, %v4603_v35  ;;  %v4663_v37 = vmax.f32 %v4627_v38, 0.0  ;;  %v4521_v21 = vld [vmem:[%s6832_s8 + $0x6a] sm:$0xff] }
 0x352   : > { %11645 = vst [vmem:[#allocation80_spill] sm:$0xff] %v10232_v47  ;;  %4426 = vmatmul.bf16.gmra.mxu2 %v11648_v9  ;;  %5010 = vmatmul.bf16.gmra.mxu3 %v4911_v30  ;;  %v3695_v53 = vpack.c.bf16 %v3674_v28, %v3673_v24  ;;  %v4533_v30 = vld [vmem:[%s6832_s8 + $0xca] sm:$0xff]  ;;  %v5189_v24 = vld [vmem:[%s11146_s2 + $0xfb] sm:$0xff]  ;;  %v4522_v47 = vld [vmem:[%s6832_s8 + $0x72] sm:$0xff] }
 0x353   : > { %5424 = vperm.xlu2 %6756, %v5186_v10   ;;  %5419 = vperm.xlu1 %6755, %v5185_v46   ;;  %v4640_v46 = vadd.f32 %v9930_v19, %v4604_v23  ;;  %v5188_v23 = vld [vmem:[%s11146_s2 + $0xf3] sm:$0xff]  ;;  %v4605_v35 = vmul.f32 %v9896_v1, %v4533_v30  ;;  %v5187_v28 = vld [vmem:[%s11146_s2 + $0xeb] sm:$0xff]  ;;  %v4675_v38 = vmax.f32 %v4639_v22, 0.0  ;;  %v4879_v30 = vmul.f32 %v10151_v48, %v4663_v37 }
 0x354   : > { %5414 = vperm.xlu0 %6754, %v5184_v7   ;;  %v4664_v7 = vmax.f32 %v4628_v13, 0.0  ;;  %v4538_v48 = vld [vmem:[%s6832_s8 + $0xf2] sm:$0xff]  ;;  %v11653_v37 = vmax.f32 %v9757_v25, 0.0 }
 0x355   : > { %v10256_v11 = vpop.permute.xlu1 %4775  ;;  %v10258_v45 = vpop.permute.xlu0 %4770  ;;  %v4676_v13 = vmax.f32 %v4640_v46, 0.0  ;;  %v5192_v25 = vld [vmem:[%s11146_s2 + $0x113] sm:$0xff] }
 0x356   : > { %11650 = vst [vmem:[#allocation11_spill] sm:$0xff] %v10256_v11  ;;  %v4387_v10 = vpop.f32.mrf.mxu2  ;;  %v4537_v11 = vld [vmem:[%s6832_s8 + $0xea] sm:$0xff] }
 0x357   : > { %v10265_v9 = vadd.f32 %v4387_v10, %v9767_v54  ;;  %v10267_v33 = vpop.f32.mrf.mxu0  ;;  %v4608_v54 = vmul.f32 %v9896_v1, %v4536_v55  ;;  %v4606_v10 = vmul.f32 %v9896_v1, %v4534_v34  ;;  %v4641_v55 = vadd.f32 %v9930_v19, %v4605_v35 }
 0x358   : > { %11652 = vst [vmem:[#allocation68_spill] sm:$0xff] %v10267_v33  ;;  %3842 = vmatmul.bf16.gmra.mxu1 %v3695_v53  ;;  %v4607_v53 = vmul.f32 %v9896_v1, %v4535_v15  ;;  %v4880_v33 = vmul.f32 %v10148_v6, %v4664_v7  ;;  %v11654_v7 = vld [vmem:[#allocation70_spill] sm:$0xff] }
 0x359   : > { %11651 = vst [vmem:[#allocation67_spill] sm:$0xff] %v10265_v9  ;;  %v4644_v9 = vadd.f32 %v9930_v19, %v4608_v54  ;;  %v4642_v6 = vadd.f32 %v9930_v19, %v4606_v10  ;;  %v3676_v35 = vmul.f32 %v11654_v7, %v11653_v37  ;;  %v11656_v10 = vmax.f32 %v9937_v29, 0.0 }
 0x35a   : > { %v11658_v37 = vpack.c.bf16 %v9805_v57, %v9808_v58 }
 0x35b   : > { %5439 = vperm.xlu2 %6756, %v5189_v24   ;;  %5434 = vperm.xlu1 %6755, %v5188_v23   ;;  %v4643_v23 = vadd.f32 %v9930_v19, %v4607_v53  ;;  %v4678_v29 = vmax.f32 %v4642_v6, 0.0 }
 0x35c   : > { %5429 = vperm.xlu0 %6754, %v5187_v28   ;;  %v4811_v28 = vpop.permute.xlu2 %4810 }
 0x35d   : > { %v4791_v46 = vpop.permute.xlu1 %4790  ;;  %v4786_v22 = vpop.permute.xlu0 %4785  ;;  %v4679_v7 = vmax.f32 %v4643_v23, 0.0 }
 0x35e   : > { %v10290_v15 = vmul.f32 %v4791_v46, %v4676_v13  ;;  %v10292_v34 = vmul.f32 %v4786_v22, %v4675_v38  ;;  %v4389_v24 = vpop.f32.mrf.mxu2  ;;  %v4912_v13 = vpack.c.bf16 %v4880_v33, %v4879_v30  ;;  %v4594_v38 = vmul.f32 %v9896_v1, %v4522_v47  ;;  %v11657_v33 = vld [vmem:[#allocation71_spill] sm:$0xff] }
 0x35f   : > { %v10301_v54 = vadd.f32 %v4389_v24, %v9819_v26  ;;  %v3224_v32 = vpop.f32.mrf.mxu0  ;;  %v5191_v26 = vld [vmem:[%s11146_s2 + $0x10b] sm:$0xff]  ;;  %v3675_v30 = vmul.f32 %v11657_v33, %v11656_v10  ;;  %v4593_v47 = vmul.f32 %v9896_v1, %v4521_v21  ;;  %v4677_v22 = vmax.f32 %v4641_v55, 0.0  ;;  %v3317_v21 = vld [vmem:[%s6832_s8 + $0x119] sm:$0xff]  ;;  %v4524_v46 = vld [vmem:[%s6832_s8 + $0x82] sm:$0xff] }
 0x360   : > { %v10308_v53 = vadd.f32 %v3224_v32, %v9871_v56  ;;  %v5190_v56 = vld [vmem:[%s11146_s2 + $0x103] sm:$0xff]  ;;  %v4610_v32 = vmul.f32 %v9896_v1, %v4538_v48  ;;  %v4680_v24 = vmax.f32 %v4644_v9, 0.0  ;;  %v4609_v10 = vmul.f32 %v9896_v1, %v4537_v11  ;;  %v4539_v11 = vld [vmem:[%s6832_s8 + $0xfa] sm:$0xff] }
 0x361   : > { %v4630_v55 = vadd.f32 %v9930_v19, %v4594_v38  ;;  %v3696_v33 = vpack.c.bf16 %v3676_v35, %v3675_v30  ;;  %v4629_v9 = vadd.f32 %v9930_v19, %v4593_v47  ;;  %v10332_v57 = vmul.f32 %v10254_v41, %v4677_v22  ;;  %v4541_v22 = vld [vmem:[%s6832_s8 + $0x10a] sm:$0xff] }
 0x362   : > { %11655 = vst [vmem:[#allocation53_spill] sm:$0xff] %v10308_v53  ;;  %4431 = vmatmul.bf16.gmra.mxu2 %v11658_v37  ;;  %5015 = vmatmul.bf16.gmra.mxu3 %v4912_v13  ;;  %v4646_v6 = vadd.f32 %v9930_v19, %v4610_v32  ;;  %v10335_v48 = vmul.f32 %v4811_v28, %v4680_v24  ;;  %v4542_v13 = vld [vmem:[%s6832_s8 + $0x112] sm:$0xff] }
 0x363   : > { %5454 = vperm.xlu2 %6756, %v5192_v25   ;;  %5449 = vperm.xlu1 %6755, %v5191_v26   ;;  %v4645_v26 = vadd.f32 %v9930_v19, %v4609_v10  ;;  %v3389_v30 = vmul.f32 %v9896_v1, %v3317_v21  ;;  %v4666_v28 = vmax.f32 %v4630_v55, 0.0  ;;  %v5195_v37 = vld [vmem:[%s11146_s2 + $0x12b] sm:$0xff]  ;;  %v4611_v10 = vmul.f32 %v9896_v1, %v4539_v11  ;;  %v5193_v55 = vld [vmem:[%s11146_s2 + $0x11b] sm:$0xff] }
 0x364   : > { %5444 = vperm.xlu0 %6754, %v5190_v56   ;;  %v4540_v56 = vld [vmem:[%s6832_s8 + $0x102] sm:$0xff]  ;;  %v4614_v21 = vmul.f32 %v9896_v1, %v4542_v13  ;;  %v4523_v13 = vld [vmem:[%s6832_s8 + $0x7a] sm:$0xff] }
 0x365   : > { %v4806_v58 = vpop.permute.xlu1 %4805  ;;  %v4801_v23 = vpop.permute.xlu0 %4800  ;;  %v3425_v32 = vadd.f32 %v9930_v19, %v3389_v30  ;;  %v4647_v24 = vadd.f32 %v9930_v19, %v4611_v10 }
 0x366   : > { %v10339_v25 = vmul.f32 %v4806_v58, %v4679_v7  ;;  %v10341_v38 = vmul.f32 %v4801_v23, %v4678_v29  ;;  %v4392_v35 = vpop.f32.mrf.mxu2  ;;  %v4665_v7 = vmax.f32 %v4629_v9, 0.0  ;;  %v4826_v29 = vpop.permute.xlu2 %4825  ;;  %v4681_v58 = vmax.f32 %v4645_v26, 0.0 }
 0x367   : > { %v10346_v41 = vadd.f32 %v4392_v35, %v9876_v39  ;;  %v10348_v47 = vpop.f32.mrf.mxu0  ;;  %v5194_v39 = vld [vmem:[%s11146_s2 + $0x123] sm:$0xff]  ;;  %v4613_v23 = vmul.f32 %v9896_v1, %v4541_v22  ;;  %v4612_v35 = vmul.f32 %v9896_v1, %v4540_v56  ;;  %v4882_v9 = vmul.f32 %v10190_v52, %v4666_v28  ;;  %v5128_v28 = vld [vmem:[%s6832_s8 + $0x33] sm:$0xff] }
 0x368   : > { %11659 = vst [vmem:[#allocation77_spill] sm:$0xff] %v10348_v47  ;;  %3847 = vmatmul.bf16.gmra.mxu1 %v3696_v33  ;;  %v4682_v33 = vmax.f32 %v4646_v6, 0.0  ;;  %v4881_v11 = vmul.f32 %v10090_v4, %v4665_v7  ;;  %v4650_v6 = vadd.f32 %v9930_v19, %v4614_v21  ;;  %v3461_v4 = vmax.f32 %v3425_v32, 0.0 }
 0x369   : > { %v4648_v52 = vadd.f32 %v9930_v19, %v4612_v35  ;;  %v4595_v21 = vmul.f32 %v9896_v1, %v4523_v13  ;;  %v11661_v32 = vmax.f32 %v9979_v62, 0.0  ;;  %v11662_v35 = vld [vmem:[#allocation18_spill] sm:$0xff]  ;;  %v5200_v13 = vmul.f32 %v9896_v1, %v5128_v28 }
 0x36a   : > { %v4913_v47 = vpack.c.bf16 %v4882_v9, %v4881_v11  ;;  %v4596_v9 = vmul.f32 %v9896_v1, %v4524_v46  ;;  %v4683_v11 = vmax.f32 %v4647_v24, 0.0 }
 0x36b   : > { %5469 = vperm.xlu2 %6756, %v5195_v37   ;;  %5464 = vperm.xlu1 %6755, %v5194_v39   ;;  %v4649_v39 = vadd.f32 %v9930_v19, %v4613_v23  ;;  %v5198_v23 = vld [vmem:[%s11146_s2 + $0x143] sm:$0xff]  ;;  %v4631_v24 = vadd.f32 %v9930_v19, %v4595_v21 }
 0x36c   : > { %5459 = vperm.xlu0 %6754, %v5193_v55   ;;  %v5127_v55 = vld [vmem:[%s6832_s8 + $0x2b] sm:$0xff]  ;;  %v10414_v28 = vmul.f32 %v4826_v29, %v4683_v11  ;;  %v5777_v11 = vld [vmem:[%s11146_s2 + $0x18] sm:$0xff] }
 0x36d   : > { %v4821_v26 = vpop.permute.xlu1 %4820  ;;  %v4816_v22 = vpop.permute.xlu0 %4815  ;;  %v5199_v62 = vmul.f32 %v9896_v1, %v5127_v55  ;;  %v4667_v29 = vmax.f32 %v4631_v24, 0.0 }
 0x36e   : > { %v10376_v56 = vmul.f32 %v4821_v26, %v4682_v33  ;;  %v10378_v30 = vmul.f32 %v4816_v22, %v4681_v58  ;;  %v4394_v37 = vpop.f32.mrf.mxu2  ;;  %v3678_v26 = vmul.f32 %v11662_v35, %v11661_v32  ;;  %v4686_v22 = vmax.f32 %v4650_v6, 0.0  ;;  %v11664_v32 = vld [vmem:[#allocation35_spill] sm:$0xff]  ;;  %v4841_v46 = vpop.permute.xlu2 %4840 }
 0x36f   : > { %v10384_v7 = vadd.f32 %v4394_v37, %v9940_v51  ;;  %v3229_v10 = vpop.f32.mrf.mxu0  ;;  %v5197_v51 = vld [vmem:[%s11146_s2 + $0x13b] sm:$0xff]  ;;  %v11663_v37 = vpack.c.bf16 %v9862_v3, %v9632_v63  ;;  %v4684_v33 = vmax.f32 %v4648_v52, 0.0  ;;  %v3677_v35 = vmul.f32 %v11664_v32, %v3461_v4 }
 0x370   : > { %v10391_v58 = vadd.f32 %v3229_v10, %v9986_v18  ;;  %v5196_v18 = vld [vmem:[%s11146_s2 + $0x133] sm:$0xff]  ;;  %v4685_v10 = vmax.f32 %v4649_v39, 0.0  ;;  %v4632_v6 = vadd.f32 %v9930_v19, %v4596_v9  ;;  %v10417_v39 = vmul.f32 %v4841_v46, %v4686_v22 }
 0x372   : > { %11660 = vst [vmem:[#allocation19_spill] sm:$0xff] %v10391_v58  ;;  %4436 = vmatmul.bf16.gmra.mxu2 %v11663_v37  ;;  %5020 = vmatmul.bf16.gmra.mxu3 %v4913_v47  ;;  %v3697_v58 = vpack.c.bf16 %v3678_v26, %v3677_v35  ;;  %v5236_v47 = vadd.f32 %v9930_v19, %v5200_v13  ;;  %v4526_v37 = vld [vmem:[%s6832_s8 + $0x92] sm:$0xff] }
 0x373   : > { %5484 = vperm.xlu2 %6756, %v5198_v23   ;;  %5479 = vperm.xlu1 %6755, %v5197_v51   ;;  %v5235_v23 = vadd.f32 %v9930_v19, %v5199_v62 }
 0x374   : > { %5474 = vperm.xlu0 %6754, %v5196_v18   ;;  %v4668_v18 = vmax.f32 %v4632_v6, 0.0  ;;  %v5272_v13 = vmax.f32 %v5236_v47, 0.0  ;;  %v5130_v6 = vld [vmem:[%s6832_s8 + $0x43] sm:$0xff]  ;;  %v4598_v47 = vmul.f32 %v9896_v1, %v4526_v37 }
 0x375   : > { %v4836_v63 = vpop.permute.xlu1 %4835  ;;  %v4831_v3 = vpop.permute.xlu0 %4830  ;;  %v5271_v22 = vmax.f32 %v5235_v23, 0.0 }
 0x376   : > { %v10419_v52 = vmul.f32 %v4836_v63, %v4685_v10  ;;  %v10421_v4 = vmul.f32 %v4831_v3, %v4684_v33  ;;  %v4397_v55 = vpop.f32.mrf.mxu2  ;;  %v5779_v33 = vld [vmem:[%s11146_s2 + $0x28] sm:$0xff]  ;;  %v4884_v35 = vmul.f32 %v10126_v12, %v4668_v18  ;;  %v5129_v3 = vld [vmem:[%s6832_s8 + $0x3b] sm:$0xff] }
 0x377   : > { %v10425_v21 = vadd.f32 %v4397_v55, %v9991_v43  ;;  %v10427_v51 = vpop.f32.mrf.mxu0  ;;  %v5778_v43 = vld [vmem:[%s11146_s2 + $0x20] sm:$0xff]  ;;  %v4525_v10 = vld [vmem:[%s6832_s8 + $0x8a] sm:$0xff]  ;;  %v5781_v18 = vld [vmem:[%s11146_s2 + $0x38] sm:$0xff] }
 0x378   : > { %11665 = vst [vmem:[#allocation5_spill] sm:$0xff] %v10427_v51  ;;  %3852 = vmatmul.bf16.gmra.mxu1 %v3697_v58  ;;  %v4883_v58 = vmul.f32 %v10188_v5, %v4667_v29  ;;  %v4543_v55 = vld [vmem:[%s6832_s8 + $0x11a] sm:$0xff]  ;;  %v4544_v29 = vld [vmem:[%s6832_s8 + $0x122] sm:$0xff] }
 0x379   : > { %v5782_v12 = vld [vmem:[%s11146_s2 + $0x40] sm:$0xff]  ;;  %v4616_v37 = vmul.f32 %v9896_v1, %v4544_v29  ;;  %v11670_v29 = vld [vmem:[#allocation76_spill] sm:$0xff] }
 0x37a   : > { %v5148_v51 = vld [vmem:[%s6832_s8 + $0xd3] sm:$0xff] }
 0x37b   : > { %5825 = vperm.xlu2 %6756, %v5779_v33   ;;  %5820 = vperm.xlu1 %6755, %v5778_v43   ;;  %v4914_v33 = vpack.c.bf16 %v4884_v35, %v4883_v58  ;;  %v4597_v43 = vmul.f32 %v9896_v1, %v4525_v10  ;;  %v4615_v58 = vmul.f32 %v9896_v1, %v4543_v55 }
 0x37c   : > { %5815 = vperm.xlu0 %6754, %v5777_v11   ;;  %v4634_v10 = vadd.f32 %v9930_v19, %v4598_v47 }
 0x37d   : > { %v5315_v62 = vpop.permute.xlu1 %5314  ;;  %v5310_v32 = vpop.permute.xlu0 %5309 }
 0x37e   : > { %v5488_v46 = vmul.f32 %v5315_v62, %v5272_v13  ;;  %v5487_v24 = vmul.f32 %v5310_v32, %v5271_v22  ;;  %v4399_v63 = vpop.f32.mrf.mxu2  ;;  %v5202_v13 = vmul.f32 %v9896_v1, %v5130_v6  ;;  %v5201_v22 = vmul.f32 %v9896_v1, %v5129_v3  ;;  %v4846_v32 = vpop.permute.xlu2 %4845 }
 0x37f   : > { %v10451_v23 = vadd.f32 %v4399_v63, %v10035_v31  ;;  %v3234_v5 = vpop.f32.mrf.mxu0  ;;  %v5780_v31 = vld [vmem:[%s11146_s2 + $0x30] sm:$0xff]  ;;  %v4633_v62 = vadd.f32 %v9930_v19, %v4597_v43  ;;  %v4652_v1 = vadd.f32 %v9930_v19, %v4616_v37  ;;  %v4670_v47 = vmax.f32 %v4634_v10, 0.0  ;;  %v5785_v43 = vld [vmem:[%s11146_s2 + $0x58] sm:$0xff] }
 0x380   : > { %v5523_v11 = vpack.c.bf16 %v5488_v46, %v5487_v24  ;;  %v10456_v26 = vadd.f32 %v3234_v5, %v10072_v27  ;;  %v11667_v27 = vpack.c.bf16 %v9682_v44, %v9858_v14  ;;  %v5238_v46 = vadd.f32 %v9930_v19, %v5202_v13  ;;  %v11669_v5 = vld [vmem:[#allocation75_spill] sm:$0xff] }
 0x381   : > { %v5237_v24 = vadd.f32 %v9930_v19, %v5201_v22  ;;  %v4651_v44 = vadd.f32 %v9930_v19, %v4615_v58  ;;  %v4669_v55 = vmax.f32 %v4633_v62, 0.0  ;;  %v5784_v19 = vld [vmem:[%s11146_s2 + $0x50] sm:$0xff]  ;;  %v4886_v13 = vmul.f32 %v10217_v20, %v4670_v47  ;;  %v4528_v58 = vld [vmem:[%s6832_s8 + $0xa2] sm:$0xff]  ;;  %v10512_v47 = vld [vmem:[%s11147_s3] ss:$0 sm:$0xff] }
 0x382   : > { %11666 = vst [vmem:[#allocation62_spill] sm:$0xff] %v10456_v26  ;;  %4441 = vmatmul.bf16.gmra.mxu2 %v11667_v27  ;;  %5025 = vmatmul.bf16.gmra.mxu3 %v4914_v33  ;;  %v11671_v33 = vpack.c.bf16 %v11669_v5, %v11670_v29 }
 0x383   : > { %5614 = vmatmul.bf16.vlgmr.msra.gmra.mxu0 %v5523_v11  ;;  %5840 = vperm.xlu2 %6756, %v5782_v12   ;;  %v5274_v11 = vmax.f32 %v5238_v46, 0.0  ;;  %v5273_v12 = vmax.f32 %v5237_v24, 0.0  ;;  %v4885_v22 = vmul.f32 %v10219_v0, %v4669_v55  ;;  %v5132_v24 = vld [vmem:[%s6832_s8 + $0x53] sm:$0xff] }
 0x384   : > { %5835 = vperm.xlu1 %6755, %v5781_v18   ;;  %5830 = vperm.xlu0 %6754, %v5780_v31   ;;  %v4687_v18 = vmax.f32 %v4651_v44, 0.0  ;;  %v4688_v31 = vmax.f32 %v4652_v1, 0.0  ;;  %v4527_v44 = vld [vmem:[%s6832_s8 + $0x9a] sm:$0xff] }
 0x385   : > { %v5325_v35 = vpop.permute.xlu1 %5324  ;;  %v5320_v14 = vpop.permute.xlu0 %5319  ;;  %v4915_v0 = vpack.c.bf16 %v4886_v13, %v4885_v22 }
 0x386   : > { %v4402_v63 = vpop.f32.mrf.mxu2  ;;  %v5490_v27 = vmul.f32 %v5325_v35, %v5274_v11  ;;  %v5489_v37 = vmul.f32 %v5320_v14, %v5273_v12  ;;  %v10500_v62 = vmul.f32 %v4846_v32, %v4687_v18  ;;  %v5330_v1 = vpop.permute.xlu2 %5329  ;;  %v4600_v35 = vmul.f32 %v10512_v47, %v4528_v58  ;;  %v5131_v32 = vld [vmem:[%s6832_s8 + $0x4b] sm:$0xff]  ;;  %v5786_v12 = vld [vmem:[%s11146_s2 + $0x60] sm:$0xff] }
 0x387   : > { %v10481_v6 = vadd.f32 %v4402_v63, %v10077_v42  ;;  %v10483_v3 = vpop.f32.mrf.mxu0  ;;  %v5783_v42 = vld [vmem:[%s11146_s2 + $0x48] sm:$0xff]  ;;  %v10539_v18 = vld [vmem:[%s11148_s4] ss:$0 sm:$0xff] }
 0x388   : > { %11668 = vst [vmem:[#allocation83_spill] sm:$0xff] %v10483_v3  ;;  %3857 = vmatmul.bf16.gmra.mxu1 %v11671_v33  ;;  %v5524_v33 = vpack.c.bf16 %v5490_v27, %v5489_v37  ;;  %v5787_v11 = vld [vmem:[%s11146_s2 + $0x68] sm:$0xff] }
 0x38b   : > { %5855 = vperm.xlu2 %6756, %v5785_v43   ;;  %v5204_v43 = vmul.f32 %v10512_v47, %v5132_v24 }
 0x38c   : > { %5850 = vperm.xlu1 %6755, %v5784_v19   ;;  %5845 = vperm.xlu0 %6754, %v5783_v42   ;;  %v4599_v19 = vmul.f32 %v10512_v47, %v4527_v44  ;;  %v5203_v42 = vmul.f32 %v10512_v47, %v5131_v32  ;;  %v5790_v44 = vld [vmem:[%s11146_s2 + $0x80] sm:$0xff] }
 0x38d   : > { %v4851_v10 = vpop.permute.xlu1 %4850  ;;  %v5335_v55 = vpop.permute.xlu0 %5334  ;;  %v5240_v13 = vadd.f32 %v10539_v18, %v5204_v43 }
 0x38e   : > { %v10502_v46 = vmul.f32 %v4851_v10, %v4688_v31  ;;  %v4404_v63 = vpop.f32.mrf.mxu2  ;;  %v4636_v31 = vadd.f32 %v10539_v18, %v4600_v35  ;;  %v4635_v22 = vadd.f32 %v10539_v18, %v4599_v19  ;;  %v5791_v10 = vld [vmem:[%s11146_s2 + $0x88] sm:$0xff]  ;;  %v10553_v24 = vpop.permute.xlu2 %5339 }
 0x38f   : > { %v10507_v5 = vadd.f32 %v4404_v63, %v10097_v40  ;;  %v3239_v20 = vpop.f32.mrf.mxu0  ;;  %v5788_v40 = vld [vmem:[%s11146_s2 + $0x70] sm:$0xff]  ;;  %v5276_v63 = vmax.f32 %v5240_v13, 0.0 }
 0x390   : > { %v10519_v29 = vadd.f32 %v3239_v20, %v10130_v16  ;;  %v11673_v16 = vpack.c.bf16 %v9915_v50, %v9921_v61  ;;  %v5239_v61 = vadd.f32 %v10539_v18, %v5203_v42  ;;  %v4672_v37 = vmax.f32 %v4636_v31, 0.0 }
 0x391   : > { %v4671_v20 = vmax.f32 %v4635_v22, 0.0  ;;  %v5492_v43 = vmul.f32 %v5335_v55, %v5276_v63  ;;  %v5794_v55 = vld [vmem:[%s11146_s2 + $0xa0] sm:$0xff] }
 0x392   : > { %11672 = vst [vmem:[#allocation15_spill] sm:$0xff] %v10519_v29  ;;  %4446 = vmatmul.bf16.gmra.mxu2 %v11673_v16  ;;  %5030 = vmatmul.bf16.gmra.mxu3 %v4915_v0  ;;  %v5275_v35 = vmax.f32 %v5239_v61, 0.0  ;;  %v4888_v32 = vmul.f32 %v10258_v45, %v4672_v37  ;;  %v4530_v16 = vld [vmem:[%s6832_s8 + $0xb2] sm:$0xff]  ;;  %v5133_v45 = vld [vmem:[%s6832_s8 + $0x5b] sm:$0xff] }
 0x393   : > { %5619 = vmatmul.bf16.gmra.mxu0 %v5524_v33  ;;  %5870 = vperm.xlu2 %6756, %v5788_v40   ;;  %v4529_v33 = vld [vmem:[%s6832_s8 + $0xaa] sm:$0xff]  ;;  %v5205_v63 = vmul.f32 %v10512_v47, %v5133_v45 }
 0x394   : > { %5865 = vperm.xlu1 %6755, %v5787_v11   ;;  %5860 = vperm.xlu0 %6754, %v5786_v12   ;;  %v4887_v11 = vmul.f32 %v10160_v36, %v4671_v20  ;;  %v5134_v12 = vld [vmem:[%s6832_s8 + $0x63] sm:$0xff]  ;;  %v5491_v42 = vmul.f32 %v5330_v1, %v5275_v35  ;;  %v4601_v22 = vmul.f32 %v10512_v47, %v4529_v33  ;;  %v5792_v1 = vld [vmem:[%s11146_s2 + $0x90] sm:$0xff] }
 0x395   : > { %v5345_v0 = vpop.permute.xlu0 %5344  ;;  %v10562_v40 = vpop.permute.xlu1 %4855  ;;  %v5206_v37 = vmul.f32 %v10512_v47, %v5134_v12  ;;  %v5797_v12 = vld [vmem:[%s11146_s2 + $0xb8] sm:$0xff] }
 0x396   : > { %v4407_v50 = vpop.f32.mrf.mxu2  ;;  %v5525_v36 = vpack.c.bf16 %v5492_v43, %v5491_v42  ;;  %v5795_v42 = vld [vmem:[%s11146_s2 + $0xa8] sm:$0xff] }
 0x397   : > { %v10546_v58 = vadd.f32 %v4407_v50, %v10135_v49  ;;  %v10548_v27 = vpop.f32.mrf.mxu0  ;;  %v5789_v49 = vld [vmem:[%s11146_s2 + $0x78] sm:$0xff]  ;;  %v4916_v50 = vpack.c.bf16 %v4888_v32, %v4887_v11  ;;  %v5242_v35 = vadd.f32 %v10539_v18, %v5206_v37 }
 0x398   : > { %11674 = vst [vmem:[#allocation3_spill] sm:$0xff] %v10548_v27  ;;  %v5145_v27 = vld [vmem:[%s6832_s8 + $0xbb] sm:$0xff] }
 0x399   : > { %v5217_v26 = vmul.f32 %v10512_v47, %v5145_v27 }
 0x39b   : > { %5885 = vperm.xlu2 %6756, %v5791_v10   ;;  %v4602_v10 = vmul.f32 %v10512_v47, %v4530_v16  ;;  %v5796_v16 = vld [vmem:[%s11146_s2 + $0xb0] sm:$0xff] }
 0x39c   : > { %5880 = vperm.xlu1 %6755, %v5790_v44   ;;  %5875 = vperm.xlu0 %6754, %v5789_v49   ;;  %v10591_v44 = vpop.permute.xlu2 %5349  ;;  %v4637_v49 = vadd.f32 %v10539_v18, %v4601_v22 }
 0x39d   : > { %v5355_v20 = vpop.permute.xlu0 %5354  ;;  %v4638_v32 = vadd.f32 %v10539_v18, %v4602_v10  ;;  %v10596_v33 = vpop.permute.xlu1 %5359 }
 0x39e   : > { %v4409_v19 = vpop.f32.mrf.mxu2  ;;  %v4673_v11 = vmax.f32 %v4637_v49, 0.0  ;;  %v11680_v49 = vld [vmem:[#allocation10_spill] sm:$0xff] }
 0x39f   : > { %v10569_v31 = vadd.f32 %v4409_v19, %v10158_v60  ;;  %v3244_v13 = vpop.f32.mrf.mxu0  ;;  %v5793_v60 = vld [vmem:[%s11146_s2 + $0x98] sm:$0xff]  ;;  %v5278_v19 = vmax.f32 %v5242_v35, 0.0 }
 0x3a0   : > { %v10574_v61 = vadd.f32 %v3244_v13, %v10195_v8  ;;  %v11676_v8 = vpack.c.bf16 %v9974_v2, %v9741_v59  ;;  %v5241_v2 = vadd.f32 %v10539_v18, %v5205_v63  ;;  %v4674_v13 = vmax.f32 %v4638_v32, 0.0 }
 0x3a2   : > { %11675 = vst [vmem:[#allocation47_spill] sm:$0xff] %v10574_v61  ;;  %4451 = vmatmul.bf16.gmra.mxu2 %v11676_v8  ;;  %5035 = vmatmul.bf16.gmra.mxu3 %v4916_v50  ;;  %v5277_v22 = vmax.f32 %v5241_v2, 0.0  ;;  %v10618_v8 = vpop.f32.mrf.mxu3 }
 0x3a3   : > { %5624 = vmatmul.bf16.gmra.mxu0 %v5525_v36  ;;  %5900 = vperm.xlu2 %6756, %v5794_v55   ;;  %v5494_v55 = vmul.f32 %v5345_v0, %v5278_v19  ;;  %v11678_v36 = vld [vmem:[#allocation54_spill] sm:$0xff]  ;;  %11679 = vst [vmem:[#allocation70_spill] sm:$0xff] %v10618_v8  ;;  %v5800_v0 = vld [vmem:[%s11146_s2 + $0xd0] sm:$0xff]  ;;  %v5799_v19 = vld [vmem:[%s11146_s2 + $0xc8] sm:$0xff] }
 0x3a4   : > { %5895 = vperm.xlu1 %6755, %v5793_v60   ;;  %5890 = vperm.xlu0 %6754, %v5792_v1   ;;  %v10612_v45 = vpop.permute.xlu2 %5364  ;;  %v4890_v37 = vmul.f32 %v11678_v36, %v4674_v13  ;;  %v5136_v60 = vld [vmem:[%s6832_s8 + $0x73] sm:$0xff]  ;;  %v5493_v63 = vmul.f32 %v10553_v24, %v5277_v22  ;;  %v5798_v24 = vld [vmem:[%s11146_s2 + $0xc0] sm:$0xff] }
 0x3a5   : > { %v10625_v2 = vpop.permute.xlu1 %5369 }
 0x3a6   : > { %v4412_v59 = vpop.f32.mrf.mxu2  ;;  %v10616_v1 = vpop.permute.xlu0 %4860 }
 0x3a7   : > { %v10600_v43 = vadd.f32 %v4412_v59, %v10200_v17  ;;  %v11677_v17 = vld [vmem:[#allocation11_spill] sm:$0xff] }
 0x3a8   : > { %v4889_v50 = vmul.f32 %v11677_v17, %v4673_v11  ;;  %v5135_v59 = vld [vmem:[%s6832_s8 + $0x6b] sm:$0xff]  ;;  %v5526_v11 = vpack.c.bf16 %v5494_v55, %v5493_v63  ;;  %v5802_v63 = vld [vmem:[%s11146_s2 + $0xe0] sm:$0xff] }
 0x3a9   : > { %v5207_v22 = vmul.f32 %v10512_v47, %v5135_v59 }
 0x3aa   : > { %v4917_v32 = vpack.c.bf16 %v4890_v37, %v4889_v50 }
 0x3ab   : > { %5915 = vperm.xlu2 %6756, %v5797_v12   ;;  %v5208_v12 = vmul.f32 %v10512_v47, %v5136_v60  ;;  %v5243_v50 = vadd.f32 %v10539_v18, %v5207_v22  ;;  %v5803_v60 = vld [vmem:[%s11146_s2 + $0xe8] sm:$0xff] }
 0x3ac   : > { %5910 = vperm.xlu1 %6755, %v5796_v16   ;;  %5905 = vperm.xlu0 %6754, %v5795_v42   ;;  %v11681_v16 = vld [vmem:[#allocation73_spill] sm:$0xff]  ;;  %v11682_v42 = vld [vmem:[#allocation78_spill] sm:$0xff]  ;;  %v10643_v55 = vpop.permute.xlu2 %5374 }
 0x3ad   : > { %v11683_v13 = vpack.c.bf16 %v11681_v16, %v11682_v42  ;;  %v5244_v17 = vadd.f32 %v10539_v18, %v5208_v12  ;;  %v5279_v59 = vmax.f32 %v5243_v50, 0.0  ;;  %v5806_v16 = vld [vmem:[%s11146_s2 + $0x100] sm:$0xff]  ;;  %v11684_v50 = vld [vmem:[#allocation21_spill] sm:$0xff] }
 0x3ae   : > { %v4414_v10 = vpop.f32.mrf.mxu2  ;;  %v10647_v37 = vpop.permute.xlu0 %4865 }
 0x3af   : > { %v10622_v35 = vadd.f32 %v4414_v10, %v11680_v49  ;;  %v5280_v10 = vmax.f32 %v5244_v17, 0.0  ;;  %v5801_v49 = vld [vmem:[%s11146_s2 + $0xd8] sm:$0xff]  ;;  %v5495_v12 = vmul.f32 %v10591_v44, %v5279_v59  ;;  %v5804_v44 = vld [vmem:[%s11146_s2 + $0xf0] sm:$0xff] }
 0x3b0   : > { %v5805_v17 = vld [vmem:[%s11146_s2 + $0xf8] sm:$0xff] }
 0x3b2   : > { %4456 = vmatmul.bf16.gmra.mxu2 %v11683_v13  ;;  %5040 = vmatmul.bf16.gmra.mxu3 %v4917_v32  ;;  %v10658_v32 = vpop.permute.xlu1 %5379 }
 0x3b3   : > { %5629 = vmatmul.bf16.gmra.mxu0 %v5526_v11  ;;  %5930 = vperm.xlu2 %6756, %v5800_v0   ;;  %v5496_v0 = vmul.f32 %v5355_v20, %v5280_v10  ;;  %v5137_v11 = vld [vmem:[%s6832_s8 + $0x7b] sm:$0xff] }
 0x3b4   : > { %5925 = vperm.xlu1 %6755, %v5799_v19   ;;  %5920 = vperm.xlu0 %6754, %v5798_v24   ;;  %v5138_v19 = vld [vmem:[%s6832_s8 + $0x83] sm:$0xff]  ;;  %v10668_v42 = vpop.permute.xlu2 %5384  ;;  %v5209_v13 = vmul.f32 %v10512_v47, %v5137_v11 }
 0x3b5   : > { %v10645_v36 = vpop.f32.mrf.mxu3  ;;  %v5527_v22 = vpack.c.bf16 %v5496_v0, %v5495_v12  ;;  %v5809_v12 = vld [vmem:[%s11146_s2 + $0x118] sm:$0xff] }
 0x3b6   : > { %v10677_v20 = vpop.permute.xlu0 %5389  ;;  %v5245_v0 = vadd.f32 %v10539_v18, %v5209_v13 }
 0x3ba   : > { %v10686_v59 = vpop.permute.xlu1 %5394 }
 0x3bb   : > { %5945 = vperm.xlu2 %6756, %v5803_v60   ;;  %v11685_v60 = vld [vmem:[#allocation55_spill] sm:$0xff] }
 0x3bc   : > { %5940 = vperm.xlu1 %6755, %v5802_v63   ;;  %5935 = vperm.xlu0 %6754, %v5801_v49   ;;  %v11686_v10 = vpack.c.bf16 %v11684_v50, %v11685_v60  ;;  %v11687_v63 = vpack.c.bf16 %v10290_v15, %v10292_v34  ;;  %v5210_v49 = vmul.f32 %v10512_v47, %v5138_v19  ;;  %v5281_v15 = vmax.f32 %v5245_v0, 0.0  ;;  %v5808_v34 = vld [vmem:[%s11146_s2 + $0x110] sm:$0xff]  ;;  %v5807_v19 = vld [vmem:[%s11146_s2 + $0x108] sm:$0xff]  ;;  %v10701_v13 = vpop.permute.xlu2 %4870 }
 0x3bd   : > { %v10663_v24 = vpop.f32.mrf.mxu3  ;;  %v5139_v50 = vld [vmem:[%s6832_s8 + $0x8b] sm:$0xff] }
 0x3be   : > { %v5246_v11 = vadd.f32 %v10539_v18, %v5210_v49  ;;  %v5812_v49 = vld [vmem:[%s11146_s2 + $0x130] sm:$0xff] }
 0x3c2   : > { %4461 = vmatmul.bf16.gmra.mxu2 %v11686_v10  ;;  %5045 = vmatmul.bf16.gmra.mxu3 %v11687_v63  ;;  %v10707_v60 = vpop.permute.xlu1 %5404  ;;  %v5140_v63 = vld [vmem:[%s6832_s8 + $0x93] sm:$0xff] }
 0x3c3   : > { %5634 = vmatmul.bf16.gmra.mxu0 %v5527_v22  ;;  %5960 = vperm.xlu2 %6756, %v5806_v16   ;;  %v5282_v22 = vmax.f32 %v5246_v11, 0.0  ;;  %v5211_v11 = vmul.f32 %v10512_v47, %v5139_v50 }
 0x3c4   : > { %5955 = vperm.xlu1 %6755, %v5805_v17   ;;  %5950 = vperm.xlu0 %6754, %v5804_v44   ;;  %v10703_v17 = vpop.permute.xlu0 %5399  ;;  %v5497_v44 = vmul.f32 %v10596_v33, %v5281_v15  ;;  %v5810_v33 = vld [vmem:[%s11146_s2 + $0x120] sm:$0xff]  ;;  %v11688_v15 = vld [vmem:[#allocation59_spill] sm:$0xff]  ;;  %v10730_v50 = vpop.permute.xlu2 %5409 }
 0x3c5   : > { %v10699_v16 = vpop.f32.mrf.mxu3  ;;  %v5498_v10 = vmul.f32 %v10612_v45, %v5282_v22  ;;  %v11691_v45 = vpack.c.bf16 %v10341_v38, %v10332_v57  ;;  %v5212_v22 = vmul.f32 %v10512_v47, %v5140_v63 }
 0x3c7   : > { %v5528_v0 = vpack.c.bf16 %v5498_v10, %v5497_v44  ;;  %v5247_v10 = vadd.f32 %v10539_v18, %v5211_v11 }
 0x3c9   : > { %v5283_v38 = vmax.f32 %v5247_v10, 0.0  ;;  %v11692_v10 = vld [vmem:[#allocation28_spill] sm:$0xff] }
 0x3ca   : > { %v10736_v57 = vpop.permute.xlu1 %5419 }
 0x3cb   : > { %5975 = vperm.xlu2 %6756, %v5809_v12   ;;  %v5811_v12 = vld [vmem:[%s11146_s2 + $0x128] sm:$0xff]  ;;  %v5499_v63 = vmul.f32 %v10625_v2, %v5283_v38  ;;  %v11695_v38 = vpack.c.bf16 %v10335_v48, %v10339_v25  ;;  %v5144_v25 = vld [vmem:[%s6832_s8 + $0xb3] sm:$0xff] }
 0x3cc   : > { %5970 = vperm.xlu1 %6755, %v5808_v34   ;;  %5965 = vperm.xlu0 %6754, %v5807_v19   ;;  %v11689_v34 = vld [vmem:[#allocation43_spill] sm:$0xff] }
 0x3cd   : > { %v11690_v19 = vpack.c.bf16 %v11688_v15, %v11689_v34  ;;  %v10728_v44 = vpop.f32.mrf.mxu3  ;;  %v10733_v15 = vpop.permute.xlu0 %5414  ;;  %v5248_v34 = vadd.f32 %v10539_v18, %v5212_v22 }
 0x3d2   : > { %4466 = vmatmul.bf16.gmra.mxu2 %v11690_v19  ;;  %5050 = vmatmul.bf16.gmra.mxu3 %v11691_v45  ;;  %v5284_v19 = vmax.f32 %v5248_v34, 0.0  ;;  %v5142_v45 = vld [vmem:[%s6832_s8 + $0xa3] sm:$0xff]  ;;  %v10749_v9 = vpop.permute.xlu1 %5434  ;;  %v11693_v34 = vld [vmem:[#allocation29_spill] sm:$0xff] }
 0x3d3   : > { %5639 = vmatmul.bf16.gmra.mxu0 %v5528_v0  ;;  %5990 = vperm.xlu2 %6756, %v5812_v49   ;;  %v5141_v49 = vld [vmem:[%s6832_s8 + $0x9b] sm:$0xff]  ;;  %v11694_v2 = vpack.c.bf16 %v11692_v10, %v11693_v34 }
 0x3d4   : > { %5985 = vperm.xlu1 %6755, %v5811_v12   ;;  %5980 = vperm.xlu0 %6754, %v5810_v33   ;;  %v5500_v12 = vmul.f32 %v10643_v55, %v5284_v19  ;;  %v10743_v33 = vpop.permute.xlu2 %5424  ;;  %v5213_v22 = vmul.f32 %v10512_v47, %v5141_v49  ;;  %v5214_v55 = vmul.f32 %v10512_v47, %v5142_v45 }
 0x3d5   : > { %v10740_v0 = vpop.f32.mrf.mxu3  ;;  %v10746_v14 = vpop.permute.xlu0 %5429 }
 0x3d6   : > { %v5529_v11 = vpack.c.bf16 %v5500_v12, %v5499_v63  ;;  %v5249_v19 = vadd.f32 %v10539_v18, %v5213_v22  ;;  %v5250_v63 = vadd.f32 %v10539_v18, %v5214_v55  ;;  %v5216_v22 = vmul.f32 %v10512_v47, %v5144_v25 }
 0x3d8   : > { %v5285_v49 = vmax.f32 %v5249_v19, 0.0  ;;  %v5286_v10 = vmax.f32 %v5250_v63, 0.0  ;;  %v11696_v19 = vpack.c.bf16 %v10376_v56, %v10378_v30 }
 0x3da   : > { %v10766_v34 = vpop.permute.xlu1 %5449  ;;  %v5501_v48 = vmul.f32 %v10658_v32, %v5285_v49  ;;  %v5502_v45 = vmul.f32 %v10668_v42, %v5286_v10  ;;  %v5252_v42 = vadd.f32 %v10539_v18, %v5216_v22 }
 0x3dc   : > { %v10762_v8 = vpop.permute.xlu2 %5439  ;;  %v5288_v25 = vmax.f32 %v5252_v42, 0.0 }
 0x3dd   : > { %v10760_v12 = vpop.f32.mrf.mxu3  ;;  %v10764_v61 = vpop.permute.xlu0 %5444 }
 0x3de   : > { %v5504_v56 = vmul.f32 %v10686_v59, %v5288_v25 }
 0x3e2   : > { %4471 = vmatmul.bf16.gmra.mxu2 %v11694_v2  ;;  %5055 = vmatmul.bf16.gmra.mxu3 %v11695_v38  ;;  %v5143_v2 = vld [vmem:[%s6832_s8 + $0xab] sm:$0xff]  ;;  %v10785_v10 = vpop.permute.xlu1 %5464 }
 0x3e3   : > { %5644 = vmatmul.bf16.gmra.mxu0 %v5529_v11  ;;  %v5530_v11 = vpack.c.bf16 %v5502_v45, %v5501_v48  ;;  %v5215_v38 = vmul.f32 %v10512_v47, %v5143_v2  ;;  %v10787_v48 = vpop.f32.mrf.mxu0 }
 0x3e4   : > { %v10779_v63 = vpop.permute.xlu2 %5454  ;;  %11697 = vst [vmem:[#allocation71_spill] sm:$0xff] %v10787_v48 }
 0x3e5   : > { %v10774_v55 = vpop.f32.mrf.mxu3  ;;  %v10781_v32 = vpop.permute.xlu0 %5459  ;;  %v5251_v49 = vadd.f32 %v10539_v18, %v5215_v38  ;;  %v11698_v38 = vld [vmem:[#allocation67_spill] sm:$0xff] }
 0x3e6   : > { %v5091_v29 = vadd.f32 %v10645_v36, %v11698_v38  ;;  %v5253_v36 = vadd.f32 %v10539_v18, %v5217_v26 }
 0x3e7   : > { %v5287_v2 = vmax.f32 %v5251_v49, 0.0 }
 0x3e9   : > { %v5503_v30 = vmul.f32 %v10677_v20, %v5287_v2  ;;  %v11699_v20 = vpack.c.bf16 %v10421_v4, %v10414_v28  ;;  %v5289_v4 = vmax.f32 %v5253_v36, 0.0 }
 0x3ea   : > { %v10802_v42 = vpop.permute.xlu1 %5479 }
 0x3eb   : > { %v5531_v3 = vpack.c.bf16 %v5504_v56, %v5503_v30 }
 0x3ed   : > { %v10789_v45 = vpop.f32.mrf.mxu3  ;;  %v10797_v22 = vpop.permute.xlu0 %5474 }
 0x3f2   : > { %5060 = vmatmul.bf16.gmra.mxu3 %v11696_v19  ;;  %v10794_v19 = vpop.permute.xlu2 %5469 }
 0x3f3   : > { %5649 = vmatmul.bf16.gmra.mxu0 %v5530_v11  ;;  %v5146_v11 = vld [vmem:[%s6832_s8 + $0xc3] sm:$0xff] }
 0x3f4   : > { %v5218_v48 = vmul.f32 %v10512_v47, %v5146_v11  ;;  %v5092_v11 = vadd.f32 %v10663_v24, %v10301_v54 }
 0x3f5   : > { %v10811_v2 = vpop.f32.mrf.mxu3  ;;  %v5816_v27 = vpop.permute.xlu0 %5815 }
 0x3f6   : > { %v5254_v25 = vadd.f32 %v10539_v18, %v5218_v48 }
 0x3fa   : > { %v10815_v56 = vpop.permute.xlu2 %5484 }
 0x3fb   : > { %11700 = vst [vmem:[#allocation18_spill] sm:$0xff] %v10815_v56  ;;  %v5147_v56 = vld [vmem:[%s6832_s8 + $0xcb] sm:$0xff] }
 0x3fd   : > { %v10824_v36 = vpop.f32.mrf.mxu3 }
 0x400   : > { %v5615_v49 = vpop.f32.mrf.mxu0 }
 0x401   : > { %v5705_v59 = vadd.f32 %v5615_v49, %v5091_v29  ;;  %v5290_v29 = vmax.f32 %v5254_v25, 0.0  ;;  %v5505_v49 = vmul.f32 %v10703_v17, %v5289_v4  ;;  %v5093_v25 = vadd.f32 %v10699_v16, %v10346_v41 }
 0x402   : > { %5065 = vmatmul.bf16.gmra.mxu3 %v11699_v20  ;;  %v11701_v17 = vpack.c.bf16 %v10417_v39, %v10419_v52 }
 0x403   : > { %5741 = vst [vmem:[%s6837_s11] sm:$0xff] %v5705_v59  ;;  %5654 = vmatmul.bf16.gmra.mxu0 %v5531_v3  ;;  %v5993_v30 = vmul.f32 %v5816_v27, %v5705_v59  ;;  %v5821_v3 = vpop.permute.xlu1 %5820  ;;  %v5506_v26 = vmul.f32 %v10707_v60, %v5290_v29  ;;  %v5826_v60 = vpop.permute.xlu2 %5825 }
 0x405   : > { %v6074_v20 = vmul.f32 %v5993_v30, %v5705_v59  ;;  %v5532_v27 = vpack.c.bf16 %v5506_v26, %v5505_v49  ;;  %v5219_v59 = vmul.f32 %v10512_v47, %v5147_v56  ;;  %v10836_v26 = vpop.f32.mrf.mxu3 }
 0x408   : > { %v5617_v28 = vpop.f32.mrf.mxu0 }
 0x409   : > { %v5706_v38 = vadd.f32 %v5617_v28, %v5092_v11  ;;  %v5220_v28 = vmul.f32 %v10512_v47, %v5148_v51  ;;  %v5255_v51 = vadd.f32 %v10539_v18, %v5219_v59 }
 0x40b   : > { %5742 = vst [vmem:[%s6837_s11 + $0x8] sm:$0xff] %v5706_v38  ;;  %v5994_v48 = vmul.f32 %v5821_v3, %v5706_v38  ;;  %v5256_v41 = vadd.f32 %v10539_v18, %v5220_v28  ;;  %v5291_v49 = vmax.f32 %v5255_v51, 0.0  ;;  %v4545_v28 = vld [vmem:[%s6832_s8 + $0x12a] sm:$0xff] }
 0x40d   : > { %v6030_v54 = vadd.f32 %v5994_v48, %v5993_v30  ;;  %v6075_v24 = vmul.f32 %v5994_v48, %v5706_v38  ;;  %v5094_v30 = vadd.f32 %v10728_v44, %v10384_v7  ;;  %v5292_v38 = vmax.f32 %v5256_v41, 0.0  ;;  %v5831_v48 = vpop.permute.xlu0 %5830  ;;  %v10856_v51 = vpop.f32.mrf.mxu3 }
 0x40e   : > { %v5095_v7 = vadd.f32 %v10740_v0, %v10425_v21 }
 0x40f   : > { %v6110_v53 = vadd.f32 %v6075_v24, %v6074_v20  ;;  %v5508_v24 = vmul.f32 %v10733_v15, %v5292_v38  ;;  %v4617_v15 = vmul.f32 %v10512_v47, %v4545_v28 }
 0x410   : > { %v5620_v11 = vpop.f32.mrf.mxu0 }
 0x411   : > { %v5707_v3 = vadd.f32 %v5620_v11, %v5093_v25  ;;  %v4653_v38 = vadd.f32 %v10539_v18, %v4617_v15 }
 0x412   : > { %5070 = vmatmul.bf16.gmra.mxu3 %v11701_v17 }
 0x413   : > { %5743 = vst [vmem:[%s6837_s11 + $0x10] sm:$0xff] %v5707_v3  ;;  %v5995_v29 = vmul.f32 %v5826_v60, %v5707_v3  ;;  %5659 = vmatmul.bf16.gmra.mxu0 %v5532_v27  ;;  %v5149_v27 = vld [vmem:[%s6832_s8 + $0xdb] sm:$0xff]  ;;  %v5150_v60 = vld [vmem:[%s6832_s8 + $0xe3] sm:$0xff] }
 0x414   : > { %v5221_v59 = vmul.f32 %v10512_v47, %v5149_v27 }
 0x415   : > { %v6031_v16 = vadd.f32 %v6030_v54, %v5995_v29  ;;  %v6076_v4 = vmul.f32 %v5995_v29, %v5707_v3  ;;  %v4546_v54 = vld [vmem:[%s6832_s8 + $0x132] sm:$0xff] }
 0x416   : > { %v4618_v3 = vmul.f32 %v10512_v47, %v4546_v54 }
 0x417   : > { %v6111_v39 = vadd.f32 %v6110_v53, %v6076_v4  ;;  %v5507_v53 = vmul.f32 %v10730_v50, %v5291_v49  ;;  %v11702_v4 = vpack.c.bf16 %v10502_v46, %v10500_v62  ;;  %v5222_v50 = vmul.f32 %v10512_v47, %v5150_v60 }
 0x418   : > { %v5622_v52 = vpop.f32.mrf.mxu0  ;;  %v4654_v0 = vadd.f32 %v10539_v18, %v4618_v3  ;;  %v5096_v46 = vadd.f32 %v10760_v12, %v10451_v23  ;;  %v4547_v23 = vld [vmem:[%s6832_s8 + $0x13a] sm:$0xff] }
 0x419   : > { %v5708_v56 = vadd.f32 %v5622_v52, %v5094_v30  ;;  %v5533_v29 = vpack.c.bf16 %v5508_v24, %v5507_v53  ;;  %v5257_v30 = vadd.f32 %v10539_v18, %v5221_v59  ;;  %v5258_v62 = vadd.f32 %v10539_v18, %v5222_v50  ;;  %v10863_v24 = vpop.f32.mrf.mxu1  ;;  %v5151_v59 = vld [vmem:[%s6832_s8 + $0xeb] sm:$0xff] }
 0x41a   : > { %v4619_v50 = vmul.f32 %v10512_v47, %v4547_v23 }
 0x41b   : > { %5744 = vst [vmem:[%s6837_s11 + $0x18] sm:$0xff] %v5708_v56  ;;  %v5996_v20 = vmul.f32 %v5831_v48, %v5708_v56  ;;  %v4690_v48 = vmax.f32 %v4654_v0, 0.0  ;;  %v5294_v27 = vmax.f32 %v5258_v62, 0.0 }
 0x41d   : > { %v6032_v25 = vadd.f32 %v6031_v16, %v5996_v20  ;;  %v6077_v11 = vmul.f32 %v5996_v20, %v5708_v56  ;;  %v5836_v16 = vpop.permute.xlu1 %5835  ;;  %v5293_v20 = vmax.f32 %v5257_v30, 0.0  ;;  %v4906_v53 = vmul.f32 %v10616_v1, %v4690_v48 }
 0x41e   : > { %v5510_v15 = vmul.f32 %v10743_v33, %v5294_v27  ;;  %v5097_v1 = vadd.f32 %v10774_v55, %v10481_v6  ;;  %v4655_v6 = vadd.f32 %v10539_v18, %v4619_v50 }
 0x41f   : > { %v6112_v44 = vadd.f32 %v6111_v39, %v6077_v11  ;;  %v5841_v11 = vpop.permute.xlu2 %5840  ;;  %v5509_v12 = vmul.f32 %v10736_v57, %v5293_v20  ;;  %v5098_v20 = vadd.f32 %v10789_v45, %v10507_v5 }
 0x420   : > { %v5625_v17 = vpop.f32.mrf.mxu0 }
 0x421   : > { %v5709_v41 = vadd.f32 %v5625_v17, %v5095_v7  ;;  %v10867_v7 = vpop.f32.mrf.mxu2  ;;  %v5152_v17 = vld [vmem:[%s6832_s8 + $0xf3] sm:$0xff] }
 0x422   : > { %5075 = vmatmul.bf16.gmra.mxu3 %v11702_v4  ;;  %v5224_v0 = vmul.f32 %v10512_v47, %v5152_v17 }
 0x423   : > { %5745 = vst [vmem:[%s6837_s11 + $0x20] sm:$0xff] %v5709_v41  ;;  %v5997_v21 = vmul.f32 %v5836_v16, %v5709_v41  ;;  %5664 = vmatmul.bf16.gmra.mxu0 %v5533_v29  ;;  %v10874_v29 = vpop.f32.mrf.mxu3 }
 0x424   : > { %v5260_v55 = vadd.f32 %v10539_v18, %v5224_v0 }
 0x425   : > { %v6033_v39 = vadd.f32 %v6032_v25, %v5997_v21  ;;  %v6078_v52 = vmul.f32 %v5997_v21, %v5709_v41  ;;  %v4689_v25 = vmax.f32 %v4653_v38, 0.0  ;;  %v4548_v41 = vld [vmem:[%s6832_s8 + $0x142] sm:$0xff]  ;;  %v5534_v21 = vpack.c.bf16 %v5510_v15, %v5509_v12  ;;  %v10885_v38 = vpop.f32.mrf.mxu1 }
 0x427   : > { %v6113_v56 = vadd.f32 %v6112_v44, %v6078_v52  ;;  %v4905_v60 = vmul.f32 %v10562_v40, %v4689_v25  ;;  %v5223_v40 = vmul.f32 %v10512_v47, %v5151_v59  ;;  %v5846_v52 = vpop.permute.xlu0 %5845  ;;  %v4691_v25 = vmax.f32 %v4655_v6, 0.0 }
 0x428   : > { %v5627_v49 = vpop.f32.mrf.mxu0  ;;  %v5100_v6 = vadd.f32 %v10824_v36, %v10569_v31  ;;  %v5155_v36 = vld [vmem:[%s6832_s8 + $0x10b] sm:$0xff] }
 0x429   : > { %v5710_v54 = vadd.f32 %v5627_v49, %v5096_v46  ;;  %v4925_v4 = vpack.c.bf16 %v4906_v53, %v4905_v60  ;;  %v5259_v62 = vadd.f32 %v10539_v18, %v5223_v40  ;;  %v10891_v49 = vpop.f32.mrf.mxu2  ;;  %v4907_v60 = vmul.f32 %v10647_v37, %v4691_v25  ;;  %v5856_v40 = vpop.permute.xlu2 %5855 }
 0x42b   : > { %5746 = vst [vmem:[%s6837_s11 + $0x28] sm:$0xff] %v5710_v54  ;;  %v5998_v28 = vmul.f32 %v5841_v11, %v5710_v54  ;;  %v10895_v11 = vpop.f32.mrf.mxu3  ;;  %v5295_v53 = vmax.f32 %v5259_v62, 0.0 }
 0x42d   : > { %v6034_v44 = vadd.f32 %v6033_v39, %v5998_v28  ;;  %v6079_v3 = vmul.f32 %v5998_v28, %v5710_v54  ;;  %v4620_v39 = vmul.f32 %v10512_v47, %v4548_v41  ;;  %v5296_v28 = vmax.f32 %v5260_v55, 0.0  ;;  %v10901_v41 = vpop.f32.mrf.mxu1 }
 0x42e   : > { %v5511_v5 = vmul.f32 %v10746_v14, %v5295_v53 }
 0x42f   : > { %v6114_v16 = vadd.f32 %v6113_v56, %v6079_v3  ;;  %v4656_v48 = vadd.f32 %v10539_v18, %v4620_v39  ;;  %v5512_v17 = vmul.f32 %v10749_v9, %v5296_v28 }
 0x430   : > { %v5630_v57 = vpop.f32.mrf.mxu0 }
 0x431   : > { %v5711_v30 = vadd.f32 %v5630_v57, %v5097_v1  ;;  %v4692_v12 = vmax.f32 %v4656_v48, 0.0  ;;  %v5154_v1 = vld [vmem:[%s6832_s8 + $0x103] sm:$0xff]  ;;  %v5153_v57 = vld [vmem:[%s6832_s8 + $0xfb] sm:$0xff]  ;;  %v5535_v9 = vpack.c.bf16 %v5512_v17, %v5511_v5  ;;  %v5227_v5 = vmul.f32 %v10512_v47, %v5155_v36 }
 0x432   : > { %5080 = vmatmul.bf16.gmra.mxu3 %v4925_v4  ;;  %v5226_v14 = vmul.f32 %v10512_v47, %v5154_v1 }
 0x433   : > { %5747 = vst [vmem:[%s6837_s11 + $0x30] sm:$0xff] %v5711_v30  ;;  %v5999_v33 = vmul.f32 %v5846_v52, %v5711_v30  ;;  %5669 = vmatmul.bf16.gmra.mxu0 %v5534_v21  ;;  %v4908_v15 = vmul.f32 %v10701_v13, %v4692_v12  ;;  %v10908_v21 = vpop.f32.mrf.mxu2  ;;  %v5225_v13 = vmul.f32 %v10512_v47, %v5153_v57 }
 0x435   : > { %v6035_v46 = vadd.f32 %v6034_v44, %v5999_v33  ;;  %v6080_v56 = vmul.f32 %v5999_v33, %v5711_v30  ;;  %v5851_v44 = vpop.permute.xlu1 %5850  ;;  %v4926_v50 = vpack.c.bf16 %v4908_v15, %v4907_v60  ;;  %v10911_v30 = vpop.f32.mrf.mxu3  ;;  %v5261_v33 = vadd.f32 %v10539_v18, %v5225_v13  ;;  %v5156_v60 = vld [vmem:[%s6832_s8 + $0x113] sm:$0xff]  ;;  %v11703_v13 = vld [vmem:[#allocation7_spill] sm:$0xff] }
 0x436   : > { %v10919_v62 = vpop.f32.mrf.mxu1 }
 0x437   : > { %v6115_v54 = vadd.f32 %v6114_v16, %v6080_v56  ;;  %v5099_v16 = vadd.f32 %v10811_v2, %v10546_v58  ;;  %v5262_v58 = vadd.f32 %v10539_v18, %v5226_v14  ;;  %v5297_v25 = vmax.f32 %v5261_v33, 0.0 }
 0x438   : > { %v5632_v27 = vpop.f32.mrf.mxu0 }
 0x439   : > { %v5712_v23 = vadd.f32 %v5632_v27, %v5098_v20  ;;  %v5298_v56 = vmax.f32 %v5262_v58, 0.0  ;;  %v5513_v12 = vmul.f32 %v10762_v8, %v5297_v25 }
 0x43b   : > { %5748 = vst [vmem:[%s6837_s11 + $0x38] sm:$0xff] %v5712_v23  ;;  %v6000_v3 = vmul.f32 %v5851_v44, %v5712_v23  ;;  %v10921_v20 = vpop.f32.mrf.mxu2  ;;  %v5514_v53 = vmul.f32 %v10764_v61, %v5298_v56  ;;  %v5101_v44 = vadd.f32 %v10836_v26, %v10600_v43  ;;  %v5228_v61 = vmul.f32 %v10512_v47, %v5156_v60 }
 0x43c   : > { %v5263_v43 = vadd.f32 %v10539_v18, %v5227_v5 }
 0x43d   : > { %v6036_v45 = vadd.f32 %v6035_v46, %v6000_v3  ;;  %v6081_v59 = vmul.f32 %v6000_v3, %v5712_v23  ;;  %v10924_v28 = vpop.f32.mrf.mxu3  ;;  %v5866_v1 = vpop.permute.xlu1 %5865  ;;  %v5264_v57 = vadd.f32 %v10539_v18, %v5228_v61 }
 0x43e   : > { %v10933_v15 = vpop.f32.mrf.mxu1 }
 0x43f   : > { %v6116_v4 = vadd.f32 %v6115_v54, %v6081_v59  ;;  %v5861_v54 = vpop.permute.xlu0 %5860 }
 0x440   : > { %v5635_v37 = vpop.f32.mrf.mxu0 }
 0x441   : > { %v5713_v0 = vadd.f32 %v5635_v37, %v5099_v16  ;;  %v5102_v37 = vadd.f32 %v10856_v51, %v10622_v35 }
 0x442   : > { %5085 = vmatmul.bf16.gmra.mxu3 %v4926_v50 }
 0x443   : > { %5749 = vst [vmem:[%s6837_s11 + $0x40] sm:$0xff] %v5713_v0  ;;  %v6001_v39 = vmul.f32 %v5856_v40, %v5713_v0  ;;  %5674 = vmatmul.bf16.gmra.mxu0 %v5535_v9  ;;  %v10937_v8 = vpop.f32.mrf.mxu2 }
 0x445   : > { %v6037_v2 = vadd.f32 %v6036_v45, %v6001_v39  ;;  %v6082_v52 = vmul.f32 %v6001_v39, %v5713_v0  ;;  %v5536_v45 = vpack.c.bf16 %v5514_v53, %v5513_v12  ;;  %v10940_v50 = vpop.f32.mrf.mxu3  ;;  %v5299_v0 = vmax.f32 %v5263_v43, 0.0  ;;  %v11704_v39 = vld [vmem:[#allocation81_spill] sm:$0xff] }
 0x446   : > { %v1386_v58 = vadd.f32 %v11704_v39, %v11703_v13  ;;  %v5157_v53 = vld [vmem:[%s6832_s8 + $0x11b] sm:$0xff] }
 0x447   : > { %v6117_v55 = vadd.f32 %v6116_v4, %v6082_v52  ;;  %v11705_v52 = vld [vmem:[#allocation30_spill] sm:$0xff]  ;;  %v5515_v51 = vmul.f32 %v10766_v34, %v5299_v0  ;;  %v11708_v34 = vld [vmem:[#allocation45_spill] sm:$0xff] }
 0x448   : > { %v5637_v46 = vpop.f32.mrf.mxu0  ;;  %v3875_v33 = vadd.f32 %v10863_v24, %v11705_v52  ;;  %v11709_v39 = vld [vmem:[#allocation41_spill] sm:$0xff] }
 0x449   : > { %v5714_v48 = vadd.f32 %v5637_v46, %v5100_v6  ;;  %v5300_v6 = vmax.f32 %v5264_v57, 0.0  ;;  %v11706_v46 = vld [vmem:[#allocation13_spill] sm:$0xff] }
 0x44a   : > { %v2034_v56 = vadd.f32 %v11706_v46, %v1386_v58  ;;  %v4489_v35 = vadd.f32 %v10867_v7, %v3875_v33  ;;  %v11710_v58 = vld [vmem:[#allocation88_spill] sm:$0xff]  ;;  %v5881_v33 = vpop.permute.xlu1 %5880 }
 0x44b   : > { %5750 = vst [vmem:[%s6837_s11 + $0x48] sm:$0xff] %v5714_v48  ;;  %v6002_v27 = vmul.f32 %v5861_v54, %v5714_v48  ;;  %v5158_v54 = vld [vmem:[%s6832_s8 + $0x123] sm:$0xff]  ;;  %v5516_v36 = vmul.f32 %v10779_v63, %v5300_v6 }
 0x44c   : > { %v5103_v12 = vadd.f32 %v10874_v29, %v4489_v35 }
 0x44d   : > { %v6038_v23 = vadd.f32 %v6037_v2, %v6002_v27  ;;  %v6083_v31 = vmul.f32 %v6002_v27, %v5714_v48  ;;  %v5871_v2 = vpop.permute.xlu2 %5870  ;;  %v10951_v48 = vpop.f32.mrf.mxu1  ;;  %v5537_v5 = vpack.c.bf16 %v5516_v36, %v5515_v51 }
 0x44e   : > { %v10963_v60 = vpop.f32.mrf.mxu3 }
 0x44f   : > { %v6118_v3 = vadd.f32 %v6117_v55, %v6083_v31  ;;  %v11707_v31 = vld [vmem:[#allocation57_spill] sm:$0xff] }
 0x450   : > { %v5640_v17 = vpop.f32.mrf.mxu0  ;;  %v2648_v24 = vadd.f32 %v11707_v31, %v2034_v56 }
 0x451   : > { %v5715_v59 = vadd.f32 %v5640_v17, %v5101_v44 }
 0x452   : > { %v3262_v17 = vadd.f32 %v11708_v34, %v2648_v24 }
 0x453   : > { %5751 = vst [vmem:[%s6837_s11 + $0x50] sm:$0xff] %v5715_v59  ;;  %v6003_v16 = vmul.f32 %v5866_v1, %v5715_v59  ;;  %5679 = vmatmul.bf16.gmra.mxu0 %v5536_v45  ;;  %v5229_v45 = vmul.f32 %v10512_v47, %v5157_v53  ;;  %v5876_v1 = vpop.permute.xlu0 %5875  ;;  %v11713_v53 = vld [vmem:[#allocation9_spill] sm:$0xff] }
 0x454   : > { %v3876_v61 = vadd.f32 %v10885_v38, %v3262_v17 }
 0x455   : > { %v6039_v26 = vadd.f32 %v6038_v23, %v6003_v16  ;;  %v6084_v4 = vmul.f32 %v6003_v16, %v5715_v59  ;;  %v10957_v23 = vpop.f32.mrf.mxu2  ;;  %v5265_v43 = vadd.f32 %v10539_v18, %v5229_v45  ;;  %v10972_v57 = vpop.f32.mrf.mxu1 }
 0x456   : > { %v4490_v29 = vadd.f32 %v10891_v49, %v3876_v61  ;;  %v1391_v49 = vadd.f32 %v11710_v58, %v11709_v39  ;;  %v10981_v6 = vpop.f32.mrf.mxu3  ;;  %v5886_v17 = vpop.permute.xlu2 %5885 }
 0x457   : > { %v6119_v9 = vadd.f32 %v6118_v3, %v6084_v4  ;;  %v5230_v3 = vmul.f32 %v10512_v47, %v5158_v54 }
 0x458   : > { %v5642_v14 = vpop.f32.mrf.mxu0 }
 0x459   : > { %v5716_v40 = vadd.f32 %v5642_v14, %v5102_v37  ;;  %v5266_v63 = vadd.f32 %v10539_v18, %v5230_v3  ;;  %v5104_v37 = vadd.f32 %v10895_v11, %v4490_v29  ;;  %v11714_v3 = vld [vmem:[#allocation27_spill] sm:$0xff] }
 0x45b   : > { %5752 = vst [vmem:[%s6837_s11 + $0x58] sm:$0xff] %v5716_v40  ;;  %v6004_v55 = vmul.f32 %v5871_v2, %v5716_v40  ;;  %v5302_v0 = vmax.f32 %v5266_v63, 0.0  ;;  %v11711_v2 = vld [vmem:[#allocation87_spill] sm:$0xff] }
 0x45c   : > { %v3877_v52 = vadd.f32 %v10901_v41, %v11711_v2 }
 0x45d   : > { %v6040_v25 = vadd.f32 %v6039_v26, %v6004_v55  ;;  %v6085_v27 = vmul.f32 %v6004_v55, %v5716_v40  ;;  %v10975_v14 = vpop.f32.mrf.mxu2  ;;  %v5301_v40 = vmax.f32 %v5265_v43, 0.0  ;;  %v11712_v55 = vld [vmem:[#allocation37_spill] sm:$0xff]  ;;  %v5518_v35 = vmul.f32 %v10785_v10, %v5302_v0  ;;  %v10991_v36 = vpop.f32.mrf.mxu1 }
 0x45e   : > { %v2036_v46 = vadd.f32 %v11712_v55, %v1391_v49  ;;  %v4491_v56 = vadd.f32 %v10908_v21, %v3877_v52  ;;  %v11718_v49 = vld [vmem:[#allocation24_spill] sm:$0xff] }
 0x45f   : > { %v6120_v44 = vadd.f32 %v6119_v9, %v6085_v27  ;;  %v5517_v51 = vmul.f32 %v10781_v32, %v5301_v40  ;;  %v5160_v27 = vld [vmem:[%s6832_s8 + $0x133] sm:$0xff] }
 0x460   : > { %v5645_v7 = vpop.f32.mrf.mxu0  ;;  %v2650_v41 = vadd.f32 %v11713_v53, %v2036_v46  ;;  %v5105_v31 = vadd.f32 %v10911_v30, %v4491_v56  ;;  %v5232_v10 = vmul.f32 %v10512_v47, %v5160_v27  ;;  %v6769_v30 = vld [vmem:[%s11147_s3] ss:$0 sm:$0xff]  ;;  %v5162_v27 = vld [vmem:[%s6832_s8 + $0x143] sm:$0xff] }
 0x461   : > { %v5717_v59 = vadd.f32 %v5645_v7, %v5103_v12  ;;  %v5159_v12 = vld [vmem:[%s6832_s8 + $0x12b] sm:$0xff]  ;;  %v5538_v21 = vpack.c.bf16 %v5518_v35, %v5517_v51  ;;  %v5161_v46 = vld [vmem:[%s6832_s8 + $0x13b] sm:$0xff] }
 0x462   : > { %v3264_v7 = vadd.f32 %v11714_v3, %v2650_v41  ;;  %v5231_v45 = vmul.f32 %v6769_v30, %v5159_v12  ;;  %v5268_v47 = vadd.f32 %v10539_v18, %v5232_v10  ;;  %v11719_v35 = vld [vmem:[#allocation66_spill] sm:$0xff]  ;;  %v5896_v12 = vpop.permute.xlu1 %5895  ;;  %v5234_v3 = vmul.f32 %v6769_v30, %v5162_v27 }
 0x463   : > { %5753 = vst [vmem:[%s6837_s11 + $0x60] sm:$0xff] %v5717_v59  ;;  %v6005_v16 = vmul.f32 %v5876_v1, %v5717_v59  ;;  %5684 = vmatmul.bf16.gmra.mxu0 %v5537_v5  ;;  %v11003_v1 = vpop.f32.mrf.mxu3  ;;  %v11720_v41 = vld [vmem:[#allocation34_spill] sm:$0xff] }
 0x464   : > { %v3878_v5 = vadd.f32 %v10919_v62, %v3264_v7  ;;  %v5267_v29 = vadd.f32 %v10539_v18, %v5231_v45 }
 0x465   : > { %v6041_v26 = vadd.f32 %v6040_v25, %v6005_v16  ;;  %v6086_v4 = vmul.f32 %v6005_v16, %v5717_v59  ;;  %v10996_v32 = vpop.f32.mrf.mxu2  ;;  %v11011_v40 = vpop.f32.mrf.mxu1 }
 0x466   : > { %v4492_v61 = vadd.f32 %v10921_v20, %v3878_v5  ;;  %v11717_v20 = vld [vmem:[#allocation51_spill] sm:$0xff]  ;;  %v5303_v58 = vmax.f32 %v5267_v29, 0.0 }
 0x467   : > { %v6121_v9 = vadd.f32 %v6120_v44, %v6086_v4  ;;  %v5304_v4 = vmax.f32 %v5268_v47, 0.0  ;;  %v3879_v39 = vadd.f32 %v10933_v15, %v11717_v20 }
 0x468   : > { %v5647_v38 = vpop.f32.mrf.mxu0  ;;  %v5106_v62 = vadd.f32 %v10924_v28, %v4492_v61  ;;  %v5519_v51 = vmul.f32 %v10794_v19, %v5303_v58  ;;  %v11725_v58 = vld [vmem:[#allocation74_spill] sm:$0xff] }
 0x469   : > { %v5718_v13 = vadd.f32 %v5647_v38, %v5104_v37  ;;  %v11716_v38 = vld [vmem:[#allocation20_spill] sm:$0xff]  ;;  %v4493_v52 = vadd.f32 %v10937_v8, %v3879_v39  ;;  %v5233_v8 = vmul.f32 %v6769_v30, %v5161_v46 }
 0x46b   : > { %5754 = vst [vmem:[%s6837_s11 + $0x68] sm:$0xff] %v5718_v13  ;;  %v6006_v11 = vmul.f32 %v5881_v33, %v5718_v13  ;;  %v5520_v33 = vmul.f32 %v10797_v22, %v5304_v4  ;;  %v11022_v56 = vpop.f32.mrf.mxu3 }
 0x46d   : > { %v6042_v54 = vadd.f32 %v6041_v26, %v6006_v11  ;;  %v6087_v25 = vmul.f32 %v6006_v11, %v5718_v13  ;;  %v5891_v13 = vpop.permute.xlu0 %5890  ;;  %v11017_v2 = vpop.f32.mrf.mxu2 }
 0x46f   : > { %v6122_v24 = vadd.f32 %v6121_v9, %v6087_v25  ;;  %v11715_v9 = vld [vmem:[#allocation39_spill] sm:$0xff] }
 0x470   : > { %v5650_v44 = vpop.f32.mrf.mxu0  ;;  %v1396_v0 = vadd.f32 %v11716_v38, %v11715_v9  ;;  %v11724_v9 = vld [vmem:[#allocation63_spill] sm:$0xff] }
 0x471   : > { %v5719_v34 = vadd.f32 %v5650_v44, %v5105_v31 }
 0x472   : > { %v2038_v28 = vadd.f32 %v11718_v49, %v1396_v0  ;;  %v11726_v49 = vld [vmem:[#allocation18_spill] sm:$0xff] }
 0x473   : > { %5755 = vst [vmem:[%s6837_s11 + $0x70] sm:$0xff] %v5719_v34  ;;  %v6007_v59 = vmul.f32 %v5886_v17, %v5719_v34  ;;  %5689 = vmatmul.bf16.gmra.mxu0 %v5538_v21  ;;  %v11031_v21 = vpop.f32.mrf.mxu1 }
 0x474   : > { %v2652_v15 = vadd.f32 %v11719_v35, %v2038_v28 }
 0x475   : > { %v6043_v16 = vadd.f32 %v6042_v54, %v6007_v59  ;;  %v6088_v63 = vmul.f32 %v6007_v59, %v5719_v34  ;;  %v5107_v54 = vadd.f32 %v10940_v50, %v4493_v52  ;;  %v6770_v50 = vld [vmem:[%s11148_s4] ss:$0 sm:$0xff]  ;;  %v11037_v5 = vpop.f32.mrf.mxu2  ;;  %v11040_v59 = vpop.f32.mrf.mxu3 }
 0x476   : > { %v3266_v31 = vadd.f32 %v11720_v41, %v2652_v15  ;;  %v5269_v10 = vadd.f32 %v6770_v50, %v5233_v8  ;;  %v5270_v45 = vadd.f32 %v6770_v50, %v5234_v3  ;;  %v11729_v3 = vld [vmem:[#allocation58_spill] sm:$0xff] }
 0x477   : > { %v6123_v43 = vadd.f32 %v6122_v24, %v6088_v63  ;;  %v5539_v24 = vpack.c.bf16 %v5520_v33, %v5519_v51  ;;  %v11722_v63 = vld [vmem:[#allocation31_spill] sm:$0xff] }
 0x478   : > { %v5652_v26 = vpop.f32.mrf.mxu0  ;;  %v3880_v44 = vadd.f32 %v10951_v48, %v3266_v31  ;;  %v5305_v47 = vmax.f32 %v5269_v10, 0.0  ;;  %v5306_v4 = vmax.f32 %v5270_v45, 0.0  ;;  %v11731_v10 = vld [vmem:[#allocation2_spill] sm:$0xff] }
 0x479   : > { %v5720_v37 = vadd.f32 %v5652_v26, %v5106_v62  ;;  %v5901_v62 = vpop.permute.xlu2 %5900 }
 0x47a   : > { %v4494_v19 = vadd.f32 %v10957_v23, %v3880_v44  ;;  %v11721_v23 = vld [vmem:[#allocation17_spill] sm:$0xff]  ;;  %v5522_v28 = vmul.f32 %v11726_v49, %v5306_v4  ;;  %v11728_v44 = vld [vmem:[#allocation38_spill] sm:$0xff] }
 0x47b   : > { %5756 = vst [vmem:[%s6837_s11 + $0x78] sm:$0xff] %v5720_v37  ;;  %v6008_v18 = vmul.f32 %v5891_v13, %v5720_v37  ;;  %v1401_v29 = vadd.f32 %v11722_v63, %v11721_v23  ;;  %v3828_v39 = vpop.f32.mrf.mxu1  ;;  %v11733_v23 = vld [vmem:[#allocation8_spill] sm:$0xff] }
 0x47c   : > { %v5108_v48 = vadd.f32 %v10963_v60, %v4494_v19  ;;  %v5521_v60 = vmul.f32 %v10802_v42, %v5305_v47  ;;  %v5906_v42 = vpop.permute.xlu0 %5905 }
 0x47d   : > { %v6044_v11 = vadd.f32 %v6043_v16, %v6008_v18  ;;  %v6089_v55 = vmul.f32 %v6008_v18, %v5720_v37  ;;  %v2040_v38 = vadd.f32 %v11724_v9, %v1401_v29  ;;  %v4442_v33 = vpop.f32.mrf.mxu2  ;;  %v5056_v51 = vpop.f32.mrf.mxu3 }
 0x47e   : > { %v5540_v35 = vpack.c.bf16 %v5522_v28, %v5521_v60  ;;  %v11736_v28 = vld [vmem:[#allocation12_spill] sm:$0xff] }
 0x47f   : > { %v6124_v25 = vadd.f32 %v6123_v43, %v6089_v55  ;;  %v11723_v43 = vld [vmem:[#allocation36_spill] sm:$0xff]  ;;  %v2654_v18 = vadd.f32 %v11725_v58, %v2040_v38  ;;  %v11727_v55 = vld [vmem:[#allocation50_spill] sm:$0xff] }
 0x480   : > { %v5655_v53 = vpop.f32.mrf.mxu0  ;;  %v3881_v26 = vadd.f32 %v10972_v57, %v11723_v43  ;;  %v11734_v58 = vld [vmem:[#allocation4_spill] sm:$0xff] }
 0x481   : > { %v5721_v22 = vadd.f32 %v5655_v53, %v5107_v54  ;;  %v3268_v46 = vadd.f32 %v11727_v55, %v2654_v18  ;;  %v11735_v18 = vld [vmem:[#allocation46_spill] sm:$0xff] }
 0x482   : > { %v4495_v0 = vadd.f32 %v10975_v14, %v3881_v26  ;;  %v1411_v49 = vadd.f32 %v11735_v18, %v11734_v58 }
 0x483   : > { %5757 = vst [vmem:[%s6837_s11 + $0x80] sm:$0xff] %v5721_v22  ;;  %v6009_v7 = vmul.f32 %v5896_v12, %v5721_v22  ;;  %5694 = vmatmul.bf16.gmra.mxu0 %v5539_v24  ;;  %v3882_v14 = vadd.f32 %v10991_v36, %v3268_v46  ;;  %v3830_v31 = vpop.f32.mrf.mxu1  ;;  %v5911_v12 = vpop.permute.xlu1 %5910  ;;  %v11730_v36 = vld [vmem:[#allocation65_spill] sm:$0xff] }
 0x484   : > { %v5109_v52 = vadd.f32 %v10981_v6, %v4495_v0  ;;  %v3883_v19 = vadd.f32 %v11011_v40, %v11730_v36 }
 0x485   : > { %v6045_v34 = vadd.f32 %v6044_v11, %v6009_v7  ;;  %v6090_v17 = vmul.f32 %v6009_v7, %v5721_v22  ;;  %v4444_v22 = vpop.f32.mrf.mxu2  ;;  %v1406_v7 = vadd.f32 %v11729_v3, %v11728_v44 }
 0x487   : > { %v6125_v30 = vadd.f32 %v6124_v25, %v6090_v17  ;;  %v4496_v25 = vadd.f32 %v10996_v32, %v3882_v14  ;;  %v5058_v32 = vpop.f32.mrf.mxu3 }
 0x488   : > { %v5657_v61 = vpop.f32.mrf.mxu0 }
 0x489   : > { %v5722_v16 = vadd.f32 %v5657_v61, %v5108_v48  ;;  %v5110_v6 = vadd.f32 %v11003_v1, %v4496_v25  ;;  %v4497_v1 = vadd.f32 %v11017_v2, %v3883_v19  ;;  %v11732_v48 = vld [vmem:[#allocation40_spill] sm:$0xff] }
 0x48b   : > { %5758 = vst [vmem:[%s6837_s11 + $0x88] sm:$0xff] %v5722_v16  ;;  %v6010_v37 = vmul.f32 %v5901_v62, %v5722_v16  ;;  %v5111_v61 = vadd.f32 %v11022_v56, %v4497_v1  ;;  %v3833_v40 = vpop.f32.mrf.mxu1  ;;  %v5916_v62 = vpop.permute.xlu2 %5915  ;;  %v11740_v1 = vld [vmem:[#allocation16_spill] sm:$0xff] }
 0x48d   : > { %v6046_v13 = vadd.f32 %v6045_v34, %v6010_v37  ;;  %v6091_v20 = vmul.f32 %v6010_v37, %v5722_v16  ;;  %v2042_v34 = vadd.f32 %v11731_v10, %v1406_v7  ;;  %v4447_v4 = vpop.f32.mrf.mxu2 }
 0x48f   : > { %v6126_v57 = vadd.f32 %v6125_v30, %v6091_v20  ;;  %v2656_v30 = vadd.f32 %v11732_v48, %v2042_v34  ;;  %v5061_v38 = vpop.f32.mrf.mxu3  ;;  %v5921_v20 = vpop.permute.xlu0 %5920  ;;  %v11742_v48 = vld [vmem:[#allocation80_spill] sm:$0xff] }
 0x490   : > { %v5660_v11 = vpop.f32.mrf.mxu0 }
 0x491   : > { %v5723_v15 = vadd.f32 %v5660_v11, %v5109_v52  ;;  %v3270_v63 = vadd.f32 %v11733_v23, %v2656_v30  ;;  %v3885_v52 = vadd.f32 %v3828_v39, %v11736_v28  ;;  %v11737_v11 = vld [vmem:[#allocation25_spill] sm:$0xff]  ;;  %v5926_v39 = vpop.permute.xlu1 %5925  ;;  %v3887_v30 = vadd.f32 %v3833_v40, %v11742_v48 }
 0x493   : > { %5759 = vst [vmem:[%s6837_s11 + $0x90] sm:$0xff] %v5723_v15  ;;  %v6011_v54 = vmul.f32 %v5906_v42, %v5723_v15  ;;  %5699 = vmatmul.bf16.gmra.mxu0 %v5540_v35  ;;  %v3884_v43 = vadd.f32 %v11031_v21, %v3270_v63  ;;  %v4499_v55 = vadd.f32 %v4442_v33, %v3885_v52  ;;  %v5931_v10 = vpop.permute.xlu2 %5930 }
 0x495   : > { %v6047_v27 = vadd.f32 %v6046_v13, %v6011_v54  ;;  %v6092_v53 = vmul.f32 %v6011_v54, %v5723_v15  ;;  %v4498_v2 = vadd.f32 %v11037_v5, %v3884_v43  ;;  %v2044_v5 = vadd.f32 %v11737_v11, %v1411_v49  ;;  %v4449_v15 = vpop.f32.mrf.mxu2  ;;  %v11746_v11 = vld [vmem:[#allocation44_spill] sm:$0xff] }
 0x496   : > { %v5113_v14 = vadd.f32 %v5056_v51, %v4499_v55 }
 0x497   : > { %v6127_v41 = vadd.f32 %v6126_v57, %v6092_v53  ;;  %v5112_v56 = vadd.f32 %v11040_v59, %v4498_v2  ;;  %v3835_v57 = vpop.f32.mrf.mxu1  ;;  %v11738_v59 = vld [vmem:[#allocation89_spill] sm:$0xff]  ;;  %v5063_v25 = vpop.f32.mrf.mxu3  ;;  %v11745_v2 = vld [vmem:[#allocation68_spill] sm:$0xff] }
 0x498   : > { %v5662_v8 = vpop.f32.mrf.mxu0  ;;  %v2658_v42 = vadd.f32 %v11738_v59, %v2044_v5  ;;  %v11739_v53 = vld [vmem:[#allocation61_spill] sm:$0xff]  ;;  %v11747_v5 = vld [vmem:[#allocation64_spill] sm:$0xff] }
 0x499   : > { %v5724_v24 = vadd.f32 %v5662_v8, %v5110_v6  ;;  %v1421_v55 = vadd.f32 %v11747_v5, %v11746_v11 }
 0x49a   : > { %v3272_v6 = vadd.f32 %v11739_v53, %v2658_v42  ;;  %v11749_v42 = vld [vmem:[#allocation79_spill] sm:$0xff]  ;;  %v11750_v53 = vld [vmem:[#allocation32_spill] sm:$0xff] }
 0x49b   : > { %5760 = vst [vmem:[%s6837_s11 + $0x98] sm:$0xff] %v5724_v24  ;;  %v6012_v50 = vmul.f32 %v5911_v12, %v5724_v24 }
 0x49c   : > { %v3886_v8 = vadd.f32 %v3830_v31, %v3272_v6 }
 0x49d   : > { %v6048_v17 = vadd.f32 %v6047_v27, %v6012_v50  ;;  %v6093_v45 = vmul.f32 %v6012_v50, %v5724_v24  ;;  %v4452_v19 = vpop.f32.mrf.mxu2 }
 0x49e   : > { %v4500_v12 = vadd.f32 %v4444_v22, %v3886_v8 }
 0x49f   : > { %v6128_v47 = vadd.f32 %v6127_v41, %v6093_v45  ;;  %v3838_v3 = vpop.f32.mrf.mxu1  ;;  %v5066_v34 = vpop.f32.mrf.mxu3 }
 0x4a0   : > { %v5665_v16 = vpop.f32.mrf.mxu0  ;;  %v5114_v7 = vadd.f32 %v5058_v32, %v4500_v12  ;;  %v11744_v32 = vld [vmem:[#allocation86_spill] sm:$0xff] }
 0x4a1   : > { %v5725_v29 = vadd.f32 %v5665_v16, %v5111_v61  ;;  %v11743_v61 = vld [vmem:[#allocation69_spill] sm:$0xff] }
 0x4a3   : > { %5761 = vst [vmem:[%s6837_s11 + $0xa0] sm:$0xff] %v5725_v29  ;;  %v6013_v26 = vmul.f32 %v5916_v62, %v5725_v29 }
 0x4a5   : > { %v6049_v37 = vadd.f32 %v6048_v17, %v6013_v26  ;;  %v6094_v9 = vmul.f32 %v6013_v26, %v5725_v29  ;;  %v11741_v17 = vld [vmem:[#allocation42_spill] sm:$0xff] }
 0x4a6   : > { %v1416_v45 = vadd.f32 %v11741_v17, %v11740_v1 }
 0x4a7   : > { %v6129_v60 = vadd.f32 %v6128_v47, %v6094_v9  ;;  %v4501_v47 = vadd.f32 %v4447_v4, %v3887_v30  ;;  %v3840_v43 = vpop.f32.mrf.mxu1 }
 0x4a8   : > { %v5667_v0 = vpop.f32.mrf.mxu0  ;;  %v2046_v22 = vadd.f32 %v11743_v61, %v1416_v45  ;;  %v11753_v61 = vld [vmem:[#allocation33_spill] sm:$0xff] }
 0x4a9   : > { %v5726_v13 = vadd.f32 %v5667_v0, %v5112_v56  ;;  %v5115_v29 = vadd.f32 %v5061_v38, %v4501_v47  ;;  %v5936_v56 = vpop.permute.xlu0 %5935  ;;  %v11754_v47 = vld [vmem:[#allocation19_spill] sm:$0xff] }
 0x4aa   : > { %v2660_v63 = vadd.f32 %v11744_v32, %v2046_v22  ;;  %v11755_v32 = vld [vmem:[#allocation84_spill] sm:$0xff] }
 0x4ab   : > { %5762 = vst [vmem:[%s6837_s11 + $0xa8] sm:$0xff] %v5726_v13  ;;  %v6014_v21 = vmul.f32 %v5921_v20, %v5726_v13 }
 0x4ad   : > { %v6050_v46 = vadd.f32 %v6049_v37, %v6014_v21  ;;  %v6095_v35 = vmul.f32 %v6014_v21, %v5726_v13  ;;  %v3274_v37 = vadd.f32 %v11745_v2, %v2660_v63  ;;  %v5068_v13 = vpop.f32.mrf.mxu3  ;;  %v5941_v21 = vpop.permute.xlu1 %5940  ;;  %v11756_v2 = vld [vmem:[#allocation60_spill] sm:$0xff] }
 0x4af   : > { %v6130_v54 = vadd.f32 %v6129_v60, %v6095_v35  ;;  %v4454_v60 = vpop.f32.mrf.mxu2  ;;  %v3888_v40 = vadd.f32 %v3835_v57, %v3274_v37  ;;  %v3843_v52 = vpop.f32.mrf.mxu1 }
 0x4b0   : > { %v5670_v27 = vpop.f32.mrf.mxu0 }
 0x4b1   : > { %v5727_v41 = vadd.f32 %v5670_v27, %v5113_v14  ;;  %v4502_v20 = vadd.f32 %v4449_v15, %v3888_v40  ;;  %v2048_v14 = vadd.f32 %v11749_v42, %v1421_v55  ;;  %v5951_v30 = vpop.permute.xlu0 %5950  ;;  %v11759_v42 = vld [vmem:[#allocation52_spill] sm:$0xff] }
 0x4b3   : > { %5763 = vst [vmem:[%s6837_s11 + $0xb0] sm:$0xff] %v5727_v41  ;;  %v6015_v24 = vmul.f32 %v5926_v39, %v5727_v41  ;;  %v5116_v18 = vadd.f32 %v5063_v25, %v4502_v20  ;;  %v2662_v6 = vadd.f32 %v11750_v53, %v2048_v14  ;;  %v11761_v53 = vld [vmem:[#allocation14_spill] sm:$0xff] }
 0x4b5   : > { %v6051_v44 = vadd.f32 %v6050_v46, %v6015_v24  ;;  %v6096_v33 = vmul.f32 %v6015_v24, %v5727_v41  ;;  %v11748_v46 = vld [vmem:[#allocation53_spill] sm:$0xff]  ;;  %v5071_v25 = vpop.f32.mrf.mxu3 }
 0x4b6   : > { %v3889_v35 = vadd.f32 %v3838_v3, %v11748_v46  ;;  %v11751_v24 = vld [vmem:[#allocation77_spill] sm:$0xff] }
 0x4b7   : > { %v6131_v36 = vadd.f32 %v6130_v54, %v6096_v33  ;;  %v4457_v59 = vpop.f32.mrf.mxu2  ;;  %v3276_v12 = vadd.f32 %v11751_v24, %v2662_v6  ;;  %v5946_v33 = vpop.permute.xlu2 %5945  ;;  %v11762_v24 = vld [vmem:[#allocation85_spill] sm:$0xff] }
 0x4b8   : > { %v5672_v50 = vpop.f32.mrf.mxu0  ;;  %v4503_v15 = vadd.f32 %v4452_v19, %v3889_v35 }
 0x4b9   : > { %v5728_v51 = vadd.f32 %v5672_v50, %v5114_v7  ;;  %v3890_v3 = vadd.f32 %v3840_v43, %v3276_v12 }
 0x4ba   : > { %v5117_v41 = vadd.f32 %v5066_v34, %v4503_v15  ;;  %v11760_v15 = vld [vmem:[#allocation62_spill] sm:$0xff] }
 0x4bb   : > { %5764 = vst [vmem:[%s6837_s11 + $0xb8] sm:$0xff] %v5728_v51  ;;  %v6016_v31 = vmul.f32 %v5931_v10, %v5728_v51  ;;  %v4504_v50 = vadd.f32 %v4454_v60, %v3890_v3 }
 0x4bd   : > { %v6052_v16 = vadd.f32 %v6051_v44, %v6016_v31  ;;  %v6097_v23 = vmul.f32 %v6016_v31, %v5728_v51  ;;  %v5118_v1 = vadd.f32 %v5068_v13, %v4504_v50  ;;  %v5073_v45 = vpop.f32.mrf.mxu3  ;;  %v11752_v31 = vld [vmem:[#allocation49_spill] sm:$0xff] }
 0x4be   : > { %v1426_v22 = vadd.f32 %v11753_v61, %v11752_v31 }
 0x4bf   : > { %v6132_v62 = vadd.f32 %v6131_v36, %v6097_v23  ;;  %v3845_v36 = vpop.f32.mrf.mxu1  ;;  %v4459_v10 = vpop.f32.mrf.mxu2 }
 0x4c0   : > { %v5675_v26 = vpop.f32.mrf.mxu0  ;;  %v2050_v63 = vadd.f32 %v11755_v32, %v1426_v22  ;;  %v5961_v35 = vpop.permute.xlu2 %5960  ;;  %v11765_v32 = vld [vmem:[#allocation82_spill] sm:$0xff] }
 0x4c1   : > { %v5729_v9 = vadd.f32 %v5675_v26, %v5115_v29 }
 0x4c2   : > { %v2664_v37 = vadd.f32 %v11756_v2, %v2050_v63  ;;  %v11767_v2 = vld [vmem:[#allocation48_spill] sm:$0xff] }
 0x4c3   : > { %5765 = vst [vmem:[%s6837_s11 + $0xc0] sm:$0xff] %v5729_v9  ;;  %v6017_v0 = vmul.f32 %v5936_v56, %v5729_v9 }
 0x4c5   : > { %v6053_v4 = vadd.f32 %v6052_v16, %v6017_v0  ;;  %v6098_v58 = vmul.f32 %v6017_v0, %v5729_v9  ;;  %v3891_v16 = vadd.f32 %v3843_v52, %v11754_v47  ;;  %v11757_v0 = vld [vmem:[#allocation5_spill] sm:$0xff] }
 0x4c6   : > { %v3278_v13 = vadd.f32 %v11757_v0, %v2664_v37  ;;  %v11768_v0 = vld [vmem:[#allocation6_spill] sm:$0xff] }
 0x4c7   : > { %v6133_v49 = vadd.f32 %v6132_v62, %v6098_v58  ;;  %v4505_v29 = vadd.f32 %v4457_v59, %v3891_v16  ;;  %v3848_v26 = vpop.f32.mrf.mxu1  ;;  %v4462_v60 = vpop.f32.mrf.mxu2  ;;  %v11758_v59 = vld [vmem:[#allocation22_spill] sm:$0xff] }
 0x4c8   : > { %v5677_v28 = vpop.f32.mrf.mxu0  ;;  %v5076_v58 = vpop.f32.mrf.mxu3  ;;  %v1431_v14 = vadd.f32 %v11759_v42, %v11758_v59 }
 0x4c9   : > { %v5730_v38 = vadd.f32 %v5677_v28, %v5116_v18  ;;  %v5119_v9 = vadd.f32 %v5071_v25, %v4505_v29  ;;  %v3892_v18 = vadd.f32 %v3845_v36, %v3278_v13  ;;  %v11766_v29 = vld [vmem:[#allocation15_spill] sm:$0xff] }
 0x4ca   : > { %v2052_v6 = vadd.f32 %v11761_v53, %v1431_v14  ;;  %v11771_v53 = vld [vmem:[#allocation56_spill] sm:$0xff] }
 0x4cb   : > { %5766 = vst [vmem:[%s6837_s11 + $0xc8] sm:$0xff] %v5730_v38  ;;  %v6018_v57 = vmul.f32 %v5941_v21, %v5730_v38  ;;  %v4506_v28 = vadd.f32 %v4459_v10, %v3892_v18 }
 0x4cc   : > { %v2666_v12 = vadd.f32 %v11762_v24, %v2052_v6  ;;  %v11773_v24 = vld [vmem:[#allocation23_spill] sm:$0xff] }
 0x4cd   : > { %v6054_v54 = vadd.f32 %v6053_v4, %v6018_v57  ;;  %v6099_v27 = vmul.f32 %v6018_v57, %v5730_v38  ;;  %v5956_v4 = vpop.permute.xlu1 %5955  ;;  %v5120_v21 = vadd.f32 %v5073_v45, %v4506_v28 }
 0x4cf   : > { %v6134_v39 = vadd.f32 %v6133_v49, %v6099_v27  ;;  %v3850_v5 = vpop.f32.mrf.mxu1  ;;  %v4464_v57 = vpop.f32.mrf.mxu2 }
 0x4d0   : > { %v5680_v8 = vpop.f32.mrf.mxu0  ;;  %v5078_v25 = vpop.f32.mrf.mxu3 }
 0x4d1   : > { %v5731_v44 = vadd.f32 %v5680_v8, %v5117_v41 }
 0x4d3   : > { %5767 = vst [vmem:[%s6837_s11 + $0xd0] sm:$0xff] %v5731_v44  ;;  %v6019_v7 = vmul.f32 %v5946_v33, %v5731_v44 }
 0x4d5   : > { %v6055_v51 = vadd.f32 %v6054_v54, %v6019_v7  ;;  %v6100_v19 = vmul.f32 %v6019_v7, %v5731_v44  ;;  %v3893_v54 = vadd.f32 %v3848_v26, %v11760_v15  ;;  %v11763_v7 = vld [vmem:[#allocation83_spill] sm:$0xff]  ;;  %v5971_v16 = vpop.permute.xlu1 %5970 }
 0x4d6   : > { %v3280_v36 = vadd.f32 %v11763_v7, %v2666_v12  ;;  %v11774_v7 = vld [vmem:[#allocation70_spill] sm:$0xff] }
 0x4d7   : > { %v6135_v17 = vadd.f32 %v6134_v39, %v6100_v19  ;;  %v4507_v41 = vadd.f32 %v4462_v60, %v3893_v54  ;;  %v5966_v19 = vpop.permute.xlu0 %5965 }
 0x4d8   : > { %v5682_v48 = vpop.f32.mrf.mxu0  ;;  %v3894_v10 = vadd.f32 %v3850_v5, %v3280_v36 }
 0x4d9   : > { %v5732_v34 = vadd.f32 %v5682_v48, %v5118_v1  ;;  %v5121_v44 = vadd.f32 %v5076_v58, %v4507_v41  ;;  %v11772_v41 = vld [vmem:[#allocation47_spill] sm:$0xff] }
 0x4da   : > { %v4508_v45 = vadd.f32 %v4464_v57, %v3894_v10 }
 0x4db   : > { %5768 = vst [vmem:[%s6837_s11 + $0xd8] sm:$0xff] %v5732_v34  ;;  %v6020_v23 = vmul.f32 %v5951_v30, %v5732_v34  ;;  %v5081_v30 = vpop.f32.mrf.mxu3 }
 0x4dc   : > { %v5122_v31 = vadd.f32 %v5078_v25, %v4508_v45  ;;  %v11770_v25 = vld [vmem:[#allocation72_spill] sm:$0xff] }
 0x4dd   : > { %v6056_v62 = vadd.f32 %v6055_v51, %v6020_v23  ;;  %v6101_v43 = vmul.f32 %v6020_v23, %v5732_v34  ;;  %v3853_v51 = vpop.f32.mrf.mxu1  ;;  %v11764_v23 = vld [vmem:[#allocation26_spill] sm:$0xff]  ;;  %v1441_v6 = vadd.f32 %v11771_v53, %v11770_v25 }
 0x4de   : > { %v1436_v63 = vadd.f32 %v11765_v32, %v11764_v23 }
 0x4df   : > { %v6136_v56 = vadd.f32 %v6135_v17, %v6101_v43  ;;  %v4467_v17 = vpop.f32.mrf.mxu2  ;;  %v5981_v54 = vpop.permute.xlu0 %5980  ;;  %v2056_v12 = vadd.f32 %v11773_v24, %v1441_v6 }
 0x4e0   : > { %v5685_v40 = vpop.f32.mrf.mxu0  ;;  %v2054_v37 = vadd.f32 %v11767_v2, %v1436_v63 }
 0x4e1   : > { %v5733_v20 = vadd.f32 %v5685_v40, %v5119_v9  ;;  %v2670_v36 = vadd.f32 %v11774_v7, %v2056_v12 }
 0x4e2   : > { %v2668_v13 = vadd.f32 %v11768_v0, %v2054_v37 }
 0x4e3   : > { %5769 = vst [vmem:[%s6837_s11 + $0xe0] sm:$0xff] %v5733_v20  ;;  %v6021_v49 = vmul.f32 %v5956_v4, %v5733_v20  ;;  %v5083_v58 = vpop.f32.mrf.mxu3 }
 0x4e5   : > { %v6057_v38 = vadd.f32 %v6056_v62, %v6021_v49  ;;  %v6102_v52 = vmul.f32 %v6021_v49, %v5733_v20  ;;  %v3895_v62 = vadd.f32 %v3853_v51, %v11766_v29  ;;  %v3855_v26 = vpop.f32.mrf.mxu1  ;;  %v11769_v49 = vld [vmem:[#allocation3_spill] sm:$0xff] }
 0x4e6   : > { %v3282_v28 = vadd.f32 %v11769_v49, %v2668_v13 }
 0x4e7   : > { %v6137_v11 = vadd.f32 %v6136_v56, %v6102_v52  ;;  %v4509_v9 = vadd.f32 %v4467_v17, %v3895_v62  ;;  %v4469_v40 = vpop.f32.mrf.mxu2  ;;  %v5976_v52 = vpop.permute.xlu2 %5975 }
 0x4e8   : > { %v5687_v55 = vpop.f32.mrf.mxu0 }
 0x4e9   : > { %v5734_v46 = vadd.f32 %v5687_v55, %v5120_v21  ;;  %v5123_v20 = vadd.f32 %v5081_v30, %v4509_v9  ;;  %v3896_v21 = vadd.f32 %v3855_v26, %v3282_v28 }
 0x4eb   : > { %5770 = vst [vmem:[%s6837_s11 + $0xe8] sm:$0xff] %v5734_v46  ;;  %v6022_v27 = vmul.f32 %v5961_v35, %v5734_v46  ;;  %v4510_v5 = vadd.f32 %v4469_v40, %v3896_v21 }
 0x4ed   : > { %v6058_v39 = vadd.f32 %v6057_v38, %v6022_v27  ;;  %v6103_v8 = vmul.f32 %v6022_v27, %v5734_v46  ;;  %v3858_v35 = vpop.f32.mrf.mxu1  ;;  %v5124_v57 = vadd.f32 %v5083_v58, %v4510_v5  ;;  %v5086_v27 = vpop.f32.mrf.mxu3 }
 0x4ef   : > { %v6138_v33 = vadd.f32 %v6137_v11, %v6103_v8  ;;  %v4472_v42 = vpop.f32.mrf.mxu2  ;;  %v5991_v62 = vpop.permute.xlu2 %5990 }
 0x4f0   : > { %v5690_v3 = vpop.f32.mrf.mxu0 }
 0x4f1   : > { %v5735_v50 = vadd.f32 %v5690_v3, %v5121_v44 }
 0x4f3   : > { %5771 = vst [vmem:[%s6837_s11 + $0xf0] sm:$0xff] %v5735_v50  ;;  %v6023_v1 = vmul.f32 %v5966_v19, %v5735_v50 }
 0x4f5   : > { %v6059_v48 = vadd.f32 %v6058_v39, %v6023_v1  ;;  %v6104_v34 = vmul.f32 %v6023_v1, %v5735_v50  ;;  %v3897_v39 = vadd.f32 %v3858_v35, %v11772_v41  ;;  %v3860_v19 = vpop.f32.mrf.mxu1  ;;  %v11775_v1 = vld [vmem:[#allocation71_spill] sm:$0xff] }
 0x4f6   : > { %v3284_v17 = vadd.f32 %v11775_v1, %v2670_v36 }
 0x4f7   : > { %v6139_v61 = vadd.f32 %v6138_v33, %v6104_v34  ;;  %v4511_v44 = vadd.f32 %v4472_v42, %v3897_v39  ;;  %v4474_v34 = vpop.f32.mrf.mxu2 }
 0x4f8   : > { %v5692_v22 = vpop.f32.mrf.mxu0  ;;  %v3898_v30 = vadd.f32 %v3860_v19, %v3284_v17 }
 0x4f9   : > { %v5736_v47 = vadd.f32 %v5692_v22, %v5122_v31  ;;  %v5125_v50 = vadd.f32 %v5086_v27, %v4511_v44 }
 0x4fa   : > { %v4512_v22 = vadd.f32 %v4474_v34, %v3898_v30 }
 0x4fb   : > { %5772 = vst [vmem:[%s6837_s11 + $0xf8] sm:$0xff] %v5736_v47  ;;  %v6024_v43 = vmul.f32 %v5971_v16, %v5736_v47 }
 0x4fd   : > { %v6060_v56 = vadd.f32 %v6059_v48, %v6024_v43  ;;  %v6105_v60 = vmul.f32 %v6024_v43, %v5736_v47  ;;  %v5986_v48 = vpop.permute.xlu1 %5985 }
 0x4ff   : > { %v6140_v4 = vadd.f32 %v6139_v61, %v6105_v60  ;;  %v5088_v61 = vpop.f32.mrf.mxu3 }
 0x500   : > { %v5695_v18 = vpop.f32.mrf.mxu0  ;;  %v5126_v23 = vadd.f32 %v5088_v61, %v4512_v22 }
 0x501   : > { %v5737_v38 = vadd.f32 %v5695_v18, %v5123_v20  ;;  %v6029_v18 = vld [vmem:[%s11150_s6] sm:$0x1] }
 0x503   : > { %5773 = vst [vmem:[%s6837_s11 + $0x100] sm:$0xff] %v5737_v38  ;;  %v6025_v11 = vmul.f32 %v5976_v52, %v5737_v38 }
 0x505   : > { %v6061_v55 = vadd.f32 %v6060_v56, %v6025_v11  ;;  %v6106_v46 = vmul.f32 %v6025_v11, %v5737_v38  ;;  %v6073_v38 = vld [vmem:[%s11151_s7] sm:$0x1] }
 0x507   : > { %v6141_v59 = vadd.f32 %v6140_v4, %v6106_v46 }
 0x508   : > { %v5697_v14 = vpop.f32.mrf.mxu0 }
 0x509   : > { %v5738_v15 = vadd.f32 %v5697_v14, %v5124_v57 }
 0x50b   : > { %5774 = vst [vmem:[%s6837_s11 + $0x108] sm:$0xff] %v5738_v15  ;;  %v6026_v8 = vmul.f32 %v5981_v54, %v5738_v15 }
 0x50d   : > { %v6062_v33 = vadd.f32 %v6061_v55, %v6026_v8  ;;  %v6107_v3 = vmul.f32 %v6026_v8, %v5738_v15 }
 0x50f   : > { %v6142_v51 = vadd.f32 %v6141_v59, %v6107_v3 }
 0x510   : > { %v5700_v10 = vpop.f32.mrf.mxu0 }
 0x511   : > { %v5739_v45 = vadd.f32 %v5700_v10, %v5125_v50 }
 0x513   : > { %5775 = vst [vmem:[%s6837_s11 + $0x110] sm:$0xff] %v5739_v45  ;;  %v6027_v31 = vmul.f32 %v5986_v48, %v5739_v45 }
 0x515   : > { %v6063_v47 = vadd.f32 %v6062_v33, %v6027_v31  ;;  %v6108_v16 = vmul.f32 %v6027_v31, %v5739_v45 }
 0x517   : > { %v6143_v32 = vadd.f32 %v6142_v51, %v6108_v16 }
 0x518   : > { %v5702_v63 = vpop.f32.mrf.mxu0 }
 0x519   : > { %v5740_v29 = vadd.f32 %v5702_v63, %v5126_v23 }
 0x51b   : > { %5776 = vst [vmem:[%s6837_s11 + $0x118] sm:$0xff] %v5740_v29  ;;  %v6028_v43 = vmul.f32 %v5991_v62, %v5740_v29 }
 0x51d   : > { %v6064_v26 = vadd.f32 %v6063_v47, %v6028_v43  ;;  %v6109_v2 = vmul.f32 %v6028_v43, %v5740_v29 }
 0x51f   : > { %v6065_v37 = vrot.slane %v6064_v26, 4  ;;  %v6144_v9 = vadd.f32 %v6143_v32, %v6109_v2 }
 0x521   : > { %v6066_v56 = vadd.f32 %v6065_v37, %v6064_v26  ;;  %v6145_v60 = vrot.slane %v6144_v9, 4 }
 0x523   : > { %v6067_v40 = vrot.slane %v6066_v56, 2  ;;  %v6146_v0 = vadd.f32 %v6145_v60, %v6144_v9 }
 0x525   : > { %v6068_v13 = vadd.f32 %v6067_v40, %v6066_v56  ;;  %v6147_v20 = vrot.slane %v6146_v0, 2 }
 0x527   : > { %v6069_v4 = vrot.slane %v6068_v13, 1  ;;  %v6148_v58 = vadd.f32 %v6147_v20, %v6146_v0 }
 0x529   : > { %v6070_v49 = vadd.f32 %v6069_v4, %v6068_v13  ;;  %v6149_v28 = vrot.slane %v6148_v58, 1 }
 0x52b   : > { %v6071_v52 = vadd.f32 %v6070_v49, %v6029_v18  ;;  %v6150_v21 = vadd.f32 %v6149_v28, %v6148_v58 }
 0x52d   : > { %6072 = vst [vmem:[%s11150_s6] sm:$0x1] %v6071_v52  ;;  %v6151_v11 = vadd.f32 %v6150_v21, %v6073_v38 }
 0x52f   : > { %6152 = vst [vmem:[%s11151_s7] sm:$0x1] %v6151_v11 }
 0x530 PF: > { %s18_s24 = sadd.s32 1, %s6777_s24  }
 0x531   : > { %p15_p5 = scmp.ge.s32.totalorder %s18_s24, 4  }
 0x533   :  { %17 = sbr.rel (!%p15_p5) target bundleno = 1 (0x1), region = 98 }

</bundles_post_ra>
